<compile_context>
chip_gen: v5e
topology: v5e:2x2
jax: 0.10.0
libtpu: 0.0.40
codegen_flags: <defaults>
</compile_context>

<pallas_src>
import functools

import jax
import jax.numpy as jnp
from jax.experimental import pallas as pl
from jax.experimental.pallas import tpu as pltpu


def _round_up(x, m):
    return (x + m - 1) // m * m


# ----------------------------------------------------------------------------
# In-kernel exact-erf GELU (nn.GELU default).  Abramowitz & Stegun 7.1.26,
# |erf err| <= 1.5e-7 -- far below bf16 resolution.  The 1/(1+p|x|) divide uses
# the approximate EUP reciprocal (error ~2^-12, also below bf16 resolution).
# ----------------------------------------------------------------------------
def _erf(x):
    p = 0.3275911
    a1, a2, a3, a4, a5 = (0.254829592, -0.284496736, 1.421413741,
                          -1.453152027, 1.061405429)
    ax = jnp.abs(x)
    t = pl.reciprocal(1.0 + p * ax, approx=True)      # EUP slot, nearly free
    poly = ((((a5 * t + a4) * t + a3) * t + a2) * t + a1) * t
    y = 1.0 - poly * jnp.exp(-ax * ax)
    return jnp.where(x < 0.0, -y, y)


def _gelu_exact(x):
    return 0.5 * x * (1.0 + _erf(x * 0.7071067811865476))


# ----------------------------------------------------------------------------
# Tiled matmul with fused bias + activation epilogue
# ----------------------------------------------------------------------------
def _matmul_kernel(a_ref, b_ref, bias_ref, o_ref, acc_ref, *, activation):
    k = pl.program_id(2)

    @pl.when(k == 0)
    def _():
        acc_ref[...] = jnp.zeros_like(acc_ref)

    # Cast the activation tile to bf16 *in-kernel* (hides under the MXU) rather
    # than paying a separate XLA pass over the whole matrix in the wrapper.
    a = a_ref[...].astype(jnp.bfloat16)
    acc_ref[...] += jnp.dot(a, b_ref[...], preferred_element_type=jnp.float32)

    @pl.when(k == pl.num_programs(2) - 1)
    def _():
        y = acc_ref[...] + bias_ref[...]
        if activation == "relu":
            y = jnp.maximum(y, 0.0)
        elif activation is not None:
            raise ValueError(activation)
        o_ref[...] = y.astype(o_ref.dtype)


def _fit(size, tile, min_tile=128):
    """Return (padded_size, block_size) for one matmul dimension.

    Prefers a full-extent block for small dims and a divisor of `size` for
    large dims so big operands never need a padded HBM copy.
    """
    if size <= tile:
        return size, size                 # single full-extent block, no pad
    t = tile
    while t >= min_tile:
        if size % t == 0:
            return size, t                # divides -> no pad
        t //= 2
    return _round_up(size, tile), tile    # last resort: pad


def pallas_matmul(a, b, bias=None, activation=None, out_dtype=jnp.float32,
                  tm=512, tn=512, tk=512):
    """out = activation(a @ b + bias); a:[M,K], b:[K,N], bias:[N] or None.

    MXU operands in bfloat16 (A cast in-kernel), float32 accumulation/epilogue.
    """
    M, K = a.shape
    K2, N = b.shape
    assert K == K2
    if bias is None:
        bias = jnp.zeros((N,), jnp.float32)

    Mp, TM = _fit(M, tm)
    Kp, TK = _fit(K, tk)
    Np, TN = _fit(N, tn)

    b = b.astype(jnp.bfloat16)                       # weights: tiny one-time cast
    bias = bias.reshape(1, N).astype(jnp.float32)
    if (Mp, Kp) != (M, K):
        a = jnp.pad(a, ((0, Mp - M), (0, Kp - K)))
    if (Kp, Np) != (K, N):
        b = jnp.pad(b, ((0, Kp - K), (0, Np - N)))
    if Np != N:
        bias = jnp.pad(bias, ((0, 0), (0, Np - N)))

    grid = (Mp // TM, Np // TN, Kp // TK)
    out = pl.pallas_call(
        functools.partial(_matmul_kernel, activation=activation),
        out_shape=jax.ShapeDtypeStruct((Mp, Np), out_dtype),
        grid=grid,
        in_specs=[
            pl.BlockSpec((TM, TK), lambda i, j, k: (i, k)),
            pl.BlockSpec((TK, TN), lambda i, j, k: (k, j)),
            pl.BlockSpec((1, TN), lambda i, j, k: (0, j)),
        ],
        out_specs=pl.BlockSpec((TM, TN), lambda i, j, k: (i, j)),
        scratch_shapes=[pltpu.VMEM((TM, TN), jnp.float32)],
        compiler_params=pltpu.CompilerParams(
            dimension_semantics=("parallel", "parallel", "arbitrary")),
    )(a, b, bias)
    if (Mp, Np) != (M, N):
        out = out[:M, :N]
    return out


# ----------------------------------------------------------------------------
# Depthwise 3x3 conv + exact GELU
#   - one full image per grid step (auto-pipelined / double-buffered DMA)
#   - zero halo synthesized in VMEM scratch (no padded HBM copy)
# ----------------------------------------------------------------------------
def _dwconv_gelu_kernel(x_ref, w_ref, b_ref, o_ref, xpad_ref):
    _, H, W, C = x_ref.shape
    dt = xpad_ref.dtype

    # Build the 1-pixel zero halo in VMEM.  Re-zeroed every step so the kernel
    # is correct under megacore ("parallel") sharding of the batch axis.
    xpad_ref[pl.ds(0, 1), :, :] = jnp.zeros((1, W + 2, C), dt)
    xpad_ref[pl.ds(H + 1, 1), :, :] = jnp.zeros((1, W + 2, C), dt)
    xpad_ref[:, pl.ds(0, 1), :] = jnp.zeros((H + 2, 1, C), dt)
    xpad_ref[:, pl.ds(W + 1, 1), :] = jnp.zeros((H + 2, 1, C), dt)
    xpad_ref[pl.ds(1, H), pl.ds(1, W), :] = x_ref[0]

    acc = None
    # Hoist the dx (sublane) shift out of the dy loop: 3 realigned loads
    # instead of 9; the dy slice is a cheap leading-axis (vreg-row) select.
    for dx in range(3):
        xs = xpad_ref[:, pl.ds(dx, W), :].astype(jnp.float32)    # (H+2, W, C)
        for dy in range(3):
            tap = xs[dy:dy + H] * w_ref[dy * 3 + dx]
            acc = tap if acc is None else acc + tap
    y = _gelu_exact(acc + b_ref[...])
    o_ref[0] = y.astype(o_ref.dtype)


def dwconv3x3_gelu(x_nhwc, w, b, out_dtype=jnp.bfloat16):
    """Depthwise 3x3 conv (stride 1, pad 1, groups=C) followed by exact GELU.

    x_nhwc: un-padded [B, H, W, C]; w: torch layout [C, 1, 3, 3]; b: [C].
    """
    B, H, W, C = x_nhwc.shape
    w9 = jnp.transpose(w.reshape(C, 9), (1, 0)).reshape(9, 1, C)
    w9 = w9.astype(jnp.float32)
    b2 = b.reshape(1, C).astype(jnp.float32)
    return pl.pallas_call(
        _dwconv_gelu_kernel,
        out_shape=jax.ShapeDtypeStruct((B, H, W, C), out_dtype),
        grid=(B,),
        in_specs=[
            pl.BlockSpec((1, H, W, C), lambda bi: (bi, 0, 0, 0)),
            pl.BlockSpec((9, 1, C), lambda bi: (0, 0, 0)),
            pl.BlockSpec((1, C), lambda bi: (0, 0)),
        ],
        out_specs=pl.BlockSpec((1, H, W, C), lambda bi: (bi, 0, 0, 0)),
        scratch_shapes=[pltpu.VMEM((H + 2, W + 2, C), x_nhwc.dtype)],
        compiler_params=pltpu.CompilerParams(
            dimension_semantics=("parallel",)),
    )(x_nhwc, w9, b2)


# ----------------------------------------------------------------------------
# Mlp forward (matches the PyTorch module, eval semantics)
# ----------------------------------------------------------------------------
def mlp_forward(params, x, H, W, linear=False):
    """x: [B, N, C] tokens with N == H*W (row-major, as in the torch module)."""
    B, N, C = x.shape
    assert N == H * W
    hidden = params['fc1_w'].shape[1]
    c_out = params['fc2_w'].shape[1]

    h = pallas_matmul(x.reshape(B * N, C), params['fc1_w'], params['fc1_b'],
                      activation='relu' if linear else None,
                      out_dtype=jnp.bfloat16)
    h = dwconv3x3_gelu(h.reshape(B, H, W, hidden), params['dw_w'], params['dw_b'],
                       out_dtype=jnp.bfloat16)
    out = pallas_matmul(h.reshape(B * N, hidden), params['fc2_w'], params['fc2_b'],
                        activation=None, out_dtype=jnp.float32)
    # TODO(synk): Dropout(p=0.0) is identity under eval semantics.
    return out.reshape(B, N, c_out)


# ----------------------------------------------------------------------------
# Deterministic params + pure-JAX reference
# ----------------------------------------------------------------------------
def make_params(key, in_features, hidden_features, out_features=None):
    out_features = out_features or in_features
    ks = jax.random.split(key, 6)
    n = lambda k, shape, std: std * jax.random.normal(k, shape, jnp.float32)
    return {
        'fc1_w': n(ks[0], (in_features, hidden_features), 0.02),   # [in, out]
        'fc1_b': n(ks[1], (hidden_features,), 0.02),
        'dw_w':  n(ks[2], (hidden_features, 1, 3, 3), 0.05),       # torch [C,1,3,3]
        'dw_b':  n(ks[3], (hidden_features,), 0.02),
        'fc2_w': n(ks[4], (hidden_features, out_features), 0.02),
        'fc2_b': n(ks[5], (out_features,), 0.02),
    }


def mlp_reference(params, x, H, W, linear=False):
    B, N, C = x.shape
    hi = jax.lax.Precision.HIGHEST
    h = jnp.matmul(x.reshape(B * N, C), params['fc1_w'], precision=hi) + params['fc1_b']
    if linear:
        h = jnp.maximum(h, 0.0)
    hidden = h.shape[-1]
    img = h.reshape(B, H, W, hidden)
    k = jnp.transpose(params['dw_w'], (2, 3, 1, 0))                # -> HWIO (I=1)
    y = jax.lax.conv_general_dilated(
        img, k, window_strides=(1, 1), padding=((1, 1), (1, 1)),
        dimension_numbers=('NHWC', 'HWIO', 'NHWC'),
        feature_group_count=hidden, precision=hi) + params['dw_b']
    y = jax.nn.gelu(y, approximate=False)
    out = jnp.matmul(y.reshape(B * N, hidden), params['fc2_w'], precision=hi)
    out = out + params['fc2_b']
    return out.reshape(B, N, -1)


if __name__ == "__main__":
    B, H, W = 2, 16, 16
    C, HIDDEN = 64, 256                  # small PVT-like stage (mlp_ratio = 4)
    N = H * W
    key = jax.random.PRNGKey(0)
    kx, kp = jax.random.split(key)
    x = jax.random.normal(kx, (B, N, C), jnp.float32)
    params = make_params(kp, C, HIDDEN)

    fwd = jax.jit(functools.partial(mlp_forward, H=H, W=W, linear=True))
    out = jax.block_until_ready(fwd(params, x))
    assert out.shape == (B, N, C), out.shape
    assert bool(jnp.all(jnp.isfinite(out)))

    ref = mlp_reference(params, x, H, W, linear=True)
    err = float(jnp.max(jnp.abs(out - ref)))
    assert err < 5e-3, f"max |err| vs reference = {err}"   # bf16-activation tolerance
    print("KERNEL_OK")
</pallas_src>

<mosaic_0001>
module attributes {stable_mosaic.version = 11 : i64} {
  func.func @_matmul_kernel(%arg0: i32, %arg1: i32, %arg2: i32, %arg3: memref<512x64xf32, #tpu.memory_space<vmem>>, %arg4: memref<64x256xbf16, #tpu.memory_space<vmem>>, %arg5: memref<1x256xf32, #tpu.memory_space<vmem>>, %arg6: memref<512x256xbf16, #tpu.memory_space<vmem>>, %arg7: memref<512x256xf32, #tpu.memory_space<vmem>>) attributes {dimension_semantics = [#tpu.dimension_semantics<parallel>, #tpu.dimension_semantics<parallel>, #tpu.dimension_semantics<arbitrary>], iteration_bounds = array<i64: 1, 1, 1>, scalar_prefetch = 0 : i64, scratch_operands = 1 : i64, tpu.core_type = #tpu.core_type<tc>, window_params = [{transform_indices = @transform_0, window_bounds = array<i64: 512, 64>}, {transform_indices = @transform_1, window_bounds = array<i64: 64, 256>}, {transform_indices = @transform_2, window_bounds = array<i64: 1, 256>}, {transform_indices = @transform_3, window_bounds = array<i64: 512, 256>}]} {
    %c0_i32 = arith.constant 0 : i32
    %0 = arith.cmpi eq, %arg2, %c0_i32 : i32
    %1 = arith.extui %0 : i1 to i32
    %c0_i32_0 = arith.constant 0 : i32
    %2 = arith.cmpi ne, %1, %c0_i32_0 : i32
    scf.if %2 {
      %cst_10 = arith.constant 0.000000e+00 : f32
      %13 = vector.broadcast %cst_10 : f32 to vector<512x256xf32>
      %c0_11 = arith.constant 0 : index
      %c0_12 = arith.constant 0 : index
      %14 = vector.load %arg7[%c0_11, %c0_12] : memref<512x256xf32, #tpu.memory_space<vmem>>, vector<512x256xf32>
      tpu.vector_store %arg7[%c0_11, %c0_12], %13 {strides = array<i32>} : memref<512x256xf32, #tpu.memory_space<vmem>>, vector<512x256xf32>,
    } else {
    }
    %c0 = arith.constant 0 : index
    %c0_1 = arith.constant 0 : index
    %3 = vector.load %arg3[%c0, %c0_1] : memref<512x64xf32, #tpu.memory_space<vmem>>, vector<512x64xf32>
    %4 = arith.truncf %3 : vector<512x64xf32> to vector<512x64xbf16>
    %c0_2 = arith.constant 0 : index
    %c0_3 = arith.constant 0 : index
    %5 = vector.load %arg7[%c0_2, %c0_3] : memref<512x256xf32, #tpu.memory_space<vmem>>, vector<512x256xf32>
    %c0_4 = arith.constant 0 : index
    %c0_5 = arith.constant 0 : index
    %6 = vector.load %arg4[%c0_4, %c0_5] : memref<64x256xbf16, #tpu.memory_space<vmem>>, vector<64x256xbf16>
    %cst = arith.constant dense<0.000000e+00> : vector<512x256xf32>
    %7 = tpu.matmul %4, %6, %cst {dimension_numbers = #tpu.dot_dimension_numbers<[1], [0], [0], [1], [0, 0, 1, 1], [], []>} : vector<512x64xbf16>, vector<64x256xbf16>, vector<512x256xf32> -> vector<512x256xf32>
    %8 = arith.addf %5, %7 : vector<512x256xf32>
    %c0_6 = arith.constant 0 : index
    %c0_7 = arith.constant 0 : index
    %9 = vector.load %arg7[%c0_6, %c0_7] : memref<512x256xf32, #tpu.memory_space<vmem>>, vector<512x256xf32>
    tpu.vector_store %arg7[%c0_6, %c0_7], %8 {strides = array<i32>} : memref<512x256xf32, #tpu.memory_space<vmem>>, vector<512x256xf32>,
    %c0_i32_8 = arith.constant 0 : i32
    %10 = arith.cmpi eq, %arg2, %c0_i32_8 : i32
    %11 = arith.extui %10 : i1 to i32
    %c0_i32_9 = arith.constant 0 : i32
    %12 = arith.cmpi ne, %11, %c0_i32_9 : i32
    scf.if %12 {
      %c0_10 = arith.constant 0 : index
      %c0_11 = arith.constant 0 : index
      %13 = vector.load %arg7[%c0_10, %c0_11] : memref<512x256xf32, #tpu.memory_space<vmem>>, vector<512x256xf32>
      %c0_12 = arith.constant 0 : index
      %c0_13 = arith.constant 0 : index
      %14 = vector.load %arg5[%c0_12, %c0_13] : memref<1x256xf32, #tpu.memory_space<vmem>>, vector<1x256xf32>
      %15 = vector.broadcast %14 : vector<1x256xf32> to vector<512x256xf32>
      %16 = arith.addf %13, %15 : vector<512x256xf32>
      %cst_14 = arith.constant 0.000000e+00 : f32
      %17 = vector.broadcast %cst_14 : f32 to vector<512x256xf32>
      %18 = arith.maximumf %16, %17 : vector<512x256xf32>
      %19 = arith.truncf %18 : vector<512x256xf32> to vector<512x256xbf16>
      %c0_15 = arith.constant 0 : index
      %c0_16 = arith.constant 0 : index
      %20 = vector.load %arg6[%c0_15, %c0_16] : memref<512x256xbf16, #tpu.memory_space<vmem>>, vector<512x256xbf16>
      tpu.vector_store %arg6[%c0_15, %c0_16], %19 {strides = array<i32>} : memref<512x256xbf16, #tpu.memory_space<vmem>>, vector<512x256xbf16>,
    } else {
    }
    return
  }
  func.func @transform_0(%arg0: i32, %arg1: i32, %arg2: i32) -> (i32, i32) {
    %c0_i32 = arith.constant 0 : i32
    return %arg0, %arg2 : i32, i32
  }
  func.func @transform_1(%arg0: i32, %arg1: i32, %arg2: i32) -> (i32, i32) {
    %c0_i32 = arith.constant 0 : i32
    return %arg2, %arg1 : i32, i32
  }
  func.func @transform_2(%arg0: i32, %arg1: i32, %arg2: i32) -> (i32, i32) {
    %c0_i32 = arith.constant 0 : i32
    %c0_i32_0 = arith.constant 0 : i32
    return %c0_i32, %arg1 : i32, i32
  }
  func.func @transform_3(%arg0: i32, %arg1: i32, %arg2: i32) -> (i32, i32) {
    %c0_i32 = arith.constant 0 : i32
    return %arg0, %arg1 : i32, i32
  }
}

module attributes {stable_mosaic.version = 11 : i64} {
  func.func @_matmul_kernel(%arg0: i32, %arg1: i32, %arg2: i32, %arg3: memref<512x256xbf16, #tpu.memory_space<vmem>>, %arg4: memref<256x64xbf16, #tpu.memory_space<vmem>>, %arg5: memref<1x64xf32, #tpu.memory_space<vmem>>, %arg6: memref<512x64xf32, #tpu.memory_space<vmem>>, %arg7: memref<512x64xf32, #tpu.memory_space<vmem>>) attributes {dimension_semantics = [#tpu.dimension_semantics<parallel>, #tpu.dimension_semantics<parallel>, #tpu.dimension_semantics<arbitrary>], iteration_bounds = array<i64: 1, 1, 1>, scalar_prefetch = 0 : i64, scratch_operands = 1 : i64, tpu.core_type = #tpu.core_type<tc>, window_params = [{transform_indices = @transform_0, window_bounds = array<i64: 512, 256>}, {transform_indices = @transform_1, window_bounds = array<i64: 256, 64>}, {transform_indices = @transform_2, window_bounds = array<i64: 1, 64>}, {transform_indices = @transform_3, window_bounds = array<i64: 512, 64>}]} {
    %c0_i32 = arith.constant 0 : i32
    %0 = arith.cmpi eq, %arg2, %c0_i32 : i32
    %1 = arith.extui %0 : i1 to i32
    %c0_i32_0 = arith.constant 0 : i32
    %2 = arith.cmpi ne, %1, %c0_i32_0 : i32
    scf.if %2 {
      %cst_10 = arith.constant 0.000000e+00 : f32
      %12 = vector.broadcast %cst_10 : f32 to vector<512x64xf32>
      %c0_11 = arith.constant 0 : index
      %c0_12 = arith.constant 0 : index
      %13 = vector.load %arg7[%c0_11, %c0_12] : memref<512x64xf32, #tpu.memory_space<vmem>>, vector<512x64xf32>
      tpu.vector_store %arg7[%c0_11, %c0_12], %12 {strides = array<i32>} : memref<512x64xf32, #tpu.memory_space<vmem>>, vector<512x64xf32>,
    } else {
    }
    %c0 = arith.constant 0 : index
    %c0_1 = arith.constant 0 : index
    %3 = vector.load %arg3[%c0, %c0_1] : memref<512x256xbf16, #tpu.memory_space<vmem>>, vector<512x256xbf16>
    %c0_2 = arith.constant 0 : index
    %c0_3 = arith.constant 0 : index
    %4 = vector.load %arg7[%c0_2, %c0_3] : memref<512x64xf32, #tpu.memory_space<vmem>>, vector<512x64xf32>
    %c0_4 = arith.constant 0 : index
    %c0_5 = arith.constant 0 : index
    %5 = vector.load %arg4[%c0_4, %c0_5] : memref<256x64xbf16, #tpu.memory_space<vmem>>, vector<256x64xbf16>
    %cst = arith.constant dense<0.000000e+00> : vector<512x64xf32>
    %6 = tpu.matmul %3, %5, %cst {dimension_numbers = #tpu.dot_dimension_numbers<[1], [0], [0], [1], [0, 0, 1, 1], [], []>} : vector<512x256xbf16>, vector<256x64xbf16>, vector<512x64xf32> -> vector<512x64xf32>
    %7 = arith.addf %4, %6 : vector<512x64xf32>
    %c0_6 = arith.constant 0 : index
    %c0_7 = arith.constant 0 : index
    %8 = vector.load %arg7[%c0_6, %c0_7] : memref<512x64xf32, #tpu.memory_space<vmem>>, vector<512x64xf32>
    tpu.vector_store %arg7[%c0_6, %c0_7], %7 {strides = array<i32>} : memref<512x64xf32, #tpu.memory_space<vmem>>, vector<512x64xf32>,
    %c0_i32_8 = arith.constant 0 : i32
    %9 = arith.cmpi eq, %arg2, %c0_i32_8 : i32
    %10 = arith.extui %9 : i1 to i32
    %c0_i32_9 = arith.constant 0 : i32
    %11 = arith.cmpi ne, %10, %c0_i32_9 : i32
    scf.if %11 {
      %c0_10 = arith.constant 0 : index
      %c0_11 = arith.constant 0 : index
      %12 = vector.load %arg7[%c0_10, %c0_11] : memref<512x64xf32, #tpu.memory_space<vmem>>, vector<512x64xf32>
      %c0_12 = arith.constant 0 : index
      %c0_13 = arith.constant 0 : index
      %13 = vector.load %arg5[%c0_12, %c0_13] : memref<1x64xf32, #tpu.memory_space<vmem>>, vector<1x64xf32>
      %14 = vector.broadcast %13 : vector<1x64xf32> to vector<512x64xf32>
      %15 = arith.addf %12, %14 : vector<512x64xf32>
      %c0_14 = arith.constant 0 : index
      %c0_15 = arith.constant 0 : index
      %16 = vector.load %arg6[%c0_14, %c0_15] : memref<512x64xf32, #tpu.memory_space<vmem>>, vector<512x64xf32>
      tpu.vector_store %arg6[%c0_14, %c0_15], %15 {strides = array<i32>} : memref<512x64xf32, #tpu.memory_space<vmem>>, vector<512x64xf32>,
    } else {
    }
    return
  }
  func.func @transform_0(%arg0: i32, %arg1: i32, %arg2: i32) -> (i32, i32) {
    %c0_i32 = arith.constant 0 : i32
    return %arg0, %arg2 : i32, i32
  }
  func.func @transform_1(%arg0: i32, %arg1: i32, %arg2: i32) -> (i32, i32) {
    %c0_i32 = arith.constant 0 : i32
    return %arg2, %arg1 : i32, i32
  }
  func.func @transform_2(%arg0: i32, %arg1: i32, %arg2: i32) -> (i32, i32) {
    %c0_i32 = arith.constant 0 : i32
    %c0_i32_0 = arith.constant 0 : i32
    return %c0_i32, %arg1 : i32, i32
  }
  func.func @transform_3(%arg0: i32, %arg1: i32, %arg2: i32) -> (i32, i32) {
    %c0_i32 = arith.constant 0 : i32
    return %arg0, %arg1 : i32, i32
  }
}

module attributes {stable_mosaic.version = 11 : i64} {
  func.func @_dwconv_gelu_kernel(%arg0: i32, %arg1: memref<1x16x16x256xbf16, #tpu.memory_space<vmem>>, %arg2: memref<9x1x256xf32, #tpu.memory_space<vmem>>, %arg3: memref<1x256xf32, #tpu.memory_space<vmem>>, %arg4: memref<1x16x16x256xbf16, #tpu.memory_space<vmem>>, %arg5: memref<18x18x256xbf16, #tpu.memory_space<vmem>>) attributes {dimension_semantics = [#tpu.dimension_semantics<parallel>], iteration_bounds = array<i64: 2>, scalar_prefetch = 0 : i64, scratch_operands = 1 : i64, tpu.core_type = #tpu.core_type<tc>, window_params = [{transform_indices = @transform_0, window_bounds = array<i64: 1, 16, 16, 256>}, {pipeline_mode = #tpu.pipeline_mode<synchronous>, transform_indices = @transform_1, window_bounds = array<i64: 9, 1, 256>}, {pipeline_mode = #tpu.pipeline_mode<synchronous>, transform_indices = @transform_2, window_bounds = array<i64: 1, 256>}, {transform_indices = @transform_3, window_bounds = array<i64: 1, 16, 16, 256>}]} {
    %cst = arith.constant 0.000000e+00 : bf16
    %0 = vector.broadcast %cst : bf16 to vector<1x18x256xbf16>
    %c0 = arith.constant 0 : index
    %c0_0 = arith.constant 0 : index
    %c0_1 = arith.constant 0 : index
    %1 = vector.load %arg5[%c0, %c0_0, %c0_1] : memref<18x18x256xbf16, #tpu.memory_space<vmem>>, vector<1x18x256xbf16>
    tpu.vector_store %arg5[%c0, %c0_0, %c0_1], %0 {strides = array<i32>} : memref<18x18x256xbf16, #tpu.memory_space<vmem>>, vector<1x18x256xbf16>,
    %cst_2 = arith.constant 0.000000e+00 : bf16
    %2 = vector.broadcast %cst_2 : bf16 to vector<1x18x256xbf16>
    %c17 = arith.constant 17 : index
    %c0_3 = arith.constant 0 : index
    %c0_4 = arith.constant 0 : index
    %3 = vector.load %arg5[%c17, %c0_3, %c0_4] : memref<18x18x256xbf16, #tpu.memory_space<vmem>>, vector<1x18x256xbf16>
    tpu.vector_store %arg5[%c17, %c0_3, %c0_4], %2 {strides = array<i32>} : memref<18x18x256xbf16, #tpu.memory_space<vmem>>, vector<1x18x256xbf16>,
    %cst_5 = arith.constant 0.000000e+00 : bf16
    %4 = vector.broadcast %cst_5 : bf16 to vector<18x1x256xbf16>
    %c0_6 = arith.constant 0 : index
    %c0_7 = arith.constant 0 : index
    %c0_8 = arith.constant 0 : index
    %5 = vector.load %arg5[%c0_6, %c0_7, %c0_8] : memref<18x18x256xbf16, #tpu.memory_space<vmem>>, vector<18x1x256xbf16>
    tpu.vector_store %arg5[%c0_6, %c0_7, %c0_8], %4 {strides = array<i32>} : memref<18x18x256xbf16, #tpu.memory_space<vmem>>, vector<18x1x256xbf16>,
    %cst_9 = arith.constant 0.000000e+00 : bf16
    %6 = vector.broadcast %cst_9 : bf16 to vector<18x1x256xbf16>
    %c0_10 = arith.constant 0 : index
    %c17_11 = arith.constant 17 : index
    %c0_12 = arith.constant 0 : index
    %7 = vector.load %arg5[%c0_10, %c17_11, %c0_12] : memref<18x18x256xbf16, #tpu.memory_space<vmem>>, vector<18x1x256xbf16>
    tpu.vector_store %arg5[%c0_10, %c17_11, %c0_12], %6 {strides = array<i32>} : memref<18x18x256xbf16, #tpu.memory_space<vmem>>, vector<18x1x256xbf16>,
    %c0_13 = arith.constant 0 : index
    %c0_14 = arith.constant 0 : index
    %c0_15 = arith.constant 0 : index
    %c0_16 = arith.constant 0 : index
    %8 = vector.load %arg1[%c0_13, %c0_14, %c0_15, %c0_16] : memref<1x16x16x256xbf16, #tpu.memory_space<vmem>>, vector<1x16x16x256xbf16>
    %9 = vector.shape_cast %8 : vector<1x16x16x256xbf16> to vector<16x16x256xbf16>
    %c1 = arith.constant 1 : index
    %c1_17 = arith.constant 1 : index
    %c0_18 = arith.constant 0 : index
    %10 = vector.load %arg5[%c1, %c1_17, %c0_18] : memref<18x18x256xbf16, #tpu.memory_space<vmem>>, vector<16x16x256xbf16>
    tpu.vector_store %arg5[%c1, %c1_17, %c0_18], %9 {strides = array<i32>} : memref<18x18x256xbf16, #tpu.memory_space<vmem>>, vector<16x16x256xbf16>,
    %c0_19 = arith.constant 0 : index
    %c0_20 = arith.constant 0 : index
    %c0_21 = arith.constant 0 : index
    %11 = vector.load %arg5[%c0_19, %c0_20, %c0_21] : memref<18x18x256xbf16, #tpu.memory_space<vmem>>, vector<18x16x256xbf16>
    %12 = arith.extf %11 : vector<18x16x256xbf16> to vector<18x16x256xf32>
    %13 = vector.extract_strided_slice %12 {offsets = [0, 0, 0], sizes = [16, 16, 256], strides = [1, 1, 1]} : vector<18x16x256xf32> to vector<16x16x256xf32>
    %c0_22 = arith.constant 0 : index
    %c0_23 = arith.constant 0 : index
    %c0_24 = arith.constant 0 : index
    %14 = vector.load %arg2[%c0_22, %c0_23, %c0_24] : memref<9x1x256xf32, #tpu.memory_space<vmem>>, vector<1x1x256xf32>
    %15 = vector.shape_cast %14 : vector<1x1x256xf32> to vector<1x256xf32>
    %16 = vector.shape_cast %15 : vector<1x256xf32> to vector<1x1x256xf32>
    %17 = vector.broadcast %16 : vector<1x1x256xf32> to vector<16x16x256xf32>
    %18 = arith.mulf %13, %17 : vector<16x16x256xf32>
    %19 = vector.extract_strided_slice %12 {offsets = [1, 0, 0], sizes = [16, 16, 256], strides = [1, 1, 1]} : vector<18x16x256xf32> to vector<16x16x256xf32>
    %c3 = arith.constant 3 : index
    %c0_25 = arith.constant 0 : index
    %c0_26 = arith.constant 0 : index
    %20 = vector.load %arg2[%c3, %c0_25, %c0_26] : memref<9x1x256xf32, #tpu.memory_space<vmem>>, vector<1x1x256xf32>
    %21 = vector.shape_cast %20 : vector<1x1x256xf32> to vector<1x256xf32>
    %22 = vector.shape_cast %21 : vector<1x256xf32> to vector<1x1x256xf32>
    %23 = vector.broadcast %22 : vector<1x1x256xf32> to vector<16x16x256xf32>
    %24 = arith.mulf %19, %23 : vector<16x16x256xf32>
    %25 = arith.addf %18, %24 : vector<16x16x256xf32>
    %26 = vector.extract_strided_slice %12 {offsets = [2, 0, 0], sizes = [16, 16, 256], strides = [1, 1, 1]} : vector<18x16x256xf32> to vector<16x16x256xf32>
    %c6 = arith.constant 6 : index
    %c0_27 = arith.constant 0 : index
    %c0_28 = arith.constant 0 : index
    %27 = vector.load %arg2[%c6, %c0_27, %c0_28] : memref<9x1x256xf32, #tpu.memory_space<vmem>>, vector<1x1x256xf32>
    %28 = vector.shape_cast %27 : vector<1x1x256xf32> to vector<1x256xf32>
    %29 = vector.shape_cast %28 : vector<1x256xf32> to vector<1x1x256xf32>
    %30 = vector.broadcast %29 : vector<1x1x256xf32> to vector<16x16x256xf32>
    %31 = arith.mulf %26, %30 : vector<16x16x256xf32>
    %32 = arith.addf %25, %31 : vector<16x16x256xf32>
    %c0_29 = arith.constant 0 : index
    %c1_30 = arith.constant 1 : index
    %c0_31 = arith.constant 0 : index
    %33 = vector.load %arg5[%c0_29, %c1_30, %c0_31] : memref<18x18x256xbf16, #tpu.memory_space<vmem>>, vector<18x16x256xbf16>
    %34 = arith.extf %33 : vector<18x16x256xbf16> to vector<18x16x256xf32>
    %35 = vector.extract_strided_slice %34 {offsets = [0, 0, 0], sizes = [16, 16, 256], strides = [1, 1, 1]} : vector<18x16x256xf32> to vector<16x16x256xf32>
    %c1_32 = arith.constant 1 : index
    %c0_33 = arith.constant 0 : index
    %c0_34 = arith.constant 0 : index
    %36 = vector.load %arg2[%c1_32, %c0_33, %c0_34] : memref<9x1x256xf32, #tpu.memory_space<vmem>>, vector<1x1x256xf32>
    %37 = vector.shape_cast %36 : vector<1x1x256xf32> to vector<1x256xf32>
    %38 = vector.shape_cast %37 : vector<1x256xf32> to vector<1x1x256xf32>
    %39 = vector.broadcast %38 : vector<1x1x256xf32> to vector<16x16x256xf32>
    %40 = arith.mulf %35, %39 : vector<16x16x256xf32>
    %41 = arith.addf %32, %40 : vector<16x16x256xf32>
    %42 = vector.extract_strided_slice %34 {offsets = [1, 0, 0], sizes = [16, 16, 256], strides = [1, 1, 1]} : vector<18x16x256xf32> to vector<16x16x256xf32>
    %c4 = arith.constant 4 : index
    %c0_35 = arith.constant 0 : index
    %c0_36 = arith.constant 0 : index
    %43 = vector.load %arg2[%c4, %c0_35, %c0_36] : memref<9x1x256xf32, #tpu.memory_space<vmem>>, vector<1x1x256xf32>
    %44 = vector.shape_cast %43 : vector<1x1x256xf32> to vector<1x256xf32>
    %45 = vector.shape_cast %44 : vector<1x256xf32> to vector<1x1x256xf32>
    %46 = vector.broadcast %45 : vector<1x1x256xf32> to vector<16x16x256xf32>
    %47 = arith.mulf %42, %46 : vector<16x16x256xf32>
    %48 = arith.addf %41, %47 : vector<16x16x256xf32>
    %49 = vector.extract_strided_slice %34 {offsets = [2, 0, 0], sizes = [16, 16, 256], strides = [1, 1, 1]} : vector<18x16x256xf32> to vector<16x16x256xf32>
    %c7 = arith.constant 7 : index
    %c0_37 = arith.constant 0 : index
    %c0_38 = arith.constant 0 : index
    %50 = vector.load %arg2[%c7, %c0_37, %c0_38] : memref<9x1x256xf32, #tpu.memory_space<vmem>>, vector<1x1x256xf32>
    %51 = vector.shape_cast %50 : vector<1x1x256xf32> to vector<1x256xf32>
    %52 = vector.shape_cast %51 : vector<1x256xf32> to vector<1x1x256xf32>
    %53 = vector.broadcast %52 : vector<1x1x256xf32> to vector<16x16x256xf32>
    %54 = arith.mulf %49, %53 : vector<16x16x256xf32>
    %55 = arith.addf %48, %54 : vector<16x16x256xf32>
    %c0_39 = arith.constant 0 : index
    %c2 = arith.constant 2 : index
    %c0_40 = arith.constant 0 : index
    %56 = vector.load %arg5[%c0_39, %c2, %c0_40] : memref<18x18x256xbf16, #tpu.memory_space<vmem>>, vector<18x16x256xbf16>
    %57 = arith.extf %56 : vector<18x16x256xbf16> to vector<18x16x256xf32>
    %58 = vector.extract_strided_slice %57 {offsets = [0, 0, 0], sizes = [16, 16, 256], strides = [1, 1, 1]} : vector<18x16x256xf32> to vector<16x16x256xf32>
    %c2_41 = arith.constant 2 : index
    %c0_42 = arith.constant 0 : index
    %c0_43 = arith.constant 0 : index
    %59 = vector.load %arg2[%c2_41, %c0_42, %c0_43] : memref<9x1x256xf32, #tpu.memory_space<vmem>>, vector<1x1x256xf32>
    %60 = vector.shape_cast %59 : vector<1x1x256xf32> to vector<1x256xf32>
    %61 = vector.shape_cast %60 : vector<1x256xf32> to vector<1x1x256xf32>
    %62 = vector.broadcast %61 : vector<1x1x256xf32> to vector<16x16x256xf32>
    %63 = arith.mulf %58, %62 : vector<16x16x256xf32>
    %64 = arith.addf %55, %63 : vector<16x16x256xf32>
    %65 = vector.extract_strided_slice %57 {offsets = [1, 0, 0], sizes = [16, 16, 256], strides = [1, 1, 1]} : vector<18x16x256xf32> to vector<16x16x256xf32>
    %c5 = arith.constant 5 : index
    %c0_44 = arith.constant 0 : index
    %c0_45 = arith.constant 0 : index
    %66 = vector.load %arg2[%c5, %c0_44, %c0_45] : memref<9x1x256xf32, #tpu.memory_space<vmem>>, vector<1x1x256xf32>
    %67 = vector.shape_cast %66 : vector<1x1x256xf32> to vector<1x256xf32>
    %68 = vector.shape_cast %67 : vector<1x256xf32> to vector<1x1x256xf32>
    %69 = vector.broadcast %68 : vector<1x1x256xf32> to vector<16x16x256xf32>
    %70 = arith.mulf %65, %69 : vector<16x16x256xf32>
    %71 = arith.addf %64, %70 : vector<16x16x256xf32>
    %72 = vector.extract_strided_slice %57 {offsets = [2, 0, 0], sizes = [16, 16, 256], strides = [1, 1, 1]} : vector<18x16x256xf32> to vector<16x16x256xf32>
    %c8 = arith.constant 8 : index
    %c0_46 = arith.constant 0 : index
    %c0_47 = arith.constant 0 : index
    %73 = vector.load %arg2[%c8, %c0_46, %c0_47] : memref<9x1x256xf32, #tpu.memory_space<vmem>>, vector<1x1x256xf32>
    %74 = vector.shape_cast %73 : vector<1x1x256xf32> to vector<1x256xf32>
    %75 = vector.shape_cast %74 : vector<1x256xf32> to vector<1x1x256xf32>
    %76 = vector.broadcast %75 : vector<1x1x256xf32> to vector<16x16x256xf32>
    %77 = arith.mulf %72, %76 : vector<16x16x256xf32>
    %78 = arith.addf %71, %77 : vector<16x16x256xf32>
    %c0_48 = arith.constant 0 : index
    %c0_49 = arith.constant 0 : index
    %79 = vector.load %arg3[%c0_48, %c0_49] : memref<1x256xf32, #tpu.memory_space<vmem>>, vector<1x256xf32>
    %80 = vector.shape_cast %79 : vector<1x256xf32> to vector<1x1x256xf32>
    %81 = vector.broadcast %80 : vector<1x1x256xf32> to vector<16x16x256xf32>
    %82 = arith.addf %78, %81 : vector<16x16x256xf32>
    %cst_50 = arith.constant 5.000000e-01 : f32
    %83 = vector.broadcast %cst_50 : f32 to vector<16x16x256xf32>
    %84 = arith.mulf %83, %82 : vector<16x16x256xf32>
    %cst_51 = arith.constant 0.707106769 : f32
    %85 = vector.broadcast %cst_51 : f32 to vector<16x16x256xf32>
    %86 = arith.mulf %82, %85 : vector<16x16x256xf32>
    %87 = math.absf %86 : vector<16x16x256xf32>
    %cst_52 = arith.constant 0.327591091 : f32
    %88 = vector.broadcast %cst_52 : f32 to vector<16x16x256xf32>
    %89 = arith.mulf %88, %87 : vector<16x16x256xf32>
    %cst_53 = arith.constant 1.000000e+00 : f32
    %90 = vector.broadcast %cst_53 : f32 to vector<16x16x256xf32>
    %91 = arith.addf %90, %89 : vector<16x16x256xf32>
    %92 = tpu.reciprocal %91 {approx = true} : vector<16x16x256xf32> -> vector<16x16x256xf32>
    %cst_54 = arith.constant 1.06140542 : f32
    %93 = vector.broadcast %cst_54 : f32 to vector<16x16x256xf32>
    %94 = arith.mulf %93, %92 : vector<16x16x256xf32>
    %cst_55 = arith.constant -1.45315206 : f32
    %95 = vector.broadcast %cst_55 : f32 to vector<16x16x256xf32>
    %96 = arith.addf %94, %95 : vector<16x16x256xf32>
    %97 = arith.mulf %96, %92 : vector<16x16x256xf32>
    %cst_56 = arith.constant 1.42141378 : f32
    %98 = vector.broadcast %cst_56 : f32 to vector<16x16x256xf32>
    %99 = arith.addf %97, %98 : vector<16x16x256xf32>
    %100 = arith.mulf %99, %92 : vector<16x16x256xf32>
    %cst_57 = arith.constant -0.284496725 : f32
    %101 = vector.broadcast %cst_57 : f32 to vector<16x16x256xf32>
    %102 = arith.addf %100, %101 : vector<16x16x256xf32>
    %103 = arith.mulf %102, %92 : vector<16x16x256xf32>
    %cst_58 = arith.constant 0.254829586 : f32
    %104 = vector.broadcast %cst_58 : f32 to vector<16x16x256xf32>
    %105 = arith.addf %103, %104 : vector<16x16x256xf32>
    %106 = arith.mulf %105, %92 : vector<16x16x256xf32>
    %cst_59 = arith.constant 0.000000e+00 : f32
    %107 = vector.broadcast %cst_59 : f32 to vector<16x16x256xf32>
    %108 = arith.subf %107, %87 : vector<16x16x256xf32>
    %109 = arith.mulf %108, %87 : vector<16x16x256xf32>
    %110 = math.exp %109 : vector<16x16x256xf32>
    %111 = arith.mulf %106, %110 : vector<16x16x256xf32>
    %cst_60 = arith.constant 1.000000e+00 : f32
    %112 = vector.broadcast %cst_60 : f32 to vector<16x16x256xf32>
    %113 = arith.subf %112, %111 : vector<16x16x256xf32>
    %cst_61 = arith.constant 0.000000e+00 : f32
    %114 = vector.broadcast %cst_61 : f32 to vector<16x16x256xf32>
    %115 = arith.cmpf olt, %86, %114 : vector<16x16x256xf32>
    %cst_62 = arith.constant 0.000000e+00 : f32
    %116 = vector.broadcast %cst_62 : f32 to vector<16x16x256xf32>
    %117 = arith.subf %116, %113 : vector<16x16x256xf32>
    %118 = arith.select %115, %117, %113 : vector<16x16x256xi1>, vector<16x16x256xf32>
    %cst_63 = arith.constant 1.000000e+00 : f32
    %119 = vector.broadcast %cst_63 : f32 to vector<16x16x256xf32>
    %120 = arith.addf %119, %118 : vector<16x16x256xf32>
    %121 = arith.mulf %84, %120 : vector<16x16x256xf32>
    %122 = arith.truncf %121 : vector<16x16x256xf32> to vector<16x16x256xbf16>
    %c0_64 = arith.constant 0 : index
    %c0_65 = arith.constant 0 : index
    %c0_66 = arith.constant 0 : index
    %c0_67 = arith.constant 0 : index
    %123 = vector.load %arg4[%c0_64, %c0_65, %c0_66, %c0_67] : memref<1x16x16x256xbf16, #tpu.memory_space<vmem>>, vector<1x16x16x256xbf16>
    %124 = vector.shape_cast %123 : vector<1x16x16x256xbf16> to vector<16x16x256xbf16>
    %125 = vector.shape_cast %122 : vector<16x16x256xbf16> to vector<1x16x16x256xbf16>
    tpu.vector_store %arg4[%c0_64, %c0_65, %c0_66, %c0_67], %125 {strides = array<i32>} : memref<1x16x16x256xbf16, #tpu.memory_space<vmem>>, vector<1x16x16x256xbf16>,
    return
  }
  func.func @transform_0(%arg0: i32) -> (i32, i32, i32, i32) {
    %c0_i32 = arith.constant 0 : i32
    %c0_i32_0 = arith.constant 0 : i32
    %c0_i32_1 = arith.constant 0 : i32
    %c0_i32_2 = arith.constant 0 : i32
    return %arg0, %c0_i32, %c0_i32_0, %c0_i32_1 : i32, i32, i32, i32
  }
  func.func @transform_1(%arg0: i32) -> (i32, i32, i32) {
    %c0_i32 = arith.constant 0 : i32
    %c0_i32_0 = arith.constant 0 : i32
    %c0_i32_1 = arith.constant 0 : i32
    %c0_i32_2 = arith.constant 0 : i32
    return %c0_i32, %c0_i32_0, %c0_i32_1 : i32, i32, i32
  }
  func.func @transform_2(%arg0: i32) -> (i32, i32) {
    %c0_i32 = arith.constant 0 : i32
    %c0_i32_0 = arith.constant 0 : i32
    %c0_i32_1 = arith.constant 0 : i32
    return %c0_i32, %c0_i32_0 : i32, i32
  }
  func.func @transform_3(%arg0: i32) -> (i32, i32, i32, i32) {
    %c0_i32 = arith.constant 0 : i32
    %c0_i32_0 = arith.constant 0 : i32
    %c0_i32_1 = arith.constant 0 : i32
    %c0_i32_2 = arith.constant 0 : i32
    return %arg0, %c0_i32, %c0_i32_0, %c0_i32_1 : i32, i32, i32, i32
  }
}

</mosaic_0001>

<bundles_post_ra>
// kernel: mlp_forward.5
= control target key start
LH: loop header
LB: loop body
LE: loop exit
PB: predicated region body
PF: predicated region fallthrough
CT: control target
= control target key end

     0   :  { %vm18_vm0 = vcmask 523264   ;;  %s2723_s1 = inlined_call_operand.vmem [shape: bf16[256,64], index: 1, kind: input, shape index: {}]   ;;  %s2724_s0 = inlined_call_operand.vmem [shape: bf16[512,256], index: 0, kind: input, shape index: {}]   ;;  %s2725_s2 = inlined_call_operand.vmem [shape: f32[1,64], index: 2, kind: input, shape index: {}]   ;;  %s2726_s3 = inlined_call_operand.vmem [shape: f32[512,64], index: 3, kind: output, shape index: {}]  }
   0x1   :  { %v1720_v0 = vld [vmem:[%s2723_s1 + $0x38] sm:$0xff]  ;;  %v1719_v2 = vld [vmem:[%s2723_s1 + $0x30] sm:$0xff]  ;;  %v1718_v4 = vld [vmem:[%s2723_s1 + $0x28] sm:$0xff] }
   0x2   :  { %v1728_v1 = vld [vmem:[%s2723_s1 + $0x78] sm:$0xff]  ;;  %659 = vmatpush.bf16.msra.mxu0 %v1720_v0  ;;  %1729 = vmatpush.bf16.msra.mxu2 %v1720_v0  ;;  %v1727_v3 = vld [vmem:[%s2723_s1 + $0x70] sm:$0xff]  ;;  %v1726_v5 = vld [vmem:[%s2723_s1 + $0x68] sm:$0xff] }
   0x3   :  { %828 = vmatpush.bf16.msra.mxu1 %v1728_v1  ;;  %1737 = vmatpush.bf16.msra.mxu3 %v1728_v1  ;;  %v1717_v6 = vld [vmem:[%s2723_s1 + $0x20] sm:$0xff]  ;;  %v1716_v8 = vld [vmem:[%s2723_s1 + $0x18] sm:$0xff]  ;;  %v1715_v10 = vld [vmem:[%s2723_s1 + $0x10] sm:$0xff] }
   0x4   :  { %v1725_v7 = vld [vmem:[%s2723_s1 + $0x60] sm:$0xff]  ;;  %v1724_v9 = vld [vmem:[%s2723_s1 + $0x58] sm:$0xff]  ;;  %v1723_v11 = vld [vmem:[%s2723_s1 + $0x50] sm:$0xff] }
   0x5   :  { %v1714_v12 = vld [vmem:[%s2723_s1 + $0x8] sm:$0xff]  ;;  %v1713_v14 = vld [vmem:[%s2723_s1] sm:$0xff]  ;;  %v1339_v28 = vld [vmem:[%s2724_s0 + $0x10] sm:$0xf] }
   0x6   :  { %660 = vmatpush.bf16.msra.mxu0 %v1719_v2  ;;  %1730 = vmatpush.bf16.msra.mxu2 %v1719_v2  ;;  %v1722_v13 = vld [vmem:[%s2723_s1 + $0x48] sm:$0xff]  ;;  %v1721_v15 = vld [vmem:[%s2723_s1 + $0x40] sm:$0xff]  ;;  %v1652_v29 = vld [vmem:[%s2724_s0 + $0x14] sm:$0xf0] }
   0x7   :  { %829 = vmatpush.bf16.msra.mxu1 %v1727_v3  ;;  %1738 = vmatpush.bf16.msra.mxu3 %v1727_v3  ;;  %v1331_v16 = vld [vmem:[%s2724_s0] sm:$0xf]  ;;  %v1650_v17 = vld [vmem:[%s2724_s0 + $0x4] sm:$0xf0]  ;;  %v1649_v20 = vld [vmem:[%s2724_s0 + $0x4] sm:$0xf]  ;;  %v1340_v36 = vor.u32 %v1652_v29, %v1339_v28 }
   0x8   :  { %v1459_v18 = vld [vmem:[%s2724_s0 + $0x100] sm:$0xf]  ;;  %v1682_v19 = vld [vmem:[%s2724_s0 + $0x104] sm:$0xf0]  ;;  %v1333_v21 = vld [vmem:[%s2724_s0 + $0x8] sm:$0xf0]  ;;  %v1332_v24 = vor.u32 %v1650_v17, %v1331_v16 }
   0x9   :  { %v1681_v22 = vld [vmem:[%s2724_s0 + $0x104] sm:$0xf]  ;;  %v1461_v23 = vld [vmem:[%s2724_s0 + $0x108] sm:$0xf0]  ;;  %v1460_v25 = vor.u32 %v1682_v19, %v1459_v18  ;;  %v1336_v26 = vor.u32 %v1649_v20, %v1333_v21  ;;  %v1467_v30 = vld [vmem:[%s2724_s0 + $0x110] sm:$0xf] }
   0xa   :  { %661 = vmatpush.bf16.msra.mxu0 %v1718_v4  ;;  %1731 = vmatpush.bf16.msra.mxu2 %v1718_v4  ;;  %v1464_v27 = vor.u32 %v1681_v22, %v1461_v23  ;;  %v1684_v31 = vld [vmem:[%s2724_s0 + $0x114] sm:$0xf0]  ;;  %v1651_v32 = vld [vmem:[%s2724_s0 + $0x14] sm:$0xf]  ;;  %v1341_v33 = vld [vmem:[%s2724_s0 + $0x18] sm:$0xf0] }
   0xb   :  { %830 = vmatpush.bf16.msra.mxu1 %v1726_v5  ;;  %1739 = vmatpush.bf16.msra.mxu3 %v1726_v5  ;;  %v1683_v34 = vld [vmem:[%s2724_s0 + $0x114] sm:$0xf]  ;;  %v1469_v35 = vld [vmem:[%s2724_s0 + $0x118] sm:$0xf0]  ;;  %v1468_v37 = vor.u32 %v1684_v31, %v1467_v30  ;;  %v1344_v38 = vor.u32 %v1651_v32, %v1341_v33  ;;  %v1347_v40 = vld [vmem:[%s2724_s0 + $0x20] sm:$0xf] }
   0xc   :  { %v1472_v39 = vor.u32 %v1683_v34, %v1469_v35  ;;  %v1654_v41 = vld [vmem:[%s2724_s0 + $0x24] sm:$0xf0]  ;;  %v1475_v42 = vld [vmem:[%s2724_s0 + $0x120] sm:$0xf]  ;;  %v1653_v44 = vld [vmem:[%s2724_s0 + $0x24] sm:$0xf] }
   0xd   :  { %v1686_v43 = vld [vmem:[%s2724_s0 + $0x124] sm:$0xf0]  ;;  %v1349_v45 = vld [vmem:[%s2724_s0 + $0x28] sm:$0xf0]  ;;  %v1685_v46 = vld [vmem:[%s2724_s0 + $0x124] sm:$0xf]  ;;  %v1348_v48 = vor.u32 %v1654_v41, %v1347_v40 }
   0xe   :  { %662 = vmatpush.bf16.msra.mxu0 %v1717_v6  ;;  %1732 = vmatpush.bf16.msra.mxu2 %v1717_v6  ;;  %v1477_v47 = vld [vmem:[%s2724_s0 + $0x128] sm:$0xf0]  ;;  %v1476_v49 = vor.u32 %v1686_v43, %v1475_v42  ;;  %v1352_v50 = vor.u32 %v1653_v44, %v1349_v45  ;;  %v1355_v52 = vld [vmem:[%s2724_s0 + $0x30] sm:$0xf]  ;;  %v1656_v53 = vld [vmem:[%s2724_s0 + $0x34] sm:$0xf0] }
   0xf   :  { %831 = vmatpush.bf16.msra.mxu1 %v1725_v7  ;;  %1740 = vmatpush.bf16.msra.mxu3 %v1725_v7  ;;  %v1480_v51 = vor.u32 %v1685_v46, %v1477_v47  ;;  %v1483_v54 = vld [vmem:[%s2724_s0 + $0x130] sm:$0xf]  ;;  %v1688_v55 = vld [vmem:[%s2724_s0 + $0x134] sm:$0xf0]  ;;  %v1655_v56 = vld [vmem:[%s2724_s0 + $0x34] sm:$0xf]  ;;  %v1356_v60 = vor.u32 %v1656_v53, %v1355_v52 }
  0x10   :  { %v1357_v57 = vld [vmem:[%s2724_s0 + $0x38] sm:$0xf0]  ;;  %v1687_v58 = vld [vmem:[%s2724_s0 + $0x134] sm:$0xf]  ;;  %v1484_v61 = vor.u32 %v1688_v55, %v1483_v54  ;;  %v1363_v0 = vld [vmem:[%s2724_s0 + $0x40] sm:$0xf] }
  0x11   :  { %v1485_v59 = vld [vmem:[%s2724_s0 + $0x138] sm:$0xf0]  ;;  %v1360_v62 = vor.u32 %v1655_v56, %v1357_v57  ;;  %v1658_v1 = vld [vmem:[%s2724_s0 + $0x44] sm:$0xf0]  ;;  %v1491_v2 = vld [vmem:[%s2724_s0 + $0x140] sm:$0xf] }
  0x12   :  { %663 = vmatpush.bf16.msra.mxu0 %v1716_v8  ;;  %1733 = vmatpush.bf16.msra.mxu2 %v1716_v8  ;;  %v1488_v63 = vor.u32 %v1687_v58, %v1485_v59  ;;  %v1690_v3 = vld [vmem:[%s2724_s0 + $0x144] sm:$0xf0]  ;;  %v1657_v4 = vld [vmem:[%s2724_s0 + $0x44] sm:$0xf]  ;;  %v1365_v5 = vld [vmem:[%s2724_s0 + $0x48] sm:$0xf0]  ;;  %v1364_v8 = vor.u32 %v1658_v1, %v1363_v0 }
  0x13   :  { %832 = vmatpush.bf16.msra.mxu1 %v1724_v9  ;;  %1741 = vmatpush.bf16.msra.mxu3 %v1724_v9  ;;  %v1689_v6 = vld [vmem:[%s2724_s0 + $0x144] sm:$0xf]  ;;  %v1493_v7 = vld [vmem:[%s2724_s0 + $0x148] sm:$0xf0]  ;;  %v1492_v9 = vor.u32 %v1690_v3, %v1491_v2  ;;  %v1659_v16 = vld [vmem:[%s2724_s0 + $0x54] sm:$0xf] }
  0x14   :  { %v1373_v17 = vld [vmem:[%s2724_s0 + $0x58] sm:$0xf0]  ;;  %v1691_v18 = vld [vmem:[%s2724_s0 + $0x154] sm:$0xf]  ;;  %v1661_v28 = vld [vmem:[%s2724_s0 + $0x64] sm:$0xf] }
  0x15   :  { %v1501_v19 = vld [vmem:[%s2724_s0 + $0x158] sm:$0xf0]  ;;  %v1376_v22 = vor.u32 %v1659_v16, %v1373_v17  ;;  %v1381_v29 = vld [vmem:[%s2724_s0 + $0x68] sm:$0xf0]  ;;  %v1693_v30 = vld [vmem:[%s2724_s0 + $0x164] sm:$0xf] }
  0x16   :  { %664 = vmatpush.bf16.msra.mxu0 %v1715_v10  ;;  %1734 = vmatpush.bf16.msra.mxu2 %v1715_v10  ;;  %v1368_v10 = vor.u32 %v1657_v4, %v1365_v5  ;;  %v1504_v23 = vor.u32 %v1691_v18, %v1501_v19  ;;  %v1509_v31 = vld [vmem:[%s2724_s0 + $0x168] sm:$0xf0]  ;;  %v1384_v34 = vor.u32 %v1661_v28, %v1381_v29  ;;  %v1696_v40 = vld [vmem:[%s2724_s0 + $0x174] sm:$0xf0]  ;;  %v1663_v41 = vld [vmem:[%s2724_s0 + $0x74] sm:$0xf] }
  0x17   :  { %833 = vmatpush.bf16.msra.mxu1 %v1723_v11  ;;  %1742 = vmatpush.bf16.msra.mxu3 %v1723_v11  ;;  %v1496_v11 = vor.u32 %v1689_v6, %v1493_v7  ;;  %v1512_v35 = vor.u32 %v1693_v30, %v1509_v31  ;;  %v1389_v42 = vld [vmem:[%s2724_s0 + $0x78] sm:$0xf0]  ;;  %v1695_v43 = vld [vmem:[%s2724_s0 + $0x174] sm:$0xf]  ;;  %v1698_v52 = vld [vmem:[%s2724_s0 + $0x184] sm:$0xf0] }
  0x18   :  { %v1517_v44 = vld [vmem:[%s2724_s0 + $0x178] sm:$0xf0]  ;;  %v1392_v47 = vor.u32 %v1663_v41, %v1389_v42  ;;  %v1665_v53 = vld [vmem:[%s2724_s0 + $0x84] sm:$0xf]  ;;  %v1397_v54 = vld [vmem:[%s2724_s0 + $0x88] sm:$0xf0] }
  0x19   :  { %v1697_v55 = vld [vmem:[%s2724_s0 + $0x184] sm:$0xf]  ;;  %v1525_v56 = vld [vmem:[%s2724_s0 + $0x188] sm:$0xf0]  ;;  %v2115_v5 = vld [vmem:[%s2725_s2] ss:$0 sm:$0xff] }
  0x1a   :  { %665 = vmatpush.bf16.msra.mxu0 %v1714_v12  ;;  %1735 = vmatpush.bf16.msra.mxu2 %v1714_v12  ;;  %v1371_v12 = vld [vmem:[%s2724_s0 + $0x50] sm:$0xf]  ;;  %v1411_v29 = vld [vmem:[%s2724_s0 + $0xa0] sm:$0xf]  ;;  %v1670_v30 = vld [vmem:[%s2724_s0 + $0xa4] sm:$0xf0] }
  0x1b   :  { %834 = vmatpush.bf16.msra.mxu1 %v1722_v13  ;;  %1743 = vmatpush.bf16.msra.mxu3 %v1722_v13  ;;  %v1660_v13 = vld [vmem:[%s2724_s0 + $0x54] sm:$0xf0]  ;;  %v1403_v7 = vld [vmem:[%s2724_s0 + $0x90] sm:$0xf]  ;;  %v1701_v41 = vld [vmem:[%s2724_s0 + $0x1a4] sm:$0xf] }
  0x1c   :  { %v1372_v20 = vor.u32 %v1660_v13, %v1371_v12  ;;  %v1405_v12 = vld [vmem:[%s2724_s0 + $0x98] sm:$0xf0]  ;;  %v1541_v42 = vld [vmem:[%s2724_s0 + $0x1a8] sm:$0xf0] }
  0x1e   :  { %666 = vmatpush.bf16.msra.mxu0 %v1713_v14  ;;  %1736 = vmatpush.bf16.msra.mxu2 %v1713_v14  ;;  %v1499_v14 = vld [vmem:[%s2724_s0 + $0x150] sm:$0xf] }
  0x1f   :  { %835 = vmatpush.bf16.msra.mxu1 %v1721_v15  ;;  %1744 = vmatpush.bf16.msra.mxu3 %v1721_v15  ;;  %v1692_v15 = vld [vmem:[%s2724_s0 + $0x154] sm:$0xf0] }
  0x20   :  { %v1500_v21 = vor.u32 %v1692_v15, %v1499_v14  ;;  %v1699_v14 = vld [vmem:[%s2724_s0 + $0x194] sm:$0xf]  ;;  %v1533_v15 = vld [vmem:[%s2724_s0 + $0x198] sm:$0xf0] }
  0x21   :  { %667 = vmatmul.bf16.vlgmr.msra.gmra.mxu0 %v1332_v24  ;;  %747 = vmatmul.bf16.vlgmr.msra.gmra.mxu2 %v1460_v25  ;;  %v1379_v24 = vld [vmem:[%s2724_s0 + $0x60] sm:$0xf]  ;;  %v1662_v25 = vld [vmem:[%s2724_s0 + $0x64] sm:$0xf0] }
  0x22   :  { %836 = vmatmul.bf16.vlgmr.msra.gmra.mxu1 %v1336_v26  ;;  %916 = vmatmul.bf16.vlgmr.msra.gmra.mxu3 %v1464_v27  ;;  %v1507_v26 = vld [vmem:[%s2724_s0 + $0x160] sm:$0xf]  ;;  %v1694_v27 = vld [vmem:[%s2724_s0 + $0x164] sm:$0xf0]  ;;  %v1380_v32 = vor.u32 %v1662_v25, %v1379_v24 }
  0x23   :  { %v1508_v33 = vor.u32 %v1694_v27, %v1507_v26 }
  0x31   :  { %672 = vmatmul.bf16.gmra.mxu0 %v1340_v36  ;;  %752 = vmatmul.bf16.gmra.mxu2 %v1468_v37  ;;  %v1748_v36 = vmov 0.0   ;;  %v1387_v37 = vld [vmem:[%s2724_s0 + $0x70] sm:$0xf] }
  0x32   :  { %841 = vmatmul.bf16.gmra.mxu1 %v1344_v38  ;;  %921 = vmatmul.bf16.gmra.mxu3 %v1472_v39  ;;  %19 = vst.msk [vmem:[#allocation2] sm:$0xff] %vm18_vm0, %v1748_v36  ;;  %v1664_v38 = vld [vmem:[%s2724_s0 + $0x74] sm:$0xf0]  ;;  %v1515_v39 = vld [vmem:[%s2724_s0 + $0x170] sm:$0xf] }
  0x33   :  { %20 = vst.msk [vmem:[#allocation2 + $0x8] sm:$0xff] %vm18_vm0, %v1748_v36  ;;  %v1388_v45 = vor.u32 %v1664_v38, %v1387_v37  ;;  %v1516_v46 = vor.u32 %v1696_v40, %v1515_v39  ;;  %v1669_v37 = vld [vmem:[%s2724_s0 + $0xa4] sm:$0xf]  ;;  %v1413_v38 = vld [vmem:[%s2724_s0 + $0xa8] sm:$0xf0] }
  0x34   :  { %21 = vst.msk [vmem:[#allocation2 + $0x10] sm:$0xff] %vm18_vm0, %v1748_v36 }
  0x35   :  { %22 = vst.msk [vmem:[#allocation2 + $0x18] sm:$0xff] %vm18_vm0, %v1748_v36 }
  0x36   :  { %23 = vst.msk [vmem:[#allocation2 + $0x20] sm:$0xff] %vm18_vm0, %v1748_v36 }
  0x37   :  { %24 = vst.msk [vmem:[#allocation2 + $0x28] sm:$0xff] %vm18_vm0, %v1748_v36 }
  0x38   :  { %25 = vst.msk [vmem:[#allocation2 + $0x30] sm:$0xff] %vm18_vm0, %v1748_v36 }
  0x39   :  { %26 = vst.msk [vmem:[#allocation2 + $0x38] sm:$0xff] %vm18_vm0, %v1748_v36 }
  0x3a   :  { %27 = vst.msk [vmem:[#allocation2 + $0x40] sm:$0xff] %vm18_vm0, %v1748_v36  ;;  %v148_v39 = vld [vmem:[#allocation2 + $0x8] sm:$0xff] }
  0x3b   :  { %28 = vst.msk [vmem:[#allocation2 + $0x48] sm:$0xff] %vm18_vm0, %v1748_v36 }
  0x3c   :  { %29 = vst.msk [vmem:[#allocation2 + $0x50] sm:$0xff] %vm18_vm0, %v1748_v36 }
  0x3d   :  { %30 = vst.msk [vmem:[#allocation2 + $0x58] sm:$0xff] %vm18_vm0, %v1748_v36 }
  0x3e   :  { %31 = vst.msk [vmem:[#allocation2 + $0x60] sm:$0xff] %vm18_vm0, %v1748_v36 }
  0x3f   :  { %32 = vst.msk [vmem:[#allocation2 + $0x68] sm:$0xff] %vm18_vm0, %v1748_v36 }
  0x40   :  { %33 = vst.msk [vmem:[#allocation2 + $0x70] sm:$0xff] %vm18_vm0, %v1748_v36 }
  0x41   :  { %677 = vmatmul.bf16.gmra.mxu0 %v1348_v48  ;;  %757 = vmatmul.bf16.gmra.mxu2 %v1476_v49  ;;  %v1520_v48 = vor.u32 %v1695_v43, %v1517_v44  ;;  %34 = vst.msk [vmem:[#allocation2 + $0x78] sm:$0xff] %vm18_vm0, %v1748_v36  ;;  %v1395_v49 = vld [vmem:[%s2724_s0 + $0x80] sm:$0xf] }
  0x42   :  { %846 = vmatmul.bf16.gmra.mxu1 %v1352_v50  ;;  %926 = vmatmul.bf16.gmra.mxu3 %v1480_v51  ;;  %35 = vst.msk [vmem:[#allocation2 + $0x80] sm:$0xff] %vm18_vm0, %v1748_v36  ;;  %v1666_v50 = vld [vmem:[%s2724_s0 + $0x84] sm:$0xf0]  ;;  %v1523_v51 = vld [vmem:[%s2724_s0 + $0x180] sm:$0xf] }
  0x43   :  { %36 = vst.msk [vmem:[#allocation2 + $0x88] sm:$0xff] %vm18_vm0, %v1748_v36  ;;  %v1396_v57 = vor.u32 %v1666_v50, %v1395_v49  ;;  %v1524_v58 = vor.u32 %v1698_v52, %v1523_v51  ;;  %v1412_v50 = vor.u32 %v1670_v30, %v1411_v29 }
  0x44   :  { %37 = vst.msk [vmem:[#allocation2 + $0x90] sm:$0xff] %vm18_vm0, %v1748_v36 }
  0x45   :  { %38 = vst.msk [vmem:[#allocation2 + $0x98] sm:$0xff] %vm18_vm0, %v1748_v36 }
  0x46   :  { %39 = vst.msk [vmem:[#allocation2 + $0xa0] sm:$0xff] %vm18_vm0, %v1748_v36 }
  0x47   :  { %40 = vst.msk [vmem:[#allocation2 + $0xa8] sm:$0xff] %vm18_vm0, %v1748_v36 }
  0x48   :  { %41 = vst.msk [vmem:[#allocation2 + $0xb0] sm:$0xff] %vm18_vm0, %v1748_v36 }
  0x49   :  { %42 = vst.msk [vmem:[#allocation2 + $0xb8] sm:$0xff] %vm18_vm0, %v1748_v36 }
  0x4a   :  { %43 = vst.msk [vmem:[#allocation2 + $0xc0] sm:$0xff] %vm18_vm0, %v1748_v36 }
  0x4b   :  { %44 = vst.msk [vmem:[#allocation2 + $0xc8] sm:$0xff] %vm18_vm0, %v1748_v36 }
  0x4c   :  { %45 = vst.msk [vmem:[#allocation2 + $0xd0] sm:$0xff] %vm18_vm0, %v1748_v36 }
  0x4d   :  { %46 = vst.msk [vmem:[#allocation2 + $0xd8] sm:$0xff] %vm18_vm0, %v1748_v36 }
  0x4e   :  { %47 = vst.msk [vmem:[#allocation2 + $0xe0] sm:$0xff] %vm18_vm0, %v1748_v36 }
  0x4f   :  { %48 = vst.msk [vmem:[#allocation2 + $0xe8] sm:$0xff] %vm18_vm0, %v1748_v36 }
  0x50   :  { %49 = vst.msk [vmem:[#allocation2 + $0xf0] sm:$0xff] %vm18_vm0, %v1748_v36 }
  0x51   :  { %682 = vmatmul.bf16.gmra.mxu0 %v1356_v60  ;;  %762 = vmatmul.bf16.gmra.mxu2 %v1484_v61  ;;  %50 = vst.msk [vmem:[#allocation2 + $0xf8] sm:$0xff] %vm18_vm0, %v1748_v36  ;;  %v1400_v60 = vor.u32 %v1665_v53, %v1397_v54  ;;  %v1528_v61 = vor.u32 %v1697_v55, %v1525_v56 }
  0x52   :  { %851 = vmatmul.bf16.gmra.mxu1 %v1360_v62  ;;  %931 = vmatmul.bf16.gmra.mxu3 %v1488_v63  ;;  %v147_v62 = vld [vmem:[#allocation2] sm:$0xff]  ;;  %51 = vst.msk [vmem:[#allocation2 + $0x100] sm:$0xff] %vm18_vm0, %v1748_v36  ;;  %v1416_v56 = vor.u32 %v1669_v37, %v1413_v38 }
  0x53   :  { %52 = vst.msk [vmem:[#allocation2 + $0x108] sm:$0xff] %vm18_vm0, %v1748_v36 }
  0x54   :  { %53 = vst.msk [vmem:[#allocation2 + $0x110] sm:$0xff] %vm18_vm0, %v1748_v36 }
  0x55   :  { %54 = vst.msk [vmem:[#allocation2 + $0x118] sm:$0xff] %vm18_vm0, %v1748_v36 }
  0x56   :  { %55 = vst.msk [vmem:[#allocation2 + $0x120] sm:$0xff] %vm18_vm0, %v1748_v36 }
  0x57   :  { %56 = vst.msk [vmem:[#allocation2 + $0x128] sm:$0xff] %vm18_vm0, %v1748_v36 }
  0x58   :  { %57 = vst.msk [vmem:[#allocation2 + $0x130] sm:$0xff] %vm18_vm0, %v1748_v36 }
  0x59   :  { %58 = vst.msk [vmem:[#allocation2 + $0x138] sm:$0xff] %vm18_vm0, %v1748_v36 }
  0x5a   :  { %59 = vst.msk [vmem:[#allocation2 + $0x140] sm:$0xff] %vm18_vm0, %v1748_v36  ;;  %v180_v43 = vld [vmem:[#allocation2 + $0x108] sm:$0xff] }
  0x5b   :  { %60 = vst.msk [vmem:[#allocation2 + $0x148] sm:$0xff] %vm18_vm0, %v1748_v36  ;;  %v181_v53 = vld [vmem:[#allocation2 + $0x110] sm:$0xff] }
  0x5c   :  { %61 = vst.msk [vmem:[#allocation2 + $0x150] sm:$0xff] %vm18_vm0, %v1748_v36 }
  0x5d   :  { %62 = vst.msk [vmem:[#allocation2 + $0x158] sm:$0xff] %vm18_vm0, %v1748_v36 }
  0x5e   :  { %63 = vst.msk [vmem:[#allocation2 + $0x160] sm:$0xff] %vm18_vm0, %v1748_v36 }
  0x5f   :  { %64 = vst.msk [vmem:[#allocation2 + $0x168] sm:$0xff] %vm18_vm0, %v1748_v36 }
  0x60   :  { %65 = vst.msk [vmem:[#allocation2 + $0x170] sm:$0xff] %vm18_vm0, %v1748_v36 }
  0x61   :  { %687 = vmatmul.bf16.gmra.mxu0 %v1364_v8  ;;  %767 = vmatmul.bf16.gmra.mxu2 %v1492_v9  ;;  %v1668_v8 = vld [vmem:[%s2724_s0 + $0x94] sm:$0xf0]  ;;  %v1531_v9 = vld [vmem:[%s2724_s0 + $0x190] sm:$0xf]  ;;  %66 = vst.msk [vmem:[#allocation2 + $0x178] sm:$0xff] %vm18_vm0, %v1748_v36 }
  0x62   :  { %856 = vmatmul.bf16.gmra.mxu1 %v1368_v10  ;;  %936 = vmatmul.bf16.gmra.mxu3 %v1496_v11  ;;  %v1700_v10 = vld [vmem:[%s2724_s0 + $0x194] sm:$0xf0]  ;;  %v1667_v11 = vld [vmem:[%s2724_s0 + $0x94] sm:$0xf]  ;;  %v1404_v19 = vor.u32 %v1668_v8, %v1403_v7  ;;  %67 = vst.msk [vmem:[#allocation2 + $0x180] sm:$0xff] %vm18_vm0, %v1748_v36  ;;  %v183_v7 = vld [vmem:[#allocation2 + $0x120] sm:$0xff] }
  0x63   :  { %68 = vst.msk [vmem:[#allocation2 + $0x188] sm:$0xff] %vm18_vm0, %v1748_v36 }
  0x64   :  { %69 = vst.msk [vmem:[#allocation2 + $0x190] sm:$0xff] %vm18_vm0, %v1748_v36 }
  0x65   :  { %70 = vst.msk [vmem:[#allocation2 + $0x198] sm:$0xff] %vm18_vm0, %v1748_v36 }
  0x66   :  { %71 = vst.msk [vmem:[#allocation2 + $0x1a0] sm:$0xff] %vm18_vm0, %v1748_v36 }
  0x67   :  { %72 = vst.msk [vmem:[#allocation2 + $0x1a8] sm:$0xff] %vm18_vm0, %v1748_v36 }
  0x68   :  { %73 = vst.msk [vmem:[#allocation2 + $0x1b0] sm:$0xff] %vm18_vm0, %v1748_v36 }
  0x69   :  { %74 = vst.msk [vmem:[#allocation2 + $0x1b8] sm:$0xff] %vm18_vm0, %v1748_v36 }
  0x6a   :  { %75 = vst.msk [vmem:[#allocation2 + $0x1c0] sm:$0xff] %vm18_vm0, %v1748_v36 }
  0x6b   :  { %76 = vst.msk [vmem:[#allocation2 + $0x1c8] sm:$0xff] %vm18_vm0, %v1748_v36 }
  0x6c   :  { %77 = vst.msk [vmem:[#allocation2 + $0x1d0] sm:$0xff] %vm18_vm0, %v1748_v36 }
  0x6d   :  { %78 = vst.msk [vmem:[#allocation2 + $0x1d8] sm:$0xff] %vm18_vm0, %v1748_v36 }
  0x6e   :  { %79 = vst.msk [vmem:[#allocation2 + $0x1e0] sm:$0xff] %vm18_vm0, %v1748_v36 }
  0x6f   :  { %80 = vst.msk [vmem:[#allocation2 + $0x1e8] sm:$0xff] %vm18_vm0, %v1748_v36 }
  0x70   :  { %81 = vst.msk [vmem:[#allocation2 + $0x1f0] sm:$0xff] %vm18_vm0, %v1748_v36 }
  0x71   :  { %692 = vmatmul.bf16.gmra.mxu0 %v1372_v20  ;;  %772 = vmatmul.bf16.gmra.mxu2 %v1500_v21  ;;  %v1532_v20 = vor.u32 %v1700_v10, %v1531_v9  ;;  %82 = vst.msk [vmem:[#allocation2 + $0x1f8] sm:$0xff] %vm18_vm0, %v1748_v36 }
  0x72   :  { %861 = vmatmul.bf16.gmra.mxu1 %v1376_v22  ;;  %941 = vmatmul.bf16.gmra.mxu3 %v1504_v23  ;;  %v1408_v22 = vor.u32 %v1667_v11, %v1405_v12  ;;  %v1536_v23 = vor.u32 %v1699_v14, %v1533_v15  ;;  %v1419_v14 = vld [vmem:[%s2724_s0 + $0xb0] sm:$0xf]  ;;  %v1672_v15 = vld [vmem:[%s2724_s0 + $0xb4] sm:$0xf0] }
  0x73   :  { %v1420_v37 = vor.u32 %v1672_v15, %v1419_v14 }
  0x81   :  { %697 = vmatmul.bf16.gmra.mxu0 %v1380_v32  ;;  %777 = vmatmul.bf16.gmra.mxu2 %v1508_v33  ;;  %v1539_v32 = vld [vmem:[%s2724_s0 + $0x1a0] sm:$0xf]  ;;  %v1702_v33 = vld [vmem:[%s2724_s0 + $0x1a4] sm:$0xf0] }
  0x82   :  { %866 = vmatmul.bf16.gmra.mxu1 %v1384_v34  ;;  %946 = vmatmul.bf16.gmra.mxu3 %v1512_v35  ;;  %v179_v34 = vld [vmem:[#allocation2 + $0x100] sm:$0xff]  ;;  %v1540_v51 = vor.u32 %v1702_v33, %v1539_v32 }
  0x91   :  { %702 = vmatmul.bf16.gmra.mxu0 %v1388_v45  ;;  %782 = vmatmul.bf16.gmra.mxu2 %v1516_v46 }
  0x92   :  { %871 = vmatmul.bf16.gmra.mxu1 %v1392_v47  ;;  %951 = vmatmul.bf16.gmra.mxu3 %v1520_v48  ;;  %v149_v47 = vld [vmem:[#allocation2 + $0x10] sm:$0xff] }
  0x9e   :  { %v668_v59 = vpop.f32.mrf.mxu0 }
  0x9f   :  { %v837_v63 = vpop.f32.mrf.mxu1 }
  0xa0   :  { %v838_v0 = vadd.f32 %v837_v63, %v668_v59  ;;  %v150_v59 = vld [vmem:[#allocation2 + $0x18] sm:$0xff] }
  0xa1   :  { %707 = vmatmul.bf16.gmra.mxu0 %v1396_v57  ;;  %787 = vmatmul.bf16.gmra.mxu2 %v1524_v58  ;;  %v1544_v57 = vor.u32 %v1701_v41, %v1541_v42  ;;  %v182_v63 = vld [vmem:[#allocation2 + $0x118] sm:$0xff]  ;;  %v184_v41 = vld [vmem:[#allocation2 + $0x128] sm:$0xff] }
  0xa2   :  { %v997_v1 = vadd.f32 %v838_v0, %v147_v62  ;;  %876 = vmatmul.bf16.gmra.mxu1 %v1400_v60  ;;  %956 = vmatmul.bf16.gmra.mxu3 %v1528_v61 }
  0xa4   :  { %1062 = vst.msk [vmem:[#allocation2] sm:$0xff] %vm18_vm0, %v997_v1  ;;  %v748_v2 = vpop.f32.mrf.mxu2 }
  0xa5   :  { %v917_v3 = vpop.f32.mrf.mxu3 }
  0xa6   :  { %v670_v4 = vpop.f32.mrf.mxu0  ;;  %v918_v31 = vadd.f32 %v917_v3, %v748_v2  ;;  %v151_v2 = vld [vmem:[#allocation2 + $0x20] sm:$0xff] }
  0xa7   :  { %v839_v6 = vpop.f32.mrf.mxu1 }
  0xa8   :  { %v840_v35 = vadd.f32 %v839_v6, %v670_v4  ;;  %v1029_v46 = vadd.f32 %v918_v31, %v179_v34  ;;  %v152_v31 = vld [vmem:[#allocation2 + $0x28] sm:$0xff] }
  0xaa   :  { %v998_v52 = vadd.f32 %v840_v35, %v148_v39  ;;  %1094 = vst.msk [vmem:[#allocation2 + $0x100] sm:$0xff] %vm18_vm0, %v1029_v46 }
  0xab   :  { %v1129_v13 = vld [vmem:[#allocation2] sm:$0xff] }
  0xac   :  { %v1197_v16 = vadd.f32 %v2115_v5, %v1129_v13  ;;  %v750_v17 = vpop.f32.mrf.mxu2  ;;  %1063 = vst.msk [vmem:[#allocation2 + $0x8] sm:$0xff] %vm18_vm0, %v998_v52 }
  0xad   :  { %v919_v18 = vpop.f32.mrf.mxu3 }
  0xae   :  { %1261 = vst.msk [vmem:[%s2726_s3] sm:$0xff] %vm18_vm0, %v1197_v16  ;;  %v673_v21 = vpop.f32.mrf.mxu0  ;;  %v920_v40 = vadd.f32 %v919_v18, %v750_v17  ;;  %v1547_v18 = vld [vmem:[%s2724_s0 + $0x1b0] sm:$0xf] }
  0xaf   :  { %v842_v24 = vpop.f32.mrf.mxu1 }
  0xb0   :  { %v843_v44 = vadd.f32 %v842_v24, %v673_v21  ;;  %v1030_v58 = vadd.f32 %v920_v40, %v180_v43 }
  0xb1   :  { %712 = vmatmul.bf16.gmra.mxu0 %v1404_v19  ;;  %792 = vmatmul.bf16.gmra.mxu2 %v1532_v20  ;;  %v1161_v12 = vld [vmem:[#allocation2 + $0x100] sm:$0xff]  ;;  %v1704_v19 = vld [vmem:[%s2724_s0 + $0x1b4] sm:$0xf0] }
  0xb2   :  { %881 = vmatmul.bf16.gmra.mxu1 %v1408_v22  ;;  %961 = vmatmul.bf16.gmra.mxu3 %v1536_v23  ;;  %v999_v62 = vadd.f32 %v843_v44, %v149_v47  ;;  %1095 = vst.msk [vmem:[#allocation2 + $0x108] sm:$0xff] %vm18_vm0, %v1030_v58  ;;  %v1229_v16 = vadd.f32 %v2115_v5, %v1161_v12  ;;  %v1671_v22 = vld [vmem:[%s2724_s0 + $0xb4] sm:$0xf]  ;;  %v1421_v23 = vld [vmem:[%s2724_s0 + $0xb8] sm:$0xf0] }
  0xb3   :  { %v1130_v17 = vld [vmem:[#allocation2 + $0x8] sm:$0xff]  ;;  %v1548_v38 = vor.u32 %v1704_v19, %v1547_v18  ;;  %v1424_v44 = vor.u32 %v1671_v22, %v1421_v23  ;;  %v185_v58 = vld [vmem:[#allocation2 + $0x130] sm:$0xff] }
  0xb4   :  { %v753_v25 = vpop.f32.mrf.mxu2  ;;  %1064 = vst.msk [vmem:[#allocation2 + $0x10] sm:$0xff] %vm18_vm0, %v999_v62  ;;  %v1198_v20 = vadd.f32 %v2115_v5, %v1130_v17  ;;  %v154_v62 = vld [vmem:[#allocation2 + $0x38] sm:$0xff]  ;;  %v1557_v12 = vld [vmem:[%s2724_s0 + $0x1c8] sm:$0xf0] }
  0xb5   :  { %v922_v26 = vpop.f32.mrf.mxu3  ;;  %1293 = vst.msk [vmem:[%s2726_s3 + $0x100] sm:$0xff] %vm18_vm0, %v1229_v16  ;;  %v186_v17 = vld [vmem:[#allocation2 + $0x138] sm:$0xff] }
  0xb6   :  { %v675_v27 = vpop.f32.mrf.mxu0  ;;  %v923_v48 = vadd.f32 %v922_v26, %v753_v25  ;;  %1262 = vst.msk [vmem:[%s2726_s3 + $0x8] sm:$0xff] %vm18_vm0, %v1198_v20 }
  0xb7   :  { %v844_v28 = vpop.f32.mrf.mxu1 }
  0xb8   :  { %v845_v54 = vadd.f32 %v844_v28, %v675_v27  ;;  %v1031_v1 = vadd.f32 %v923_v48, %v181_v53  ;;  %v1703_v27 = vld [vmem:[%s2724_s0 + $0x1b4] sm:$0xf]  ;;  %v1549_v28 = vld [vmem:[%s2724_s0 + $0x1b8] sm:$0xf0] }
  0xb9   :  { %v1162_v21 = vld [vmem:[#allocation2 + $0x108] sm:$0xff] }
  0xba   :  { %v1000_v3 = vadd.f32 %v845_v54, %v150_v59  ;;  %1096 = vst.msk [vmem:[#allocation2 + $0x110] sm:$0xff] %vm18_vm0, %v1031_v1  ;;  %v1230_v24 = vadd.f32 %v2115_v5, %v1162_v21 }
  0xbb   :  { %v1131_v25 = vld [vmem:[#allocation2 + $0x10] sm:$0xff] }
  0xbc   :  { %v755_v45 = vpop.f32.mrf.mxu2  ;;  %1065 = vst.msk [vmem:[#allocation2 + $0x18] sm:$0xff] %vm18_vm0, %v1000_v3  ;;  %v1199_v29 = vadd.f32 %v2115_v5, %v1131_v25  ;;  %v1674_v3 = vld [vmem:[%s2724_s0 + $0xc4] sm:$0xf0] }
  0xbd   :  { %v924_v49 = vpop.f32.mrf.mxu3  ;;  %1294 = vst.msk [vmem:[%s2726_s3 + $0x108] sm:$0xff] %vm18_vm0, %v1230_v24 }
  0xbe   :  { %v678_v55 = vpop.f32.mrf.mxu0  ;;  %v925_v60 = vadd.f32 %v924_v49, %v755_v45  ;;  %1263 = vst.msk [vmem:[%s2726_s3 + $0x10] sm:$0xff] %vm18_vm0, %v1199_v29  ;;  %v1552_v45 = vor.u32 %v1703_v27, %v1549_v28  ;;  %v153_v49 = vld [vmem:[#allocation2 + $0x30] sm:$0xff] }
  0xbf   :  { %v847_v61 = vpop.f32.mrf.mxu1 }
  0xc0   :  { %v848_v0 = vadd.f32 %v847_v61, %v678_v55  ;;  %v1032_v4 = vadd.f32 %v925_v60, %v182_v63 }
  0xc1   :  { %717 = vmatmul.bf16.gmra.mxu0 %v1412_v50  ;;  %797 = vmatmul.bf16.gmra.mxu2 %v1540_v51  ;;  %v1163_v30 = vld [vmem:[#allocation2 + $0x110] sm:$0xff] }
  0xc2   :  { %886 = vmatmul.bf16.gmra.mxu1 %v1416_v56  ;;  %966 = vmatmul.bf16.gmra.mxu3 %v1544_v57  ;;  %v1001_v36 = vadd.f32 %v848_v0, %v151_v2  ;;  %1097 = vst.msk [vmem:[#allocation2 + $0x118] sm:$0xff] %vm18_vm0, %v1032_v4  ;;  %v1231_v33 = vadd.f32 %v2115_v5, %v1163_v30  ;;  %v1427_v2 = vld [vmem:[%s2724_s0 + $0xc0] sm:$0xf] }
  0xc3   :  { %v1132_v34 = vld [vmem:[#allocation2 + $0x18] sm:$0xff]  ;;  %v1555_v4 = vld [vmem:[%s2724_s0 + $0x1c0] sm:$0xf]  ;;  %v1428_v19 = vor.u32 %v1674_v3, %v1427_v2  ;;  %v157_v3 = vld [vmem:[#allocation2 + $0x50] sm:$0xff] }
  0xc4   :  { %v758_v6 = vpop.f32.mrf.mxu2  ;;  %1066 = vst.msk [vmem:[#allocation2 + $0x20] sm:$0xff] %vm18_vm0, %v1001_v36  ;;  %v1200_v39 = vadd.f32 %v2115_v5, %v1132_v34 }
  0xc5   :  { %v927_v8 = vpop.f32.mrf.mxu3  ;;  %1295 = vst.msk [vmem:[%s2726_s3 + $0x110] sm:$0xff] %vm18_vm0, %v1231_v33 }
  0xc6   :  { %v928_v9 = vadd.f32 %v927_v8, %v758_v6  ;;  %v680_v10 = vpop.f32.mrf.mxu0  ;;  %1264 = vst.msk [vmem:[%s2726_s3 + $0x18] sm:$0xff] %vm18_vm0, %v1200_v39  ;;  %v1673_v8 = vld [vmem:[%s2724_s0 + $0xc4] sm:$0xf] }
  0xc7   :  { %v849_v11 = vpop.f32.mrf.mxu1 }
  0xc8   :  { %v1033_v13 = vadd.f32 %v928_v9, %v183_v7  ;;  %v850_v26 = vadd.f32 %v849_v11, %v680_v10  ;;  %v1706_v7 = vld [vmem:[%s2724_s0 + $0x1c4] sm:$0xf0]  ;;  %v1429_v10 = vld [vmem:[%s2724_s0 + $0xc8] sm:$0xf0]  ;;  %v1705_v11 = vld [vmem:[%s2724_s0 + $0x1c4] sm:$0xf] }
  0xc9   :  { %v1164_v40 = vld [vmem:[#allocation2 + $0x118] sm:$0xff]  ;;  %v1556_v20 = vor.u32 %v1706_v7, %v1555_v4  ;;  %v1432_v24 = vor.u32 %v1673_v8, %v1429_v10  ;;  %v1560_v25 = vor.u32 %v1705_v11, %v1557_v12 }
  0xca   :  { %1098 = vst.msk [vmem:[#allocation2 + $0x120] sm:$0xff] %vm18_vm0, %v1033_v13  ;;  %v1232_v46 = vadd.f32 %v2115_v5, %v1164_v40  ;;  %v1002_v48 = vadd.f32 %v850_v26, %v152_v31  ;;  %v155_v26 = vld [vmem:[#allocation2 + $0x40] sm:$0xff] }
  0xcb   :  { %v1133_v47 = vld [vmem:[#allocation2 + $0x20] sm:$0xff] }
  0xcc   :  { %v760_v32 = vpop.f32.mrf.mxu2  ;;  %v1201_v51 = vadd.f32 %v2115_v5, %v1133_v47  ;;  %1296 = vst.msk [vmem:[%s2726_s3 + $0x118] sm:$0xff] %vm18_vm0, %v1232_v46  ;;  %v1676_v47 = vld [vmem:[%s2724_s0 + $0xd4] sm:$0xf0] }
  0xcd   :  { %v929_v35 = vpop.f32.mrf.mxu3  ;;  %1067 = vst.msk [vmem:[#allocation2 + $0x28] sm:$0xff] %vm18_vm0, %v1002_v48  ;;  %v1563_v48 = vld [vmem:[%s2724_s0 + $0x1d0] sm:$0xf] }
  0xce   :  { %v930_v42 = vadd.f32 %v929_v35, %v760_v32  ;;  %v683_v43 = vpop.f32.mrf.mxu0  ;;  %1265 = vst.msk [vmem:[%s2726_s3 + $0x20] sm:$0xff] %vm18_vm0, %v1201_v51  ;;  %v1708_v51 = vld [vmem:[%s2724_s0 + $0x1d4] sm:$0xf0] }
  0xcf   :  { %v852_v50 = vpop.f32.mrf.mxu1 }
  0xd0   :  { %v853_v52 = vadd.f32 %v852_v50, %v683_v43  ;;  %v1034_v54 = vadd.f32 %v930_v42, %v184_v41  ;;  %v156_v41 = vld [vmem:[#allocation2 + $0x48] sm:$0xff] }
  0xd1   :  { %v1165_v53 = vld [vmem:[#allocation2 + $0x120] sm:$0xff]  ;;  %722 = vmatmul.bf16.gmra.mxu0 %v1420_v37  ;;  %802 = vmatmul.bf16.gmra.mxu2 %v1548_v38 }
  0xd2   :  { %v1233_v55 = vadd.f32 %v2115_v5, %v1165_v53  ;;  %v1003_v56 = vadd.f32 %v853_v52, %v153_v49  ;;  %891 = vmatmul.bf16.gmra.mxu1 %v1424_v44  ;;  %971 = vmatmul.bf16.gmra.mxu3 %v1552_v45  ;;  %1099 = vst.msk [vmem:[#allocation2 + $0x128] sm:$0xff] %vm18_vm0, %v1034_v54  ;;  %v187_v37 = vld [vmem:[#allocation2 + $0x140] sm:$0xff]  ;;  %v1435_v45 = vld [vmem:[%s2724_s0 + $0xd0] sm:$0xf]  ;;  %v1675_v52 = vld [vmem:[%s2724_s0 + $0xd4] sm:$0xf] }
  0xd3   :  { %v1437_v53 = vld [vmem:[%s2724_s0 + $0xd8] sm:$0xf0]  ;;  %v1707_v54 = vld [vmem:[%s2724_s0 + $0x1d4] sm:$0xf] }
  0xd4   :  { %1297 = vst.msk [vmem:[%s2726_s3 + $0x120] sm:$0xff] %vm18_vm0, %v1233_v55  ;;  %v763_v57 = vpop.f32.mrf.mxu2  ;;  %v1134_v36 = vld [vmem:[#allocation2 + $0x28] sm:$0xff]  ;;  %v1565_v55 = vld [vmem:[%s2724_s0 + $0x1d8] sm:$0xf0] }
  0xd5   :  { %v932_v59 = vpop.f32.mrf.mxu3  ;;  %1068 = vst.msk [vmem:[#allocation2 + $0x30] sm:$0xff] %vm18_vm0, %v1003_v56  ;;  %v1202_v9 = vadd.f32 %v2115_v5, %v1134_v36  ;;  %v1568_v2 = vor.u32 %v1707_v54, %v1565_v55  ;;  %v191_v54 = vld [vmem:[#allocation2 + $0x160] sm:$0xff] }
  0xd6   :  { %v933_v60 = vadd.f32 %v932_v59, %v763_v57  ;;  %v685_v61 = vpop.f32.mrf.mxu0  ;;  %v188_v59 = vld [vmem:[#allocation2 + $0x148] sm:$0xff] }
  0xd7   :  { %v854_v63 = vpop.f32.mrf.mxu1  ;;  %1266 = vst.msk [vmem:[%s2726_s3 + $0x28] sm:$0xff] %vm18_vm0, %v1202_v9 }
  0xd8   :  { %v1035_v0 = vadd.f32 %v933_v60, %v185_v58  ;;  %v855_v1 = vadd.f32 %v854_v63, %v685_v61  ;;  %v1436_v61 = vor.u32 %v1676_v47, %v1435_v45 }
  0xd9   :  { %v1166_v13 = vld [vmem:[#allocation2 + $0x128] sm:$0xff] }
  0xda   :  { %1100 = vst.msk [vmem:[#allocation2 + $0x130] sm:$0xff] %vm18_vm0, %v1035_v0  ;;  %v1004_v6 = vadd.f32 %v855_v1, %v154_v62  ;;  %v1234_v15 = vadd.f32 %v2115_v5, %v1166_v13  ;;  %v1564_v62 = vor.u32 %v1708_v51, %v1563_v48  ;;  %v1440_v1 = vor.u32 %v1675_v52, %v1437_v53  ;;  %v189_v13 = vld [vmem:[#allocation2 + $0x150] sm:$0xff] }
  0xdc   :  { %1069 = vst.msk [vmem:[#allocation2 + $0x38] sm:$0xff] %vm18_vm0, %v1004_v6  ;;  %v765_v14 = vpop.f32.mrf.mxu2  ;;  %v1135_v16 = vld [vmem:[#allocation2 + $0x30] sm:$0xff] }
  0xdd   :  { %v934_v18 = vpop.f32.mrf.mxu3  ;;  %v1203_v21 = vadd.f32 %v2115_v5, %v1135_v16  ;;  %1298 = vst.msk [vmem:[%s2726_s3 + $0x128] sm:$0xff] %vm18_vm0, %v1234_v15 }
  0xde   :  { %v935_v22 = vadd.f32 %v934_v18, %v765_v14  ;;  %v688_v23 = vpop.f32.mrf.mxu0 }
  0xdf   :  { %v857_v27 = vpop.f32.mrf.mxu1  ;;  %1267 = vst.msk [vmem:[%s2726_s3 + $0x30] sm:$0xff] %vm18_vm0, %v1203_v21  ;;  %v1443_v21 = vld [vmem:[%s2724_s0 + $0xe0] sm:$0xf] }
  0xe0   :  { %v1036_v28 = vadd.f32 %v935_v22, %v186_v17  ;;  %v858_v29 = vadd.f32 %v857_v27, %v688_v23  ;;  %v158_v17 = vld [vmem:[#allocation2 + $0x58] sm:$0xff]  ;;  %v1678_v23 = vld [vmem:[%s2724_s0 + $0xe4] sm:$0xf0] }
  0xe1   :  { %v1167_v30 = vld [vmem:[#allocation2 + $0x130] sm:$0xff]  ;;  %727 = vmatmul.bf16.gmra.mxu0 %v1428_v19  ;;  %807 = vmatmul.bf16.gmra.mxu2 %v1556_v20  ;;  %v1710_v27 = vld [vmem:[%s2724_s0 + $0x1e4] sm:$0xf0] }
  0xe2   :  { %v1235_v31 = vadd.f32 %v2115_v5, %v1167_v30  ;;  %1101 = vst.msk [vmem:[#allocation2 + $0x138] sm:$0xff] %vm18_vm0, %v1036_v28  ;;  %v1005_v32 = vadd.f32 %v858_v29, %v155_v26  ;;  %896 = vmatmul.bf16.gmra.mxu1 %v1432_v24  ;;  %976 = vmatmul.bf16.gmra.mxu3 %v1560_v25  ;;  %v1571_v24 = vld [vmem:[%s2724_s0 + $0x1e0] sm:$0xf]  ;;  %v1677_v28 = vld [vmem:[%s2724_s0 + $0xe4] sm:$0xf] }
  0xe3   :  { %v1136_v33 = vld [vmem:[#allocation2 + $0x38] sm:$0xff]  ;;  %v1445_v29 = vld [vmem:[%s2724_s0 + $0xe8] sm:$0xf0]  ;;  %v1709_v30 = vld [vmem:[%s2724_s0 + $0x1e4] sm:$0xf] }
  0xe4   :  { %1299 = vst.msk [vmem:[%s2726_s3 + $0x130] sm:$0xff] %vm18_vm0, %v1235_v31  ;;  %v1204_v34 = vadd.f32 %v2115_v5, %v1136_v33  ;;  %v768_v35 = vpop.f32.mrf.mxu2  ;;  %v1573_v31 = vld [vmem:[%s2724_s0 + $0x1e8] sm:$0xf0] }
  0xe5   :  { %1070 = vst.msk [vmem:[#allocation2 + $0x40] sm:$0xff] %vm18_vm0, %v1005_v32  ;;  %v937_v38 = vpop.f32.mrf.mxu3 }
  0xe6   :  { %1268 = vst.msk [vmem:[%s2726_s3 + $0x38] sm:$0xff] %vm18_vm0, %v1204_v34  ;;  %v938_v39 = vadd.f32 %v937_v38, %v768_v35  ;;  %v690_v40 = vpop.f32.mrf.mxu0  ;;  %v190_v35 = vld [vmem:[#allocation2 + $0x158] sm:$0xff]  ;;  %v1444_v38 = vor.u32 %v1678_v23, %v1443_v21 }
  0xe7   :  { %v859_v42 = vpop.f32.mrf.mxu1 }
  0xe8   :  { %v1037_v43 = vadd.f32 %v938_v39, %v187_v37  ;;  %v860_v44 = vadd.f32 %v859_v42, %v690_v40  ;;  %v1572_v39 = vor.u32 %v1710_v27, %v1571_v24  ;;  %v1448_v42 = vor.u32 %v1677_v28, %v1445_v29 }
  0xe9   :  { %v1168_v46 = vld [vmem:[#allocation2 + $0x138] sm:$0xff] }
  0xea   :  { %v1236_v49 = vadd.f32 %v2115_v5, %v1168_v46  ;;  %1102 = vst.msk [vmem:[#allocation2 + $0x140] sm:$0xff] %vm18_vm0, %v1037_v43  ;;  %v1006_v50 = vadd.f32 %v860_v44, %v156_v41  ;;  %v1576_v43 = vor.u32 %v1709_v30, %v1573_v31  ;;  %v159_v44 = vld [vmem:[#allocation2 + $0x60] sm:$0xff]  ;;  %v193_v30 = vld [vmem:[#allocation2 + $0x170] sm:$0xff] }
  0xec   :  { %1300 = vst.msk [vmem:[%s2726_s3 + $0x138] sm:$0xff] %vm18_vm0, %v1236_v49  ;;  %v1137_v56 = vld [vmem:[#allocation2 + $0x40] sm:$0xff]  ;;  %v770_v57 = vpop.f32.mrf.mxu2 }
  0xed   :  { %v1205_v58 = vadd.f32 %v2115_v5, %v1137_v56  ;;  %1071 = vst.msk [vmem:[#allocation2 + $0x48] sm:$0xff] %vm18_vm0, %v1006_v50  ;;  %v939_v60 = vpop.f32.mrf.mxu3 }
  0xee   :  { %v940_v63 = vadd.f32 %v939_v60, %v770_v57  ;;  %v693_v0 = vpop.f32.mrf.mxu0 }
  0xef   :  { %1269 = vst.msk [vmem:[%s2726_s3 + $0x40] sm:$0xff] %vm18_vm0, %v1205_v58  ;;  %v862_v4 = vpop.f32.mrf.mxu1  ;;  %v160_v58 = vld [vmem:[#allocation2 + $0x68] sm:$0xff] }
  0xf0   :  { %v1038_v36 = vadd.f32 %v940_v63, %v188_v59  ;;  %v863_v6 = vadd.f32 %v862_v4, %v693_v0  ;;  %v1680_v0 = vld [vmem:[%s2724_s0 + $0xf4] sm:$0xf0] }
  0xf1   :  { %v1169_v7 = vld [vmem:[#allocation2 + $0x140] sm:$0xff]  ;;  %732 = vmatmul.bf16.gmra.mxu0 %v1436_v61  ;;  %812 = vmatmul.bf16.gmra.mxu2 %v1564_v62  ;;  %v1451_v62 = vld [vmem:[%s2724_s0 + $0xf0] sm:$0xf]  ;;  %v1712_v4 = vld [vmem:[%s2724_s0 + $0x1f4] sm:$0xf0] }
  0xf2   :  { %v1237_v8 = vadd.f32 %v2115_v5, %v1169_v7  ;;  %1103 = vst.msk [vmem:[#allocation2 + $0x148] sm:$0xff] %vm18_vm0, %v1038_v36  ;;  %v1007_v9 = vadd.f32 %v863_v6, %v157_v3  ;;  %901 = vmatmul.bf16.gmra.mxu1 %v1440_v1  ;;  %981 = vmatmul.bf16.gmra.mxu3 %v1568_v2  ;;  %v1579_v1 = vld [vmem:[%s2724_s0 + $0x1f0] sm:$0xf]  ;;  %v1679_v36 = vld [vmem:[%s2724_s0 + $0xf4] sm:$0xf] }
  0xf3   :  { %v1453_v6 = vld [vmem:[%s2724_s0 + $0xf8] sm:$0xf0]  ;;  %v1711_v7 = vld [vmem:[%s2724_s0 + $0x1f4] sm:$0xf] }
  0xf4   :  { %1301 = vst.msk [vmem:[%s2726_s3 + $0x140] sm:$0xff] %vm18_vm0, %v1237_v8  ;;  %v1138_v10 = vld [vmem:[#allocation2 + $0x48] sm:$0xff]  ;;  %v773_v11 = vpop.f32.mrf.mxu2  ;;  %v1581_v8 = vld [vmem:[%s2724_s0 + $0x1f8] sm:$0xf0] }
  0xf5   :  { %v1206_v12 = vadd.f32 %v2115_v5, %v1138_v10  ;;  %1072 = vst.msk [vmem:[#allocation2 + $0x50] sm:$0xff] %vm18_vm0, %v1007_v9  ;;  %v942_v14 = vpop.f32.mrf.mxu3 }
  0xf6   :  { %v943_v15 = vadd.f32 %v942_v14, %v773_v11  ;;  %v695_v16 = vpop.f32.mrf.mxu0  ;;  %v1452_v14 = vor.u32 %v1680_v0, %v1451_v62 }
  0xf7   :  { %1270 = vst.msk [vmem:[%s2726_s3 + $0x48] sm:$0xff] %vm18_vm0, %v1206_v12  ;;  %v864_v18 = vpop.f32.mrf.mxu1  ;;  %v192_v12 = vld [vmem:[#allocation2 + $0x168] sm:$0xff] }
  0xf8   :  { %v1039_v19 = vadd.f32 %v943_v15, %v189_v13  ;;  %v865_v20 = vadd.f32 %v864_v18, %v695_v16  ;;  %v1580_v15 = vor.u32 %v1712_v4, %v1579_v1  ;;  %v1456_v18 = vor.u32 %v1679_v36, %v1453_v6 }
  0xf9   :  { %v1170_v22 = vld [vmem:[#allocation2 + $0x148] sm:$0xff] }
  0xfa   :  { %v1238_v25 = vadd.f32 %v2115_v5, %v1170_v22  ;;  %1104 = vst.msk [vmem:[#allocation2 + $0x150] sm:$0xff] %vm18_vm0, %v1039_v19  ;;  %v1008_v26 = vadd.f32 %v865_v20, %v158_v17  ;;  %v1584_v19 = vor.u32 %v1711_v7, %v1581_v8  ;;  %v161_v20 = vld [vmem:[#allocation2 + $0x70] sm:$0xff] }
  0xfc   :  { %1302 = vst.msk [vmem:[%s2726_s3 + $0x148] sm:$0xff] %vm18_vm0, %v1238_v25  ;;  %v1139_v32 = vld [vmem:[#allocation2 + $0x50] sm:$0xff]  ;;  %v775_v33 = vpop.f32.mrf.mxu2 }
  0xfd   :  { %v1207_v34 = vadd.f32 %v2115_v5, %v1139_v32  ;;  %1073 = vst.msk [vmem:[#allocation2 + $0x58] sm:$0xff] %vm18_vm0, %v1008_v26  ;;  %v944_v37 = vpop.f32.mrf.mxu3 }
  0xfe   :  { %v945_v40 = vadd.f32 %v944_v37, %v775_v33  ;;  %v698_v41 = vpop.f32.mrf.mxu0 }
  0xff   :  { %1271 = vst.msk [vmem:[%s2726_s3 + $0x50] sm:$0xff] %vm18_vm0, %v1207_v34  ;;  %v867_v45 = vpop.f32.mrf.mxu1  ;;  %v162_v34 = vld [vmem:[#allocation2 + $0x78] sm:$0xff] }
 0x100   :  { %v1040_v46 = vadd.f32 %v945_v40, %v190_v35  ;;  %v868_v47 = vadd.f32 %v867_v45, %v698_v41  ;;  %v194_v45 = vld [vmem:[#allocation2 + $0x178] sm:$0xff] }
 0x101   :  { %v1171_v48 = vld [vmem:[#allocation2 + $0x150] sm:$0xff]  ;;  %737 = vmatmul.bf16.gmra.mxu0 %v1444_v38  ;;  %817 = vmatmul.bf16.gmra.mxu2 %v1572_v39 }
 0x102   :  { %v1239_v49 = vadd.f32 %v2115_v5, %v1171_v48  ;;  %1105 = vst.msk [vmem:[#allocation2 + $0x158] sm:$0xff] %vm18_vm0, %v1040_v46  ;;  %v1009_v50 = vadd.f32 %v868_v47, %v159_v44  ;;  %906 = vmatmul.bf16.gmra.mxu1 %v1448_v42  ;;  %986 = vmatmul.bf16.gmra.mxu3 %v1576_v43 }
 0x104   :  { %1303 = vst.msk [vmem:[%s2726_s3 + $0x150] sm:$0xff] %vm18_vm0, %v1239_v49  ;;  %v1140_v51 = vld [vmem:[#allocation2 + $0x58] sm:$0xff]  ;;  %v778_v52 = vpop.f32.mrf.mxu2  ;;  %v163_v49 = vld [vmem:[#allocation2 + $0x80] sm:$0xff] }
 0x105   :  { %v1208_v53 = vadd.f32 %v2115_v5, %v1140_v51  ;;  %1074 = vst.msk [vmem:[#allocation2 + $0x60] sm:$0xff] %vm18_vm0, %v1009_v50  ;;  %v947_v55 = vpop.f32.mrf.mxu3 }
 0x106   :  { %v948_v56 = vadd.f32 %v947_v55, %v778_v52  ;;  %v700_v57 = vpop.f32.mrf.mxu0 }
 0x107   :  { %1272 = vst.msk [vmem:[%s2726_s3 + $0x58] sm:$0xff] %vm18_vm0, %v1208_v53  ;;  %v869_v59 = vpop.f32.mrf.mxu1 }
 0x108   :  { %v1041_v60 = vadd.f32 %v948_v56, %v191_v54  ;;  %v870_v61 = vadd.f32 %v869_v59, %v700_v57  ;;  %v195_v59 = vld [vmem:[#allocation2 + $0x180] sm:$0xff] }
 0x109   :  { %v1172_v63 = vld [vmem:[#allocation2 + $0x158] sm:$0xff] }
 0x10a   :  { %v1240_v2 = vadd.f32 %v2115_v5, %v1172_v63  ;;  %1106 = vst.msk [vmem:[#allocation2 + $0x160] sm:$0xff] %vm18_vm0, %v1041_v60  ;;  %v1010_v3 = vadd.f32 %v870_v61, %v160_v58  ;;  %v164_v63 = vld [vmem:[#allocation2 + $0x88] sm:$0xff] }
 0x10c   :  { %1304 = vst.msk [vmem:[%s2726_s3 + $0x158] sm:$0xff] %vm18_vm0, %v1240_v2  ;;  %v1141_v9 = vld [vmem:[#allocation2 + $0x60] sm:$0xff]  ;;  %v780_v10 = vpop.f32.mrf.mxu2 }
 0x10d   :  { %v1209_v11 = vadd.f32 %v2115_v5, %v1141_v9  ;;  %1075 = vst.msk [vmem:[#allocation2 + $0x68] sm:$0xff] %vm18_vm0, %v1010_v3  ;;  %v949_v13 = vpop.f32.mrf.mxu3  ;;  %v196_v9 = vld [vmem:[#allocation2 + $0x188] sm:$0xff] }
 0x10e   :  { %v950_v16 = vadd.f32 %v949_v13, %v780_v10  ;;  %v703_v17 = vpop.f32.mrf.mxu0  ;;  %v165_v13 = vld [vmem:[#allocation2 + $0x90] sm:$0xff] }
 0x10f   :  { %1273 = vst.msk [vmem:[%s2726_s3 + $0x60] sm:$0xff] %vm18_vm0, %v1209_v11  ;;  %v872_v21 = vpop.f32.mrf.mxu1 }
 0x110   :  { %v1042_v22 = vadd.f32 %v950_v16, %v192_v12  ;;  %v873_v23 = vadd.f32 %v872_v21, %v703_v17 }
 0x111   :  { %v1173_v24 = vld [vmem:[#allocation2 + $0x160] sm:$0xff]  ;;  %742 = vmatmul.bf16.gmra.mxu0 %v1452_v14  ;;  %822 = vmatmul.bf16.gmra.mxu2 %v1580_v15 }
 0x112   :  { %v1241_v25 = vadd.f32 %v2115_v5, %v1173_v24  ;;  %1107 = vst.msk [vmem:[#allocation2 + $0x168] sm:$0xff] %vm18_vm0, %v1042_v22  ;;  %v1011_v26 = vadd.f32 %v873_v23, %v161_v20  ;;  %911 = vmatmul.bf16.gmra.mxu1 %v1456_v18  ;;  %991 = vmatmul.bf16.gmra.mxu3 %v1584_v19  ;;  %v197_v23 = vld [vmem:[#allocation2 + $0x190] sm:$0xff] }
 0x114   :  { %1305 = vst.msk [vmem:[%s2726_s3 + $0x160] sm:$0xff] %vm18_vm0, %v1241_v25  ;;  %v1142_v27 = vld [vmem:[#allocation2 + $0x68] sm:$0xff]  ;;  %v783_v28 = vpop.f32.mrf.mxu2 }
 0x115   :  { %v1210_v29 = vadd.f32 %v2115_v5, %v1142_v27  ;;  %1076 = vst.msk [vmem:[#allocation2 + $0x70] sm:$0xff] %vm18_vm0, %v1011_v26  ;;  %v952_v31 = vpop.f32.mrf.mxu3  ;;  %v166_v27 = vld [vmem:[#allocation2 + $0x98] sm:$0xff] }
 0x116   :  { %v953_v32 = vadd.f32 %v952_v31, %v783_v28  ;;  %v705_v33 = vpop.f32.mrf.mxu0 }
 0x117   :  { %1274 = vst.msk [vmem:[%s2726_s3 + $0x68] sm:$0xff] %vm18_vm0, %v1210_v29  ;;  %v874_v35 = vpop.f32.mrf.mxu1 }
 0x118   :  { %v1043_v37 = vadd.f32 %v953_v32, %v193_v30  ;;  %v875_v38 = vadd.f32 %v874_v35, %v705_v33 }
 0x119   :  { %v1174_v39 = vld [vmem:[#allocation2 + $0x168] sm:$0xff] }
 0x11a   :  { %v1242_v40 = vadd.f32 %v2115_v5, %v1174_v39  ;;  %1108 = vst.msk [vmem:[#allocation2 + $0x170] sm:$0xff] %vm18_vm0, %v1043_v37  ;;  %v1012_v41 = vadd.f32 %v875_v38, %v162_v34  ;;  %v198_v38 = vld [vmem:[#allocation2 + $0x198] sm:$0xff] }
 0x11c   :  { %1306 = vst.msk [vmem:[%s2726_s3 + $0x168] sm:$0xff] %vm18_vm0, %v1242_v40  ;;  %v1143_v42 = vld [vmem:[#allocation2 + $0x70] sm:$0xff]  ;;  %v785_v43 = vpop.f32.mrf.mxu2 }
 0x11d   :  { %v1211_v44 = vadd.f32 %v2115_v5, %v1143_v42  ;;  %1077 = vst.msk [vmem:[#allocation2 + $0x78] sm:$0xff] %vm18_vm0, %v1012_v41  ;;  %v954_v46 = vpop.f32.mrf.mxu3  ;;  %v167_v42 = vld [vmem:[#allocation2 + $0xa0] sm:$0xff] }
 0x11e   :  { %v955_v47 = vadd.f32 %v954_v46, %v785_v43  ;;  %v708_v48 = vpop.f32.mrf.mxu0 }
 0x11f   :  { %1275 = vst.msk [vmem:[%s2726_s3 + $0x70] sm:$0xff] %vm18_vm0, %v1211_v44  ;;  %v877_v50 = vpop.f32.mrf.mxu1 }
 0x120   :  { %v1044_v51 = vadd.f32 %v955_v47, %v194_v45  ;;  %v878_v52 = vadd.f32 %v877_v50, %v708_v48 }
 0x121   :  { %v1175_v53 = vld [vmem:[#allocation2 + $0x170] sm:$0xff] }
 0x122   :  { %v1243_v54 = vadd.f32 %v2115_v5, %v1175_v53  ;;  %1109 = vst.msk [vmem:[#allocation2 + $0x178] sm:$0xff] %vm18_vm0, %v1044_v51  ;;  %v1013_v55 = vadd.f32 %v878_v52, %v163_v49  ;;  %v199_v52 = vld [vmem:[#allocation2 + $0x1a0] sm:$0xff] }
 0x124   :  { %1307 = vst.msk [vmem:[%s2726_s3 + $0x170] sm:$0xff] %vm18_vm0, %v1243_v54  ;;  %v1144_v56 = vld [vmem:[#allocation2 + $0x78] sm:$0xff]  ;;  %v788_v57 = vpop.f32.mrf.mxu2 }
 0x125   :  { %v1212_v58 = vadd.f32 %v2115_v5, %v1144_v56  ;;  %1078 = vst.msk [vmem:[#allocation2 + $0x80] sm:$0xff] %vm18_vm0, %v1013_v55  ;;  %v957_v60 = vpop.f32.mrf.mxu3  ;;  %v168_v56 = vld [vmem:[#allocation2 + $0xa8] sm:$0xff] }
 0x126   :  { %v958_v61 = vadd.f32 %v957_v60, %v788_v57  ;;  %v710_v62 = vpop.f32.mrf.mxu0 }
 0x127   :  { %1276 = vst.msk [vmem:[%s2726_s3 + $0x78] sm:$0xff] %vm18_vm0, %v1212_v58  ;;  %v879_v0 = vpop.f32.mrf.mxu1 }
 0x128   :  { %v1045_v1 = vadd.f32 %v958_v61, %v195_v59  ;;  %v880_v2 = vadd.f32 %v879_v0, %v710_v62 }
 0x129   :  { %v1176_v3 = vld [vmem:[#allocation2 + $0x178] sm:$0xff] }
 0x12a   :  { %v1244_v4 = vadd.f32 %v2115_v5, %v1176_v3  ;;  %1110 = vst.msk [vmem:[#allocation2 + $0x180] sm:$0xff] %vm18_vm0, %v1045_v1  ;;  %v1014_v36 = vadd.f32 %v880_v2, %v164_v63  ;;  %v200_v2 = vld [vmem:[#allocation2 + $0x1a8] sm:$0xff] }
 0x12c   :  { %1308 = vst.msk [vmem:[%s2726_s3 + $0x178] sm:$0xff] %vm18_vm0, %v1244_v4  ;;  %v1145_v6 = vld [vmem:[#allocation2 + $0x80] sm:$0xff]  ;;  %v790_v7 = vpop.f32.mrf.mxu2 }
 0x12d   :  { %v1213_v8 = vadd.f32 %v2115_v5, %v1145_v6  ;;  %1079 = vst.msk [vmem:[#allocation2 + $0x88] sm:$0xff] %vm18_vm0, %v1014_v36  ;;  %v959_v10 = vpop.f32.mrf.mxu3  ;;  %v169_v6 = vld [vmem:[#allocation2 + $0xb0] sm:$0xff] }
 0x12e   :  { %v960_v11 = vadd.f32 %v959_v10, %v790_v7  ;;  %v713_v12 = vpop.f32.mrf.mxu0 }
 0x12f   :  { %1277 = vst.msk [vmem:[%s2726_s3 + $0x80] sm:$0xff] %vm18_vm0, %v1213_v8  ;;  %v882_v14 = vpop.f32.mrf.mxu1 }
 0x130   :  { %v1046_v15 = vadd.f32 %v960_v11, %v196_v9  ;;  %v883_v16 = vadd.f32 %v882_v14, %v713_v12 }
 0x131   :  { %v1177_v17 = vld [vmem:[#allocation2 + $0x180] sm:$0xff] }
 0x132   :  { %v1245_v18 = vadd.f32 %v2115_v5, %v1177_v17  ;;  %1111 = vst.msk [vmem:[#allocation2 + $0x188] sm:$0xff] %vm18_vm0, %v1046_v15  ;;  %v1015_v19 = vadd.f32 %v883_v16, %v165_v13  ;;  %v201_v16 = vld [vmem:[#allocation2 + $0x1b0] sm:$0xff] }
 0x134   :  { %1309 = vst.msk [vmem:[%s2726_s3 + $0x180] sm:$0xff] %vm18_vm0, %v1245_v18  ;;  %v1146_v20 = vld [vmem:[#allocation2 + $0x88] sm:$0xff]  ;;  %v793_v21 = vpop.f32.mrf.mxu2 }
 0x135   :  { %v1214_v22 = vadd.f32 %v2115_v5, %v1146_v20  ;;  %1080 = vst.msk [vmem:[#allocation2 + $0x90] sm:$0xff] %vm18_vm0, %v1015_v19  ;;  %v962_v24 = vpop.f32.mrf.mxu3  ;;  %v170_v20 = vld [vmem:[#allocation2 + $0xb8] sm:$0xff] }
 0x136   :  { %v963_v25 = vadd.f32 %v962_v24, %v793_v21  ;;  %v715_v26 = vpop.f32.mrf.mxu0 }
 0x137   :  { %1278 = vst.msk [vmem:[%s2726_s3 + $0x88] sm:$0xff] %vm18_vm0, %v1214_v22  ;;  %v884_v28 = vpop.f32.mrf.mxu1 }
 0x138   :  { %v1047_v29 = vadd.f32 %v963_v25, %v197_v23  ;;  %v885_v30 = vadd.f32 %v884_v28, %v715_v26 }
 0x139   :  { %v1178_v31 = vld [vmem:[#allocation2 + $0x188] sm:$0xff] }
 0x13a   :  { %v1246_v32 = vadd.f32 %v2115_v5, %v1178_v31  ;;  %1112 = vst.msk [vmem:[#allocation2 + $0x190] sm:$0xff] %vm18_vm0, %v1047_v29  ;;  %v1016_v33 = vadd.f32 %v885_v30, %v166_v27  ;;  %v202_v30 = vld [vmem:[#allocation2 + $0x1b8] sm:$0xff] }
 0x13c   :  { %1310 = vst.msk [vmem:[%s2726_s3 + $0x188] sm:$0xff] %vm18_vm0, %v1246_v32  ;;  %v1147_v34 = vld [vmem:[#allocation2 + $0x90] sm:$0xff]  ;;  %v795_v35 = vpop.f32.mrf.mxu2 }
 0x13d   :  { %v1215_v37 = vadd.f32 %v2115_v5, %v1147_v34  ;;  %1081 = vst.msk [vmem:[#allocation2 + $0x98] sm:$0xff] %vm18_vm0, %v1016_v33  ;;  %v964_v39 = vpop.f32.mrf.mxu3  ;;  %v171_v34 = vld [vmem:[#allocation2 + $0xc0] sm:$0xff] }
 0x13e   :  { %v965_v40 = vadd.f32 %v964_v39, %v795_v35  ;;  %v718_v41 = vpop.f32.mrf.mxu0 }
 0x13f   :  { %1279 = vst.msk [vmem:[%s2726_s3 + $0x90] sm:$0xff] %vm18_vm0, %v1215_v37  ;;  %v887_v43 = vpop.f32.mrf.mxu1 }
 0x140   :  { %v1048_v44 = vadd.f32 %v965_v40, %v198_v38  ;;  %v888_v45 = vadd.f32 %v887_v43, %v718_v41 }
 0x141   :  { %v1179_v46 = vld [vmem:[#allocation2 + $0x190] sm:$0xff] }
 0x142   :  { %v1247_v47 = vadd.f32 %v2115_v5, %v1179_v46  ;;  %1113 = vst.msk [vmem:[#allocation2 + $0x198] sm:$0xff] %vm18_vm0, %v1048_v44  ;;  %v1017_v48 = vadd.f32 %v888_v45, %v167_v42  ;;  %v203_v45 = vld [vmem:[#allocation2 + $0x1c0] sm:$0xff] }
 0x144   :  { %1311 = vst.msk [vmem:[%s2726_s3 + $0x190] sm:$0xff] %vm18_vm0, %v1247_v47  ;;  %v1148_v49 = vld [vmem:[#allocation2 + $0x98] sm:$0xff]  ;;  %v798_v50 = vpop.f32.mrf.mxu2 }
 0x145   :  { %v1216_v51 = vadd.f32 %v2115_v5, %v1148_v49  ;;  %1082 = vst.msk [vmem:[#allocation2 + $0xa0] sm:$0xff] %vm18_vm0, %v1017_v48  ;;  %v967_v53 = vpop.f32.mrf.mxu3  ;;  %v172_v49 = vld [vmem:[#allocation2 + $0xc8] sm:$0xff] }
 0x146   :  { %v968_v54 = vadd.f32 %v967_v53, %v798_v50  ;;  %v720_v55 = vpop.f32.mrf.mxu0 }
 0x147   :  { %1280 = vst.msk [vmem:[%s2726_s3 + $0x98] sm:$0xff] %vm18_vm0, %v1216_v51  ;;  %v889_v57 = vpop.f32.mrf.mxu1 }
 0x148   :  { %v1049_v58 = vadd.f32 %v968_v54, %v199_v52  ;;  %v890_v59 = vadd.f32 %v889_v57, %v720_v55 }
 0x149   :  { %v1180_v60 = vld [vmem:[#allocation2 + $0x198] sm:$0xff] }
 0x14a   :  { %v1248_v61 = vadd.f32 %v2115_v5, %v1180_v60  ;;  %1114 = vst.msk [vmem:[#allocation2 + $0x1a0] sm:$0xff] %vm18_vm0, %v1049_v58  ;;  %v1018_v62 = vadd.f32 %v890_v59, %v168_v56  ;;  %v204_v59 = vld [vmem:[#allocation2 + $0x1c8] sm:$0xff] }
 0x14c   :  { %1312 = vst.msk [vmem:[%s2726_s3 + $0x198] sm:$0xff] %vm18_vm0, %v1248_v61  ;;  %v1149_v63 = vld [vmem:[#allocation2 + $0xa0] sm:$0xff]  ;;  %v800_v0 = vpop.f32.mrf.mxu2 }
 0x14d   :  { %v1217_v1 = vadd.f32 %v2115_v5, %v1149_v63  ;;  %1083 = vst.msk [vmem:[#allocation2 + $0xa8] sm:$0xff] %vm18_vm0, %v1018_v62  ;;  %v969_v3 = vpop.f32.mrf.mxu3  ;;  %v2585_v5 = vld [vmem:[%s2725_s2] ss:$0 sm:$0xff]  ;;  %v173_v63 = vld [vmem:[#allocation2 + $0xd0] sm:$0xff] }
 0x14e   :  { %v970_v4 = vadd.f32 %v969_v3, %v800_v0  ;;  %v723_v36 = vpop.f32.mrf.mxu0 }
 0x14f   :  { %1281 = vst.msk [vmem:[%s2726_s3 + $0xa0] sm:$0xff] %vm18_vm0, %v1217_v1  ;;  %v892_v7 = vpop.f32.mrf.mxu1 }
 0x150   :  { %v1050_v8 = vadd.f32 %v970_v4, %v200_v2  ;;  %v893_v9 = vadd.f32 %v892_v7, %v723_v36 }
 0x151   :  { %v1181_v10 = vld [vmem:[#allocation2 + $0x1a0] sm:$0xff] }
 0x152   :  { %v1249_v11 = vadd.f32 %v2585_v5, %v1181_v10  ;;  %1115 = vst.msk [vmem:[#allocation2 + $0x1a8] sm:$0xff] %vm18_vm0, %v1050_v8  ;;  %v1019_v12 = vadd.f32 %v893_v9, %v169_v6  ;;  %v205_v9 = vld [vmem:[#allocation2 + $0x1d0] sm:$0xff] }
 0x154   :  { %1313 = vst.msk [vmem:[%s2726_s3 + $0x1a0] sm:$0xff] %vm18_vm0, %v1249_v11  ;;  %v1150_v13 = vld [vmem:[#allocation2 + $0xa8] sm:$0xff]  ;;  %v803_v14 = vpop.f32.mrf.mxu2 }
 0x155   :  { %v1218_v15 = vadd.f32 %v2585_v5, %v1150_v13  ;;  %1084 = vst.msk [vmem:[#allocation2 + $0xb0] sm:$0xff] %vm18_vm0, %v1019_v12  ;;  %v972_v17 = vpop.f32.mrf.mxu3  ;;  %v174_v13 = vld [vmem:[#allocation2 + $0xd8] sm:$0xff] }
 0x156   :  { %v973_v18 = vadd.f32 %v972_v17, %v803_v14  ;;  %v725_v19 = vpop.f32.mrf.mxu0 }
 0x157   :  { %1282 = vst.msk [vmem:[%s2726_s3 + $0xa8] sm:$0xff] %vm18_vm0, %v1218_v15  ;;  %v894_v21 = vpop.f32.mrf.mxu1 }
 0x158   :  { %v1051_v22 = vadd.f32 %v973_v18, %v201_v16  ;;  %v895_v23 = vadd.f32 %v894_v21, %v725_v19 }
 0x159   :  { %v1182_v24 = vld [vmem:[#allocation2 + $0x1a8] sm:$0xff] }
 0x15a   :  { %v1250_v25 = vadd.f32 %v2585_v5, %v1182_v24  ;;  %1116 = vst.msk [vmem:[#allocation2 + $0x1b0] sm:$0xff] %vm18_vm0, %v1051_v22  ;;  %v1020_v26 = vadd.f32 %v895_v23, %v170_v20  ;;  %v206_v23 = vld [vmem:[#allocation2 + $0x1d8] sm:$0xff] }
 0x15c   :  { %1314 = vst.msk [vmem:[%s2726_s3 + $0x1a8] sm:$0xff] %vm18_vm0, %v1250_v25  ;;  %v1151_v27 = vld [vmem:[#allocation2 + $0xb0] sm:$0xff]  ;;  %v805_v28 = vpop.f32.mrf.mxu2 }
 0x15d   :  { %v1219_v29 = vadd.f32 %v2585_v5, %v1151_v27  ;;  %1085 = vst.msk [vmem:[#allocation2 + $0xb8] sm:$0xff] %vm18_vm0, %v1020_v26  ;;  %v974_v31 = vpop.f32.mrf.mxu3  ;;  %v175_v27 = vld [vmem:[#allocation2 + $0xe0] sm:$0xff] }
 0x15e   :  { %v975_v32 = vadd.f32 %v974_v31, %v805_v28  ;;  %v728_v33 = vpop.f32.mrf.mxu0 }
 0x15f   :  { %1283 = vst.msk [vmem:[%s2726_s3 + $0xb0] sm:$0xff] %vm18_vm0, %v1219_v29  ;;  %v897_v35 = vpop.f32.mrf.mxu1 }
 0x160   :  { %v1052_v37 = vadd.f32 %v975_v32, %v202_v30  ;;  %v898_v38 = vadd.f32 %v897_v35, %v728_v33 }
 0x161   :  { %v1183_v39 = vld [vmem:[#allocation2 + $0x1b0] sm:$0xff] }
 0x162   :  { %v1251_v40 = vadd.f32 %v2585_v5, %v1183_v39  ;;  %1117 = vst.msk [vmem:[#allocation2 + $0x1b8] sm:$0xff] %vm18_vm0, %v1052_v37  ;;  %v1021_v41 = vadd.f32 %v898_v38, %v171_v34  ;;  %v207_v38 = vld [vmem:[#allocation2 + $0x1e0] sm:$0xff] }
 0x164   :  { %1315 = vst.msk [vmem:[%s2726_s3 + $0x1b0] sm:$0xff] %vm18_vm0, %v1251_v40  ;;  %v1152_v42 = vld [vmem:[#allocation2 + $0xb8] sm:$0xff]  ;;  %v808_v43 = vpop.f32.mrf.mxu2 }
 0x165   :  { %v1220_v44 = vadd.f32 %v2585_v5, %v1152_v42  ;;  %1086 = vst.msk [vmem:[#allocation2 + $0xc0] sm:$0xff] %vm18_vm0, %v1021_v41  ;;  %v977_v46 = vpop.f32.mrf.mxu3  ;;  %v176_v42 = vld [vmem:[#allocation2 + $0xe8] sm:$0xff] }
 0x166   :  { %v978_v47 = vadd.f32 %v977_v46, %v808_v43  ;;  %v730_v48 = vpop.f32.mrf.mxu0 }
 0x167   :  { %1284 = vst.msk [vmem:[%s2726_s3 + $0xb8] sm:$0xff] %vm18_vm0, %v1220_v44  ;;  %v899_v50 = vpop.f32.mrf.mxu1 }
 0x168   :  { %v1053_v51 = vadd.f32 %v978_v47, %v203_v45  ;;  %v900_v52 = vadd.f32 %v899_v50, %v730_v48 }
 0x169   :  { %v1184_v53 = vld [vmem:[#allocation2 + $0x1b8] sm:$0xff] }
 0x16a   :  { %v1252_v54 = vadd.f32 %v2585_v5, %v1184_v53  ;;  %1118 = vst.msk [vmem:[#allocation2 + $0x1c0] sm:$0xff] %vm18_vm0, %v1053_v51  ;;  %v1022_v55 = vadd.f32 %v900_v52, %v172_v49  ;;  %v208_v52 = vld [vmem:[#allocation2 + $0x1e8] sm:$0xff] }
 0x16c   :  { %1316 = vst.msk [vmem:[%s2726_s3 + $0x1b8] sm:$0xff] %vm18_vm0, %v1252_v54  ;;  %v1153_v56 = vld [vmem:[#allocation2 + $0xc0] sm:$0xff]  ;;  %v810_v57 = vpop.f32.mrf.mxu2 }
 0x16d   :  { %v1221_v58 = vadd.f32 %v2585_v5, %v1153_v56  ;;  %1087 = vst.msk [vmem:[#allocation2 + $0xc8] sm:$0xff] %vm18_vm0, %v1022_v55  ;;  %v979_v60 = vpop.f32.mrf.mxu3  ;;  %v177_v56 = vld [vmem:[#allocation2 + $0xf0] sm:$0xff] }
 0x16e   :  { %v980_v61 = vadd.f32 %v979_v60, %v810_v57  ;;  %v733_v62 = vpop.f32.mrf.mxu0 }
 0x16f   :  { %1285 = vst.msk [vmem:[%s2726_s3 + $0xc0] sm:$0xff] %vm18_vm0, %v1221_v58  ;;  %v902_v0 = vpop.f32.mrf.mxu1 }
 0x170   :  { %v1054_v1 = vadd.f32 %v980_v61, %v204_v59  ;;  %v903_v2 = vadd.f32 %v902_v0, %v733_v62 }
 0x171   :  { %v1185_v3 = vld [vmem:[#allocation2 + $0x1c0] sm:$0xff] }
 0x172   :  { %v1253_v4 = vadd.f32 %v2585_v5, %v1185_v3  ;;  %1119 = vst.msk [vmem:[#allocation2 + $0x1c8] sm:$0xff] %vm18_vm0, %v1054_v1  ;;  %v1023_v36 = vadd.f32 %v903_v2, %v173_v63  ;;  %v209_v2 = vld [vmem:[#allocation2 + $0x1f0] sm:$0xff] }
 0x174   :  { %1317 = vst.msk [vmem:[%s2726_s3 + $0x1c0] sm:$0xff] %vm18_vm0, %v1253_v4  ;;  %v1154_v6 = vld [vmem:[#allocation2 + $0xc8] sm:$0xff]  ;;  %v813_v7 = vpop.f32.mrf.mxu2 }
 0x175   :  { %v1222_v8 = vadd.f32 %v2585_v5, %v1154_v6  ;;  %1088 = vst.msk [vmem:[#allocation2 + $0xd0] sm:$0xff] %vm18_vm0, %v1023_v36  ;;  %v982_v10 = vpop.f32.mrf.mxu3  ;;  %v178_v6 = vld [vmem:[#allocation2 + $0xf8] sm:$0xff] }
 0x176   :  { %v983_v11 = vadd.f32 %v982_v10, %v813_v7  ;;  %v735_v12 = vpop.f32.mrf.mxu0 }
 0x177   :  { %1286 = vst.msk [vmem:[%s2726_s3 + $0xc8] sm:$0xff] %vm18_vm0, %v1222_v8  ;;  %v904_v14 = vpop.f32.mrf.mxu1 }
 0x178   :  { %v1055_v15 = vadd.f32 %v983_v11, %v205_v9  ;;  %v905_v16 = vadd.f32 %v904_v14, %v735_v12 }
 0x179   :  { %v1186_v17 = vld [vmem:[#allocation2 + $0x1c8] sm:$0xff] }
 0x17a   :  { %v1254_v18 = vadd.f32 %v2585_v5, %v1186_v17  ;;  %1120 = vst.msk [vmem:[#allocation2 + $0x1d0] sm:$0xff] %vm18_vm0, %v1055_v15  ;;  %v1024_v19 = vadd.f32 %v905_v16, %v174_v13  ;;  %v210_v16 = vld [vmem:[#allocation2 + $0x1f8] sm:$0xff] }
 0x17c   :  { %1318 = vst.msk [vmem:[%s2726_s3 + $0x1c8] sm:$0xff] %vm18_vm0, %v1254_v18  ;;  %v1155_v20 = vld [vmem:[#allocation2 + $0xd0] sm:$0xff]  ;;  %v815_v21 = vpop.f32.mrf.mxu2 }
 0x17d   :  { %v1223_v22 = vadd.f32 %v2585_v5, %v1155_v20  ;;  %1089 = vst.msk [vmem:[#allocation2 + $0xd8] sm:$0xff] %vm18_vm0, %v1024_v19  ;;  %v984_v24 = vpop.f32.mrf.mxu3 }
 0x17e   :  { %v985_v25 = vadd.f32 %v984_v24, %v815_v21  ;;  %v738_v26 = vpop.f32.mrf.mxu0 }
 0x17f   :  { %1287 = vst.msk [vmem:[%s2726_s3 + $0xd0] sm:$0xff] %vm18_vm0, %v1223_v22  ;;  %v907_v28 = vpop.f32.mrf.mxu1 }
 0x180   :  { %v1056_v29 = vadd.f32 %v985_v25, %v206_v23  ;;  %v908_v30 = vadd.f32 %v907_v28, %v738_v26 }
 0x181   :  { %v1187_v31 = vld [vmem:[#allocation2 + $0x1d0] sm:$0xff] }
 0x182   :  { %v1255_v32 = vadd.f32 %v2585_v5, %v1187_v31  ;;  %1121 = vst.msk [vmem:[#allocation2 + $0x1d8] sm:$0xff] %vm18_vm0, %v1056_v29  ;;  %v1025_v33 = vadd.f32 %v908_v30, %v175_v27 }
 0x184   :  { %1319 = vst.msk [vmem:[%s2726_s3 + $0x1d0] sm:$0xff] %vm18_vm0, %v1255_v32  ;;  %v1156_v34 = vld [vmem:[#allocation2 + $0xd8] sm:$0xff]  ;;  %v818_v35 = vpop.f32.mrf.mxu2 }
 0x185   :  { %v1224_v37 = vadd.f32 %v2585_v5, %v1156_v34  ;;  %1090 = vst.msk [vmem:[#allocation2 + $0xe0] sm:$0xff] %vm18_vm0, %v1025_v33  ;;  %v987_v39 = vpop.f32.mrf.mxu3 }
 0x186   :  { %v988_v40 = vadd.f32 %v987_v39, %v818_v35  ;;  %v740_v41 = vpop.f32.mrf.mxu0 }
 0x187   :  { %1288 = vst.msk [vmem:[%s2726_s3 + $0xd8] sm:$0xff] %vm18_vm0, %v1224_v37  ;;  %v909_v43 = vpop.f32.mrf.mxu1 }
 0x188   :  { %v1057_v44 = vadd.f32 %v988_v40, %v207_v38  ;;  %v910_v45 = vadd.f32 %v909_v43, %v740_v41 }
 0x189   :  { %v1188_v46 = vld [vmem:[#allocation2 + $0x1d8] sm:$0xff] }
 0x18a   :  { %v1256_v47 = vadd.f32 %v2585_v5, %v1188_v46  ;;  %1122 = vst.msk [vmem:[#allocation2 + $0x1e0] sm:$0xff] %vm18_vm0, %v1057_v44  ;;  %v1026_v48 = vadd.f32 %v910_v45, %v176_v42 }
 0x18c   :  { %1320 = vst.msk [vmem:[%s2726_s3 + $0x1d8] sm:$0xff] %vm18_vm0, %v1256_v47  ;;  %v1157_v49 = vld [vmem:[#allocation2 + $0xe0] sm:$0xff]  ;;  %v820_v50 = vpop.f32.mrf.mxu2 }
 0x18d   :  { %v1225_v51 = vadd.f32 %v2585_v5, %v1157_v49  ;;  %1091 = vst.msk [vmem:[#allocation2 + $0xe8] sm:$0xff] %vm18_vm0, %v1026_v48  ;;  %v989_v53 = vpop.f32.mrf.mxu3 }
 0x18e   :  { %v990_v54 = vadd.f32 %v989_v53, %v820_v50  ;;  %v743_v55 = vpop.f32.mrf.mxu0 }
 0x18f   :  { %1289 = vst.msk [vmem:[%s2726_s3 + $0xe0] sm:$0xff] %vm18_vm0, %v1225_v51  ;;  %v912_v57 = vpop.f32.mrf.mxu1 }
 0x190   :  { %v1058_v58 = vadd.f32 %v990_v54, %v208_v52  ;;  %v913_v59 = vadd.f32 %v912_v57, %v743_v55 }
 0x191   :  { %v1189_v60 = vld [vmem:[#allocation2 + $0x1e0] sm:$0xff] }
 0x192   :  { %v1257_v61 = vadd.f32 %v2585_v5, %v1189_v60  ;;  %1123 = vst.msk [vmem:[#allocation2 + $0x1e8] sm:$0xff] %vm18_vm0, %v1058_v58  ;;  %v1027_v62 = vadd.f32 %v913_v59, %v177_v56 }
 0x194   :  { %1321 = vst.msk [vmem:[%s2726_s3 + $0x1e0] sm:$0xff] %vm18_vm0, %v1257_v61  ;;  %v1158_v63 = vld [vmem:[#allocation2 + $0xe8] sm:$0xff]  ;;  %v823_v0 = vpop.f32.mrf.mxu2 }
 0x195   :  { %v1226_v1 = vadd.f32 %v2585_v5, %v1158_v63  ;;  %1092 = vst.msk [vmem:[#allocation2 + $0xf0] sm:$0xff] %vm18_vm0, %v1027_v62  ;;  %v992_v3 = vpop.f32.mrf.mxu3 }
 0x196   :  { %v993_v4 = vadd.f32 %v992_v3, %v823_v0  ;;  %v745_v36 = vpop.f32.mrf.mxu0 }
 0x197   :  { %1290 = vst.msk [vmem:[%s2726_s3 + $0xe8] sm:$0xff] %vm18_vm0, %v1226_v1  ;;  %v914_v7 = vpop.f32.mrf.mxu1 }
 0x198   :  { %v1059_v8 = vadd.f32 %v993_v4, %v209_v2  ;;  %v915_v9 = vadd.f32 %v914_v7, %v745_v36 }
 0x199   :  { %v1190_v10 = vld [vmem:[#allocation2 + $0x1e8] sm:$0xff] }
 0x19a   :  { %v1258_v11 = vadd.f32 %v2585_v5, %v1190_v10  ;;  %1124 = vst.msk [vmem:[#allocation2 + $0x1f0] sm:$0xff] %vm18_vm0, %v1059_v8  ;;  %v1028_v12 = vadd.f32 %v915_v9, %v178_v6 }
 0x19c   :  { %1322 = vst.msk [vmem:[%s2726_s3 + $0x1e8] sm:$0xff] %vm18_vm0, %v1258_v11  ;;  %v1159_v13 = vld [vmem:[#allocation2 + $0xf0] sm:$0xff]  ;;  %v825_v14 = vpop.f32.mrf.mxu2 }
 0x19d   :  { %v1227_v15 = vadd.f32 %v2585_v5, %v1159_v13  ;;  %1093 = vst.msk [vmem:[#allocation2 + $0xf8] sm:$0xff] %vm18_vm0, %v1028_v12  ;;  %v994_v17 = vpop.f32.mrf.mxu3 }
 0x19e   :  { %v995_v18 = vadd.f32 %v994_v17, %v825_v14 }
 0x19f   :  { %1291 = vst.msk [vmem:[%s2726_s3 + $0xf0] sm:$0xff] %vm18_vm0, %v1227_v15 }
 0x1a0   :  { %v1060_v19 = vadd.f32 %v995_v18, %v210_v16 }
 0x1a1   :  { %v1191_v20 = vld [vmem:[#allocation2 + $0x1f0] sm:$0xff] }
 0x1a2   :  { %v1259_v21 = vadd.f32 %v2585_v5, %v1191_v20  ;;  %1125 = vst.msk [vmem:[#allocation2 + $0x1f8] sm:$0xff] %vm18_vm0, %v1060_v19 }
 0x1a4   :  { %1323 = vst.msk [vmem:[%s2726_s3 + $0x1f0] sm:$0xff] %vm18_vm0, %v1259_v21  ;;  %v1160_v22 = vld [vmem:[#allocation2 + $0xf8] sm:$0xff] }
 0x1a5   :  { %v1228_v23 = vadd.f32 %v2585_v5, %v1160_v22 }
 0x1a7   :  { %1292 = vst.msk [vmem:[%s2726_s3 + $0xf8] sm:$0xff] %vm18_vm0, %v1228_v23 }
 0x1a9   :  { %v1192_v24 = vld [vmem:[#allocation2 + $0x1f8] sm:$0xff] }
 0x1aa   :  { %v1260_v25 = vadd.f32 %v2585_v5, %v1192_v24 }
 0x1ac   :  { %1324 = vst.msk [vmem:[%s2726_s3 + $0x1f8] sm:$0xff] %vm18_vm0, %v1260_v25 }

// kernel: mlp_forward.3
= control target key start
LH: loop header
LB: loop body
LE: loop exit
PB: predicated region body
PF: predicated region fallthrough
CT: control target
= control target key end

     0   :  { %vm419_vm0 = vcmask 523264   ;;  %s2398_s1 = inlined_call_operand.vmem [shape: bf16[64,256], index: 1, kind: input, shape index: {}]   ;;  %s2399_s0 = inlined_call_operand.vmem [shape: f32[512,64], index: 0, kind: input, shape index: {}]   ;;  %s2400_s2 = inlined_call_operand.vmem [shape: f32[1,256], index: 2, kind: input, shape index: {}]   ;;  %s2401_s3 = inlined_call_operand.vmem [shape: bf16[512,256], index: 3, kind: output, shape index: {}]  }
   0x1   :  { %v1661_v0 = vld [vmem:[%s2398_s1 + $0x30] sm:$0xf]  ;;  %v1738_v1 = vld [vmem:[%s2398_s1 + $0x34] sm:$0xf0]  ;;  %v1737_v2 = vld [vmem:[%s2398_s1 + $0x34] sm:$0xf] }
   0x2   :  { %v1662_v3 = vor.u32 %v1738_v1, %v1661_v0  ;;  %v1663_v4 = vld [vmem:[%s2398_s1 + $0x38] sm:$0xf0]  ;;  %v1653_v5 = vld [vmem:[%s2398_s1 + $0x20] sm:$0xf]  ;;  %v1736_v6 = vld [vmem:[%s2398_s1 + $0x24] sm:$0xf0] }
   0x3   :  { %v1666_v7 = vor.u32 %v1737_v2, %v1663_v4  ;;  %v1735_v8 = vld [vmem:[%s2398_s1 + $0x24] sm:$0xf]  ;;  %v1655_v9 = vld [vmem:[%s2398_s1 + $0x28] sm:$0xf0]  ;;  %v1654_v10 = vor.u32 %v1736_v6, %v1653_v5  ;;  %v1645_v12 = vld [vmem:[%s2398_s1 + $0x10] sm:$0xf] }
   0x4   :  { %520 = vmatpush.bf16.msra.mxu0 %v1662_v3  ;;  %1739 = vmatpush.bf16.msra.mxu2 %v1662_v3  ;;  %v1658_v11 = vor.u32 %v1735_v8, %v1655_v9  ;;  %v1734_v13 = vld [vmem:[%s2398_s1 + $0x14] sm:$0xf0]  ;;  %v1733_v14 = vld [vmem:[%s2398_s1 + $0x14] sm:$0xf]  ;;  %v1647_v15 = vld [vmem:[%s2398_s1 + $0x18] sm:$0xf0] }
   0x5   :  { %689 = vmatpush.bf16.msra.mxu1 %v1666_v7  ;;  %1743 = vmatpush.bf16.msra.mxu3 %v1666_v7  ;;  %v1646_v16 = vor.u32 %v1734_v13, %v1645_v12  ;;  %v1650_v17 = vor.u32 %v1733_v14, %v1647_v15  ;;  %v1637_v18 = vld [vmem:[%s2398_s1] sm:$0xf]  ;;  %v1732_v19 = vld [vmem:[%s2398_s1 + $0x4] sm:$0xf0]  ;;  %v1731_v20 = vld [vmem:[%s2398_s1 + $0x4] sm:$0xf] }
   0x6   :  { %v1639_v21 = vld [vmem:[%s2398_s1 + $0x8] sm:$0xf0]  ;;  %v147_v22 = vld [vmem:[%s2399_s0] sm:$0xff]  ;;  %v1638_v23 = vor.u32 %v1732_v19, %v1637_v18  ;;  %v149_v30 = vld [vmem:[%s2399_s0 + $0x10] sm:$0xff] }
   0x7   :  { %v148_v24 = vld [vmem:[%s2399_s0 + $0x8] sm:$0xff]  ;;  %v179_v25 = vld [vmem:[%s2399_s0 + $0x100] sm:$0xff]  ;;  %v1642_v27 = vor.u32 %v1731_v20, %v1639_v21  ;;  %v150_v31 = vld [vmem:[%s2399_s0 + $0x18] sm:$0xff] }
   0x8   :  { %521 = vmatpush.bf16.msra.mxu0 %v1654_v10  ;;  %1740 = vmatpush.bf16.msra.mxu2 %v1654_v10  ;;  %v180_v26 = vld [vmem:[%s2399_s0 + $0x108] sm:$0xff]  ;;  %v211_v28 = vpack.c.bf16 %v148_v24, %v147_v22  ;;  %v181_v32 = vld [vmem:[%s2399_s0 + $0x110] sm:$0xff]  ;;  %v182_v33 = vld [vmem:[%s2399_s0 + $0x118] sm:$0xff]  ;;  %v212_v34 = vpack.c.bf16 %v150_v31, %v149_v30 }
   0x9   :  { %690 = vmatpush.bf16.msra.mxu1 %v1658_v11  ;;  %1744 = vmatpush.bf16.msra.mxu3 %v1658_v11  ;;  %v227_v29 = vpack.c.bf16 %v180_v26, %v179_v25  ;;  %v228_v35 = vpack.c.bf16 %v182_v33, %v181_v32  ;;  %v151_v36 = vld [vmem:[%s2399_s0 + $0x20] sm:$0xff]  ;;  %v152_v37 = vld [vmem:[%s2399_s0 + $0x28] sm:$0xff]  ;;  %v153_v42 = vld [vmem:[%s2399_s0 + $0x30] sm:$0xff] }
   0xa   :  { %v183_v38 = vld [vmem:[%s2399_s0 + $0x120] sm:$0xff]  ;;  %v184_v39 = vld [vmem:[%s2399_s0 + $0x128] sm:$0xff]  ;;  %v213_v40 = vpack.c.bf16 %v152_v37, %v151_v36  ;;  %v154_v43 = vld [vmem:[%s2399_s0 + $0x38] sm:$0xff] }
   0xb   :  { %v229_v41 = vpack.c.bf16 %v184_v39, %v183_v38  ;;  %v185_v44 = vld [vmem:[%s2399_s0 + $0x130] sm:$0xff]  ;;  %v186_v45 = vld [vmem:[%s2399_s0 + $0x138] sm:$0xff]  ;;  %v214_v46 = vpack.c.bf16 %v154_v43, %v153_v42  ;;  %v155_v48 = vld [vmem:[%s2399_s0 + $0x40] sm:$0xff] }
   0xc   :  { %522 = vmatpush.bf16.msra.mxu0 %v1646_v16  ;;  %1741 = vmatpush.bf16.msra.mxu2 %v1646_v16  ;;  %v230_v47 = vpack.c.bf16 %v186_v45, %v185_v44  ;;  %v156_v49 = vld [vmem:[%s2399_s0 + $0x48] sm:$0xff]  ;;  %v187_v50 = vld [vmem:[%s2399_s0 + $0x140] sm:$0xff]  ;;  %v157_v54 = vld [vmem:[%s2399_s0 + $0x50] sm:$0xff] }
   0xd   :  { %691 = vmatpush.bf16.msra.mxu1 %v1650_v17  ;;  %1745 = vmatpush.bf16.msra.mxu3 %v1650_v17  ;;  %v188_v51 = vld [vmem:[%s2399_s0 + $0x148] sm:$0xff]  ;;  %v215_v52 = vpack.c.bf16 %v156_v49, %v155_v48  ;;  %v158_v55 = vld [vmem:[%s2399_s0 + $0x58] sm:$0xff]  ;;  %v189_v56 = vld [vmem:[%s2399_s0 + $0x150] sm:$0xff] }
   0xe   :  { %v231_v53 = vpack.c.bf16 %v188_v51, %v187_v50  ;;  %v190_v57 = vld [vmem:[%s2399_s0 + $0x158] sm:$0xff]  ;;  %v216_v58 = vpack.c.bf16 %v158_v55, %v157_v54  ;;  %v159_v60 = vld [vmem:[%s2399_s0 + $0x60] sm:$0xff]  ;;  %v160_v61 = vld [vmem:[%s2399_s0 + $0x68] sm:$0xff] }
   0xf   :  { %v232_v59 = vpack.c.bf16 %v190_v57, %v189_v56  ;;  %v191_v62 = vld [vmem:[%s2399_s0 + $0x160] sm:$0xff]  ;;  %v192_v63 = vld [vmem:[%s2399_s0 + $0x168] sm:$0xff]  ;;  %v217_v0 = vpack.c.bf16 %v160_v61, %v159_v60  ;;  %v161_v2 = vld [vmem:[%s2399_s0 + $0x70] sm:$0xff] }
  0x10   :  { %523 = vmatpush.bf16.msra.mxu0 %v1638_v23  ;;  %1742 = vmatpush.bf16.msra.mxu2 %v1638_v23  ;;  %v233_v1 = vpack.c.bf16 %v192_v63, %v191_v62  ;;  %v162_v3 = vld [vmem:[%s2399_s0 + $0x78] sm:$0xff]  ;;  %v193_v4 = vld [vmem:[%s2399_s0 + $0x170] sm:$0xff]  ;;  %v1241_v8 = vld [vmem:[%s2400_s2] sm:$0x3] }
  0x11   :  { %692 = vmatpush.bf16.msra.mxu1 %v1642_v27  ;;  %1746 = vmatpush.bf16.msra.mxu3 %v1642_v27  ;;  %v194_v5 = vld [vmem:[%s2399_s0 + $0x178] sm:$0xff]  ;;  %v218_v6 = vpack.c.bf16 %v162_v3, %v161_v2  ;;  %v163_v9 = vld [vmem:[%s2399_s0 + $0x80] sm:$0xff]  ;;  %v164_v10 = vld [vmem:[%s2399_s0 + $0x88] sm:$0xff]  ;;  %v1958_v13 = vperm.slane %v1241_v8, 0  ;;  %v1960_v14 = vperm.slane %v1241_v8, 1 }
  0x12   :  { %v234_v7 = vpack.c.bf16 %v194_v5, %v193_v4  ;;  %v195_v11 = vld [vmem:[%s2399_s0 + $0x180] sm:$0xff]  ;;  %v196_v12 = vld [vmem:[%s2399_s0 + $0x188] sm:$0xff]  ;;  %v219_v15 = vpack.c.bf16 %v164_v10, %v163_v9  ;;  %v166_v38 = vld [vmem:[%s2399_s0 + $0x98] sm:$0xff] }
  0x13   :  { %1667 = vmatmul.msk.bf16.vlgmr.msra.gmra.mxu0 %vm419_vm0, %v211_v28  ;;  %1683 = vmatmul.msk.bf16.vlgmr.msra.gmra.mxu2 %vm419_vm0, %v227_v29  ;;  %v235_v16 = vpack.c.bf16 %v196_v12, %v195_v11  ;;  %v197_v39 = vld [vmem:[%s2399_s0 + $0x190] sm:$0xff]  ;;  %v167_v5 = vld [vmem:[%s2399_s0 + $0xa0] sm:$0xff]  ;;  %v168_v8 = vld [vmem:[%s2399_s0 + $0xa8] sm:$0xff] }
  0x14   :  { %1699 = vmatmul.msk.bf16.vlgmr.msra.gmra.mxu1 %vm419_vm0, %v211_v28  ;;  %1715 = vmatmul.msk.bf16.vlgmr.msra.gmra.mxu3 %vm419_vm0, %v227_v29  ;;  %v199_v9 = vld [vmem:[%s2399_s0 + $0x1a0] sm:$0xff]  ;;  %v200_v10 = vld [vmem:[%s2399_s0 + $0x1a8] sm:$0xff] }
  0x23   :  { %1668 = vmatmul.msk.bf16.gmra.mxu0 %vm419_vm0, %v212_v34  ;;  %1684 = vmatmul.msk.bf16.gmra.mxu2 %vm419_vm0, %v228_v35 }
  0x24   :  { %1700 = vmatmul.msk.bf16.gmra.mxu1 %vm419_vm0, %v212_v34  ;;  %1716 = vmatmul.msk.bf16.gmra.mxu3 %vm419_vm0, %v228_v35  ;;  %v165_v35 = vld [vmem:[%s2399_s0 + $0x90] sm:$0xff] }
  0x25   :  { %v220_v45 = vpack.c.bf16 %v166_v38, %v165_v35 }
  0x33   :  { %1669 = vmatmul.msk.bf16.gmra.mxu0 %vm419_vm0, %v213_v40  ;;  %1685 = vmatmul.msk.bf16.gmra.mxu2 %vm419_vm0, %v229_v41 }
  0x34   :  { %1701 = vmatmul.msk.bf16.gmra.mxu1 %vm419_vm0, %v213_v40  ;;  %1717 = vmatmul.msk.bf16.gmra.mxu3 %vm419_vm0, %v229_v41  ;;  %v198_v40 = vld [vmem:[%s2399_s0 + $0x198] sm:$0xff] }
  0x43   :  { %1670 = vmatmul.msk.bf16.gmra.mxu0 %vm419_vm0, %v214_v46  ;;  %1686 = vmatmul.msk.bf16.gmra.mxu2 %vm419_vm0, %v230_v47 }
  0x44   :  { %1702 = vmatmul.msk.bf16.gmra.mxu1 %vm419_vm0, %v214_v46  ;;  %1718 = vmatmul.msk.bf16.gmra.mxu3 %vm419_vm0, %v230_v47  ;;  %v236_v46 = vpack.c.bf16 %v198_v40, %v197_v39 }
  0x53   :  { %1671 = vmatmul.msk.bf16.gmra.mxu0 %vm419_vm0, %v215_v52  ;;  %1687 = vmatmul.msk.bf16.gmra.mxu2 %vm419_vm0, %v231_v53 }
  0x54   :  { %1703 = vmatmul.msk.bf16.gmra.mxu1 %vm419_vm0, %v215_v52  ;;  %1719 = vmatmul.msk.bf16.gmra.mxu3 %vm419_vm0, %v231_v53 }
  0x63   :  { %1672 = vmatmul.msk.bf16.gmra.mxu0 %vm419_vm0, %v216_v58  ;;  %1688 = vmatmul.msk.bf16.gmra.mxu2 %vm419_vm0, %v232_v59 }
  0x64   :  { %1704 = vmatmul.msk.bf16.gmra.mxu1 %vm419_vm0, %v216_v58  ;;  %1720 = vmatmul.msk.bf16.gmra.mxu3 %vm419_vm0, %v232_v59 }
  0x73   :  { %1673 = vmatmul.msk.bf16.gmra.mxu0 %vm419_vm0, %v217_v0  ;;  %1689 = vmatmul.msk.bf16.gmra.mxu2 %vm419_vm0, %v233_v1 }
  0x74   :  { %1705 = vmatmul.msk.bf16.gmra.mxu1 %vm419_vm0, %v217_v0  ;;  %1721 = vmatmul.msk.bf16.gmra.mxu3 %vm419_vm0, %v233_v1 }
  0x83   :  { %1674 = vmatmul.msk.bf16.gmra.mxu0 %vm419_vm0, %v218_v6  ;;  %1690 = vmatmul.msk.bf16.gmra.mxu2 %vm419_vm0, %v234_v7 }
  0x84   :  { %1706 = vmatmul.msk.bf16.gmra.mxu1 %vm419_vm0, %v218_v6  ;;  %1722 = vmatmul.msk.bf16.gmra.mxu3 %vm419_vm0, %v234_v7 }
  0x90   :  { %v525_v17 = vpop.f32.mrf.mxu0 }
  0x91   :  { %v1247_v18 = vadd.f32 %v1958_v13, %v525_v17  ;;  %v694_v19 = vpop.f32.mrf.mxu1  ;;  %v221_v17 = vpack.c.bf16 %v168_v8, %v167_v5 }
  0x92   :  { %v1248_v20 = vadd.f32 %v1960_v14, %v694_v19 }
  0x93   :  { %v1375_v21 = vmax.f32 %v1247_v18, 0.0  ;;  %1675 = vmatmul.msk.bf16.gmra.mxu0 %vm419_vm0, %v219_v15  ;;  %1691 = vmatmul.msk.bf16.gmra.mxu2 %vm419_vm0, %v235_v16  ;;  %v237_v18 = vpack.c.bf16 %v200_v10, %v199_v9 }
  0x94   :  { %v1376_v22 = vmax.f32 %v1248_v20, 0.0  ;;  %1707 = vmatmul.msk.bf16.gmra.mxu1 %vm419_vm0, %v219_v15  ;;  %1723 = vmatmul.msk.bf16.gmra.mxu3 %vm419_vm0, %v235_v16 }
  0x96   :  { %v1503_v23 = vpack.c.bf16 %v1376_v22, %v1375_v21  ;;  %v605_v24 = vpop.f32.mrf.mxu2 }
  0x97   :  { %v1311_v25 = vadd.f32 %v1958_v13, %v605_v24  ;;  %v774_v26 = vpop.f32.mrf.mxu3 }
  0x98   :  { %1567 = vst [vmem:[%s2401_s3] sm:$0xff] %v1503_v23  ;;  %v1312_v27 = vadd.f32 %v1960_v14, %v774_v26  ;;  %v527_v28 = vpop.f32.mrf.mxu0 }
  0x99   :  { %v1439_v29 = vmax.f32 %v1311_v25, 0.0  ;;  %v1249_v30 = vadd.f32 %v1958_v13, %v527_v28  ;;  %v696_v31 = vpop.f32.mrf.mxu1 }
  0x9a   :  { %v1440_v32 = vmax.f32 %v1312_v27, 0.0  ;;  %v1250_v33 = vadd.f32 %v1960_v14, %v696_v31 }
  0x9b   :  { %v1377_v34 = vmax.f32 %v1249_v30, 0.0 }
  0x9c   :  { %v1535_v36 = vpack.c.bf16 %v1440_v32, %v1439_v29  ;;  %v1378_v37 = vmax.f32 %v1250_v33, 0.0 }
  0x9e   :  { %1599 = vst [vmem:[%s2401_s3 + $0x100] sm:$0xff] %v1535_v36  ;;  %v1504_v41 = vpack.c.bf16 %v1378_v37, %v1377_v34  ;;  %v607_v42 = vpop.f32.mrf.mxu2 }
  0x9f   :  { %v1313_v43 = vadd.f32 %v1958_v13, %v607_v42  ;;  %v776_v44 = vpop.f32.mrf.mxu3 }
  0xa0   :  { %1568 = vst [vmem:[%s2401_s3 + $0x8] sm:$0xff] %v1504_v41  ;;  %v1314_v47 = vadd.f32 %v1960_v14, %v776_v44  ;;  %v530_v48 = vpop.f32.mrf.mxu0  ;;  %v169_v41 = vld [vmem:[%s2399_s0 + $0xb0] sm:$0xff]  ;;  %v170_v44 = vld [vmem:[%s2399_s0 + $0xb8] sm:$0xff] }
  0xa1   :  { %v1441_v49 = vmax.f32 %v1313_v43, 0.0  ;;  %v1251_v50 = vadd.f32 %v1958_v13, %v530_v48  ;;  %v699_v51 = vpop.f32.mrf.mxu1 }
  0xa2   :  { %v1442_v52 = vmax.f32 %v1314_v47, 0.0  ;;  %v1252_v53 = vadd.f32 %v1960_v14, %v699_v51  ;;  %v222_v51 = vpack.c.bf16 %v170_v44, %v169_v41 }
  0xa3   :  { %v1379_v54 = vmax.f32 %v1251_v50, 0.0  ;;  %1676 = vmatmul.msk.bf16.gmra.mxu0 %vm419_vm0, %v220_v45  ;;  %1692 = vmatmul.msk.bf16.gmra.mxu2 %vm419_vm0, %v236_v46 }
  0xa4   :  { %v1536_v55 = vpack.c.bf16 %v1442_v52, %v1441_v49  ;;  %v1380_v56 = vmax.f32 %v1252_v53, 0.0  ;;  %1708 = vmatmul.msk.bf16.gmra.mxu1 %vm419_vm0, %v220_v45  ;;  %1724 = vmatmul.msk.bf16.gmra.mxu3 %vm419_vm0, %v236_v46  ;;  %v201_v45 = vld [vmem:[%s2399_s0 + $0x1b0] sm:$0xff]  ;;  %v202_v46 = vld [vmem:[%s2399_s0 + $0x1b8] sm:$0xff] }
  0xa5   :  { %v238_v52 = vpack.c.bf16 %v202_v46, %v201_v45 }
  0xa6   :  { %1600 = vst [vmem:[%s2401_s3 + $0x108] sm:$0xff] %v1536_v55  ;;  %v1505_v57 = vpack.c.bf16 %v1380_v56, %v1379_v54  ;;  %v610_v58 = vpop.f32.mrf.mxu2 }
  0xa7   :  { %v1315_v59 = vadd.f32 %v1958_v13, %v610_v58  ;;  %v779_v60 = vpop.f32.mrf.mxu3 }
  0xa8   :  { %1569 = vst [vmem:[%s2401_s3 + $0x10] sm:$0xff] %v1505_v57  ;;  %v1316_v61 = vadd.f32 %v1960_v14, %v779_v60  ;;  %v532_v62 = vpop.f32.mrf.mxu0 }
  0xa9   :  { %v1443_v63 = vmax.f32 %v1315_v59, 0.0  ;;  %v1253_v0 = vadd.f32 %v1958_v13, %v532_v62  ;;  %v701_v1 = vpop.f32.mrf.mxu1 }
  0xaa   :  { %v1444_v2 = vmax.f32 %v1316_v61, 0.0  ;;  %v1254_v3 = vadd.f32 %v1960_v14, %v701_v1 }
  0xab   :  { %v1381_v4 = vmax.f32 %v1253_v0, 0.0 }
  0xac   :  { %v1537_v6 = vpack.c.bf16 %v1444_v2, %v1443_v63  ;;  %v1382_v7 = vmax.f32 %v1254_v3, 0.0 }
  0xae   :  { %1601 = vst [vmem:[%s2401_s3 + $0x110] sm:$0xff] %v1537_v6  ;;  %v1506_v11 = vpack.c.bf16 %v1382_v7, %v1381_v4  ;;  %v612_v12 = vpop.f32.mrf.mxu2 }
  0xaf   :  { %v1317_v15 = vadd.f32 %v1958_v13, %v612_v12  ;;  %v781_v16 = vpop.f32.mrf.mxu3 }
  0xb0   :  { %1570 = vst [vmem:[%s2401_s3 + $0x18] sm:$0xff] %v1506_v11  ;;  %v1318_v19 = vadd.f32 %v1960_v14, %v781_v16  ;;  %v535_v20 = vpop.f32.mrf.mxu0  ;;  %v171_v11 = vld [vmem:[%s2399_s0 + $0xc0] sm:$0xff]  ;;  %v172_v16 = vld [vmem:[%s2399_s0 + $0xc8] sm:$0xff] }
  0xb1   :  { %v1445_v21 = vmax.f32 %v1317_v15, 0.0  ;;  %v1255_v22 = vadd.f32 %v1958_v13, %v535_v20  ;;  %v704_v23 = vpop.f32.mrf.mxu1 }
  0xb2   :  { %v1446_v24 = vmax.f32 %v1318_v19, 0.0  ;;  %v1256_v25 = vadd.f32 %v1960_v14, %v704_v23  ;;  %v223_v23 = vpack.c.bf16 %v172_v16, %v171_v11 }
  0xb3   :  { %v1383_v26 = vmax.f32 %v1255_v22, 0.0  ;;  %1677 = vmatmul.msk.bf16.gmra.mxu0 %vm419_vm0, %v221_v17  ;;  %1693 = vmatmul.msk.bf16.gmra.mxu2 %vm419_vm0, %v237_v18 }
  0xb4   :  { %v1538_v27 = vpack.c.bf16 %v1446_v24, %v1445_v21  ;;  %v1384_v28 = vmax.f32 %v1256_v25, 0.0  ;;  %1709 = vmatmul.msk.bf16.gmra.mxu1 %vm419_vm0, %v221_v17  ;;  %1725 = vmatmul.msk.bf16.gmra.mxu3 %vm419_vm0, %v237_v18  ;;  %v203_v17 = vld [vmem:[%s2399_s0 + $0x1c0] sm:$0xff]  ;;  %v204_v18 = vld [vmem:[%s2399_s0 + $0x1c8] sm:$0xff] }
  0xb5   :  { %v239_v24 = vpack.c.bf16 %v204_v18, %v203_v17 }
  0xb6   :  { %1602 = vst [vmem:[%s2401_s3 + $0x118] sm:$0xff] %v1538_v27  ;;  %v1507_v29 = vpack.c.bf16 %v1384_v28, %v1383_v26  ;;  %v615_v30 = vpop.f32.mrf.mxu2 }
  0xb7   :  { %v1319_v31 = vadd.f32 %v1958_v13, %v615_v30  ;;  %v784_v32 = vpop.f32.mrf.mxu3 }
  0xb8   :  { %1571 = vst [vmem:[%s2401_s3 + $0x20] sm:$0xff] %v1507_v29  ;;  %v1320_v33 = vadd.f32 %v1960_v14, %v784_v32  ;;  %v537_v34 = vpop.f32.mrf.mxu0 }
  0xb9   :  { %v1447_v35 = vmax.f32 %v1319_v31, 0.0  ;;  %v1257_v36 = vadd.f32 %v1958_v13, %v537_v34  ;;  %v706_v37 = vpop.f32.mrf.mxu1 }
  0xba   :  { %v1448_v38 = vmax.f32 %v1320_v33, 0.0  ;;  %v1258_v39 = vadd.f32 %v1960_v14, %v706_v37 }
  0xbb   :  { %v1385_v40 = vmax.f32 %v1257_v36, 0.0 }
  0xbc   :  { %v1539_v42 = vpack.c.bf16 %v1448_v38, %v1447_v35  ;;  %v1386_v43 = vmax.f32 %v1258_v39, 0.0 }
  0xbe   :  { %1603 = vst [vmem:[%s2401_s3 + $0x120] sm:$0xff] %v1539_v42  ;;  %v1508_v47 = vpack.c.bf16 %v1386_v43, %v1385_v40  ;;  %v617_v48 = vpop.f32.mrf.mxu2 }
  0xbf   :  { %v1321_v49 = vadd.f32 %v1958_v13, %v617_v48  ;;  %v786_v50 = vpop.f32.mrf.mxu3 }
  0xc0   :  { %1572 = vst [vmem:[%s2401_s3 + $0x28] sm:$0xff] %v1508_v47  ;;  %v1322_v53 = vadd.f32 %v1960_v14, %v786_v50  ;;  %v540_v54 = vpop.f32.mrf.mxu0  ;;  %v173_v47 = vld [vmem:[%s2399_s0 + $0xd0] sm:$0xff]  ;;  %v174_v50 = vld [vmem:[%s2399_s0 + $0xd8] sm:$0xff] }
  0xc1   :  { %v1449_v55 = vmax.f32 %v1321_v49, 0.0  ;;  %v1259_v56 = vadd.f32 %v1958_v13, %v540_v54  ;;  %v709_v57 = vpop.f32.mrf.mxu1 }
  0xc2   :  { %v1450_v58 = vmax.f32 %v1322_v53, 0.0  ;;  %v1260_v59 = vadd.f32 %v1960_v14, %v709_v57  ;;  %v224_v57 = vpack.c.bf16 %v174_v50, %v173_v47 }
  0xc3   :  { %v1387_v60 = vmax.f32 %v1259_v56, 0.0  ;;  %1678 = vmatmul.msk.bf16.gmra.mxu0 %vm419_vm0, %v222_v51  ;;  %1694 = vmatmul.msk.bf16.gmra.mxu2 %vm419_vm0, %v238_v52 }
  0xc4   :  { %v1540_v61 = vpack.c.bf16 %v1450_v58, %v1449_v55  ;;  %v1388_v62 = vmax.f32 %v1260_v59, 0.0  ;;  %1710 = vmatmul.msk.bf16.gmra.mxu1 %vm419_vm0, %v222_v51  ;;  %1726 = vmatmul.msk.bf16.gmra.mxu3 %vm419_vm0, %v238_v52  ;;  %v205_v51 = vld [vmem:[%s2399_s0 + $0x1d0] sm:$0xff]  ;;  %v206_v52 = vld [vmem:[%s2399_s0 + $0x1d8] sm:$0xff] }
  0xc5   :  { %v240_v58 = vpack.c.bf16 %v206_v52, %v205_v51 }
  0xc6   :  { %1604 = vst [vmem:[%s2401_s3 + $0x128] sm:$0xff] %v1540_v61  ;;  %v1509_v63 = vpack.c.bf16 %v1388_v62, %v1387_v60  ;;  %v620_v0 = vpop.f32.mrf.mxu2 }
  0xc7   :  { %v1323_v1 = vadd.f32 %v1958_v13, %v620_v0  ;;  %v789_v2 = vpop.f32.mrf.mxu3 }
  0xc8   :  { %1573 = vst [vmem:[%s2401_s3 + $0x30] sm:$0xff] %v1509_v63  ;;  %v1324_v3 = vadd.f32 %v1960_v14, %v789_v2  ;;  %v542_v4 = vpop.f32.mrf.mxu0 }
  0xc9   :  { %v1451_v5 = vmax.f32 %v1323_v1, 0.0  ;;  %v1261_v6 = vadd.f32 %v1958_v13, %v542_v4  ;;  %v711_v7 = vpop.f32.mrf.mxu1 }
  0xca   :  { %v1452_v8 = vmax.f32 %v1324_v3, 0.0  ;;  %v1262_v9 = vadd.f32 %v1960_v14, %v711_v7 }
  0xcb   :  { %v1389_v10 = vmax.f32 %v1261_v6, 0.0 }
  0xcc   :  { %v1541_v12 = vpack.c.bf16 %v1452_v8, %v1451_v5  ;;  %v1390_v15 = vmax.f32 %v1262_v9, 0.0 }
  0xce   :  { %1605 = vst [vmem:[%s2401_s3 + $0x130] sm:$0xff] %v1541_v12  ;;  %v1510_v19 = vpack.c.bf16 %v1390_v15, %v1389_v10  ;;  %v622_v20 = vpop.f32.mrf.mxu2 }
  0xcf   :  { %v1325_v21 = vadd.f32 %v1958_v13, %v622_v20  ;;  %v791_v22 = vpop.f32.mrf.mxu3 }
  0xd0   :  { %1574 = vst [vmem:[%s2401_s3 + $0x38] sm:$0xff] %v1510_v19  ;;  %v1326_v25 = vadd.f32 %v1960_v14, %v791_v22  ;;  %v545_v26 = vpop.f32.mrf.mxu0  ;;  %v175_v19 = vld [vmem:[%s2399_s0 + $0xe0] sm:$0xff]  ;;  %v176_v22 = vld [vmem:[%s2399_s0 + $0xe8] sm:$0xff] }
  0xd1   :  { %v1453_v27 = vmax.f32 %v1325_v21, 0.0  ;;  %v1263_v28 = vadd.f32 %v1958_v13, %v545_v26  ;;  %v714_v29 = vpop.f32.mrf.mxu1 }
  0xd2   :  { %v1454_v30 = vmax.f32 %v1326_v25, 0.0  ;;  %v1264_v31 = vadd.f32 %v1960_v14, %v714_v29  ;;  %v225_v29 = vpack.c.bf16 %v176_v22, %v175_v19 }
  0xd3   :  { %v1391_v32 = vmax.f32 %v1263_v28, 0.0  ;;  %1679 = vmatmul.msk.bf16.gmra.mxu0 %vm419_vm0, %v223_v23  ;;  %1695 = vmatmul.msk.bf16.gmra.mxu2 %vm419_vm0, %v239_v24 }
  0xd4   :  { %v1542_v33 = vpack.c.bf16 %v1454_v30, %v1453_v27  ;;  %v1392_v34 = vmax.f32 %v1264_v31, 0.0  ;;  %1711 = vmatmul.msk.bf16.gmra.mxu1 %vm419_vm0, %v223_v23  ;;  %1727 = vmatmul.msk.bf16.gmra.mxu3 %vm419_vm0, %v239_v24  ;;  %v207_v23 = vld [vmem:[%s2399_s0 + $0x1e0] sm:$0xff]  ;;  %v208_v24 = vld [vmem:[%s2399_s0 + $0x1e8] sm:$0xff] }
  0xd5   :  { %v241_v30 = vpack.c.bf16 %v208_v24, %v207_v23 }
  0xd6   :  { %1606 = vst [vmem:[%s2401_s3 + $0x138] sm:$0xff] %v1542_v33  ;;  %v1511_v35 = vpack.c.bf16 %v1392_v34, %v1391_v32  ;;  %v625_v36 = vpop.f32.mrf.mxu2 }
  0xd7   :  { %v1327_v37 = vadd.f32 %v1958_v13, %v625_v36  ;;  %v794_v38 = vpop.f32.mrf.mxu3 }
  0xd8   :  { %1575 = vst [vmem:[%s2401_s3 + $0x40] sm:$0xff] %v1511_v35  ;;  %v1328_v39 = vadd.f32 %v1960_v14, %v794_v38  ;;  %v547_v40 = vpop.f32.mrf.mxu0 }
  0xd9   :  { %v1455_v41 = vmax.f32 %v1327_v37, 0.0  ;;  %v1265_v42 = vadd.f32 %v1958_v13, %v547_v40  ;;  %v716_v43 = vpop.f32.mrf.mxu1 }
  0xda   :  { %v1456_v44 = vmax.f32 %v1328_v39, 0.0  ;;  %v1266_v45 = vadd.f32 %v1960_v14, %v716_v43 }
  0xdb   :  { %v1393_v46 = vmax.f32 %v1265_v42, 0.0 }
  0xdc   :  { %v1543_v48 = vpack.c.bf16 %v1456_v44, %v1455_v41  ;;  %v1394_v49 = vmax.f32 %v1266_v45, 0.0 }
  0xde   :  { %1607 = vst [vmem:[%s2401_s3 + $0x140] sm:$0xff] %v1543_v48  ;;  %v1512_v53 = vpack.c.bf16 %v1394_v49, %v1393_v46  ;;  %v627_v54 = vpop.f32.mrf.mxu2 }
  0xdf   :  { %v1329_v55 = vadd.f32 %v1958_v13, %v627_v54  ;;  %v796_v56 = vpop.f32.mrf.mxu3 }
  0xe0   :  { %1576 = vst [vmem:[%s2401_s3 + $0x48] sm:$0xff] %v1512_v53  ;;  %v1330_v59 = vadd.f32 %v1960_v14, %v796_v56  ;;  %v550_v60 = vpop.f32.mrf.mxu0  ;;  %v177_v53 = vld [vmem:[%s2399_s0 + $0xf0] sm:$0xff]  ;;  %v178_v56 = vld [vmem:[%s2399_s0 + $0xf8] sm:$0xff] }
  0xe1   :  { %v1457_v61 = vmax.f32 %v1329_v55, 0.0  ;;  %v1267_v62 = vadd.f32 %v1958_v13, %v550_v60  ;;  %v719_v63 = vpop.f32.mrf.mxu1 }
  0xe2   :  { %v1458_v0 = vmax.f32 %v1330_v59, 0.0  ;;  %v1268_v1 = vadd.f32 %v1960_v14, %v719_v63  ;;  %v226_v63 = vpack.c.bf16 %v178_v56, %v177_v53 }
  0xe3   :  { %v1395_v2 = vmax.f32 %v1267_v62, 0.0  ;;  %1680 = vmatmul.msk.bf16.gmra.mxu0 %vm419_vm0, %v224_v57  ;;  %1696 = vmatmul.msk.bf16.gmra.mxu2 %vm419_vm0, %v240_v58 }
  0xe4   :  { %v1544_v3 = vpack.c.bf16 %v1458_v0, %v1457_v61  ;;  %v1396_v4 = vmax.f32 %v1268_v1, 0.0  ;;  %1712 = vmatmul.msk.bf16.gmra.mxu1 %vm419_vm0, %v224_v57  ;;  %1728 = vmatmul.msk.bf16.gmra.mxu3 %vm419_vm0, %v240_v58  ;;  %v209_v57 = vld [vmem:[%s2399_s0 + $0x1f0] sm:$0xff]  ;;  %v210_v58 = vld [vmem:[%s2399_s0 + $0x1f8] sm:$0xff] }
  0xe5   :  { %v242_v0 = vpack.c.bf16 %v210_v58, %v209_v57 }
  0xe6   :  { %1608 = vst [vmem:[%s2401_s3 + $0x148] sm:$0xff] %v1544_v3  ;;  %v1513_v5 = vpack.c.bf16 %v1396_v4, %v1395_v2  ;;  %v630_v6 = vpop.f32.mrf.mxu2 }
  0xe7   :  { %v1331_v7 = vadd.f32 %v1958_v13, %v630_v6  ;;  %v799_v8 = vpop.f32.mrf.mxu3 }
  0xe8   :  { %1577 = vst [vmem:[%s2401_s3 + $0x50] sm:$0xff] %v1513_v5  ;;  %v1332_v9 = vadd.f32 %v1960_v14, %v799_v8  ;;  %v552_v10 = vpop.f32.mrf.mxu0 }
  0xe9   :  { %v1459_v11 = vmax.f32 %v1331_v7, 0.0  ;;  %v1269_v12 = vadd.f32 %v1958_v13, %v552_v10  ;;  %v721_v15 = vpop.f32.mrf.mxu1 }
  0xea   :  { %v1460_v16 = vmax.f32 %v1332_v9, 0.0  ;;  %v1270_v17 = vadd.f32 %v1960_v14, %v721_v15 }
  0xeb   :  { %v1397_v18 = vmax.f32 %v1269_v12, 0.0 }
  0xec   :  { %v1545_v20 = vpack.c.bf16 %v1460_v16, %v1459_v11  ;;  %v1398_v21 = vmax.f32 %v1270_v17, 0.0 }
  0xee   :  { %1609 = vst [vmem:[%s2401_s3 + $0x150] sm:$0xff] %v1545_v20  ;;  %v1514_v25 = vpack.c.bf16 %v1398_v21, %v1397_v18  ;;  %v632_v26 = vpop.f32.mrf.mxu2 }
  0xef   :  { %v1333_v27 = vadd.f32 %v1958_v13, %v632_v26  ;;  %v801_v28 = vpop.f32.mrf.mxu3 }
  0xf0   :  { %1578 = vst [vmem:[%s2401_s3 + $0x58] sm:$0xff] %v1514_v25  ;;  %v1334_v31 = vadd.f32 %v1960_v14, %v801_v28  ;;  %v555_v32 = vpop.f32.mrf.mxu0 }
  0xf1   :  { %v1461_v33 = vmax.f32 %v1333_v27, 0.0  ;;  %v1271_v34 = vadd.f32 %v1958_v13, %v555_v32  ;;  %v724_v35 = vpop.f32.mrf.mxu1 }
  0xf2   :  { %v1462_v36 = vmax.f32 %v1334_v31, 0.0  ;;  %v1272_v37 = vadd.f32 %v1960_v14, %v724_v35 }
  0xf3   :  { %v1399_v38 = vmax.f32 %v1271_v34, 0.0  ;;  %1681 = vmatmul.msk.bf16.gmra.mxu0 %vm419_vm0, %v225_v29  ;;  %1697 = vmatmul.msk.bf16.gmra.mxu2 %vm419_vm0, %v241_v30 }
  0xf4   :  { %v1546_v39 = vpack.c.bf16 %v1462_v36, %v1461_v33  ;;  %v1400_v40 = vmax.f32 %v1272_v37, 0.0  ;;  %1713 = vmatmul.msk.bf16.gmra.mxu1 %vm419_vm0, %v225_v29  ;;  %1729 = vmatmul.msk.bf16.gmra.mxu3 %vm419_vm0, %v241_v30 }
  0xf6   :  { %1610 = vst [vmem:[%s2401_s3 + $0x158] sm:$0xff] %v1546_v39  ;;  %v1515_v41 = vpack.c.bf16 %v1400_v40, %v1399_v38  ;;  %v635_v42 = vpop.f32.mrf.mxu2 }
  0xf7   :  { %v1335_v43 = vadd.f32 %v1958_v13, %v635_v42  ;;  %v804_v44 = vpop.f32.mrf.mxu3 }
  0xf8   :  { %1579 = vst [vmem:[%s2401_s3 + $0x60] sm:$0xff] %v1515_v41  ;;  %v1336_v45 = vadd.f32 %v1960_v14, %v804_v44  ;;  %v557_v46 = vpop.f32.mrf.mxu0 }
  0xf9   :  { %v1463_v47 = vmax.f32 %v1335_v43, 0.0  ;;  %v1273_v48 = vadd.f32 %v1958_v13, %v557_v46  ;;  %v726_v49 = vpop.f32.mrf.mxu1 }
  0xfa   :  { %v1464_v50 = vmax.f32 %v1336_v45, 0.0  ;;  %v1274_v51 = vadd.f32 %v1960_v14, %v726_v49 }
  0xfb   :  { %v1401_v52 = vmax.f32 %v1273_v48, 0.0 }
  0xfc   :  { %v1547_v54 = vpack.c.bf16 %v1464_v50, %v1463_v47  ;;  %v1402_v55 = vmax.f32 %v1274_v51, 0.0 }
  0xfe   :  { %1611 = vst [vmem:[%s2401_s3 + $0x160] sm:$0xff] %v1547_v54  ;;  %v1516_v59 = vpack.c.bf16 %v1402_v55, %v1401_v52  ;;  %v637_v60 = vpop.f32.mrf.mxu2 }
  0xff   :  { %v1337_v61 = vadd.f32 %v1958_v13, %v637_v60  ;;  %v806_v62 = vpop.f32.mrf.mxu3 }
 0x100   :  { %1580 = vst [vmem:[%s2401_s3 + $0x68] sm:$0xff] %v1516_v59  ;;  %v1338_v1 = vadd.f32 %v1960_v14, %v806_v62  ;;  %v560_v2 = vpop.f32.mrf.mxu0 }
 0x101   :  { %v1465_v3 = vmax.f32 %v1337_v61, 0.0  ;;  %v1275_v4 = vadd.f32 %v1958_v13, %v560_v2  ;;  %v729_v5 = vpop.f32.mrf.mxu1 }
 0x102   :  { %v1466_v6 = vmax.f32 %v1338_v1, 0.0  ;;  %v1276_v7 = vadd.f32 %v1960_v14, %v729_v5 }
 0x103   :  { %v1403_v8 = vmax.f32 %v1275_v4, 0.0  ;;  %1682 = vmatmul.msk.bf16.gmra.mxu0 %vm419_vm0, %v226_v63  ;;  %1698 = vmatmul.msk.bf16.gmra.mxu2 %vm419_vm0, %v242_v0 }
 0x104   :  { %v1548_v9 = vpack.c.bf16 %v1466_v6, %v1465_v3  ;;  %v1404_v10 = vmax.f32 %v1276_v7, 0.0  ;;  %1714 = vmatmul.msk.bf16.gmra.mxu1 %vm419_vm0, %v226_v63  ;;  %1730 = vmatmul.msk.bf16.gmra.mxu3 %vm419_vm0, %v242_v0 }
 0x106   :  { %1612 = vst [vmem:[%s2401_s3 + $0x168] sm:$0xff] %v1548_v9  ;;  %v1517_v11 = vpack.c.bf16 %v1404_v10, %v1403_v8  ;;  %v640_v12 = vpop.f32.mrf.mxu2 }
 0x107   :  { %v1339_v15 = vadd.f32 %v1958_v13, %v640_v12  ;;  %v809_v16 = vpop.f32.mrf.mxu3 }
 0x108   :  { %1581 = vst [vmem:[%s2401_s3 + $0x70] sm:$0xff] %v1517_v11  ;;  %v1340_v17 = vadd.f32 %v1960_v14, %v809_v16  ;;  %v562_v18 = vpop.f32.mrf.mxu0 }
 0x109   :  { %v1467_v19 = vmax.f32 %v1339_v15, 0.0  ;;  %v1277_v20 = vadd.f32 %v1958_v13, %v562_v18  ;;  %v731_v21 = vpop.f32.mrf.mxu1 }
 0x10a   :  { %v1468_v22 = vmax.f32 %v1340_v17, 0.0  ;;  %v1278_v23 = vadd.f32 %v1960_v14, %v731_v21 }
 0x10b   :  { %v1405_v24 = vmax.f32 %v1277_v20, 0.0 }
 0x10c   :  { %v1549_v25 = vpack.c.bf16 %v1468_v22, %v1467_v19  ;;  %v1406_v26 = vmax.f32 %v1278_v23, 0.0 }
 0x10e   :  { %1613 = vst [vmem:[%s2401_s3 + $0x170] sm:$0xff] %v1549_v25  ;;  %v1518_v27 = vpack.c.bf16 %v1406_v26, %v1405_v24  ;;  %v642_v28 = vpop.f32.mrf.mxu2 }
 0x10f   :  { %v1341_v29 = vadd.f32 %v1958_v13, %v642_v28  ;;  %v811_v30 = vpop.f32.mrf.mxu3 }
 0x110   :  { %1582 = vst [vmem:[%s2401_s3 + $0x78] sm:$0xff] %v1518_v27  ;;  %v1342_v31 = vadd.f32 %v1960_v14, %v811_v30  ;;  %v565_v32 = vpop.f32.mrf.mxu0 }
 0x111   :  { %v1469_v33 = vmax.f32 %v1341_v29, 0.0  ;;  %v1279_v34 = vadd.f32 %v1958_v13, %v565_v32  ;;  %v734_v35 = vpop.f32.mrf.mxu1 }
 0x112   :  { %v1470_v36 = vmax.f32 %v1342_v31, 0.0  ;;  %v1280_v37 = vadd.f32 %v1960_v14, %v734_v35 }
 0x113   :  { %v1407_v38 = vmax.f32 %v1279_v34, 0.0 }
 0x114   :  { %v1550_v39 = vpack.c.bf16 %v1470_v36, %v1469_v33  ;;  %v1408_v40 = vmax.f32 %v1280_v37, 0.0 }
 0x116   :  { %1614 = vst [vmem:[%s2401_s3 + $0x178] sm:$0xff] %v1550_v39  ;;  %v1519_v41 = vpack.c.bf16 %v1408_v40, %v1407_v38  ;;  %v645_v42 = vpop.f32.mrf.mxu2 }
 0x117   :  { %v1343_v43 = vadd.f32 %v1958_v13, %v645_v42  ;;  %v814_v44 = vpop.f32.mrf.mxu3 }
 0x118   :  { %1583 = vst [vmem:[%s2401_s3 + $0x80] sm:$0xff] %v1519_v41  ;;  %v1344_v45 = vadd.f32 %v1960_v14, %v814_v44  ;;  %v567_v46 = vpop.f32.mrf.mxu0 }
 0x119   :  { %v1471_v47 = vmax.f32 %v1343_v43, 0.0  ;;  %v1281_v48 = vadd.f32 %v1958_v13, %v567_v46  ;;  %v736_v49 = vpop.f32.mrf.mxu1 }
 0x11a   :  { %v1472_v50 = vmax.f32 %v1344_v45, 0.0  ;;  %v1282_v51 = vadd.f32 %v1960_v14, %v736_v49 }
 0x11b   :  { %v1409_v52 = vmax.f32 %v1281_v48, 0.0 }
 0x11c   :  { %v1551_v53 = vpack.c.bf16 %v1472_v50, %v1471_v47  ;;  %v1410_v54 = vmax.f32 %v1282_v51, 0.0 }
 0x11e   :  { %1615 = vst [vmem:[%s2401_s3 + $0x180] sm:$0xff] %v1551_v53  ;;  %v1520_v55 = vpack.c.bf16 %v1410_v54, %v1409_v52  ;;  %v647_v56 = vpop.f32.mrf.mxu2 }
 0x11f   :  { %v1345_v57 = vadd.f32 %v1958_v13, %v647_v56  ;;  %v816_v58 = vpop.f32.mrf.mxu3 }
 0x120   :  { %1584 = vst [vmem:[%s2401_s3 + $0x88] sm:$0xff] %v1520_v55  ;;  %v1346_v59 = vadd.f32 %v1960_v14, %v816_v58  ;;  %v570_v60 = vpop.f32.mrf.mxu0 }
 0x121   :  { %v1473_v61 = vmax.f32 %v1345_v57, 0.0  ;;  %v1283_v62 = vadd.f32 %v1958_v13, %v570_v60  ;;  %v739_v63 = vpop.f32.mrf.mxu1 }
 0x122   :  { %v1474_v0 = vmax.f32 %v1346_v59, 0.0  ;;  %v1284_v1 = vadd.f32 %v1960_v14, %v739_v63 }
 0x123   :  { %v1411_v2 = vmax.f32 %v1283_v62, 0.0 }
 0x124   :  { %v1552_v3 = vpack.c.bf16 %v1474_v0, %v1473_v61  ;;  %v1412_v4 = vmax.f32 %v1284_v1, 0.0 }
 0x126   :  { %1616 = vst [vmem:[%s2401_s3 + $0x188] sm:$0xff] %v1552_v3  ;;  %v1521_v5 = vpack.c.bf16 %v1412_v4, %v1411_v2  ;;  %v650_v6 = vpop.f32.mrf.mxu2 }
 0x127   :  { %v1347_v7 = vadd.f32 %v1958_v13, %v650_v6  ;;  %v819_v8 = vpop.f32.mrf.mxu3 }
 0x128   :  { %1585 = vst [vmem:[%s2401_s3 + $0x90] sm:$0xff] %v1521_v5  ;;  %v1348_v9 = vadd.f32 %v1960_v14, %v819_v8  ;;  %v572_v10 = vpop.f32.mrf.mxu0 }
 0x129   :  { %v1475_v11 = vmax.f32 %v1347_v7, 0.0  ;;  %v1285_v12 = vadd.f32 %v1958_v13, %v572_v10  ;;  %v741_v15 = vpop.f32.mrf.mxu1 }
 0x12a   :  { %v1476_v16 = vmax.f32 %v1348_v9, 0.0  ;;  %v1286_v17 = vadd.f32 %v1960_v14, %v741_v15 }
 0x12b   :  { %v1413_v18 = vmax.f32 %v1285_v12, 0.0 }
 0x12c   :  { %v1553_v19 = vpack.c.bf16 %v1476_v16, %v1475_v11  ;;  %v1414_v20 = vmax.f32 %v1286_v17, 0.0 }
 0x12e   :  { %1617 = vst [vmem:[%s2401_s3 + $0x190] sm:$0xff] %v1553_v19  ;;  %v1522_v21 = vpack.c.bf16 %v1414_v20, %v1413_v18  ;;  %v652_v22 = vpop.f32.mrf.mxu2 }
 0x12f   :  { %v1349_v23 = vadd.f32 %v1958_v13, %v652_v22  ;;  %v821_v24 = vpop.f32.mrf.mxu3 }
 0x130   :  { %1586 = vst [vmem:[%s2401_s3 + $0x98] sm:$0xff] %v1522_v21  ;;  %v1350_v25 = vadd.f32 %v1960_v14, %v821_v24  ;;  %v575_v26 = vpop.f32.mrf.mxu0 }
 0x131   :  { %v1477_v27 = vmax.f32 %v1349_v23, 0.0  ;;  %v1287_v28 = vadd.f32 %v1958_v13, %v575_v26  ;;  %v744_v29 = vpop.f32.mrf.mxu1 }
 0x132   :  { %v1478_v30 = vmax.f32 %v1350_v25, 0.0  ;;  %v1288_v31 = vadd.f32 %v1960_v14, %v744_v29 }
 0x133   :  { %v1415_v32 = vmax.f32 %v1287_v28, 0.0 }
 0x134   :  { %v1554_v33 = vpack.c.bf16 %v1478_v30, %v1477_v27  ;;  %v1416_v34 = vmax.f32 %v1288_v31, 0.0 }
 0x136   :  { %1618 = vst [vmem:[%s2401_s3 + $0x198] sm:$0xff] %v1554_v33  ;;  %v1523_v35 = vpack.c.bf16 %v1416_v34, %v1415_v32  ;;  %v655_v36 = vpop.f32.mrf.mxu2 }
 0x137   :  { %v1351_v37 = vadd.f32 %v1958_v13, %v655_v36  ;;  %v824_v38 = vpop.f32.mrf.mxu3 }
 0x138   :  { %1587 = vst [vmem:[%s2401_s3 + $0xa0] sm:$0xff] %v1523_v35  ;;  %v1352_v39 = vadd.f32 %v1960_v14, %v824_v38  ;;  %v577_v40 = vpop.f32.mrf.mxu0 }
 0x139   :  { %v1479_v41 = vmax.f32 %v1351_v37, 0.0  ;;  %v1289_v42 = vadd.f32 %v1958_v13, %v577_v40  ;;  %v746_v43 = vpop.f32.mrf.mxu1 }
 0x13a   :  { %v1480_v44 = vmax.f32 %v1352_v39, 0.0  ;;  %v1290_v45 = vadd.f32 %v1960_v14, %v746_v43 }
 0x13b   :  { %v1417_v46 = vmax.f32 %v1289_v42, 0.0 }
 0x13c   :  { %v1555_v47 = vpack.c.bf16 %v1480_v44, %v1479_v41  ;;  %v1418_v48 = vmax.f32 %v1290_v45, 0.0 }
 0x13e   :  { %1619 = vst [vmem:[%s2401_s3 + $0x1a0] sm:$0xff] %v1555_v47  ;;  %v1524_v49 = vpack.c.bf16 %v1418_v48, %v1417_v46  ;;  %v657_v50 = vpop.f32.mrf.mxu2 }
 0x13f   :  { %v1353_v51 = vadd.f32 %v1958_v13, %v657_v50  ;;  %v826_v52 = vpop.f32.mrf.mxu3 }
 0x140   :  { %1588 = vst [vmem:[%s2401_s3 + $0xa8] sm:$0xff] %v1524_v49  ;;  %v1354_v53 = vadd.f32 %v1960_v14, %v826_v52  ;;  %v580_v54 = vpop.f32.mrf.mxu0 }
 0x141   :  { %v1481_v55 = vmax.f32 %v1353_v51, 0.0  ;;  %v1291_v56 = vadd.f32 %v1958_v13, %v580_v54  ;;  %v749_v57 = vpop.f32.mrf.mxu1 }
 0x142   :  { %v1482_v58 = vmax.f32 %v1354_v53, 0.0  ;;  %v1292_v59 = vadd.f32 %v1960_v14, %v749_v57 }
 0x143   :  { %v1419_v60 = vmax.f32 %v1291_v56, 0.0 }
 0x144   :  { %v1556_v61 = vpack.c.bf16 %v1482_v58, %v1481_v55  ;;  %v1420_v62 = vmax.f32 %v1292_v59, 0.0 }
 0x146   :  { %1620 = vst [vmem:[%s2401_s3 + $0x1a8] sm:$0xff] %v1556_v61  ;;  %v1525_v63 = vpack.c.bf16 %v1420_v62, %v1419_v60  ;;  %v660_v0 = vpop.f32.mrf.mxu2 }
 0x147   :  { %v1355_v1 = vadd.f32 %v1958_v13, %v660_v0  ;;  %v829_v2 = vpop.f32.mrf.mxu3 }
 0x148   :  { %1589 = vst [vmem:[%s2401_s3 + $0xb0] sm:$0xff] %v1525_v63  ;;  %v1356_v3 = vadd.f32 %v1960_v14, %v829_v2  ;;  %v582_v4 = vpop.f32.mrf.mxu0 }
 0x149   :  { %v1483_v5 = vmax.f32 %v1355_v1, 0.0  ;;  %v1293_v6 = vadd.f32 %v1958_v13, %v582_v4  ;;  %v751_v7 = vpop.f32.mrf.mxu1 }
 0x14a   :  { %v1484_v8 = vmax.f32 %v1356_v3, 0.0  ;;  %v1294_v9 = vadd.f32 %v1960_v14, %v751_v7 }
 0x14b   :  { %v1421_v10 = vmax.f32 %v1293_v6, 0.0 }
 0x14c   :  { %v1557_v11 = vpack.c.bf16 %v1484_v8, %v1483_v5  ;;  %v1422_v12 = vmax.f32 %v1294_v9, 0.0 }
 0x14e   :  { %1621 = vst [vmem:[%s2401_s3 + $0x1b0] sm:$0xff] %v1557_v11  ;;  %v1526_v15 = vpack.c.bf16 %v1422_v12, %v1421_v10  ;;  %v662_v16 = vpop.f32.mrf.mxu2 }
 0x14f   :  { %v1357_v17 = vadd.f32 %v1958_v13, %v662_v16  ;;  %v831_v18 = vpop.f32.mrf.mxu3 }
 0x150   :  { %1590 = vst [vmem:[%s2401_s3 + $0xb8] sm:$0xff] %v1526_v15  ;;  %v1358_v19 = vadd.f32 %v1960_v14, %v831_v18  ;;  %v585_v20 = vpop.f32.mrf.mxu0 }
 0x151   :  { %v1485_v21 = vmax.f32 %v1357_v17, 0.0  ;;  %v1295_v22 = vadd.f32 %v1958_v13, %v585_v20  ;;  %v754_v23 = vpop.f32.mrf.mxu1 }
 0x152   :  { %v1486_v24 = vmax.f32 %v1358_v19, 0.0  ;;  %v1296_v25 = vadd.f32 %v1960_v14, %v754_v23 }
 0x153   :  { %v1423_v26 = vmax.f32 %v1295_v22, 0.0 }
 0x154   :  { %v1558_v27 = vpack.c.bf16 %v1486_v24, %v1485_v21  ;;  %v1424_v28 = vmax.f32 %v1296_v25, 0.0 }
 0x156   :  { %1622 = vst [vmem:[%s2401_s3 + $0x1b8] sm:$0xff] %v1558_v27  ;;  %v1527_v29 = vpack.c.bf16 %v1424_v28, %v1423_v26  ;;  %v665_v30 = vpop.f32.mrf.mxu2 }
 0x157   :  { %v1359_v31 = vadd.f32 %v1958_v13, %v665_v30  ;;  %v834_v32 = vpop.f32.mrf.mxu3 }
 0x158   :  { %1591 = vst [vmem:[%s2401_s3 + $0xc0] sm:$0xff] %v1527_v29  ;;  %v1360_v33 = vadd.f32 %v1960_v14, %v834_v32  ;;  %v587_v34 = vpop.f32.mrf.mxu0 }
 0x159   :  { %v1487_v35 = vmax.f32 %v1359_v31, 0.0  ;;  %v1297_v36 = vadd.f32 %v1958_v13, %v587_v34  ;;  %v756_v37 = vpop.f32.mrf.mxu1 }
 0x15a   :  { %v1488_v38 = vmax.f32 %v1360_v33, 0.0  ;;  %v1298_v39 = vadd.f32 %v1960_v14, %v756_v37 }
 0x15b   :  { %v1425_v40 = vmax.f32 %v1297_v36, 0.0 }
 0x15c   :  { %v1559_v41 = vpack.c.bf16 %v1488_v38, %v1487_v35  ;;  %v1426_v42 = vmax.f32 %v1298_v39, 0.0 }
 0x15e   :  { %1623 = vst [vmem:[%s2401_s3 + $0x1c0] sm:$0xff] %v1559_v41  ;;  %v1528_v43 = vpack.c.bf16 %v1426_v42, %v1425_v40  ;;  %v667_v44 = vpop.f32.mrf.mxu2 }
 0x15f   :  { %v1361_v45 = vadd.f32 %v1958_v13, %v667_v44  ;;  %v836_v46 = vpop.f32.mrf.mxu3 }
 0x160   :  { %1592 = vst [vmem:[%s2401_s3 + $0xc8] sm:$0xff] %v1528_v43  ;;  %v1362_v47 = vadd.f32 %v1960_v14, %v836_v46  ;;  %v590_v48 = vpop.f32.mrf.mxu0 }
 0x161   :  { %v1489_v49 = vmax.f32 %v1361_v45, 0.0  ;;  %v1299_v50 = vadd.f32 %v1958_v13, %v590_v48  ;;  %v759_v51 = vpop.f32.mrf.mxu1 }
 0x162   :  { %v1490_v52 = vmax.f32 %v1362_v47, 0.0  ;;  %v1300_v53 = vadd.f32 %v1960_v14, %v759_v51 }
 0x163   :  { %v1427_v54 = vmax.f32 %v1299_v50, 0.0 }
 0x164   :  { %v1560_v55 = vpack.c.bf16 %v1490_v52, %v1489_v49  ;;  %v1428_v56 = vmax.f32 %v1300_v53, 0.0 }
 0x166   :  { %1624 = vst [vmem:[%s2401_s3 + $0x1c8] sm:$0xff] %v1560_v55  ;;  %v1529_v57 = vpack.c.bf16 %v1428_v56, %v1427_v54  ;;  %v670_v58 = vpop.f32.mrf.mxu2 }
 0x167   :  { %v1363_v59 = vadd.f32 %v1958_v13, %v670_v58  ;;  %v839_v60 = vpop.f32.mrf.mxu3 }
 0x168   :  { %1593 = vst [vmem:[%s2401_s3 + $0xd0] sm:$0xff] %v1529_v57  ;;  %v1364_v61 = vadd.f32 %v1960_v14, %v839_v60  ;;  %v592_v62 = vpop.f32.mrf.mxu0 }
 0x169   :  { %v1491_v63 = vmax.f32 %v1363_v59, 0.0  ;;  %v1301_v0 = vadd.f32 %v1958_v13, %v592_v62  ;;  %v761_v1 = vpop.f32.mrf.mxu1 }
 0x16a   :  { %v1492_v2 = vmax.f32 %v1364_v61, 0.0  ;;  %v1302_v3 = vadd.f32 %v1960_v14, %v761_v1 }
 0x16b   :  { %v1429_v4 = vmax.f32 %v1301_v0, 0.0 }
 0x16c   :  { %v1561_v5 = vpack.c.bf16 %v1492_v2, %v1491_v63  ;;  %v1430_v6 = vmax.f32 %v1302_v3, 0.0 }
 0x16e   :  { %1625 = vst [vmem:[%s2401_s3 + $0x1d0] sm:$0xff] %v1561_v5  ;;  %v1530_v7 = vpack.c.bf16 %v1430_v6, %v1429_v4  ;;  %v672_v8 = vpop.f32.mrf.mxu2 }
 0x16f   :  { %v1365_v9 = vadd.f32 %v1958_v13, %v672_v8  ;;  %v841_v10 = vpop.f32.mrf.mxu3 }
 0x170   :  { %1594 = vst [vmem:[%s2401_s3 + $0xd8] sm:$0xff] %v1530_v7  ;;  %v1366_v11 = vadd.f32 %v1960_v14, %v841_v10  ;;  %v595_v12 = vpop.f32.mrf.mxu0 }
 0x171   :  { %v1493_v15 = vmax.f32 %v1365_v9, 0.0  ;;  %v1303_v16 = vadd.f32 %v1958_v13, %v595_v12  ;;  %v764_v17 = vpop.f32.mrf.mxu1 }
 0x172   :  { %v1494_v18 = vmax.f32 %v1366_v11, 0.0  ;;  %v1304_v19 = vadd.f32 %v1960_v14, %v764_v17 }
 0x173   :  { %v1431_v20 = vmax.f32 %v1303_v16, 0.0 }
 0x174   :  { %v1562_v21 = vpack.c.bf16 %v1494_v18, %v1493_v15  ;;  %v1432_v22 = vmax.f32 %v1304_v19, 0.0 }
 0x176   :  { %1626 = vst [vmem:[%s2401_s3 + $0x1d8] sm:$0xff] %v1562_v21  ;;  %v1531_v23 = vpack.c.bf16 %v1432_v22, %v1431_v20  ;;  %v675_v24 = vpop.f32.mrf.mxu2 }
 0x177   :  { %v1367_v25 = vadd.f32 %v1958_v13, %v675_v24  ;;  %v844_v26 = vpop.f32.mrf.mxu3 }
 0x178   :  { %1595 = vst [vmem:[%s2401_s3 + $0xe0] sm:$0xff] %v1531_v23  ;;  %v1368_v27 = vadd.f32 %v1960_v14, %v844_v26  ;;  %v597_v28 = vpop.f32.mrf.mxu0 }
 0x179   :  { %v1495_v29 = vmax.f32 %v1367_v25, 0.0  ;;  %v1305_v30 = vadd.f32 %v1958_v13, %v597_v28  ;;  %v766_v31 = vpop.f32.mrf.mxu1 }
 0x17a   :  { %v1496_v32 = vmax.f32 %v1368_v27, 0.0  ;;  %v1306_v33 = vadd.f32 %v1960_v14, %v766_v31 }
 0x17b   :  { %v1433_v34 = vmax.f32 %v1305_v30, 0.0 }
 0x17c   :  { %v1563_v35 = vpack.c.bf16 %v1496_v32, %v1495_v29  ;;  %v1434_v36 = vmax.f32 %v1306_v33, 0.0 }
 0x17e   :  { %1627 = vst [vmem:[%s2401_s3 + $0x1e0] sm:$0xff] %v1563_v35  ;;  %v1532_v37 = vpack.c.bf16 %v1434_v36, %v1433_v34  ;;  %v677_v38 = vpop.f32.mrf.mxu2 }
 0x17f   :  { %v1369_v39 = vadd.f32 %v1958_v13, %v677_v38  ;;  %v846_v40 = vpop.f32.mrf.mxu3 }
 0x180   :  { %1596 = vst [vmem:[%s2401_s3 + $0xe8] sm:$0xff] %v1532_v37  ;;  %v1370_v41 = vadd.f32 %v1960_v14, %v846_v40  ;;  %v600_v42 = vpop.f32.mrf.mxu0 }
 0x181   :  { %v1497_v43 = vmax.f32 %v1369_v39, 0.0  ;;  %v1307_v44 = vadd.f32 %v1958_v13, %v600_v42  ;;  %v769_v45 = vpop.f32.mrf.mxu1 }
 0x182   :  { %v1498_v46 = vmax.f32 %v1370_v41, 0.0  ;;  %v1308_v47 = vadd.f32 %v1960_v14, %v769_v45 }
 0x183   :  { %v1435_v48 = vmax.f32 %v1307_v44, 0.0 }
 0x184   :  { %v1564_v49 = vpack.c.bf16 %v1498_v46, %v1497_v43  ;;  %v1436_v50 = vmax.f32 %v1308_v47, 0.0 }
 0x186   :  { %1628 = vst [vmem:[%s2401_s3 + $0x1e8] sm:$0xff] %v1564_v49  ;;  %v1533_v51 = vpack.c.bf16 %v1436_v50, %v1435_v48  ;;  %v680_v52 = vpop.f32.mrf.mxu2 }
 0x187   :  { %v1371_v53 = vadd.f32 %v1958_v13, %v680_v52  ;;  %v849_v54 = vpop.f32.mrf.mxu3 }
 0x188   :  { %1597 = vst [vmem:[%s2401_s3 + $0xf0] sm:$0xff] %v1533_v51  ;;  %v1372_v55 = vadd.f32 %v1960_v14, %v849_v54  ;;  %v602_v56 = vpop.f32.mrf.mxu0 }
 0x189   :  { %v1499_v57 = vmax.f32 %v1371_v53, 0.0  ;;  %v1309_v58 = vadd.f32 %v1958_v13, %v602_v56  ;;  %v771_v59 = vpop.f32.mrf.mxu1 }
 0x18a   :  { %v1500_v60 = vmax.f32 %v1372_v55, 0.0  ;;  %v1310_v61 = vadd.f32 %v1960_v14, %v771_v59 }
 0x18b   :  { %v1437_v62 = vmax.f32 %v1309_v58, 0.0 }
 0x18c   :  { %v1565_v63 = vpack.c.bf16 %v1500_v60, %v1499_v57  ;;  %v1438_v0 = vmax.f32 %v1310_v61, 0.0 }
 0x18e   :  { %1629 = vst [vmem:[%s2401_s3 + $0x1f0] sm:$0xff] %v1565_v63  ;;  %v1534_v1 = vpack.c.bf16 %v1438_v0, %v1437_v62  ;;  %v682_v2 = vpop.f32.mrf.mxu2 }
 0x18f   :  { %v1373_v3 = vadd.f32 %v1958_v13, %v682_v2  ;;  %v851_v4 = vpop.f32.mrf.mxu3 }
 0x190   :  { %1598 = vst [vmem:[%s2401_s3 + $0xf8] sm:$0xff] %v1534_v1  ;;  %v1374_v5 = vadd.f32 %v1960_v14, %v851_v4 }
 0x191   :  { %v1501_v6 = vmax.f32 %v1373_v3, 0.0 }
 0x192   :  { %v1502_v7 = vmax.f32 %v1374_v5, 0.0 }
 0x194   :  { %v1566_v8 = vpack.c.bf16 %v1502_v7, %v1501_v6 }
 0x196   :  { %1630 = vst [vmem:[%s2401_s3 + $0x1f8] sm:$0xff] %v1566_v8 }

// kernel: mlp_forward.4
= control target key start
LH: loop header
LB: loop body
LE: loop exit
PB: predicated region body
PF: predicated region fallthrough
CT: control target
= control target key end

     0   :  { %s6428_s12 = smov 0   ;;  %s11700_s0 = inlined_call_operand.vmem [shape: bf16[2,16,16,256], index: 0, kind: input, shape index: {}]   ;;  %s11701_s1 = inlined_call_operand.vmem [shape: f32[9,1,256], index: 1, kind: input, shape index: {}]   ;;  %s11702_s2 = inlined_call_operand.vmem [shape: f32[1,256], index: 2, kind: input, shape index: {}]   ;;  %s11703_s3 = inlined_call_operand.vmem [shape: bf16[2,16,16,256], index: 3, kind: output, shape index: {}]  }
   0x1 LB: > { %s6104_s13 = sadd.s32 4294967295, %s6405_s12   ;;  %p6108_p0 = scmp.ge.s32.totalorder %s6405_s12, 1  ;;  %s6405_s12 = sphi %s6428_s12, %s13_s12  }
   0x2   : > { %p137_p1 = scmp.lt.s32.totalorder %s6405_s12, 3 }
   0x4   : > { %p138_p2 = pnand %p6108_p0, %p137_p1 }
   0x6   : > { %141 = sbr.rel (%p138_p2) target bundleno = 1246 (0x4de), region = 32 }
   0xb   : > { %vm179_vm0 = vcmask 1040384   ;;  %vm180_vm1 = vsmask.f32 256  ;;  %vm182_vm2 = vcmask 1044484   ;;  %p161_p3 = scmp.lt.s32.totalorder %s6104_s13, 1  ;;  %v6407_v0 = vmov 0  }
   0xc   : > { %172 = vst [vmem:[#allocation2 + $0x28] sm:$0xff] %v6407_v0  ;;  %vm181_vm3 = vmand %vm179_vm0, %vm180_vm1  ;;  %vm183_vm4 = vsmask.f32 4352  ;;  %v189_v1 = vld [vmem:[#allocation2 + $0x48] sm:$0x11]  ;;  %vm654_vm12 = vcmask 1043456  }
   0xd   : > { %173 = vst [vmem:[#allocation2 + $0x88] sm:$0xff] %v6407_v0  ;;  %vm184_vm5 = vmand %vm182_vm2, %vm183_vm4  ;;  %v192_v2 = vld [vmem:[#allocation2 + $0xf8] sm:$0x11]  ;;  %s12958_s13 = smov (!%p161_p3, %s6104_s13), 1  ;;  %v195_v4 = vld [vmem:[#allocation2 + $0x130] sm:$0x11] }
   0xe   : > { %174 = vst [vmem:[#allocation2 + $0x10] sm:$0x11] %v6407_v0  ;;  %vm6441_vm6 = vmor %vm184_vm5, %vm181_vm3  ;;  %v198_v5 = vld [vmem:[#allocation2 + $0x148] sm:$0x11]  ;;  %v201_v7 = vld [vmem:[#allocation2 + $0x138] sm:$0x11] }
   0xf   : > { %176 = vst [vmem:[#allocation2 + $0x60] sm:$0xff] %v6407_v0  ;;  %v190_v6 = vsel %vm6441_vm6, 0, %v189_v1  ;;  %s6123_s14 = sshll.u32 %s12958_s13, 8  ;;  %v193_v8 = vsel %vm6441_vm6, 0, %v192_v2  ;;  %v204_v9 = vld [vmem:[#allocation2 + $0x160] sm:$0x11] }
  0x10   : > { %v207_v10 = vld [vmem:[#allocation2 + $0x68] sm:$0x11]  ;;  %178 = vst [vmem:[#allocation2 + $0x190] sm:$0x11] %v6407_v0  ;;  %v196_v11 = vsel %vm6441_vm6, 0, %v195_v4  ;;  %s6457_s17 = scalar_lea.vmem %s11700_s0, %s6123_s14  ;;  %v199_v13 = vsel %vm6441_vm6, 0, %v198_v5  ;;  %s7389_s16 = scalar_lea.vmem %s11703_s3, %s6123_s14 }
  0x11   : > { %v210_v12 = vld [vmem:[#allocation2 + $0x118] sm:$0x11]  ;;  %191 = vst [vmem:[#allocation2 + $0x48] sm:$0x11] %v190_v6  ;;  %v202_v14 = vsel %vm6441_vm6, 0, %v201_v7  ;;  %v205_v15 = vsel %vm6441_vm6, 0, %v204_v9 }
  0x12   : > { %194 = vst [vmem:[#allocation2 + $0xf8] sm:$0x11] %v193_v8  ;;  %v208_v16 = vsel %vm6441_vm6, 0, %v207_v10  ;;  %v211_v17 = vsel %vm6441_vm6, 0, %v210_v12  ;;  %v213_v18 = vld [vmem:[#allocation2 + $0x90] sm:$0x11] }
  0x13   : > { %197 = vst [vmem:[#allocation2 + $0x130] sm:$0x11] %v196_v11  ;;  %v6470_v19 = vld [vmem:[%s6457_s17] sm:$0xff]  ;;  %v219_v21 = vld [vmem:[#allocation2 + $0x110] sm:$0x11]  ;;  %v214_v24 = vsel %vm6441_vm6, 0, %v213_v18 }
  0x14   : > { %200 = vst [vmem:[#allocation2 + $0x148] sm:$0x11] %v199_v13  ;;  %v216_v20 = vld [vmem:[#allocation2 + $0xa0] sm:$0x11]  ;;  %v225_v23 = vld [vmem:[#allocation2 + $0x38] sm:$0x11] }
  0x15   : > { %203 = vst [vmem:[#allocation2 + $0x138] sm:$0x11] %v202_v14  ;;  %v222_v22 = vld [vmem:[#allocation2 + $0x20] sm:$0x11]  ;;  %v228_v25 = vld [vmem:[#allocation2 + $0xf0] sm:$0x11] }
  0x16   : > { %206 = vst [vmem:[#allocation2 + $0x160] sm:$0x11] %v205_v15  ;;  %v334_v26 = vshrl.u32 %v6470_v19, 16  ;;  %v217_v27 = vsel %vm6441_vm6, 0, %v216_v20  ;;  %v220_v28 = vsel %vm6441_vm6, 0, %v219_v21  ;;  %v223_v30 = vsel %vm6441_vm6, 0, %v222_v22 }
  0x17   : > { %209 = vst [vmem:[#allocation2 + $0x68] sm:$0x11] %v208_v16  ;;  %v231_v29 = vld [vmem:[#allocation2 + $0x170] sm:$0x11]  ;;  %v226_v31 = vsel %vm6441_vm6, 0, %v225_v23  ;;  %v229_v32 = vsel %vm6441_vm6, 0, %v228_v25 }
  0x18   : > { %212 = vst [vmem:[#allocation2 + $0x118] sm:$0x11] %v211_v17  ;;  %v232_v33 = vsel %vm6441_vm6, 0, %v231_v29  ;;  %v234_v34 = vld [vmem:[#allocation2 + $0x98] sm:$0x11]  ;;  %v6488_v35 = vld [vmem:[%s6457_s17 + $0x8] sm:$0xff] }
  0x19   : > { %215 = vst [vmem:[#allocation2 + $0x90] sm:$0x11] %v214_v24  ;;  %vm240_vm7 = vsmask.f32 7938  ;;  %vm242_vm9 = vsmask.f32 7954 }
  0x1a   : > { %218 = vst [vmem:[#allocation2 + $0xa0] sm:$0x11] %v217_v27  ;;  %vm241_vm8 = vmand %vm179_vm0, %vm240_vm7  ;;  %v248_v36 = vld [vmem:[#allocation2 + $0x150] sm:$0x11]  ;;  %v254_v38 = vld [vmem:[#allocation2 + $0x108] sm:$0x11] }
  0x1b   : > { %221 = vst [vmem:[#allocation2 + $0x110] sm:$0x11] %v220_v28  ;;  %vm243_vm10 = vmand %vm182_vm2, %vm242_vm9  ;;  %v251_v37 = vld [vmem:[#allocation2 + $0xd0] sm:$0x11]  ;;  %v257_v40 = vld [vmem:[#allocation2 + $0x180] sm:$0x11] }
  0x1c   : > { %224 = vst [vmem:[#allocation2 + $0x20] sm:$0x11] %v223_v30  ;;  %vm6494_vm11 = vmor %vm243_vm10, %vm241_vm8  ;;  %v260_v41 = vld [vmem:[#allocation2 + $0x1a8] sm:$0x11]  ;;  %v235_v42 = vsel %vm6441_vm6, 0, %v234_v34  ;;  %v337_v43 = vshll.u32 %v6470_v19, 16 }
  0x1d   : > { %227 = vst [vmem:[#allocation2 + $0x38] sm:$0x11] %v226_v31  ;;  %v249_v44 = vsel %vm6494_vm11, 0, %v248_v36  ;;  %v6503_v45 = vrot.slane %v334_v26, 7  ;;  %v342_v46 = vshrl.u32 %v6488_v35, 16  ;;  %v252_v47 = vsel %vm6494_vm11, 0, %v251_v37  ;;  %vm6535_vm14 = vmand %vm654_vm12, %vm240_vm7 }
  0x1e   : > { %230 = vst [vmem:[#allocation2 + $0xf0] sm:$0x11] %v229_v32  ;;  %v255_v48 = vsel %vm6494_vm11, 0, %v254_v38  ;;  %v258_v49 = vsel %vm6494_vm11, 0, %v257_v40  ;;  %v261_v50 = vsel %vm6494_vm11, 0, %v260_v41  ;;  %v301_v55 = vld [vmem:[%s6457_s17 + $0x10] sm:$0xff] }
  0x1f   : > { %233 = vst [vmem:[#allocation2 + $0x170] sm:$0x11] %v232_v33  ;;  %v263_v51 = vld [vmem:[#allocation2] sm:$0x11]  ;;  %v266_v52 = vld [vmem:[#allocation2 + $0xc8] sm:$0x11]  ;;  %v339_v23 = vor.u32 %v337_v43, %v6503_v45 }
  0x20   : > { %236 = vst [vmem:[#allocation2 + $0x98] sm:$0x11] %v235_v42  ;;  %v269_v53 = vld [vmem:[#allocation2 + $0x40] sm:$0x11]  ;;  %v6514_v54 = vrot.slane %v342_v46, 7  ;;  %v264_v58 = vsel %vm6494_vm11, 0, %v263_v51 }
  0x21   : > { %250 = vst [vmem:[#allocation2 + $0x150] sm:$0x11] %v249_v44  ;;  %v272_v56 = vld [vmem:[#allocation2 + $0x188] sm:$0x11]  ;;  %v275_v57 = vld [vmem:[#allocation2 + $0x50] sm:$0x11] }
  0x22   : > { %253 = vst [vmem:[#allocation2 + $0xd0] sm:$0x11] %v252_v47  ;;  %vm656_vm13 = vcmask 1047556   ;;  %v340_v59 = vrot.slane %v6503_v45, 4  ;;  %v345_v60 = vshll.u32 %v6488_v35, 16  ;;  %v267_v61 = vsel %vm6494_vm11, 0, %v266_v52 }
  0x23   : > { %256 = vst [vmem:[#allocation2 + $0x108] sm:$0x11] %v255_v48  ;;  %v278_v62 = vld [vmem:[#allocation2 + $0x78] sm:$0x11]  ;;  %v351_v63 = vshrl.u32 %v301_v55, 16  ;;  %v270_v0 = vsel %vm6494_vm11, 0, %v269_v53  ;;  %vm657_vm15 = vmand %vm656_vm13, %vm242_vm9 }
  0x24   : > { %259 = vst [vmem:[#allocation2 + $0x180] sm:$0x11] %v258_v49  ;;  %v273_v1 = vsel %vm6494_vm11, 0, %v272_v56  ;;  %v276_v2 = vsel %vm6494_vm11, 0, %v275_v57  ;;  %v349_v4 = vrot.slane %v6514_v54, 4  ;;  %v279_v7 = vsel %vm6494_vm11, 0, %v278_v62  ;;  %vm6557_vm0 = vmor %vm657_vm15, %vm6535_vm14 }
  0x25   : > { %262 = vst [vmem:[#allocation2 + $0x1a8] sm:$0x11] %v261_v50  ;;  %v281_v5 = vld [vmem:[#allocation2 + $0x168] sm:$0x11]  ;;  %v284_v6 = vld [vmem:[#allocation2 + $0xe0] sm:$0x11]  ;;  %v347_v33 = vor.u32 %v345_v60, %v6514_v54 }
  0x26   : > { %265 = vst [vmem:[#allocation2] sm:$0x11] %v264_v58  ;;  %v287_v8 = vld [vmem:[#allocation2 + $0x158] sm:$0x11]  ;;  %v6539_v12 = vrot.slane %v351_v63, 7  ;;  %v354_v13 = vshll.u32 %v301_v55, 16 }
  0x27   : > { %268 = vst [vmem:[#allocation2 + $0xc8] sm:$0x11] %v267_v61  ;;  %v302_v9 = vld [vmem:[%s6457_s17 + $0x18] sm:$0xff]  ;;  %v282_v14 = vsel %vm6494_vm11, 0, %v281_v5  ;;  %v285_v15 = vsel %vm6494_vm11, 0, %v284_v6  ;;  %v288_v17 = vsel %vm6494_vm11, 0, %v287_v8 }
  0x28   : > { %271 = vst [vmem:[#allocation2 + $0x40] sm:$0x11] %v270_v0  ;;  %v290_v10 = vld [vmem:[#allocation2 + $0x58] sm:$0x11]  ;;  %v293_v16 = vld [vmem:[#allocation2 + $0x140] sm:$0x11]  ;;  %v356_v28 = vor.u32 %v354_v13, %v6539_v12 }
  0x29   : > { %274 = vst [vmem:[#allocation2 + $0x188] sm:$0x11] %v273_v1  ;;  %v186_v18 = vld [vmem:[#allocation2 + $0x28] sm:$0x11]  ;;  %v359_v20 = vshrl.u32 %v302_v9, 16  ;;  %v291_v21 = vsel %vm6494_vm11, 0, %v290_v10 }
  0x2a   : > { %277 = vst [vmem:[#allocation2 + $0x50] sm:$0x11] %v276_v2  ;;  %v659_v19 = vld [vmem:[#allocation2 + $0x48] sm:$0xff]  ;;  %v237_v22 = vld [vmem:[#allocation2 + $0x60] sm:$0x11]  ;;  %v666_v24 = vld [vmem:[#allocation2 + $0xf8] sm:$0xff] }
  0x2b   : > { %280 = vst [vmem:[#allocation2 + $0x78] sm:$0x11] %v279_v7  ;;  %v357_v25 = vrot.slane %v6539_v12, 4  ;;  %v294_v26 = vsel %vm6494_vm11, 0, %v293_v16  ;;  %vm331_vm2 = vsmask.f32 4368  ;;  %v6570_v38 = vsel %vm6557_vm0, %v339_v23, %v659_v19 }
  0x2c   : > { %283 = vst [vmem:[#allocation2 + $0x168] sm:$0x11] %v282_v14  ;;  %v303_v29 = vld [vmem:[%s6457_s17 + $0x20] sm:$0xff]  ;;  %v187_v30 = vsel %vm6441_vm6, 0, %v186_v18  ;;  %v245_v31 = vld [vmem:[#allocation2 + $0x10] sm:$0x11]  ;;  %vm6574_vm3 = vmor %vm180_vm1, %vm331_vm2  ;;  %v6584_v46 = vsel %vm6557_vm0, %v356_v28, %v666_v24 }
  0x2d   : > { %286 = vst [vmem:[#allocation2 + $0xe0] sm:$0x11] %v285_v15  ;;  %v368_v32 = vshrl.u32 %v303_v29, 16  ;;  %v663_v34 = vld [vmem:[#allocation2 + $0x150] sm:$0x11]  ;;  %v361_v35 = vrot.slane %v359_v20, 7  ;;  %v6591_v55 = vsel %vm6574_vm3, %v340_v59, %v347_v33 }
  0x2e   : > { %289 = vst [vmem:[#allocation2 + $0x158] sm:$0x11] %v288_v17  ;;  %v362_v36 = vshll.u32 %v302_v9, 16  ;;  %v238_v37 = vsel %vm6441_vm6, 0, %v237_v22  ;;  %v371_v41 = vshll.u32 %v303_v29, 16  ;;  %v304_v42 = vld [vmem:[%s6457_s17 + $0x28] sm:$0xff]  ;;  %v664_v61 = vsel %vm6441_vm6, %v349_v4, %v663_v34 }
  0x2f   : > { %292 = vst [vmem:[#allocation2 + $0x58] sm:$0x11] %v291_v21  ;;  %v305_v43 = vld [vmem:[%s6457_s17 + $0x30] sm:$0xff]  ;;  %v246_v44 = vsel %vm6494_vm11, 0, %v245_v31  ;;  %v370_v47 = vrot.slane %v368_v32, 7  ;;  %v376_v48 = vshrl.u32 %v304_v42, 16 }
  0x30   : > { %295 = vst [vmem:[#allocation2 + $0x140] sm:$0x11] %v294_v26  ;;  %v306_v49 = vld [vmem:[%s6457_s17 + $0x38] sm:$0xff]  ;;  %v379_v50 = vshll.u32 %v304_v42, 16  ;;  %v385_v51 = vshrl.u32 %v305_v43, 16  ;;  %v388_v52 = vshll.u32 %v305_v43, 16  ;;  %v364_v56 = vor.u32 %v362_v36, %v361_v35 }
  0x31   : > { %188 = vst [vmem:[#allocation2 + $0x28] sm:$0x11] %v187_v30  ;;  %v393_v53 = vshrl.u32 %v306_v49, 16  ;;  %v366_v57 = vrot.slane %v361_v35, 4  ;;  %v378_v58 = vrot.slane %v376_v48, 7  ;;  %v307_v60 = vld [vmem:[%s6457_s17 + $0x40] sm:$0xff]  ;;  %v373_v63 = vor.u32 %v371_v41, %v370_v47 }
  0x32   : > { %239 = vst [vmem:[#allocation2 + $0x60] sm:$0x11] %v238_v37  ;;  %v670_v62 = vld [vmem:[#allocation2 + $0xd0] sm:$0x11]  ;;  %v387_v0 = vrot.slane %v385_v51, 7  ;;  %v374_v2 = vrot.slane %v370_v47, 4  ;;  %v6604_v12 = vsel %vm6574_vm3, %v357_v25, %v364_v56 }
  0x33   : > { %247 = vst [vmem:[#allocation2 + $0x10] sm:$0x11] %v246_v44  ;;  %v395_v1 = vrot.slane %v393_v53, 7  ;;  %v673_v45 = vld [vmem:[#allocation2 + $0x130] sm:$0xff]  ;;  %v381_v59 = vor.u32 %v379_v50, %v378_v58  ;;  %v383_v5 = vrot.slane %v378_v58, 4  ;;  %v402_v6 = vshrl.u32 %v307_v60, 16 }
  0x34   : > { %661 = vst [vmem:[#allocation2 + $0x48] sm:$0xff] %v6570_v38  ;;  %v677_v7 = vld [vmem:[#allocation2 + $0x108] sm:$0x11]  ;;  %v390_v8 = vor.u32 %v388_v52, %v387_v0  ;;  %v396_v54 = vshll.u32 %v306_v49, 16  ;;  %v671_v4 = vsel %vm6441_vm6, %v366_v57, %v670_v62  ;;  %v684_v11 = vld [vmem:[#allocation2 + $0x180] sm:$0x11]  ;;  %v6608_v13 = vsel %vm6557_vm0, %v373_v63, %v673_v45 }
  0x35   : > { %665 = vst [vmem:[#allocation2 + $0x150] sm:$0x11] %v664_v61  ;;  %v680_v9 = vld [vmem:[#allocation2 + $0x148] sm:$0xff]  ;;  %v400_v10 = vrot.slane %v395_v1, 4  ;;  %v404_v14 = vrot.slane %v402_v6, 7  ;;  %v309_v16 = vld [vmem:[%s6457_s17 + $0x50] sm:$0xff]  ;;  %v6614_v17 = vsel %vm6574_vm3, %v374_v2, %v381_v59  ;;  %v678_v18 = vsel %vm6441_vm6, %v383_v5, %v677_v7 }
  0x36   : > { %668 = vst [vmem:[#allocation2 + $0xf8] sm:$0xff] %v6584_v46  ;;  %v308_v15 = vld [vmem:[%s6457_s17 + $0x48] sm:$0xff]  ;;  %v391_v19 = vrot.slane %v387_v0, 4  ;;  %v310_v20 = vld [vmem:[%s6457_s17 + $0x58] sm:$0xff]  ;;  %v311_v21 = vld [vmem:[%s6457_s17 + $0x60] sm:$0xff]  ;;  %v6622_v22 = vsel %vm6557_vm0, %v390_v8, %v680_v9  ;;  %v398_v23 = vor.u32 %v396_v54, %v395_v1  ;;  %v405_v25 = vshll.u32 %v307_v60, 16 }
  0x37   : > { %672 = vst [vmem:[#allocation2 + $0xd0] sm:$0x11] %v671_v4  ;;  %v685_v24 = vsel %vm6441_vm6, %v400_v10, %v684_v11  ;;  %v687_v26 = vld [vmem:[#allocation2 + $0x138] sm:$0xff]  ;;  %v410_v28 = vshrl.u32 %v308_v15, 16  ;;  %v413_v29 = vshll.u32 %v308_v15, 16  ;;  %v419_v30 = vshrl.u32 %v309_v16, 16 }
  0x38   : > { %675 = vst [vmem:[#allocation2 + $0x130] sm:$0xff] %v6608_v13  ;;  %v422_v31 = vshll.u32 %v309_v16, 16  ;;  %v407_v32 = vor.u32 %v405_v25, %v404_v14  ;;  %v427_v33 = vshrl.u32 %v310_v20, 16  ;;  %v430_v34 = vshll.u32 %v310_v20, 16  ;;  %v691_v47 = vld [vmem:[#allocation2 + $0x1a8] sm:$0x11] }
  0x39   : > { %v436_v35 = vshrl.u32 %v311_v21, 16  ;;  %679 = vst [vmem:[#allocation2 + $0x108] sm:$0x11] %v678_v18  ;;  %v408_v36 = vrot.slane %v404_v14, 4  ;;  %v412_v37 = vrot.slane %v410_v28, 7  ;;  %v421_v41 = vrot.slane %v419_v30, 7 }
  0x3a   : > { %v439_v42 = vshll.u32 %v311_v21, 16  ;;  %682 = vst [vmem:[#allocation2 + $0x148] sm:$0xff] %v6622_v22  ;;  %v6630_v43 = vsel %vm6574_vm3, %v391_v19, %v398_v23  ;;  %v6634_v44 = vsel %vm6557_vm0, %v407_v32, %v687_v26  ;;  %v429_v48 = vrot.slane %v427_v33, 7  ;;  %v694_v52 = vld [vmem:[#allocation2 + $0x160] sm:$0xff]  ;;  %v312_v53 = vld [vmem:[%s6457_s17 + $0x68] sm:$0xff]  ;;  %v313_v5 = vld [vmem:[%s6457_s17 + $0x70] sm:$0xff] }
  0x3b   : > { %v438_v49 = vrot.slane %v436_v35, 7  ;;  %v415_v50 = vor.u32 %v413_v29, %v412_v37  ;;  %v417_v51 = vrot.slane %v412_v37, 4  ;;  %686 = vst [vmem:[#allocation2 + $0x180] sm:$0x11] %v685_v24  ;;  %v424_v56 = vor.u32 %v422_v31, %v421_v41  ;;  %v698_v61 = vld [vmem:[#allocation2] sm:$0x11] }
  0x3c   : > { %v425_v57 = vrot.slane %v421_v41, 4  ;;  %v432_v58 = vor.u32 %v430_v34, %v429_v48  ;;  %v434_v60 = vrot.slane %v429_v48, 4  ;;  %689 = vst [vmem:[#allocation2 + $0x138] sm:$0xff] %v6634_v44  ;;  %v701_v1 = vld [vmem:[#allocation2 + $0x68] sm:$0xff]  ;;  %v444_v45 = vshrl.u32 %v312_v53, 16  ;;  %v314_v6 = vld [vmem:[%s6457_s17 + $0x78] sm:$0xff] }
  0x3d   : > { %v6640_v62 = vsel %vm6574_vm3, %v408_v36, %v415_v50  ;;  %v692_v63 = vsel %vm6441_vm6, %v417_v51, %v691_v47  ;;  %v441_v0 = vor.u32 %v439_v42, %v438_v49  ;;  %v6646_v2 = vsel %vm6557_vm0, %v424_v56, %v694_v52  ;;  %v315_v4 = vld [vmem:[%s6457_s17 + $0x80] sm:$0xff]  ;;  %v316_v9 = vld [vmem:[%s6457_s17 + $0x88] sm:$0xff]  ;;  %v317_v25 = vld [vmem:[%s6457_s17 + $0x90] sm:$0xff] }
  0x3e   : > { %693 = vst [vmem:[#allocation2 + $0x1a8] sm:$0x11] %v692_v63  ;;  %v699_v59 = vsel %vm6441_vm6, %v434_v60, %v698_v61  ;;  %v6655_v7 = vsel %vm6574_vm3, %v425_v57, %v432_v58  ;;  %v447_v54 = vshll.u32 %v312_v53, 16  ;;  %v442_v10 = vrot.slane %v438_v49, 4  ;;  %v705_v16 = vld [vmem:[#allocation2 + $0xc8] sm:$0x11] }
  0x3f   : > { %696 = vst [vmem:[#allocation2 + $0x160] sm:$0xff] %v6646_v2  ;;  %v6659_v8 = vsel %vm6557_vm0, %v441_v0, %v701_v1  ;;  %v446_v11 = vrot.slane %v444_v45, 7  ;;  %v453_v14 = vshrl.u32 %v313_v5, 16  ;;  %v461_v15 = vshrl.u32 %v314_v6, 16  ;;  %v708_v35 = vld [vmem:[#allocation2 + $0x118] sm:$0xff]  ;;  %v715_v53 = vld [vmem:[#allocation2 + $0x90] sm:$0xff] }
  0x40   : > { %700 = vst [vmem:[#allocation2] sm:$0x11] %v699_v59  ;;  %v456_v18 = vshll.u32 %v313_v5, 16  ;;  %v470_v19 = vshrl.u32 %v315_v4, 16  ;;  %v464_v23 = vshll.u32 %v314_v6, 16  ;;  %v473_v24 = vshll.u32 %v315_v4, 16 }
  0x41   : > { %703 = vst [vmem:[#allocation2 + $0x68] sm:$0xff] %v6659_v8  ;;  %v449_v20 = vor.u32 %v447_v54, %v446_v11  ;;  %v451_v21 = vrot.slane %v446_v11, 4  ;;  %v455_v26 = vrot.slane %v453_v14, 7  ;;  %v463_v28 = vrot.slane %v461_v15, 7  ;;  %v712_v51 = vld [vmem:[#allocation2 + $0x40] sm:$0x11] }
  0x42   : > { %v472_v29 = vrot.slane %v470_v19, 7  ;;  %v478_v30 = vshrl.u32 %v316_v9, 16  ;;  %v6672_v33 = vunpack.c.l.bf16 %v6584_v46  ;;  %v6675_v34 = vunpack.c.h.bf16 %v6584_v46  ;;  %v719_v0 = vld [vmem:[#allocation2 + $0x188] sm:$0x11]  ;;  %v318_v1 = vld [vmem:[%s6457_s17 + $0x98] sm:$0xff]  ;;  %v319_v6 = vld [vmem:[%s6457_s17 + $0xa0] sm:$0xff] }
  0x43   : > { %v6667_v31 = vsel %vm6574_vm3, %v442_v10, %v449_v20  ;;  %v706_v32 = vsel %vm6441_vm6, %v451_v21, %v705_v16  ;;  %v481_v36 = vshll.u32 %v316_v9, 16  ;;  %v487_v37 = vshrl.u32 %v317_v25, 16  ;;  %v722_v15 = vld [vmem:[#allocation2 + $0xa0] sm:$0xff]  ;;  %v1221_v19 = vld [vmem:[#allocation2 + $0xd0] sm:$0x11] }
  0x44   : > { %12262 = vst [vmem:[#allocation3_spill] sm:$0xff] %v6672_v33  ;;  %v458_v41 = vor.u32 %v456_v18, %v455_v26  ;;  %v459_v42 = vrot.slane %v455_v26, 4  ;;  %v466_v47 = vor.u32 %v464_v23, %v463_v28  ;;  %v468_v48 = vrot.slane %v463_v28, 4  ;;  %v6116_v3 = vld [vmem:[%s11701_s1 + $0x8] sm:$0x3] }
  0x45   : > { %12263 = vst [vmem:[#allocation4_spill] sm:$0xff] %v6675_v34  ;;  %v6678_v49 = vunpack.c.l.bf16 %v6591_v55  ;;  %v6681_v50 = vunpack.c.h.bf16 %v6591_v55  ;;  %v475_v52 = vor.u32 %v473_v24, %v472_v29  ;;  %v480_v46 = vrot.slane %v478_v30, 7  ;;  %v321_v30 = vld [vmem:[%s6457_s17 + $0xb0] sm:$0xff] }
  0x46   : > { %707 = vst [vmem:[#allocation2 + $0xc8] sm:$0x11] %v706_v32  ;;  %v6684_v56 = vunpack.c.l.bf16 %v6604_v12  ;;  %v6687_v57 = vunpack.c.h.bf16 %v6604_v12  ;;  %v6691_v58 = vsel %vm6557_vm0, %v458_v41, %v708_v35  ;;  %v476_v60 = vrot.slane %v472_v29, 4  ;;  %v726_v35 = vld [vmem:[#allocation2 + $0x50] sm:$0x11]  ;;  %v322_v41 = vld [vmem:[%s6457_s17 + $0xb8] sm:$0xff] }
  0x47   : > { %12264 = vst [vmem:[#allocation5_spill] sm:$0xff] %v6678_v49  ;;  %v6694_v61 = vunpack.c.l.bf16 %v6608_v13  ;;  %v6697_v55 = vunpack.c.h.bf16 %v6608_v13  ;;  %v6702_v63 = vsel %vm6574_vm3, %v459_v42, %v466_v47  ;;  %v489_v12 = vrot.slane %v487_v37, 7 }
  0x48   : > { %12265 = vst [vmem:[#allocation6_spill] sm:$0xff] %v6681_v50  ;;  %v713_v45 = vsel %vm6441_vm6, %v468_v48, %v712_v51  ;;  %v6709_v59 = vsel %vm6557_vm0, %v475_v52, %v715_v53  ;;  %v483_v5 = vor.u32 %v481_v36, %v480_v46  ;;  %v485_v13 = vrot.slane %v480_v46, 4  ;;  %v729_v53 = vld [vmem:[#allocation2 + $0x110] sm:$0xff] }
  0x49   : > { %12266 = vst [vmem:[#allocation7_spill] sm:$0xff] %v6684_v56  ;;  %v6713_v54 = vunpack.c.l.bf16 %v6614_v17  ;;  %v6716_v4 = vunpack.c.h.bf16 %v6614_v17  ;;  %v6719_v9 = vunpack.c.l.bf16 %v6622_v22  ;;  %v490_v10 = vshll.u32 %v317_v25, 16  ;;  %v320_v17 = vld [vmem:[%s6457_s17 + $0xa8] sm:$0xff] }
  0x4a   : > { %12267 = vst [vmem:[#allocation8_spill] sm:$0xff] %v6687_v57  ;;  %v6724_v11 = vsel %vm6574_vm3, %v476_v60, %v483_v5  ;;  %v720_v14 = vsel %vm6441_vm6, %v485_v13, %v719_v0  ;;  %v495_v16 = vshrl.u32 %v318_v1, 16  ;;  %v498_v18 = vshll.u32 %v318_v1, 16 }
  0x4b   : > { %12268 = vst [vmem:[#allocation9_spill] sm:$0xff] %v6694_v61  ;;  %v6730_v20 = vunpack.c.h.bf16 %v6622_v22  ;;  %v6733_v21 = vunpack.c.l.bf16 %v6630_v43  ;;  %v492_v23 = vor.u32 %v490_v10, %v489_v12  ;;  %v504_v24 = vshrl.u32 %v319_v6, 16 }
  0x4c   : > { %12269 = vst [vmem:[#allocation10_spill] sm:$0xff] %v6697_v55  ;;  %v6736_v25 = vunpack.c.h.bf16 %v6630_v43  ;;  %v493_v26 = vrot.slane %v489_v12, 4  ;;  %v497_v28 = vrot.slane %v495_v16, 7  ;;  %v507_v29 = vshll.u32 %v319_v6, 16  ;;  %v733_v6 = vld [vmem:[#allocation2 + $0x78] sm:$0x11] }
  0x4d   : > { %710 = vst [vmem:[#allocation2 + $0x118] sm:$0xff] %v6691_v58  ;;  %v6740_v32 = vunpack.c.l.bf16 %v6634_v44  ;;  %v6744_v22 = vsel %vm6557_vm0, %v492_v23, %v722_v15  ;;  %v506_v36 = vrot.slane %v504_v24, 7  ;;  %v512_v37 = vshrl.u32 %v320_v17, 16 }
  0x4e   : > { %12270 = vst [vmem:[#allocation11_spill] sm:$0xff] %v6713_v54  ;;  %v6748_v42 = vunpack.c.h.bf16 %v6634_v44  ;;  %v500_v43 = vor.u32 %v498_v18, %v497_v28  ;;  %v502_v47 = vrot.slane %v497_v28, 4  ;;  %v515_v48 = vshll.u32 %v320_v17, 16 }
  0x4f   : > { %12271 = vst [vmem:[#allocation12_spill] sm:$0xff] %v6716_v4  ;;  %v6751_v51 = vunpack.c.l.bf16 %v1221_v19  ;;  %v509_v52 = vor.u32 %v507_v29, %v506_v36  ;;  %v514_v46 = vrot.slane %v512_v37, 7  ;;  %v521_v60 = vshrl.u32 %v321_v30, 16  ;;  %v325_v37 = vld [vmem:[%s6457_s17 + $0xd0] sm:$0xff] }
  0x50   : > { %12272 = vst [vmem:[#allocation13_spill] sm:$0xff] %v6719_v9  ;;  %v6755_v0 = vsel %vm6574_vm3, %v493_v26, %v500_v43  ;;  %v727_v12 = vsel %vm6441_vm6, %v502_v47, %v726_v35  ;;  %v510_v44 = vrot.slane %v506_v36, 4  ;;  %v529_v1 = vshrl.u32 %v322_v41, 16  ;;  %v323_v26 = vld [vmem:[%s6457_s17 + $0xc0] sm:$0xff]  ;;  %v324_v36 = vld [vmem:[%s6457_s17 + $0xc8] sm:$0xff] }
  0x51   : > { %714 = vst [vmem:[#allocation2 + $0x40] sm:$0x11] %v713_v45  ;;  %v6759_v45 = vunpack.c.h.bf16 %v1221_v19  ;;  %v6762_v5 = vunpack.c.l.bf16 %v6640_v62  ;;  %v6765_v13 = vunpack.c.h.bf16 %v6640_v62  ;;  %v524_v10 = vshll.u32 %v321_v30, 16  ;;  %v1223_v47 = vld [vmem:[#allocation2 + $0x180] sm:$0x11] }
  0x52   : > { %717 = vst [vmem:[#allocation2 + $0x90] sm:$0xff] %v6709_v59  ;;  %v6769_v15 = vsel %vm6557_vm0, %v509_v52, %v729_v53  ;;  %v517_v16 = vor.u32 %v515_v48, %v514_v46  ;;  %v519_v18 = vrot.slane %v514_v46, 4  ;;  %v523_v17 = vrot.slane %v521_v60, 7  ;;  %v740_v53 = vld [vmem:[#allocation2 + $0x168] sm:$0x11] }
  0x53   : > { %12273 = vst [vmem:[#allocation14_spill] sm:$0xff] %v6730_v20  ;;  %v6772_v19 = vunpack.c.l.bf16 %v6646_v2  ;;  %v6775_v23 = vunpack.c.h.bf16 %v6646_v2  ;;  %v531_v62 = vrot.slane %v529_v1, 7  ;;  %v532_v24 = vshll.u32 %v322_v41, 16  ;;  %v736_v2 = vld [vmem:[#allocation2 + $0x20] sm:$0xff] }
  0x54   : > { %12274 = vst [vmem:[#allocation15_spill] sm:$0xff] %v6733_v21  ;;  %v6780_v28 = vunpack.c.l.bf16 %v6655_v7  ;;  %v6783_v29 = vunpack.c.h.bf16 %v6655_v7  ;;  %v6787_v30 = vsel %vm6574_vm3, %v510_v44, %v517_v16  ;;  %v734_v35 = vsel %vm6441_vm6, %v519_v18, %v733_v6  ;;  %v1224_v44 = vld [vmem:[#allocation2 + $0x1a8] sm:$0x11] }
  0x55   : > { %12275 = vst [vmem:[#allocation16_spill] sm:$0xff] %v6736_v25  ;;  %v526_v48 = vor.u32 %v524_v10, %v523_v17  ;;  %v527_v52 = vrot.slane %v523_v17, 4  ;;  %v534_v7 = vor.u32 %v532_v24, %v531_v62  ;;  %v536_v46 = vrot.slane %v531_v62, 4 }
  0x56   : > { %721 = vst [vmem:[#allocation2 + $0x188] sm:$0x11] %v720_v14  ;;  %v1222_v14 = vld [vmem:[#allocation2 + $0x108] sm:$0x11]  ;;  %v538_v60 = vshrl.u32 %v323_v26, 16  ;;  %v546_v6 = vshrl.u32 %v324_v36, 16  ;;  %v6805_v10 = vunpack.c.h.bf16 %v6659_v8  ;;  %v6814_v24 = vunpack.c.l.bf16 %v1223_v47 }
  0x57   : > { %12276 = vst [vmem:[#allocation17_spill] sm:$0xff] %v6740_v32  ;;  %v6793_v43 = vunpack.c.l.bf16 %v1222_v14  ;;  %v6795_v41 = vunpack.c.h.bf16 %v1222_v14  ;;  %v6799_v1 = vsel %vm6557_vm0, %v526_v48, %v736_v2  ;;  %v549_v16 = vshll.u32 %v324_v36, 16  ;;  %v747_v36 = vld [vmem:[#allocation2 + $0xe0] sm:$0x11]  ;;  %v326_v48 = vld [vmem:[%s6457_s17 + $0xd8] sm:$0xff] }
  0x58   : > { %12277 = vst [vmem:[#allocation18_spill] sm:$0xff] %v6748_v42  ;;  %v555_v18 = vshrl.u32 %v325_v37, 16  ;;  %v6802_v14 = vunpack.c.l.bf16 %v6659_v8  ;;  %v6810_v17 = vsel %vm6574_vm3, %v527_v52, %v534_v7  ;;  %v741_v62 = vsel %vm6441_vm6, %v536_v46, %v740_v53  ;;  %v327_v7 = vld [vmem:[%s6457_s17 + $0xe0] sm:$0xff] }
  0x59   : > { %724 = vst [vmem:[#allocation2 + $0xa0] sm:$0xff] %v6744_v22  ;;  %v548_v2 = vrot.slane %v546_v6, 7  ;;  %v6819_v8 = vunpack.c.l.bf16 %v1224_v44  ;;  %v558_v52 = vshll.u32 %v325_v37, 16  ;;  %v6828_v6 = vunpack.c.h.bf16 %v6667_v31 }
  0x5a   : > { %12278 = vst [vmem:[#allocation19_spill] sm:$0xff] %v6751_v51  ;;  %v6901_v39 = vunpack.c.l.bf16 %v6755_v0  ;;  %vm1472_vm1 = vcmask 1046528   ;;  %vm2988_vm4 = vcmask 1045504  }
  0x5b   : > { %12279 = vst [vmem:[#allocation20_spill] sm:$0xff] %v6759_v45  ;;  %v551_v46 = vor.u32 %v549_v16, %v548_v2 }
  0x5c   : > { %12280 = vst [vmem:[#allocation21_spill] sm:$0xff] %v6762_v5 }
  0x5d   : > { %12281 = vst [vmem:[#allocation22_spill] sm:$0xff] %v6765_v13  ;;  %v7022_v13 = vld [vmem:[#allocation2 + $0x48] sm:$0xee] }
  0x5e   : > { %728 = vst [vmem:[#allocation2 + $0x50] sm:$0x11] %v727_v12  ;;  %v541_v12 = vshll.u32 %v323_v26, 16  ;;  %v6816_v26 = vunpack.c.h.bf16 %v1223_v47  ;;  %v553_v47 = vrot.slane %v548_v2, 4  ;;  %v6839_v2 = vunpack.c.l.bf16 %v6691_v58 }
  0x5f   : > { %12282 = vst [vmem:[#allocation23_spill] sm:$0xff] %v6772_v19  ;;  %v12329_v20 = vunpack.c.h.bf16 %v7022_v13 }
  0x60   : > { %12283 = vst [vmem:[#allocation24_spill] sm:$0xff] %v6775_v23  ;;  %v748_v37 = vsel %vm6441_vm6, %v553_v47, %v747_v36  ;;  %v6850_v47 = vunpack.c.l.bf16 %v6702_v63 }
  0x61   : > { %731 = vst [vmem:[#allocation2 + $0x110] sm:$0xff] %v6769_v15 }
  0x62   : > { %12284 = vst [vmem:[#allocation25_spill] sm:$0xff] %v6780_v28  ;;  %v1225_v28 = vld [vmem:[#allocation2] sm:$0x11] }
  0x63   : > { %12285 = vst [vmem:[#allocation26_spill] sm:$0xff] %v6783_v29  ;;  %v557_v29 = vrot.slane %v555_v18, 7  ;;  %v6834_v16 = vunpack.c.l.bf16 %v1225_v28 }
  0x64   : > { %12286 = vst [vmem:[#allocation27_spill] sm:$0xff] %v6793_v43 }
  0x65   : > { %12287 = vst [vmem:[#allocation28_spill] sm:$0xff] %v6795_v41  ;;  %v560_v19 = vor.u32 %v558_v52, %v557_v29  ;;  %v328_v52 = vld [vmem:[%s6457_s17 + $0xe8] sm:$0xff]  ;;  %v561_v36 = vrot.slane %v557_v29, 4 }
  0x66   : > { %735 = vst [vmem:[#allocation2 + $0x78] sm:$0x11] %v734_v35  ;;  %v540_v35 = vrot.slane %v538_v60, 7  ;;  %v6825_v60 = vunpack.c.l.bf16 %v6667_v31  ;;  %v583_v29 = vshll.u32 %v328_v52, 16 }
  0x67   : > { %12288 = vst [vmem:[#allocation29_spill] sm:$0xff] %v6802_v14  ;;  %v743_v14 = vld [vmem:[#allocation2 + $0x38] sm:$0xff] }
  0x68   : > { %12289 = vst [vmem:[#allocation30_spill] sm:$0xff] %v6805_v10  ;;  %v6821_v10 = vunpack.c.h.bf16 %v1224_v44  ;;  %v543_v23 = vor.u32 %v541_v12, %v540_v35  ;;  %v544_v53 = vrot.slane %v540_v35, 4  ;;  %v750_v44 = vld [vmem:[#allocation2 + $0xf0] sm:$0xff]  ;;  %v566_v12 = vshll.u32 %v326_v48, 16 }
  0x69   : > { %738 = vst [vmem:[#allocation2 + $0x20] sm:$0xff] %v6799_v1  ;;  %v6836_v35 = vunpack.c.h.bf16 %v1225_v28  ;;  %v754_v28 = vld [vmem:[#allocation2 + $0x158] sm:$0x11] }
  0x6a   : > { %12290 = vst [vmem:[#allocation31_spill] sm:$0xff] %v6814_v24  ;;  %v744_v18 = vsel %vm6557_vm0, %v543_v23, %v743_v14  ;;  %v552_v31 = vsel %vm6574_vm3, %v544_v53, %v551_v46  ;;  %v6845_v23 = vunpack.c.h.bf16 %v6691_v58  ;;  %v751_v14 = vsel %vm6557_vm0, %v560_v19, %v750_v44  ;;  %v757_v46 = vld [vmem:[#allocation2 + $0x170] sm:$0xff] }
  0x6b   : > { %12291 = vst [vmem:[#allocation32_spill] sm:$0xff] %v6816_v26  ;;  %v575_v53 = vshll.u32 %v327_v7, 16  ;;  %v329_v58 = vld [vmem:[%s6457_s17 + $0xf0] sm:$0xff]  ;;  %v580_v19 = vshrl.u32 %v328_v52, 16  ;;  %v6860_v44 = vunpack.c.h.bf16 %v6709_v59  ;;  %v1227_v52 = vld [vmem:[#allocation2 + $0x40] sm:$0x11] }
  0x6c   : > { %12292 = vst [vmem:[#allocation33_spill] sm:$0xff] %v6819_v8  ;;  %v2735_v8 = vld [vmem:[#allocation2 + $0x28] sm:$0xee] }
  0x6d   : > { %12293 = vst [vmem:[#allocation34_spill] sm:$0xff] %v6821_v10  ;;  %v563_v10 = vshrl.u32 %v326_v48, 16  ;;  %v2753_v5 = vunpack.c.l.bf16 %v2735_v8 }
  0x6e   : > { %742 = vst [vmem:[#allocation2 + $0x168] sm:$0x11] %v741_v62  ;;  %v572_v62 = vshrl.u32 %v327_v7, 16 }
  0x6f   : > { %12294 = vst [vmem:[#allocation35_spill] sm:$0xff] %v6825_v60  ;;  %v565_v48 = vrot.slane %v563_v10, 7  ;;  %v6857_v10 = vunpack.c.l.bf16 %v6709_v59  ;;  %v6873_v59 = vunpack.c.h.bf16 %v6724_v11 }
  0x70   : > { %12295 = vst [vmem:[#allocation36_spill] sm:$0xff] %v6828_v6 }
  0x71   : > { %12296 = vst [vmem:[#allocation37_spill] sm:$0xff] %v6834_v16  ;;  %v570_v6 = vrot.slane %v565_v48, 4 }
  0x72   : > { %12297 = vst [vmem:[#allocation38_spill] sm:$0xff] %v6836_v35 }
  0x73   : > { %12298 = vst [vmem:[#allocation39_spill] sm:$0xff] %v6839_v2  ;;  %v6853_v2 = vunpack.c.h.bf16 %v6702_v63 }
  0x74   : > { %745 = vst [vmem:[#allocation2 + $0x38] sm:$0xff] %v744_v18  ;;  %v574_v18 = vrot.slane %v572_v62, 7  ;;  %v582_v62 = vrot.slane %v580_v19, 7  ;;  %v6879_v19 = vld [vmem:[#allocation2 + $0x28] sm:$0xff] }
  0x75   : > { %12299 = vst [vmem:[#allocation40_spill] sm:$0xff] %v6845_v23  ;;  %v1226_v23 = vld [vmem:[#allocation2 + $0xc8] sm:$0x11] }
  0x76   : > { %746 = vst [vmem:[#allocation2 + $0x120] sm:$0xff] %v552_v31  ;;  %v568_v31 = vor.u32 %v566_v12, %v565_v48  ;;  %v577_v63 = vor.u32 %v575_v53, %v574_v18  ;;  %v330_v12 = vld [vmem:[%s6457_s17 + $0xf8] sm:$0xff]  ;;  %v296_v48 = vld [vmem:[#allocation2 + $0x190] sm:$0x11]  ;;  %v6877_v53 = vunpack.c.h.bf16 %v1226_v23 }
  0x77   : > { %12300 = vst [vmem:[#allocation41_spill] sm:$0xff] %v6850_v47  ;;  %v6867_v47 = vunpack.c.l.bf16 %v1226_v23 }
  0x78   : > { %12301 = vst [vmem:[#allocation42_spill] sm:$0xff] %v6853_v2  ;;  %v578_v2 = vrot.slane %v574_v18, 4  ;;  %v569_v7 = vsel %vm6574_vm3, %v561_v36, %v568_v31  ;;  %v758_v36 = vsel %vm6557_vm0, %v577_v63, %v757_v46  ;;  %v761_v18 = vld [vmem:[#allocation2 + $0x58] sm:$0x11]  ;;  %v592_v31 = vshll.u32 %v329_v58, 16 }
  0x79   : > { %749 = vst [vmem:[#allocation2 + $0xe0] sm:$0x11] %v748_v37  ;;  %v755_v37 = vsel %vm6441_vm6, %v570_v6, %v754_v28  ;;  %v585_v6 = vor.u32 %v583_v29, %v582_v62  ;;  %v587_v28 = vrot.slane %v582_v62, 4  ;;  %v6887_v46 = vunpack.c.h.bf16 %v6744_v22  ;;  %v879_v63 = vld [vmem:[%s11701_s1] sm:$0x3] }
  0x7a   : > { %752 = vst [vmem:[#allocation2 + $0xf0] sm:$0xff] %v751_v14  ;;  %v589_v14 = vshrl.u32 %v329_v58, 16  ;;  %v600_v29 = vshll.u32 %v330_v12, 16  ;;  %v6898_v62 = vunpack.c.h.bf16 %v1227_v52 }
  0x7b   : > { %12302 = vst [vmem:[#allocation43_spill] sm:$0xff] %v6857_v10  ;;  %v6870_v10 = vunpack.c.l.bf16 %v6724_v11  ;;  %v597_v11 = vshrl.u32 %v330_v12, 16  ;;  %v586_v23 = vsel %vm6574_vm3, %v578_v2, %v585_v6  ;;  %v762_v58 = vsel %vm6441_vm6, %v587_v28, %v761_v18  ;;  %v6113_v18 = vld [vmem:[%s11701_s1 + $0x6] sm:$0x3]  ;;  %v768_v28 = vld [vmem:[#allocation2 + $0x140] sm:$0x11] }
  0x7c   : > { %12303 = vst [vmem:[#allocation44_spill] sm:$0xff] %v6860_v44  ;;  %v6882_v44 = vunpack.c.l.bf16 %v6744_v22  ;;  %v764_v22 = vld [vmem:[#allocation2 + $0x98] sm:$0xff]  ;;  %v807_v2 = vunpack.c.l.bf16 %v6879_v19  ;;  %v6914_v6 = vunpack.c.h.bf16 %v6769_v15 }
  0x7d   : > { %12304 = vst [vmem:[#allocation45_spill] sm:$0xff] %v6867_v47 }
  0x7e   : > { %12305 = vst [vmem:[#allocation46_spill] sm:$0xff] %v6870_v10  ;;  %v591_v10 = vrot.slane %v589_v14, 7  ;;  %v6905_v14 = vunpack.c.h.bf16 %v6755_v0  ;;  %v6114_v0 = vld [vmem:[%s11701_s1 + $0xc] sm:$0x3] }
  0x7f   : > { %12306 = vst [vmem:[#allocation47_spill] sm:$0xff] %v6873_v59 }
  0x80   : > { %753 = vst [vmem:[#allocation2 + $0xb8] sm:$0xff] %v569_v7  ;;  %v297_v7 = vsel %vm6494_vm11, 0, %v296_v48  ;;  %v594_v12 = vor.u32 %v592_v31, %v591_v10  ;;  %v595_v48 = vrot.slane %v591_v10, 4  ;;  %v1228_v10 = vld [vmem:[#allocation2 + $0x188] sm:$0x11] }
  0x81   : > { %12307 = vst [vmem:[#allocation48_spill] sm:$0xff] %v6877_v53 }
  0x82   : > { %756 = vst [vmem:[#allocation2 + $0x158] sm:$0x11] %v755_v37  ;;  %v6896_v37 = vunpack.c.l.bf16 %v1227_v52  ;;  %v6911_v52 = vunpack.c.l.bf16 %v6769_v15  ;;  %v765_v31 = vsel %vm6557_vm0, %v594_v12, %v764_v22  ;;  %v6928_v15 = vunpack.c.h.bf16 %v6570_v38 }
  0x83   : > { %12308 = vst [vmem:[#allocation49_spill] sm:$0xff] %v6882_v44  ;;  %v6941_v22 = vperm.slane %v6114_v0, 0  ;;  %v6948_v12 = vunpack.c.h.bf16 %v1228_v10 }
  0x84   : > { %759 = vst [vmem:[#allocation2 + $0x170] sm:$0xff] %v758_v36  ;;  %v599_v36 = vrot.slane %v597_v11, 7 }
  0x85   : > { %12309 = vst [vmem:[#allocation50_spill] sm:$0xff] %v6887_v46 }
  0x86   : > { %298 = vst [vmem:[#allocation2 + $0x190] sm:$0x11] %v297_v7  ;;  %v808_v7 = vunpack.c.h.bf16 %v6879_v19  ;;  %v602_v11 = vor.u32 %v600_v29, %v599_v36  ;;  %v6930_v19 = vperm.slane %v879_v63, 1  ;;  %v6939_v29 = vperm.slane %v6113_v18, 1 }
  0x87   : > { %12310 = vst [vmem:[#allocation51_spill] sm:$0xff] %v6896_v37 }
  0x88   : > { %12311 = vst [vmem:[#allocation52_spill] sm:$0xff] %v6898_v62 }
  0x89   : > { %12312 = vst [vmem:[#allocation53_spill] sm:$0xff] %v6901_v39  ;;  %v603_v39 = vsel %vm6574_vm3, %v595_v48, %v602_v11  ;;  %v6390_v48 = vld [vmem:[#allocation2 + $0x88] sm:$0xff] }
  0x8a   : > { %760 = vst [vmem:[#allocation2 + $0x178] sm:$0xff] %v586_v23  ;;  %v6917_v23 = vperm.slane %v879_v63, 0  ;;  %v6946_v63 = vunpack.c.l.bf16 %v1228_v10  ;;  %v6964_v10 = vunpack.c.h.bf16 %v6390_v48 }
  0x8b   : > { %12313 = vst [vmem:[#allocation54_spill] sm:$0xff] %v6905_v14  ;;  %v6933_v14 = vperm.slane %v6113_v18, 0  ;;  %v6956_v18 = vunpack.c.l.bf16 %v6390_v48 }
  0x8c   : > { %763 = vst [vmem:[#allocation2 + $0x58] sm:$0x11] %v762_v58  ;;  %v604_v58 = vrot.slane %v599_v36, 4  ;;  %v886_v36 = vmul.f32 %v6930_v19, %v808_v7 }
  0x8d   : > { %12314 = vst [vmem:[#allocation55_spill] sm:$0xff] %v6911_v52  ;;  %v6925_v52 = vunpack.c.l.bf16 %v6570_v38  ;;  %v6115_v38 = vld [vmem:[%s11701_s1 + $0x2] sm:$0x3] }
  0x8e   : > { %12315 = vst [vmem:[#allocation56_spill] sm:$0xff] %v6914_v6  ;;  %v885_v6 = vmul.f32 %v6917_v23, %v807_v2  ;;  %v769_v27 = vsel %vm6441_vm6, %v604_v58, %v768_v28  ;;  %v957_v28 = vmul.f32 %v6939_v29, %v6928_v15  ;;  %v6966_v58 = vperm.slane %v6115_v38, 0 }
  0x8f   : > { %766 = vst [vmem:[#allocation2 + $0x98] sm:$0xff] %v765_v31  ;;  %v956_v40 = vmul.f32 %v6933_v14, %v6925_v52  ;;  %v6960_v31 = vperm.slane %v6114_v0, 1  ;;  %v6968_v46 = vperm.slane %v6115_v38, 1 }
  0x90   : > { %12316 = vst [vmem:[#allocation57_spill] sm:$0xff] %v6939_v29  ;;  %v1021_v44 = vadd.f32 %v957_v28, %v886_v36  ;;  %v1280_v0 = vmul.f32 %v6966_v58, %v807_v2  ;;  %v6978_v48 = vmul.f32 %v6966_v58, %v6956_v18  ;;  %v6984_v36 = vperm.slane %v6116_v3, 1  ;;  %v6117_v2 = vld [vmem:[%s11701_s1 + $0xe] sm:$0x3] }
  0x91   : > { %12317 = vst [vmem:[#allocation58_spill] sm:$0xff] %v6946_v63  ;;  %v1020_v11 = vadd.f32 %v956_v40, %v885_v6  ;;  %v1281_v59 = vmul.f32 %v6968_v46, %v808_v7  ;;  %v6982_v38 = vmul.f32 %v6968_v46, %v6964_v10  ;;  %v7007_v37 = vperm.slane %v6117_v2, 0 }
  0x92   : > { %12318 = vst [vmem:[#allocation59_spill] sm:$0xff] %v6948_v12  ;;  %v6972_v12 = vperm.slane %v6116_v3, 0  ;;  %v1473_v28 = vrot.slane %v1280_v0, 1  ;;  %v11736_v7 = vrot.slane %v6978_v48, 1  ;;  %v1769_v3 = vmul.f32 %v6984_v36, %v6928_v15 }
  0x93   : > { %767 = vst [vmem:[#allocation2 + $0x128] sm:$0xff] %v603_v39  ;;  %v1091_v39 = vmul.f32 %v6941_v22, %v6672_v33  ;;  %v7009_v53 = vperm.slane %v6117_v2, 1 }
  0x94   : > { %770 = vst [vmem:[#allocation2 + $0x140] sm:$0x11] %v769_v27  ;;  %v1092_v27 = vmul.f32 %v6960_v31, %v6675_v34  ;;  %v1768_v40 = vmul.f32 %v6972_v12, %v6925_v52  ;;  %v1475_v0 = vsel %vm1472_vm1, %v1473_v28, %v11736_v7  ;;  %v1963_v35 = vrot.slane %v1769_v3, 1  ;;  %v6118_v3 = vld [vmem:[%s11701_s1 + $0x4] sm:$0x3] }
  0x95   : > { %12319 = vst [vmem:[#allocation60_spill] sm:$0xff] %v6960_v31  ;;  %v1155_v63 = vadd.f32 %v1091_v39, %v1020_v11  ;;  %v1476_v39 = vrot.slane %v1281_v59, 1  ;;  %v11739_v11 = vrot.slane %v6982_v38, 1  ;;  %v2255_v7 = vmul.f32 %v7007_v37, %v6672_v33 }
  0x96   : > { %12320 = vst [vmem:[#allocation61_spill] sm:$0xff] %v6966_v58  ;;  %v1156_v6 = vadd.f32 %v1092_v27, %v1021_v44  ;;  %v6994_v44 = vmul.f32 %v6972_v12, %v6678_v49  ;;  %v7001_v27 = vmul.f32 %v6984_v36, %v6681_v50  ;;  %v1960_v62 = vrot.slane %v1768_v40, 1 }
  0x97   : > { %12321 = vst [vmem:[#allocation62_spill] sm:$0xff] %v6968_v46  ;;  %v1478_v47 = vsel %vm1472_vm1, %v1476_v39, %v11739_v11  ;;  %v1697_v60 = vadd.f32 %v1475_v0, %v1155_v63  ;;  %v2256_v2 = vmul.f32 %v7009_v53, %v6675_v34  ;;  %v7046_v24 = vperm.slane %v6118_v3, 0 }
  0x98   : > { %12322 = vst [vmem:[#allocation63_spill] sm:$0xff] %v6984_v36  ;;  %v11738_v59 = vrot.slane %v6994_v44, 1  ;;  %v11741_v16 = vrot.slane %v7001_v27, 1  ;;  %v1698_v40 = vadd.f32 %v1478_v47, %v1156_v6  ;;  %v7029_v47 = vmul.f32 %v7007_v37, %v6684_v56  ;;  %v2737_v6 = vld [vmem:[#allocation2 + $0xf8] sm:$0xee] }
  0x99   : > { %12323 = vst [vmem:[#allocation64_spill] sm:$0xff] %v7022_v13  ;;  %v2450_v11 = vrot.slane %v2256_v2, 1  ;;  %v7042_v32 = vunpack.c.l.bf16 %v2737_v6  ;;  %v7044_v26 = vunpack.c.h.bf16 %v2737_v6  ;;  %v7057_v2 = vperm.slane %v6118_v3, 1 }
  0x9a   : > { %v1962_v28 = vsel %vm1472_vm1, %v1960_v62, %v11738_v59  ;;  %v1965_v63 = vsel %vm1472_vm1, %v1963_v35, %v11741_v16  ;;  %v7033_v62 = vmul.f32 %v7009_v53, %v6687_v57  ;;  %v2447_v59 = vrot.slane %v2255_v7, 1  ;;  %v6119_v7 = vld [vmem:[%s11701_s1 + $0xa] sm:$0x3] }
  0x9b   : > { %v2184_v39 = vadd.f32 %v1962_v28, %v1697_v60  ;;  %v2185_v0 = vadd.f32 %v1965_v63, %v1698_v40  ;;  %v11748_v35 = vrot.slane %v7029_v47, 1  ;;  %v2754_v28 = vunpack.c.h.bf16 %v2735_v8  ;;  %12324 = vst [vmem:[#allocation65_spill] sm:$0xff] %v7042_v32  ;;  %v6120_v63 = vld [vmem:[%s11701_s1 + $0x10] sm:$0x3] }
  0x9c   : > { %v11747_v60 = vrot.slane %v7033_v62, 1  ;;  %12325 = vst [vmem:[#allocation66_spill] sm:$0xff] %v7044_v26  ;;  %v2796_v16 = vmul.f32 %v7046_v24, %v2753_v5  ;;  %v7065_v25 = vmul.f32 %v7046_v24, %v6956_v18  ;;  %v7072_v3 = vperm.slane %v6119_v7, 0 }
  0x9d   : > { %v2449_v40 = vsel %vm1472_vm1, %v2447_v59, %v11748_v35  ;;  %v2797_v59 = vmul.f32 %v7057_v2, %v2754_v28  ;;  %v7079_v5 = vperm.slane %v6120_v63, 1  ;;  %v12328_v28 = vunpack.c.l.bf16 %v7022_v13 }
  0x9e   : > { %v2452_v8 = vsel %vm1472_vm1, %v2450_v11, %v11747_v60  ;;  %v2671_v6 = vadd.f32 %v2449_v40, %v2184_v39  ;;  %v7070_v11 = vmul.f32 %v7057_v2, %v6964_v10  ;;  %12326 = vst [vmem:[#allocation67_spill] sm:$0xff] %v7072_v3  ;;  %v7074_v60 = vperm.slane %v6119_v7, 1 }
  0x9f   : > { %v2672_v42 = vadd.f32 %v2452_v8, %v2185_v0  ;;  %v2989_v35 = vrot.slane %v2796_v16, 2  ;;  %v11752_v39 = vrot.slane %v7065_v25, 2  ;;  %v7077_v0 = vperm.slane %v6120_v63, 0 }
  0xa0   : > { %12327 = vst [vmem:[#allocation68_spill] sm:$0xff] %v7074_v60  ;;  %v2992_v40 = vrot.slane %v2797_v59, 2  ;;  %v11762_v8 = vrot.slane %v7070_v11, 2  ;;  %v3284_v21 = vmul.f32 %v7072_v3, %v12328_v28  ;;  %v3285_v9 = vmul.f32 %v7074_v60, %v12329_v20  ;;  %v4251_v28 = vld [vmem:[%s11702_s2] sm:$0x3] }
  0xa1   : > { %v2991_v16 = vsel %vm2988_vm4, %v2989_v35, %v11752_v39  ;;  %v7093_v7 = vmul.f32 %v7072_v3, %v6678_v49  ;;  %v7097_v63 = vmul.f32 %v7074_v60, %v6681_v50  ;;  %v3771_v59 = vmul.f32 %v7077_v0, %v7042_v32 }
  0xa2   : > { %v2994_v20 = vsel %vm2988_vm4, %v2992_v40, %v11762_v8  ;;  %v3213_v35 = vadd.f32 %v2991_v16, %v2671_v6  ;;  %v3476_v39 = vrot.slane %v3284_v21, 2  ;;  %v3479_v41 = vrot.slane %v3285_v9, 2 }
  0xa3   : > { %v3214_v43 = vadd.f32 %v2994_v20, %v2672_v42  ;;  %v11769_v13 = vrot.slane %v7093_v7, 2  ;;  %v11768_v4 = vrot.slane %v7097_v63, 2  ;;  %v3772_v54 = vmul.f32 %v7079_v5, %v7044_v26 }
  0xa4   : > { %v7113_v32 = vmul.f32 %v7077_v0, %v6684_v56  ;;  %v7117_v55 = vmul.f32 %v7079_v5, %v6687_v57  ;;  %v3963_v40 = vrot.slane %v3771_v59, 2  ;;  %v7119_v6 = vperm.slane %v4251_v28, 0 }
  0xa5   : > { %v3478_v9 = vsel %vm2988_vm4, %v3476_v39, %v11769_v13  ;;  %v3481_v21 = vsel %vm2988_vm4, %v3479_v41, %v11768_v4  ;;  %v3966_v42 = vrot.slane %v3772_v54, 2  ;;  %v7127_v16 = vperm.slane %v4251_v28, 1  ;;  %v1219_v41 = vld [vmem:[#allocation2 + $0x10] sm:$0x11] }
  0xa6   : > { %12330 = vst [vmem:[#allocation69_spill] sm:$0xff] %v7113_v32  ;;  %v3700_v20 = vadd.f32 %v3478_v9, %v3213_v35  ;;  %v3701_v8 = vadd.f32 %v3481_v21, %v3214_v43  ;;  %v11778_v26 = vrot.slane %v7113_v32, 2  ;;  %v11777_v61 = vrot.slane %v7117_v55, 2  ;;  %v1220_v28 = vld [vmem:[#allocation2 + $0x150] sm:$0x11] }
  0xa7   : > { %v887_v59 = vmul.f32 %v6917_v23, %v6956_v18  ;;  %v888_v34 = vmul.f32 %v6930_v19, %v6964_v10  ;;  %v958_v39 = vmul.f32 %v6933_v14, %v6678_v49  ;;  %v959_v54 = vmul.f32 %v6939_v29, %v6681_v50 }
  0xa8   : > { %v3965_v43 = vsel %vm2988_vm4, %v3963_v40, %v11778_v26  ;;  %v3968_v35 = vsel %vm2988_vm4, %v3966_v42, %v11777_v61  ;;  %v1093_v18 = vmul.f32 %v6941_v22, %v6684_v56  ;;  %v1094_v10 = vmul.f32 %v6960_v31, %v6687_v57 }
  0xa9   : > { %v4187_v9 = vadd.f32 %v3965_v43, %v3700_v20  ;;  %v4188_v21 = vadd.f32 %v3968_v35, %v3701_v8  ;;  %v1022_v4 = vadd.f32 %v958_v39, %v887_v59  ;;  %v1023_v13 = vadd.f32 %v959_v54, %v888_v34 }
  0xaa   : > { %v1237_v50 = vunpack.c.l.bf16 %v1219_v41  ;;  %v1238_v49 = vunpack.c.h.bf16 %v1219_v41  ;;  %v7149_v29 = vunpack.c.l.bf16 %v1220_v28  ;;  %v7151_v32 = vunpack.c.h.bf16 %v1220_v28 }
  0xab   : > { %v7154_v40 = vunpack.c.l.bf16 %v6787_v30  ;;  %v7157_v42 = vunpack.c.h.bf16 %v6787_v30  ;;  %v4257_v61 = vadd.f32 %v7119_v6, %v4187_v9  ;;  %v7161_v26 = vadd.f32 %v7127_v16, %v4188_v21 }
  0xac   : > { %v1284_v8 = vmul.f32 %v6966_v58, %v1237_v50  ;;  %v1285_v34 = vmul.f32 %v6968_v46, %v1238_v49  ;;  %v1772_v20 = vmul.f32 %v6972_v12, %v7149_v29  ;;  %v1773_v59 = vmul.f32 %v6984_v36, %v7151_v32 }
  0xad   : > { %12331 = vst [vmem:[#allocation70_spill] sm:$0xff] %v7154_v40  ;;  %v7169_v39 = vmul.f32 0.70710677, %v4257_v61  ;;  %v7172_v30 = vmul.f32 0.70710677, %v7161_v26  ;;  %v1157_v54 = vadd.f32 %v1093_v18, %v1022_v4  ;;  %v1158_v41 = vadd.f32 %v1094_v10, %v1023_v13 }
  0xae   : > { %12332 = vst [vmem:[#allocation71_spill] sm:$0xff] %v7157_v42  ;;  %v1479_v28 = vrot.slane %v1284_v8, 1  ;;  %v1481_v43 = vrot.slane %v1285_v34, 1  ;;  %v1966_v35 = vrot.slane %v1772_v20, 1  ;;  %v1968_v9 = vrot.slane %v1773_v59, 1 }
  0xaf   : > { %v7175_v21 = vunpack.c.l.bf16 %v6799_v1  ;;  %v7178_v42 = vunpack.c.h.bf16 %v6799_v1  ;;  %v4449_v40 = vand.u32 2147483647, %v7169_v39  ;;  %v4450_v57 = vand.u32 2147483647, %v7172_v30 }
  0xb0   : > { %v12335_v56 = vrot.slane %v6978_v48, 1  ;;  %v12336_v4 = vrot.slane %v6982_v38, 1  ;;  %v12337_v18 = vrot.slane %v6994_v44, 1  ;;  %v12338_v8 = vrot.slane %v7001_v27, 1 }
  0xb1   : > { %12333 = vst [vmem:[#allocation72_spill] sm:$0xff] %v7175_v21  ;;  %v4513_v34 = vmul.f32 0.3275911, %v4449_v40  ;;  %v4514_v20 = vmul.f32 0.3275911, %v4450_v57  ;;  %v5281_v59 = vsub.f32 0.0, %v4449_v40  ;;  %v2260_v38 = vmul.f32 %v7009_v53, %v6759_v45 }
  0xb2   : > { %12334 = vst [vmem:[#allocation73_spill] sm:$0xff] %v7178_v42  ;;  %v1480_v36 = vsel %vm1472_vm1, %v12335_v56, %v1479_v28  ;;  %v1482_v13 = vsel %vm1472_vm1, %v12336_v4, %v1481_v43  ;;  %v1967_v10 = vsel %vm1472_vm1, %v12337_v18, %v1966_v35  ;;  %v1969_v1 = vsel %vm1472_vm1, %v12338_v8, %v1968_v9 }
  0xb3   : > { %v5282_v42 = vsub.f32 0.0, %v4450_v57  ;;  %v1699_v21 = vadd.f32 %v1480_v36, %v1157_v54  ;;  %v1700_v48 = vadd.f32 %v1482_v13, %v1158_v41  ;;  %v2259_v56 = vmul.f32 %v7007_v37, %v6751_v51 }
  0xb4   : > { %v7199_v44 = vunpack.c.l.bf16 %v6810_v17  ;;  %v4577_v28 = vadd.f32 1.0, %v4513_v34  ;;  %v4578_v43 = vadd.f32 1.0, %v4514_v20  ;;  %v5345_v27 = vmul.f32 %v5281_v59, %v4449_v40 }
  0xb5   : > { %v2186_v35 = vadd.f32 %v1967_v10, %v1699_v21  ;;  %v2187_v9 = vadd.f32 %v1969_v1, %v1700_v48  ;;  %v2453_v4 = vrot.slane %v2259_v56, 1  ;;  %v2455_v18 = vrot.slane %v2260_v38, 1 }
  0xb6   : > { %12339 = vst [vmem:[#allocation74_spill] sm:$0xff] %v7199_v44  ;;  %v7202_v8 = vunpack.c.h.bf16 %v6810_v17  ;;  %6134 = vrcp.f32 %v4577_v28  ;;  %v5346_v36 = vmul.f32 %v5282_v42, %v4450_v57  ;;  %v2800_v54 = vmul.f32 %v7046_v24, %v1237_v50 }
  0xb7   : > { %6136 = vrcp.f32 %v4578_v43  ;;  %v12341_v41 = vrot.slane %v7029_v47, 1  ;;  %v12342_v34 = vrot.slane %v7033_v62, 1  ;;  %v2801_v21 = vmul.f32 %v7057_v2, %v1238_v49 }
  0xb8   : > { %12340 = vst [vmem:[#allocation75_spill] sm:$0xff] %v7202_v8  ;;  %v7212_v10 = vmul.f32 0.5, %v4257_v61  ;;  %v2995_v20 = vrot.slane %v2800_v54, 2  ;;  %v5409_v59 = vmul.f32 1.442695, %v5345_v27  ;;  %v3288_v50 = vmul.f32 %v7072_v3, %v7149_v29 }
  0xb9   : > { %v2454_v13 = vsel %vm1472_vm1, %v12341_v41, %v2453_v4  ;;  %v2456_v40 = vsel %vm1472_vm1, %v12342_v34, %v2455_v18  ;;  %v2997_v57 = vrot.slane %v2801_v21, 2  ;;  %v3289_v47 = vmul.f32 %v7074_v60, %v7151_v32 }
  0xba   : > { %v2673_v1 = vadd.f32 %v2454_v13, %v2186_v35  ;;  %v2674_v17 = vadd.f32 %v2456_v40, %v2187_v9  ;;  %v5411_v42 = vmul.f32 1.442695, %v5346_v36  ;;  %v12343_v62 = vrot.slane %v7065_v25, 2 }
  0xbb   : > { %v3775_v49 = vmul.f32 %v7077_v0, %v6751_v51  ;;  %v3776_v61 = vmul.f32 %v7079_v5, %v6759_v45  ;;  %v12344_v56 = vrot.slane %v7070_v11, 2  ;;  %v3482_v43 = vrot.slane %v3288_v50, 2  ;;  %v12347_v50 = vld [vmem:[#allocation69_spill] sm:$0xff] }
  0xbc   : > { %v2996_v48 = vsel %vm2988_vm4, %v12343_v62, %v2995_v20  ;;  %v3484_v27 = vrot.slane %v3289_v47, 2  ;;  %v7228_v35 = vpop.eup %6134  ;;  %v889_v18 = vmul.f32 %v6917_v23, %v6925_v52  ;;  %v12345_v41 = vrot.slane %v7093_v7, 2 }
  0xbd   : > { %v2998_v38 = vsel %vm2988_vm4, %v12344_v56, %v2997_v57  ;;  %v3215_v28 = vadd.f32 %v2996_v48, %v2673_v1  ;;  %v3969_v4 = vrot.slane %v3775_v49, 2  ;;  %v3971_v25 = vrot.slane %v3776_v61, 2  ;;  %v7232_v36 = vpop.eup %6136  ;;  %v12350_v48 = vld [vmem:[#allocation4_spill] sm:$0xff]  ;;  %v12351_v49 = vld [vmem:[#allocation57_spill] sm:$0xff] }
  0xbe   : > { %v3216_v9 = vadd.f32 %v2998_v38, %v2674_v17  ;;  %v4705_v54 = vmul.f32 1.0614054, %v7228_v35  ;;  %v3483_v11 = vsel %vm2988_vm4, %v12345_v41, %v3482_v43  ;;  %v12346_v13 = vrot.slane %v7097_v63, 2 }
  0xbf   : > { %v960_v40 = vmul.f32 %v6933_v14, %v6672_v33  ;;  %v4706_v21 = vmul.f32 1.0614054, %v7232_v36  ;;  %v3702_v1 = vadd.f32 %v3483_v11, %v3215_v28  ;;  %v890_v20 = vmul.f32 %v6930_v19, %v6928_v15 }
  0xc0   : > { %v3485_v34 = vsel %vm2988_vm4, %v12346_v13, %v3484_v27  ;;  %v4769_v57 = vadd.f32 -1.4531521, %v4705_v54  ;;  %v12348_v47 = vrot.slane %v12347_v50, 2  ;;  %v12349_v62 = vrot.slane %v7117_v55, 2  ;;  %v12353_v13 = vld [vmem:[#allocation10_spill] sm:$0xff] }
  0xc1   : > { %v3703_v17 = vadd.f32 %v3485_v34, %v3216_v9  ;;  %v961_v61 = vmul.f32 %v12351_v49, %v12350_v48  ;;  %v4770_v56 = vadd.f32 -1.4531521, %v4706_v21  ;;  %6138 = vpow2.f32 %v5409_v59  ;;  %v12352_v9 = vld [vmem:[#allocation9_spill] sm:$0xff]  ;;  %v12356_v50 = vld [vmem:[#allocation6_spill] sm:$0xff] }
  0xc2   : > { %v3970_v7 = vsel %vm2988_vm4, %v12348_v47, %v3969_v4  ;;  %v3972_v63 = vsel %vm2988_vm4, %v12349_v62, %v3971_v25  ;;  %v4833_v43 = vmul.f32 %v7228_v35, %v4769_v57  ;;  %v1024_v27 = vadd.f32 %v960_v40, %v889_v18  ;;  %v12354_v40 = vld [vmem:[#allocation5_spill] sm:$0xff] }
  0xc3   : > { %v4189_v38 = vadd.f32 %v3970_v7, %v3702_v1  ;;  %v4190_v28 = vadd.f32 %v3972_v63, %v3703_v17  ;;  %v1095_v54 = vmul.f32 %v6941_v22, %v12352_v9  ;;  %v1286_v4 = vmul.f32 %v6966_v58, %v6925_v52 }
  0xc4   : > { %v4834_v55 = vmul.f32 %v7232_v36, %v4770_v56  ;;  %v1025_v59 = vadd.f32 %v961_v61, %v890_v20  ;;  %v4897_v11 = vadd.f32 1.4214138, %v4833_v43  ;;  %v1096_v34 = vmul.f32 %v6960_v31, %v12353_v13 }
  0xc5   : > { %v7261_v25 = vadd.f32 %v7119_v6, %v4189_v38  ;;  %v7264_v41 = vadd.f32 %v7127_v16, %v4190_v28  ;;  %v1287_v18 = vmul.f32 %v6968_v46, %v6928_v15  ;;  %v7272_v21 = vmul.f32 %v6966_v58, %v12354_v40 }
  0xc6   : > { %v7275_v52 = vmul.f32 0.5, %v7161_v26  ;;  %v4898_v1 = vadd.f32 1.4214138, %v4834_v55  ;;  %6140 = vpow2.f32 %v5411_v42  ;;  %v4961_v20 = vmul.f32 %v7228_v35, %v4897_v11 }
  0xc7   : > { %12355 = vst [vmem:[#allocation69_spill] sm:$0xff] %v7272_v21  ;;  %v7278_v17 = vmul.f32 0.70710677, %v7261_v25  ;;  %v7282_v57 = vmul.f32 0.70710677, %v7264_v41  ;;  %v7286_v15 = vmul.f32 %v6968_v46, %v12356_v50  ;;  %v1483_v47 = vrot.slane %v1286_v4, 1  ;;  %v6139_v7 = vpop.eup %6138 }
  0xc8   : > { %v4962_v62 = vmul.f32 %v7232_v36, %v4898_v1  ;;  %v1159_v63 = vadd.f32 %v1095_v54, %v1024_v27  ;;  %v11796_v42 = vrot.slane %v7272_v21, 1  ;;  %v5025_v61 = vadd.f32 -0.28449672, %v4961_v20 }
  0xc9   : > { %v4451_v26 = vand.u32 2147483647, %v7278_v17  ;;  %v4452_v56 = vand.u32 2147483647, %v7282_v57  ;;  %v1160_v38 = vadd.f32 %v1096_v34, %v1025_v59  ;;  %v1486_v28 = vrot.slane %v1287_v18, 1 }
  0xca   : > { %v5026_v43 = vadd.f32 -0.28449672, %v4962_v62  ;;  %v1485_v4 = vsel %vm1472_vm1, %v1483_v47, %v11796_v42  ;;  %v5089_v8 = vmul.f32 %v7228_v35, %v5025_v61  ;;  %v11799_v27 = vrot.slane %v7286_v15, 1 }
  0xcb   : > { %v4515_v55 = vmul.f32 0.3275911, %v4451_v26  ;;  %v5283_v11 = vsub.f32 0.0, %v4451_v26  ;;  %v4516_v1 = vmul.f32 0.3275911, %v4452_v56  ;;  %v5284_v44 = vsub.f32 0.0, %v4452_v56 }
  0xcc   : > { %v6141_v54 = vpop.eup %6140  ;;  %v5090_v20 = vmul.f32 %v7232_v36, %v5026_v43  ;;  %v1701_v59 = vadd.f32 %v1485_v4, %v1159_v63  ;;  %v5153_v34 = vadd.f32 0.2548296, %v5089_v8  ;;  %v1488_v21 = vsel %vm1472_vm1, %v1486_v28, %v11799_v27  ;;  %v12357_v63 = vld [vmem:[#allocation63_spill] sm:$0xff] }
  0xcd   : > { %v4579_v45 = vadd.f32 1.0, %v4515_v55  ;;  %v5347_v51 = vmul.f32 %v5283_v11, %v4451_v26  ;;  %v4580_v18 = vadd.f32 1.0, %v4516_v1  ;;  %v5348_v62 = vmul.f32 %v5284_v44, %v4452_v56  ;;  %v12358_v28 = vld [vmem:[#allocation7_spill] sm:$0xff] }
  0xce   : > { %v5154_v47 = vadd.f32 0.2548296, %v5090_v20  ;;  %vm5665_vm5 = vcmp.lt.f32.partialorder %v7169_v39, 0.0  ;;  %v1702_v42 = vadd.f32 %v1488_v21, %v1160_v38  ;;  %v5217_v46 = vmul.f32 %v7228_v35, %v5153_v34  ;;  %v12360_v35 = vld [vmem:[#allocation8_spill] sm:$0xff] }
  0xcf   : > { %6142 = vrcp.f32 %v4579_v45  ;;  %v5413_v61 = vmul.f32 1.442695, %v5347_v51  ;;  %vm5666_vm6 = vcmp.lt.f32.partialorder %v7172_v30, 0.0  ;;  %v5415_v26 = vmul.f32 1.442695, %v5348_v62  ;;  %v12363_v62 = vld [vmem:[#allocation12_spill] sm:$0xff] }
  0xd0   : > { %6144 = vrcp.f32 %v4580_v18  ;;  %v1774_v8 = vmul.f32 %v6972_v12, %v6672_v33  ;;  %v5218_v44 = vmul.f32 %v7232_v36, %v5154_v47  ;;  %v1775_v56 = vmul.f32 %v12357_v63, %v12350_v48 }
  0xd1   : > { %6146 = vpow2.f32 %v5413_v61  ;;  %v7311_v45 = vmul.f32 %v6972_v12, %v12358_v28  ;;  %v5537_v51 = vmul.f32 %v6139_v7, %v5217_v46  ;;  %v7315_v21 = vmul.f32 %v12357_v63, %v12360_v35  ;;  %v12362_v46 = vld [vmem:[#allocation11_spill] sm:$0xff] }
  0xd2   : > { %6148 = vpow2.f32 %v5415_v26  ;;  %v1970_v38 = vrot.slane %v1774_v8, 1  ;;  %v5538_v43 = vmul.f32 %v6141_v54, %v5218_v44  ;;  %v1973_v11 = vrot.slane %v1775_v56, 1 }
  0xd3   : > { %12359 = vst [vmem:[#allocation57_spill] sm:$0xff] %v7311_v45  ;;  %v11800_v55 = vrot.slane %v7311_v45, 1  ;;  %v2261_v36 = vmul.f32 %v7007_v37, %v12352_v9  ;;  %v5601_v4 = vsub.f32 1.0, %v5537_v51  ;;  %v11808_v1 = vrot.slane %v7315_v21, 1  ;;  %v2738_v45 = vld [vmem:[#allocation2 + $0x130] sm:$0xee] }
  0xd4   : > { %12361 = vst [vmem:[#allocation5_spill] sm:$0xff] %v7315_v21  ;;  %v2262_v20 = vmul.f32 %v7009_v53, %v12353_v13  ;;  %v7325_v7 = vmul.f32 %v7007_v37, %v12362_v46  ;;  %v5602_v18 = vsub.f32 1.0, %v5538_v43  ;;  %v7334_v47 = vmul.f32 %v7009_v53, %v12363_v62 }
  0xd5   : > { %v7327_v34 = vpop.eup %6142  ;;  %v1972_v54 = vsel %vm1472_vm1, %v1970_v38, %v11800_v55  ;;  %v2457_v61 = vrot.slane %v2261_v36, 1  ;;  %v5729_v8 = vsub.f32 0.0, %v5601_v4  ;;  %v1975_v56 = vsel %vm1472_vm1, %v1973_v11, %v11808_v1 }
  0xd6   : > { %v7336_v26 = vpop.eup %6144  ;;  %v4707_v44 = vmul.f32 1.0614054, %v7327_v34  ;;  %v2188_v51 = vadd.f32 %v1972_v54, %v1701_v59  ;;  %v5730_v27 = vsub.f32 0.0, %v5602_v18  ;;  %v2189_v55 = vadd.f32 %v1975_v56, %v1702_v42 }
  0xd7   : > { %v7342_v43 = vpop.eup %6146  ;;  %v4708_v38 = vmul.f32 1.0614054, %v7336_v26  ;;  %v11810_v13 = vrot.slane %v7325_v7, 1  ;;  %v5793_v36 = vsel %vm5665_vm5, %v5729_v8, %v5601_v4  ;;  %v2460_v33 = vrot.slane %v2262_v20, 1 }
  0xd8   : > { %v7346_v9 = vpop.eup %6148  ;;  %v4771_v48 = vadd.f32 -1.4531521, %v4707_v44  ;;  %v11809_v21 = vrot.slane %v7334_v47, 1  ;;  %v5794_v59 = vsel %vm5666_vm6, %v5730_v27, %v5602_v18  ;;  %v5857_v11 = vadd.f32 1.0, %v5793_v36 }
  0xd9   : > { %v4772_v54 = vadd.f32 -1.4531521, %v4708_v38  ;;  %v2459_v42 = vsel %vm1472_vm1, %v2457_v61, %v11810_v13  ;;  %v5858_v56 = vadd.f32 1.0, %v5794_v59  ;;  %v7362_v18 = vunpack.c.l.bf16 %v2738_v45  ;;  %v12366_v38 = vld [vmem:[#allocation64_spill] sm:$0xff] }
  0xda   : > { %v4835_v1 = vmul.f32 %v7327_v34, %v4771_v48  ;;  %v2462_v39 = vsel %vm1472_vm1, %v2460_v33, %v11809_v21  ;;  %v2675_v4 = vadd.f32 %v2459_v42, %v2188_v51  ;;  %v5921_v20 = vmul.f32 %v5857_v11, %v7212_v10  ;;  %v12369_v11 = vld [vmem:[#allocation65_spill] sm:$0xff] }
  0xdb   : > { %v4836_v30 = vmul.f32 %v7336_v26, %v4772_v54  ;;  %v2676_v27 = vadd.f32 %v2462_v39, %v2189_v55  ;;  %12364 = vst [vmem:[#allocation6_spill] sm:$0xff] %v7362_v18  ;;  %v5922_v8 = vmul.f32 %v5858_v56, %v7275_v52  ;;  %v7365_v61 = vunpack.c.h.bf16 %v2738_v45 }
  0xdc   : > { %v4899_v44 = vadd.f32 1.4214138, %v4835_v1  ;;  %v12367_v48 = vunpack.c.l.bf16 %v12366_v38  ;;  %v12368_v33 = vunpack.c.h.bf16 %v12366_v38  ;;  %v7375_v51 = vmul.f32 %v7046_v24, %v12354_v40 }
  0xdd   : > { %12365 = vst [vmem:[#allocation63_spill] sm:$0xff] %v7365_v61  ;;  %v4900_v59 = vadd.f32 1.4214138, %v4836_v30  ;;  %v7379_v55 = vmul.f32 %v7057_v2, %v12356_v50  ;;  %v5985_v52 = vpack.c.bf16 %v5922_v8, %v5921_v20  ;;  %v3290_v54 = vmul.f32 %v7072_v3, %v12369_v11  ;;  %v12370_v8 = vld [vmem:[#allocation66_spill] sm:$0xff] }
  0xde   : > { %v2802_v36 = vmul.f32 %v7046_v24, %v12367_v48  ;;  %v2803_v10 = vmul.f32 %v7057_v2, %v12368_v33  ;;  %v4963_v45 = vmul.f32 %v7327_v34, %v4899_v44  ;;  %v11815_v56 = vrot.slane %v7375_v51, 2 }
  0xdf   : > { %v4964_v42 = vmul.f32 %v7336_v26, %v4900_v59  ;;  %v11814_v20 = vrot.slane %v7379_v55, 2  ;;  %6017 = vst [vmem:[%s7389_s16] sm:$0xff] %v5985_v52  ;;  %v3291_v44 = vmul.f32 %v7074_v60, %v12370_v8  ;;  %v7399_v38 = vmul.f32 %v7072_v3, %v12358_v28 }
  0xe0   : > { %v2999_v1 = vrot.slane %v2802_v36, 2  ;;  %v3002_v39 = vrot.slane %v2803_v10, 2  ;;  %v5027_v30 = vadd.f32 -0.28449672, %v4963_v45  ;;  %v7403_v48 = vmul.f32 %v7074_v60, %v12360_v35 }
  0xe1   : > { %v5028_v36 = vadd.f32 -0.28449672, %v4964_v42  ;;  %v3486_v10 = vrot.slane %v3290_v54, 2  ;;  %v11813_v13 = vrot.slane %v7399_v38, 2  ;;  %v3489_v11 = vrot.slane %v3291_v44, 2 }
  0xe2   : > { %v3001_v59 = vsel %vm2988_vm4, %v2999_v1, %v11815_v56  ;;  %v3004_v33 = vsel %vm2988_vm4, %v3002_v39, %v11814_v20  ;;  %v5091_v52 = vmul.f32 %v7327_v34, %v5027_v30  ;;  %v11818_v42 = vrot.slane %v7403_v48, 2 }
  0xe3   : > { %v3217_v45 = vadd.f32 %v3001_v59, %v2675_v4  ;;  %v3218_v21 = vadd.f32 %v3004_v33, %v2676_v27  ;;  %v5092_v8 = vmul.f32 %v7336_v26, %v5028_v36  ;;  %v3777_v60 = vmul.f32 %v7077_v0, %v7362_v18 }
  0xe4   : > { %v5155_v1 = vadd.f32 0.2548296, %v5091_v52  ;;  %v3488_v39 = vsel %vm2988_vm4, %v3486_v10, %v11813_v13  ;;  %v3778_v54 = vmul.f32 %v7079_v5, %v7365_v61  ;;  %v7424_v4 = vmul.f32 %v7077_v0, %v12362_v46 }
  0xe5   : > { %v5156_v27 = vadd.f32 0.2548296, %v5092_v8  ;;  %v3491_v30 = vsel %vm2988_vm4, %v3489_v11, %v11818_v42  ;;  %v3704_v44 = vadd.f32 %v3488_v39, %v3217_v45  ;;  %v7431_v36 = vmul.f32 %v7079_v5, %v12363_v62 }
  0xe6   : > { %v5219_v59 = vmul.f32 %v7327_v34, %v5155_v1  ;;  %v3705_v33 = vadd.f32 %v3491_v30, %v3218_v21  ;;  %v3973_v10 = vrot.slane %v3777_v60, 2  ;;  %v11817_v52 = vrot.slane %v7424_v4, 2 }
  0xe7   : > { %v5220_v13 = vmul.f32 %v7336_v26, %v5156_v27  ;;  %v3976_v20 = vrot.slane %v3778_v54, 2  ;;  %v11816_v8 = vrot.slane %v7431_v36, 2  ;;  %v891_v56 = vmul.f32 %v6917_v23, %v12354_v40 }
  0xe8   : > { %v5539_v11 = vmul.f32 %v7342_v43, %v5219_v59  ;;  %v3975_v45 = vsel %vm2988_vm4, %v3973_v10, %v11817_v52  ;;  %v892_v21 = vmul.f32 %v6930_v19, %v12356_v50  ;;  %v962_v60 = vmul.f32 %v6933_v14, %v12358_v28 }
  0xe9   : > { %v5540_v34 = vmul.f32 %v7346_v9, %v5220_v13  ;;  %v3978_v26 = vsel %vm2988_vm4, %v3976_v20, %v11816_v8  ;;  %v4191_v1 = vadd.f32 %v3975_v45, %v3704_v44  ;;  %v963_v40 = vmul.f32 %v12351_v49, %v12360_v35 }
  0xea   : > { %v4323_v43 = vmul.f32 0.5, %v7261_v25  ;;  %v5603_v39 = vsub.f32 1.0, %v5539_v11  ;;  %v4192_v54 = vadd.f32 %v3978_v26, %v3705_v33  ;;  %v1026_v27 = vadd.f32 %v962_v60, %v891_v56 }
  0xeb   : > { %v5604_v30 = vsub.f32 1.0, %v5540_v34  ;;  %v7455_v50 = vadd.f32 %v7119_v6, %v4191_v1  ;;  %v1027_v59 = vadd.f32 %v963_v40, %v892_v21  ;;  %v1097_v9 = vmul.f32 %v6941_v22, %v12362_v46  ;;  %v12371_v21 = vld [vmem:[#allocation62_spill] sm:$0xff]  ;;  %v1229_v40 = vld [vmem:[#allocation2 + $0x50] sm:$0x11]  ;;  %v12372_v46 = vld [vmem:[#allocation69_spill] sm:$0xff] }
  0xec   : > { %v5731_v13 = vsub.f32 0.0, %v5603_v39  ;;  %v7460_v20 = vadd.f32 %v7127_v16, %v4192_v54  ;;  %v1098_v44 = vmul.f32 %v6960_v31, %v12363_v62  ;;  %v1290_v25 = vmul.f32 %v6966_v58, %v7149_v29 }
  0xed   : > { %v4324_v56 = vmul.f32 0.5, %v7264_v41  ;;  %vm5667_vm7 = vcmp.lt.f32.partialorder %v7278_v17, 0.0  ;;  %v5732_v33 = vsub.f32 0.0, %v5604_v30  ;;  %v7469_v10 = vmul.f32 0.70710677, %v7455_v50 }
  0xee   : > { %vm5668_vm8 = vcmp.lt.f32.partialorder %v7282_v57, 0.0  ;;  %v5795_v11 = vsel %vm5667_vm7, %v5731_v13, %v5603_v39  ;;  %v7473_v45 = vmul.f32 0.70710677, %v7460_v20  ;;  %v1291_v60 = vmul.f32 %v12371_v21, %v7151_v32 }
  0xef   : > { %v5796_v34 = vsel %vm5668_vm8, %v5732_v33, %v5604_v30  ;;  %v5859_v26 = vadd.f32 1.0, %v5795_v11  ;;  %v4453_v1 = vand.u32 2147483647, %v7469_v10  ;;  %v1161_v41 = vadd.f32 %v1097_v9, %v1026_v27 }
  0xf0   : > { %v5860_v17 = vadd.f32 1.0, %v5796_v34  ;;  %v4454_v54 = vand.u32 2147483647, %v7473_v45  ;;  %v1162_v8 = vadd.f32 %v1098_v44, %v1027_v59  ;;  %v1489_v52 = vrot.slane %v1290_v25, 1 }
  0xf1   : > { %v5923_v42 = vmul.f32 %v5859_v26, %v4323_v43  ;;  %v4517_v57 = vmul.f32 0.3275911, %v4453_v1  ;;  %v5285_v39 = vsub.f32 0.0, %v4453_v1  ;;  %v1491_v13 = vrot.slane %v1291_v60, 1  ;;  %v12377_v26 = vld [vmem:[#allocation19_spill] sm:$0xff] }
  0xf2   : > { %v5924_v61 = vmul.f32 %v5860_v17, %v4324_v56  ;;  %v4518_v18 = vmul.f32 0.3275911, %v4454_v54  ;;  %v5286_v62 = vsub.f32 0.0, %v4454_v54  ;;  %v12373_v30 = vrot.slane %v12372_v46, 1  ;;  %v12378_v17 = vld [vmem:[#allocation20_spill] sm:$0xff] }
  0xf3   : > { %v7482_v11 = vunpack.c.l.bf16 %v1229_v40  ;;  %v4581_v27 = vadd.f32 1.0, %v4517_v57  ;;  %v5349_v9 = vmul.f32 %v5285_v39, %v4453_v1  ;;  %v12375_v34 = vrot.slane %v7286_v15, 1  ;;  %v12379_v57 = vld [vmem:[#allocation27_spill] sm:$0xff]  ;;  %v12380_v39 = vld [vmem:[#allocation28_spill] sm:$0xff] }
  0xf4   : > { %v1490_v33 = vsel %vm1472_vm1, %v12373_v30, %v1489_v52  ;;  %v7487_v43 = vunpack.c.h.bf16 %v1229_v40  ;;  %v5986_v44 = vpack.c.bf16 %v5924_v61, %v5923_v42  ;;  %v4582_v25 = vadd.f32 1.0, %v4518_v18 }
  0xf5   : > { %12374 = vst [vmem:[#allocation7_spill] sm:$0xff] %v7482_v11  ;;  %v1492_v59 = vsel %vm1472_vm1, %v12375_v34, %v1491_v13  ;;  %v5350_v56 = vmul.f32 %v5286_v62, %v4454_v54  ;;  %6150 = vrcp.f32 %v4581_v27  ;;  %v1703_v60 = vadd.f32 %v1490_v33, %v1161_v41  ;;  %v12381_v33 = vld [vmem:[#allocation57_spill] sm:$0xff] }
  0xf6   : > { %12376 = vst [vmem:[#allocation8_spill] sm:$0xff] %v7487_v43  ;;  %v1778_v46 = vmul.f32 %v6972_v12, %v12377_v26  ;;  %v1779_v52 = vmul.f32 %v12357_v63, %v12378_v17  ;;  %6152 = vrcp.f32 %v4582_v25  ;;  %v1704_v1 = vadd.f32 %v1492_v59, %v1162_v8  ;;  %v12383_v34 = vld [vmem:[#allocation5_spill] sm:$0xff] }
  0xf7   : > { %6018 = vst [vmem:[%s7389_s16 + $0x8] sm:$0xff] %v5986_v44  ;;  %v2265_v15 = vmul.f32 %v7007_v37, %v12379_v57  ;;  %v2266_v40 = vmul.f32 %v7009_v53, %v12380_v39  ;;  %v5417_v61 = vmul.f32 1.442695, %v5349_v9  ;;  %v2806_v42 = vmul.f32 %v7046_v24, %v7149_v29 }
  0xf8   : > { %v1976_v18 = vrot.slane %v1778_v46, 1  ;;  %v1978_v62 = vrot.slane %v1779_v52, 1  ;;  %v5419_v41 = vmul.f32 1.442695, %v5350_v56  ;;  %v2807_v30 = vmul.f32 %v7057_v2, %v7151_v32 }
  0xf9   : > { %v2463_v54 = vrot.slane %v2265_v15, 1  ;;  %v2465_v13 = vrot.slane %v2266_v40, 1  ;;  %v12382_v8 = vrot.slane %v12381_v33, 1  ;;  %v12384_v59 = vrot.slane %v12383_v34, 1  ;;  %v12388_v33 = vld [vmem:[#allocation68_spill] sm:$0xff] }
  0xfa   : > { %v3005_v9 = vrot.slane %v2806_v42, 2  ;;  %v3294_v25 = vmul.f32 %v7072_v3, %v12377_v26  ;;  %v12385_v56 = vrot.slane %v7325_v7, 1  ;;  %v12386_v32 = vrot.slane %v7334_v47, 1 }
  0xfb   : > { %v1977_v27 = vsel %vm1472_vm1, %v12382_v8, %v1976_v18  ;;  %v1979_v44 = vsel %vm1472_vm1, %v12384_v59, %v1978_v62  ;;  %v7516_v40 = vpop.eup %6150  ;;  %v12387_v18 = vrot.slane %v7375_v51, 2  ;;  %v3007_v42 = vrot.slane %v2807_v30, 2 }
  0xfc   : > { %v2190_v46 = vadd.f32 %v1977_v27, %v1703_v60  ;;  %v2191_v29 = vadd.f32 %v1979_v44, %v1704_v1  ;;  %v2464_v52 = vsel %vm1472_vm1, %v12385_v56, %v2463_v54  ;;  %v2466_v15 = vsel %vm1472_vm1, %v12386_v32, %v2465_v13  ;;  %v7523_v1 = vpop.eup %6152 }
  0xfd   : > { %v3006_v62 = vsel %vm2988_vm4, %v12387_v18, %v3005_v9  ;;  %v3295_v8 = vmul.f32 %v12388_v33, %v12378_v17  ;;  %v3492_v60 = vrot.slane %v3294_v25, 2  ;;  %v4709_v7 = vmul.f32 1.0614054, %v7516_v40 }
  0xfe   : > { %v2677_v54 = vadd.f32 %v2464_v52, %v2190_v46  ;;  %v2678_v27 = vadd.f32 %v2466_v15, %v2191_v29  ;;  %v3781_v47 = vmul.f32 %v7077_v0, %v12379_v57  ;;  %v4710_v13 = vmul.f32 1.0614054, %v7523_v1 }
  0xff   : > { %v12389_v51 = vrot.slane %v7379_v55, 2  ;;  %v12390_v30 = vrot.slane %v7399_v38, 2  ;;  %v3494_v44 = vrot.slane %v3295_v8, 2  ;;  %v4773_v9 = vadd.f32 -1.4531521, %v4709_v7  ;;  %v12392_v55 = vld [vmem:[#allocation3_spill] sm:$0xff] }
 0x100   : > { %v3219_v25 = vadd.f32 %v3006_v62, %v2677_v54  ;;  %v3782_v46 = vmul.f32 %v7079_v5, %v12380_v39  ;;  %v4774_v29 = vadd.f32 -1.4531521, %v4710_v13  ;;  %v12391_v52 = vrot.slane %v7403_v48, 2  ;;  %v12395_v13 = vld [vmem:[#allocation9_spill] sm:$0xff] }
 0x101   : > { %v3008_v34 = vsel %vm2988_vm4, %v12389_v51, %v3007_v42  ;;  %v3493_v59 = vsel %vm2988_vm4, %v12390_v30, %v3492_v60  ;;  %v3979_v15 = vrot.slane %v3781_v47, 2  ;;  %v893_v18 = vmul.f32 %v6917_v23, %v12392_v55 }
 0x102   : > { %v3220_v56 = vadd.f32 %v3008_v34, %v2678_v27  ;;  %v3495_v32 = vsel %vm2988_vm4, %v12391_v52, %v3494_v44  ;;  %v4837_v38 = vmul.f32 %v7516_v40, %v4773_v9  ;;  %v3706_v42 = vadd.f32 %v3493_v59, %v3219_v25  ;;  %v12394_v27 = vld [vmem:[#allocation4_spill] sm:$0xff]  ;;  %v12397_v44 = vld [vmem:[#allocation10_spill] sm:$0xff] }
 0x103   : > { %v3981_v8 = vrot.slane %v3782_v46, 2  ;;  %v4838_v62 = vmul.f32 %v7523_v1, %v4774_v29  ;;  %v12393_v7 = vrot.slane %v7424_v4, 2  ;;  %v894_v48 = vmul.f32 %v6930_v19, %v12394_v27  ;;  %v12398_v46 = vld [vmem:[#allocation13_spill] sm:$0xff] }
 0x104   : > { %v3707_v60 = vadd.f32 %v3495_v32, %v3220_v56  ;;  %v964_v47 = vmul.f32 %v6933_v14, %v12395_v13  ;;  %v4901_v51 = vadd.f32 1.4214138, %v4837_v38  ;;  %v12396_v34 = vrot.slane %v7431_v36, 2 }
 0x105   : > { %v3980_v54 = vsel %vm2988_vm4, %v12393_v7, %v3979_v15  ;;  %v965_v9 = vmul.f32 %v12351_v49, %v12397_v44  ;;  %v4902_v25 = vadd.f32 1.4214138, %v4838_v62  ;;  %v1099_v29 = vmul.f32 %v6941_v22, %v12398_v46 }
 0x106   : > { %v3982_v30 = vsel %vm2988_vm4, %v12396_v34, %v3981_v8  ;;  %v4193_v59 = vadd.f32 %v3980_v54, %v3706_v42  ;;  %v1028_v4 = vadd.f32 %v964_v47, %v893_v18  ;;  %v7559_v52 = vmul.f32 0.5, %v7455_v50 }
 0x107   : > { %v4194_v56 = vadd.f32 %v3982_v30, %v3707_v60  ;;  %v7562_v32 = vmul.f32 0.5, %v7460_v20  ;;  %v4965_v36 = vmul.f32 %v7516_v40, %v4901_v51  ;;  %v4966_v38 = vmul.f32 %v7523_v1, %v4902_v25  ;;  %v12399_v60 = vld [vmem:[#allocation14_spill] sm:$0xff] }
 0x108   : > { %v7566_v15 = vadd.f32 %v7119_v6, %v4193_v59  ;;  %v1029_v18 = vadd.f32 %v965_v9, %v894_v48  ;;  %v1100_v8 = vmul.f32 %v6960_v31, %v12399_v60  ;;  %6154 = vpow2.f32 %v5417_v61 }
 0x109   : > { %v7570_v42 = vadd.f32 %v7127_v16, %v4194_v56  ;;  %v5029_v62 = vadd.f32 -0.28449672, %v4965_v36  ;;  %v1292_v20 = vmul.f32 %v6966_v58, %v12392_v55  ;;  %v5030_v7 = vadd.f32 -0.28449672, %v4966_v38 }
 0x10a   : > { %v7575_v50 = vmul.f32 0.70710677, %v7566_v15  ;;  %6156 = vpow2.f32 %v5419_v41  ;;  %v1163_v47 = vadd.f32 %v1099_v29, %v1028_v4  ;;  %v1293_v34 = vmul.f32 %v12371_v21, %v12394_v27 }
 0x10b   : > { %v7580_v54 = vmul.f32 0.70710677, %v7570_v42  ;;  %v5093_v51 = vmul.f32 %v7516_v40, %v5029_v62  ;;  %v7588_v61 = vmul.f32 %v6966_v58, %v12358_v28  ;;  %v5094_v30 = vmul.f32 %v7523_v1, %v5030_v7 }
 0x10c   : > { %v4455_v48 = vand.u32 2147483647, %v7575_v50  ;;  %v1164_v41 = vadd.f32 %v1100_v8, %v1029_v18  ;;  %v7594_v59 = vmul.f32 %v12371_v21, %v12360_v35  ;;  %v1493_v4 = vrot.slane %v1292_v20, 1 }
 0x10d   : > { %v4456_v55 = vand.u32 2147483647, %v7580_v54  ;;  %v5157_v9 = vadd.f32 0.2548296, %v5093_v51  ;;  %v5158_v29 = vadd.f32 0.2548296, %v5094_v30 }
 0x10e   : > { %v4519_v25 = vmul.f32 0.3275911, %v4455_v48  ;;  %v5287_v56 = vsub.f32 0.0, %v4455_v48  ;;  %vm5669_vm9 = vcmp.lt.f32.partialorder %v7469_v10, 0.0  ;;  %v11832_v38 = vrot.slane %v7588_v61, 1  ;;  %v6155_v62 = vpop.eup %6154 }
 0x10f   : > { %v4520_v27 = vmul.f32 0.3275911, %v4456_v55  ;;  %v5288_v36 = vsub.f32 0.0, %v4456_v55  ;;  %v5221_v7 = vmul.f32 %v7516_v40, %v5157_v9  ;;  %vm5670_vm10 = vcmp.lt.f32.partialorder %v7473_v45, 0.0 }
 0x110   : > { %v4583_v18 = vadd.f32 1.0, %v4519_v25  ;;  %v5351_v8 = vmul.f32 %v5287_v56, %v4455_v48  ;;  %v1496_v43 = vrot.slane %v1293_v34, 1  ;;  %v6157_v11 = vpop.eup %6156  ;;  %v5222_v51 = vmul.f32 %v7523_v1, %v5158_v29 }
 0x111   : > { %v4584_v39 = vadd.f32 1.0, %v4520_v27  ;;  %v5352_v20 = vmul.f32 %v5288_v36, %v4456_v55  ;;  %v1495_v30 = vsel %vm1472_vm1, %v1493_v4, %v11832_v38  ;;  %v5541_v57 = vmul.f32 %v6155_v62, %v5221_v7 }
 0x112   : > { %6158 = vrcp.f32 %v4583_v18  ;;  %v5421_v21 = vmul.f32 1.442695, %v5351_v8  ;;  %v11831_v17 = vrot.slane %v7594_v59, 1  ;;  %v5542_v40 = vmul.f32 %v6157_v11, %v5222_v51  ;;  %v12400_v11 = vld [vmem:[#allocation11_spill] sm:$0xff] }
 0x113   : > { %6160 = vrcp.f32 %v4584_v39  ;;  %v5423_v9 = vmul.f32 1.442695, %v5352_v20  ;;  %v1705_v25 = vadd.f32 %v1495_v30, %v1163_v47  ;;  %v5605_v48 = vsub.f32 1.0, %v5541_v57  ;;  %v12402_v57 = vld [vmem:[#allocation12_spill] sm:$0xff]  ;;  %v12404_v51 = vld [vmem:[#allocation15_spill] sm:$0xff] }
 0x114   : > { %6162 = vpow2.f32 %v5421_v21  ;;  %v1498_v1 = vsel %vm1472_vm1, %v1496_v43, %v11831_v17  ;;  %v1780_v34 = vmul.f32 %v6972_v12, %v12395_v13  ;;  %v5606_v55 = vsub.f32 1.0, %v5542_v40 }
 0x115   : > { %6164 = vpow2.f32 %v5423_v9  ;;  %v1706_v56 = vadd.f32 %v1498_v1, %v1164_v41  ;;  %v1781_v4 = vmul.f32 %v12357_v63, %v12397_v44  ;;  %v5733_v29 = vsub.f32 0.0, %v5605_v48 }
 0x116   : > { %v7614_v39 = vmul.f32 %v6972_v12, %v12400_v11  ;;  %v7618_v21 = vmul.f32 %v12357_v63, %v12402_v57  ;;  %v1980_v47 = vrot.slane %v1780_v34, 1  ;;  %v5734_v43 = vsub.f32 0.0, %v5606_v55  ;;  %v12405_v34 = vld [vmem:[#allocation16_spill] sm:$0xff] }
 0x117   : > { %v1983_v27 = vrot.slane %v1781_v4, 1  ;;  %v2267_v36 = vmul.f32 %v7007_v37, %v12398_v46  ;;  %v2268_v41 = vmul.f32 %v7009_v53, %v12399_v60  ;;  %v5797_v7 = vsel %vm5669_vm9, %v5733_v29, %v5605_v48 }
 0x118   : > { %12401 = vst [vmem:[#allocation64_spill] sm:$0xff] %v7614_v39  ;;  %v7624_v62 = vpop.eup %6158  ;;  %v11838_v18 = vrot.slane %v7614_v39, 1  ;;  %v11839_v8 = vrot.slane %v7618_v21, 1  ;;  %v7632_v20 = vmul.f32 %v7007_v37, %v12404_v51  ;;  %v5798_v40 = vsel %vm5670_vm10, %v5734_v43, %v5606_v55  ;;  %v2739_v55 = vld [vmem:[#allocation2 + $0x148] sm:$0xee] }
 0x119   : > { %12403 = vst [vmem:[#allocation69_spill] sm:$0xff] %v7618_v21  ;;  %v7634_v30 = vpop.eup %6160  ;;  %v5861_v9 = vadd.f32 1.0, %v5797_v7  ;;  %v4711_v1 = vmul.f32 1.0614054, %v7624_v62  ;;  %v7641_v10 = vmul.f32 %v7009_v53, %v12405_v34  ;;  %v5862_v4 = vadd.f32 1.0, %v5798_v40 }
 0x11a   : > { %v7643_v48 = vpop.eup %6162  ;;  %v4712_v29 = vmul.f32 1.0614054, %v7634_v30  ;;  %v1982_v17 = vsel %vm1472_vm1, %v1980_v47, %v11838_v18  ;;  %v1985_v45 = vsel %vm1472_vm1, %v1983_v27, %v11839_v8  ;;  %v2467_v13 = vrot.slane %v2267_v36, 1  ;;  %v12408_v36 = vld [vmem:[#allocation65_spill] sm:$0xff] }
 0x11b   : > { %v7652_v43 = vpop.eup %6164  ;;  %v5925_v7 = vmul.f32 %v5861_v9, %v7559_v52  ;;  %v4775_v38 = vadd.f32 -1.4531521, %v4711_v1  ;;  %v2192_v60 = vadd.f32 %v1982_v17, %v1705_v25  ;;  %v2193_v46 = vadd.f32 %v1985_v45, %v1706_v56 }
 0x11c   : > { %v5926_v40 = vmul.f32 %v5862_v4, %v7562_v32  ;;  %v4776_v44 = vadd.f32 -1.4531521, %v4712_v29  ;;  %v11842_v39 = vrot.slane %v7632_v20, 1  ;;  %v2470_v18 = vrot.slane %v2268_v41, 1  ;;  %v12409_v4 = vld [vmem:[#allocation66_spill] sm:$0xff] }
 0x11d   : > { %v4839_v47 = vmul.f32 %v7624_v62, %v4775_v38  ;;  %v11841_v27 = vrot.slane %v7641_v10, 1  ;;  %v7659_v8 = vunpack.c.l.bf16 %v2739_v55  ;;  %v7665_v32 = vunpack.c.h.bf16 %v2739_v55 }
 0x11e   : > { %v5987_v21 = vpack.c.bf16 %v5926_v40, %v5925_v7  ;;  %v4840_v52 = vmul.f32 %v7634_v30, %v4776_v44  ;;  %v2469_v17 = vsel %vm1472_vm1, %v2467_v13, %v11842_v39  ;;  %v2808_v41 = vmul.f32 %v7046_v24, %v12408_v36  ;;  %v12411_v40 = vld [vmem:[#allocation63_spill] sm:$0xff] }
 0x11f   : > { %12406 = vst [vmem:[#allocation19_spill] sm:$0xff] %v7659_v8  ;;  %v4903_v25 = vadd.f32 1.4214138, %v4839_v47  ;;  %v2472_v56 = vsel %vm1472_vm1, %v2470_v18, %v11841_v27  ;;  %v2679_v38 = vadd.f32 %v2469_v17, %v2192_v60  ;;  %v2809_v44 = vmul.f32 %v7057_v2, %v12409_v4  ;;  %v12410_v18 = vld [vmem:[#allocation6_spill] sm:$0xff] }
 0x120   : > { %12407 = vst [vmem:[#allocation57_spill] sm:$0xff] %v7665_v32  ;;  %v4904_v9 = vadd.f32 1.4214138, %v4840_v52  ;;  %v2680_v1 = vadd.f32 %v2472_v56, %v2193_v46  ;;  %v7677_v13 = vmul.f32 %v7046_v24, %v12358_v28  ;;  %v7682_v45 = vmul.f32 %v7057_v2, %v12360_v35 }
 0x121   : > { %6019 = vst [vmem:[%s7389_s16 + $0x10] sm:$0xff] %v5987_v21  ;;  %v4967_v29 = vmul.f32 %v7624_v62, %v4903_v25  ;;  %v3009_v60 = vrot.slane %v2808_v41, 2  ;;  %v3296_v55 = vmul.f32 %v7072_v3, %v12410_v18  ;;  %v3012_v7 = vrot.slane %v2809_v44, 2 }
 0x122   : > { %v4968_v21 = vmul.f32 %v7634_v30, %v4904_v9  ;;  %v11846_v46 = vrot.slane %v7677_v13, 2  ;;  %v3297_v47 = vmul.f32 %v12388_v33, %v12411_v40  ;;  %v11845_v17 = vrot.slane %v7682_v45, 2 }
 0x123   : > { %v5031_v52 = vadd.f32 -0.28449672, %v4967_v29  ;;  %v7693_v25 = vmul.f32 %v7072_v3, %v12400_v11  ;;  %v7697_v56 = vmul.f32 %v12388_v33, %v12402_v57  ;;  %v3496_v9 = vrot.slane %v3296_v55, 2 }
 0x124   : > { %v5032_v36 = vadd.f32 -0.28449672, %v4968_v21  ;;  %v3011_v41 = vsel %vm2988_vm4, %v3009_v60, %v11846_v46  ;;  %v3499_v4 = vrot.slane %v3297_v47, 2  ;;  %v3014_v29 = vsel %vm2988_vm4, %v3012_v7, %v11845_v17 }
 0x125   : > { %v5095_v44 = vmul.f32 %v7624_v62, %v5031_v52  ;;  %v3221_v27 = vadd.f32 %v3011_v41, %v2679_v38  ;;  %v11844_v39 = vrot.slane %v7693_v25, 2  ;;  %v3222_v18 = vadd.f32 %v3014_v29, %v2680_v1 }
 0x126   : > { %v5096_v40 = vmul.f32 %v7634_v30, %v5032_v36  ;;  %v11849_v21 = vrot.slane %v7697_v56, 2  ;;  %v3783_v33 = vmul.f32 %v7077_v0, %v7659_v8  ;;  %v3784_v47 = vmul.f32 %v7079_v5, %v7665_v32 }
 0x127   : > { %v5159_v60 = vadd.f32 0.2548296, %v5095_v44  ;;  %v3498_v55 = vsel %vm2988_vm4, %v3496_v9, %v11844_v39  ;;  %v7718_v38 = vmul.f32 %v7077_v0, %v12404_v51  ;;  %v7725_v36 = vmul.f32 %v7079_v5, %v12405_v34 }
 0x128   : > { %v5160_v7 = vadd.f32 0.2548296, %v5096_v40  ;;  %v3501_v1 = vsel %vm2988_vm4, %v3499_v4, %v11849_v21  ;;  %v3708_v52 = vadd.f32 %v3498_v55, %v3221_v27  ;;  %v3983_v44 = vrot.slane %v3783_v33, 2 }
 0x129   : > { %v5223_v41 = vmul.f32 %v7624_v62, %v5159_v60  ;;  %v3709_v9 = vadd.f32 %v3501_v1, %v3222_v18  ;;  %v11848_v29 = vrot.slane %v7718_v38, 2  ;;  %v3986_v17 = vrot.slane %v3784_v47, 2 }
 0x12a   : > { %v5224_v39 = vmul.f32 %v7634_v30, %v5160_v7  ;;  %v11847_v40 = vrot.slane %v7725_v36, 2  ;;  %v895_v46 = vmul.f32 %v6917_v23, %v12358_v28  ;;  %v896_v62 = vmul.f32 %v6930_v19, %v12360_v35 }
 0x12b   : > { %v5543_v27 = vmul.f32 %v7643_v48, %v5223_v41  ;;  %v3985_v4 = vsel %vm2988_vm4, %v3983_v44, %v11848_v29  ;;  %v966_v33 = vmul.f32 %v6933_v14, %v12400_v11  ;;  %v967_v28 = vmul.f32 %v12351_v49, %v12402_v57 }
 0x12c   : > { %v5544_v30 = vmul.f32 %v7652_v43, %v5224_v39  ;;  %v3988_v18 = vsel %vm2988_vm4, %v3986_v17, %v11847_v40  ;;  %v4195_v60 = vadd.f32 %v3985_v4, %v3708_v52  ;;  %v4327_v48 = vmul.f32 0.5, %v7566_v15 }
 0x12d   : > { %v5607_v55 = vsub.f32 1.0, %v5543_v27  ;;  %v4196_v47 = vadd.f32 %v3988_v18, %v3709_v9  ;;  %v1030_v7 = vadd.f32 %v966_v33, %v895_v46  ;;  %v1031_v41 = vadd.f32 %v967_v28, %v896_v62  ;;  %v12412_v62 = vld [vmem:[#allocation20_spill] sm:$0xff]  ;;  %v12413_v33 = vld [vmem:[#allocation62_spill] sm:$0xff] }
 0x12e   : > { %v5608_v1 = vsub.f32 1.0, %v5544_v30  ;;  %v7749_v35 = vadd.f32 %v7119_v6, %v4195_v60  ;;  %v1101_v39 = vmul.f32 %v6941_v22, %v12404_v51  ;;  %v1102_v52 = vmul.f32 %v6960_v31, %v12405_v34 }
 0x12f   : > { %v5735_v43 = vsub.f32 0.0, %v5607_v55  ;;  %v7754_v17 = vadd.f32 %v7127_v16, %v4196_v47  ;;  %v1296_v15 = vmul.f32 %v6966_v58, %v12377_v26  ;;  %v4328_v46 = vmul.f32 0.5, %v7570_v42  ;;  %v1230_v47 = vld [vmem:[#allocation2 + $0x78] sm:$0x11] }
 0x130   : > { %vm5671_vm11 = vcmp.lt.f32.partialorder %v7575_v50, 0.0  ;;  %v5736_v9 = vsub.f32 0.0, %v5608_v1  ;;  %v7763_v44 = vmul.f32 0.70710677, %v7749_v35  ;;  %vm5672_vm12 = vcmp.lt.f32.partialorder %v7580_v54, 0.0 }
 0x131   : > { %v5799_v27 = vsel %vm5671_vm11, %v5735_v43, %v5607_v55  ;;  %v7767_v4 = vmul.f32 0.70710677, %v7754_v17  ;;  %v1297_v30 = vmul.f32 %v12413_v33, %v12412_v62  ;;  %v1165_v42 = vadd.f32 %v1101_v39, %v1030_v7 }
 0x132   : > { %v5800_v18 = vsel %vm5672_vm12, %v5736_v9, %v5608_v1  ;;  %v5863_v60 = vadd.f32 1.0, %v5799_v27  ;;  %v4457_v28 = vand.u32 2147483647, %v7763_v44  ;;  %v1166_v29 = vadd.f32 %v1102_v52, %v1031_v41 }
 0x133   : > { %v5864_v50 = vadd.f32 1.0, %v5800_v18  ;;  %v4458_v40 = vand.u32 2147483647, %v7767_v4  ;;  %v1499_v21 = vrot.slane %v1296_v15, 1  ;;  %v1501_v43 = vrot.slane %v1297_v30, 1 }
 0x134   : > { %v5927_v32 = vmul.f32 %v5863_v60, %v4327_v48  ;;  %v4521_v54 = vmul.f32 0.3275911, %v4457_v28  ;;  %v5289_v55 = vsub.f32 0.0, %v4457_v28  ;;  %v12414_v1 = vrot.slane %v7588_v61, 1  ;;  %v12418_v60 = vld [vmem:[#allocation27_spill] sm:$0xff] }
 0x135   : > { %v5928_v8 = vmul.f32 %v5864_v50, %v4328_v46  ;;  %v4522_v34 = vmul.f32 0.3275911, %v4458_v40  ;;  %v5290_v51 = vsub.f32 0.0, %v4458_v40  ;;  %v7776_v27 = vunpack.c.l.bf16 %v1230_v47  ;;  %v12419_v50 = vld [vmem:[#allocation28_spill] sm:$0xff] }
 0x136   : > { %v1500_v9 = vsel %vm1472_vm1, %v12414_v1, %v1499_v21  ;;  %v4585_v7 = vadd.f32 1.0, %v4521_v54  ;;  %v5353_v39 = vmul.f32 %v5289_v55, %v4457_v28  ;;  %v12416_v18 = vrot.slane %v7594_v59, 1  ;;  %v12420_v54 = vld [vmem:[#allocation31_spill] sm:$0xff]  ;;  %v12421_v55 = vld [vmem:[#allocation32_spill] sm:$0xff] }
 0x137   : > { %12415 = vst [vmem:[#allocation5_spill] sm:$0xff] %v7776_v27  ;;  %v7781_v48 = vunpack.c.h.bf16 %v1230_v47  ;;  %v5988_v52 = vpack.c.bf16 %v5928_v8, %v5927_v32  ;;  %v4586_v15 = vadd.f32 1.0, %v4522_v34  ;;  %v5354_v46 = vmul.f32 %v5290_v51, %v4458_v40 }
 0x138   : > { %v1502_v41 = vsel %vm1472_vm1, %v12416_v18, %v1501_v43  ;;  %6166 = vrcp.f32 %v4585_v7  ;;  %v1707_v30 = vadd.f32 %v1500_v9, %v1165_v42  ;;  %v1784_v61 = vmul.f32 %v6972_v12, %v12418_v60  ;;  %v12422_v9 = vld [vmem:[#allocation64_spill] sm:$0xff]  ;;  %v12424_v18 = vld [vmem:[#allocation69_spill] sm:$0xff] }
 0x139   : > { %12417 = vst [vmem:[#allocation3_spill] sm:$0xff] %v7781_v48  ;;  %v1785_v21 = vmul.f32 %v12357_v63, %v12419_v50  ;;  %6168 = vrcp.f32 %v4586_v15  ;;  %v1708_v28 = vadd.f32 %v1502_v41, %v1166_v29  ;;  %v2271_v59 = vmul.f32 %v7007_v37, %v12420_v54 }
 0x13a   : > { %6020 = vst [vmem:[%s7389_s16 + $0x18] sm:$0xff] %v5988_v52  ;;  %v2272_v47 = vmul.f32 %v7009_v53, %v12421_v55  ;;  %v5425_v8 = vmul.f32 1.442695, %v5353_v39  ;;  %v1986_v34 = vrot.slane %v1784_v61, 1  ;;  %v2812_v32 = vmul.f32 %v7046_v24, %v12377_v26 }
 0x13b   : > { %v1988_v51 = vrot.slane %v1785_v21, 1  ;;  %v5427_v40 = vmul.f32 1.442695, %v5354_v46  ;;  %v2473_v42 = vrot.slane %v2271_v59, 1  ;;  %v2813_v1 = vmul.f32 %v7057_v2, %v12412_v62 }
 0x13c   : > { %v2475_v43 = vrot.slane %v2272_v47, 1  ;;  %v12423_v29 = vrot.slane %v12422_v9, 1  ;;  %v12425_v41 = vrot.slane %v12424_v18, 1  ;;  %v3015_v39 = vrot.slane %v2812_v32, 2  ;;  %v12429_v9 = vld [vmem:[#allocation68_spill] sm:$0xff] }
 0x13d   : > { %v3300_v15 = vmul.f32 %v7072_v3, %v12418_v60  ;;  %v12426_v46 = vrot.slane %v7632_v20, 1  ;;  %v12427_v62 = vrot.slane %v7641_v10, 1  ;;  %v3017_v32 = vrot.slane %v2813_v1, 2 }
 0x13e   : > { %v1987_v7 = vsel %vm1472_vm1, %v12423_v29, %v1986_v34  ;;  %v1989_v52 = vsel %vm1472_vm1, %v12425_v41, %v1988_v51  ;;  %v7810_v47 = vpop.eup %6166  ;;  %v12428_v34 = vrot.slane %v7677_v13, 2  ;;  %v3301_v29 = vmul.f32 %v12429_v9, %v12419_v50 }
 0x13f   : > { %v2194_v61 = vadd.f32 %v1987_v7, %v1707_v30  ;;  %v2195_v26 = vadd.f32 %v1989_v52, %v1708_v28  ;;  %v2474_v21 = vsel %vm1472_vm1, %v12426_v46, %v2473_v42  ;;  %v2476_v59 = vsel %vm1472_vm1, %v12427_v62, %v2475_v43  ;;  %v7817_v28 = vpop.eup %6168 }
 0x140   : > { %v3016_v51 = vsel %vm2988_vm4, %v12428_v34, %v3015_v39  ;;  %v3502_v30 = vrot.slane %v3300_v15, 2  ;;  %v4713_v20 = vmul.f32 1.0614054, %v7810_v47  ;;  %v3787_v10 = vmul.f32 %v7077_v0, %v12420_v54 }
 0x141   : > { %v2681_v42 = vadd.f32 %v2474_v21, %v2194_v61  ;;  %v2682_v7 = vadd.f32 %v2476_v59, %v2195_v26  ;;  %v4714_v43 = vmul.f32 1.0614054, %v7817_v28  ;;  %v12430_v13 = vrot.slane %v7682_v45, 2  ;;  %v12433_v45 = vld [vmem:[#allocation9_spill] sm:$0xff] }
 0x142   : > { %v12431_v1 = vrot.slane %v7693_v25, 2  ;;  %v3504_v52 = vrot.slane %v3301_v29, 2  ;;  %v4777_v39 = vadd.f32 -1.4531521, %v4713_v20  ;;  %v3788_v61 = vmul.f32 %v7079_v5, %v12421_v55 }
 0x143   : > { %v3018_v18 = vsel %vm2988_vm4, %v12430_v13, %v3017_v32  ;;  %v3223_v15 = vadd.f32 %v3016_v51, %v2681_v42  ;;  %v4778_v26 = vadd.f32 -1.4531521, %v4714_v43  ;;  %v12432_v21 = vrot.slane %v7697_v56, 2  ;;  %v12436_v43 = vld [vmem:[#allocation13_spill] sm:$0xff] }
 0x144   : > { %v3503_v41 = vsel %vm2988_vm4, %v12431_v1, %v3502_v30  ;;  %v3224_v46 = vadd.f32 %v3018_v18, %v2682_v7  ;;  %v3989_v59 = vrot.slane %v3787_v10, 2  ;;  %v897_v34 = vmul.f32 %v6917_v23, %v12433_v45  ;;  %v12435_v7 = vld [vmem:[#allocation10_spill] sm:$0xff] }
 0x145   : > { %v3505_v62 = vsel %vm2988_vm4, %v12432_v21, %v3504_v52  ;;  %v4841_v25 = vmul.f32 %v7810_v47, %v4777_v39  ;;  %v3710_v32 = vadd.f32 %v3503_v41, %v3223_v15  ;;  %v3991_v29 = vrot.slane %v3788_v61, 2  ;;  %v12438_v52 = vld [vmem:[#allocation14_spill] sm:$0xff]  ;;  %v12439_v61 = vld [vmem:[#allocation17_spill] sm:$0xff] }
 0x146   : > { %v3711_v30 = vadd.f32 %v3505_v62, %v3224_v46  ;;  %v4842_v51 = vmul.f32 %v7817_v28, %v4778_v26  ;;  %v12434_v20 = vrot.slane %v7718_v38, 2  ;;  %v898_v56 = vmul.f32 %v6930_v19, %v12435_v7 }
 0x147   : > { %v968_v10 = vmul.f32 %v6933_v14, %v12436_v43  ;;  %v4905_v13 = vadd.f32 1.4214138, %v4841_v25  ;;  %v12437_v18 = vrot.slane %v7725_v36, 2  ;;  %v969_v39 = vmul.f32 %v12351_v49, %v12438_v52 }
 0x148   : > { %v3990_v42 = vsel %vm2988_vm4, %v12434_v20, %v3989_v59  ;;  %v4906_v15 = vadd.f32 1.4214138, %v4842_v51  ;;  %v1103_v26 = vmul.f32 %v6941_v22, %v12439_v61  ;;  %v7853_v21 = vmul.f32 0.5, %v7749_v35 }
 0x149   : > { %v3992_v1 = vsel %vm2988_vm4, %v12437_v18, %v3991_v29  ;;  %v4197_v41 = vadd.f32 %v3990_v42, %v3710_v32  ;;  %v1032_v38 = vadd.f32 %v968_v10, %v897_v34  ;;  %v7856_v62 = vmul.f32 0.5, %v7754_v17 }
 0x14a   : > { %v4198_v46 = vadd.f32 %v3992_v1, %v3711_v30  ;;  %v4969_v36 = vmul.f32 %v7810_v47, %v4905_v13  ;;  %v4970_v25 = vmul.f32 %v7817_v28, %v4906_v15  ;;  %v1033_v34 = vadd.f32 %v969_v39, %v898_v56  ;;  %v12440_v30 = vld [vmem:[#allocation18_spill] sm:$0xff] }
 0x14b   : > { %v7860_v59 = vadd.f32 %v7119_v6, %v4197_v41  ;;  %v1104_v29 = vmul.f32 %v6960_v31, %v12440_v30  ;;  %6170 = vpow2.f32 %v5425_v8  ;;  %v1298_v17 = vmul.f32 %v6966_v58, %v12433_v45 }
 0x14c   : > { %v7864_v32 = vadd.f32 %v7127_v16, %v4198_v46  ;;  %v5033_v51 = vadd.f32 -0.28449672, %v4969_v36  ;;  %v5034_v20 = vadd.f32 -0.28449672, %v4970_v25  ;;  %6172 = vpow2.f32 %v5427_v40 }
 0x14d   : > { %v7869_v35 = vmul.f32 0.70710677, %v7860_v59  ;;  %v1167_v10 = vadd.f32 %v1103_v26, %v1032_v38  ;;  %v1299_v18 = vmul.f32 %v12413_v33, %v12435_v7  ;;  %v7882_v8 = vmul.f32 %v6966_v58, %v12400_v11 }
 0x14e   : > { %v7874_v42 = vmul.f32 0.70710677, %v7864_v32  ;;  %v5097_v13 = vmul.f32 %v7810_v47, %v5033_v51  ;;  %v5098_v1 = vmul.f32 %v7817_v28, %v5034_v20  ;;  %v1168_v40 = vadd.f32 %v1104_v29, %v1033_v34 }
 0x14f   : > { %v4459_v56 = vand.u32 2147483647, %v7869_v35  ;;  %v7888_v41 = vmul.f32 %v12413_v33, %v12402_v57  ;;  %v1503_v38 = vrot.slane %v1298_v17, 1  ;;  %vm5673_vm13 = vcmp.lt.f32.partialorder %v7763_v44, 0.0 }
 0x150   : > { %v4460_v45 = vand.u32 2147483647, %v7874_v42  ;;  %v5161_v39 = vadd.f32 0.2548296, %v5097_v13  ;;  %v5162_v26 = vadd.f32 0.2548296, %v5098_v1 }
 0x151   : > { %v4523_v15 = vmul.f32 0.3275911, %v4459_v56  ;;  %v5291_v46 = vsub.f32 0.0, %v4459_v56  ;;  %v11863_v25 = vrot.slane %v7882_v8, 1  ;;  %v6171_v51 = vpop.eup %6170  ;;  %vm5674_vm14 = vcmp.lt.f32.partialorder %v7767_v4, 0.0 }
 0x152   : > { %v4524_v7 = vmul.f32 0.3275911, %v4460_v45  ;;  %v5292_v36 = vsub.f32 0.0, %v4460_v45  ;;  %v5225_v20 = vmul.f32 %v7810_v47, %v5161_v39  ;;  %v1506_v48 = vrot.slane %v1299_v18, 1  ;;  %v6173_v27 = vpop.eup %6172 }
 0x153   : > { %v4587_v34 = vadd.f32 1.0, %v4523_v15  ;;  %v5355_v29 = vmul.f32 %v5291_v46, %v4459_v56  ;;  %v5226_v13 = vmul.f32 %v7817_v28, %v5162_v26  ;;  %v1505_v1 = vsel %vm1472_vm1, %v1503_v38, %v11863_v25 }
 0x154   : > { %v4588_v55 = vadd.f32 1.0, %v4524_v7  ;;  %v5356_v17 = vmul.f32 %v5292_v36, %v4460_v45  ;;  %v5545_v54 = vmul.f32 %v6171_v51, %v5225_v20  ;;  %v11862_v50 = vrot.slane %v7888_v41, 1 }
 0x155   : > { %6174 = vrcp.f32 %v4587_v34  ;;  %v5429_v33 = vmul.f32 1.442695, %v5355_v29  ;;  %v5546_v47 = vmul.f32 %v6173_v27, %v5226_v13  ;;  %v1709_v15 = vadd.f32 %v1505_v1, %v1167_v10  ;;  %v12441_v27 = vld [vmem:[#allocation15_spill] sm:$0xff]  ;;  %v12445_v13 = vld [vmem:[#allocation21_spill] sm:$0xff] }
 0x156   : > { %6176 = vrcp.f32 %v4588_v55  ;;  %v5431_v39 = vmul.f32 1.442695, %v5356_v17  ;;  %v5609_v56 = vsub.f32 1.0, %v5545_v54  ;;  %v1508_v28 = vsel %vm1472_vm1, %v1506_v48, %v11862_v50  ;;  %v12443_v54 = vld [vmem:[#allocation16_spill] sm:$0xff] }
 0x157   : > { %6178 = vpow2.f32 %v5429_v33  ;;  %v1786_v18 = vmul.f32 %v6972_v12, %v12436_v43  ;;  %v5610_v45 = vsub.f32 1.0, %v5546_v47  ;;  %v1710_v46 = vadd.f32 %v1508_v28, %v1168_v40 }
 0x158   : > { %6180 = vpow2.f32 %v5431_v39  ;;  %v1787_v38 = vmul.f32 %v12357_v63, %v12438_v52  ;;  %v5737_v26 = vsub.f32 0.0, %v5609_v56  ;;  %v7908_v55 = vmul.f32 %v6972_v12, %v12441_v27 }
 0x159   : > { %v7912_v33 = vmul.f32 %v12357_v63, %v12443_v54  ;;  %v1990_v10 = vrot.slane %v1786_v18, 1  ;;  %v5738_v48 = vsub.f32 0.0, %v5610_v45  ;;  %v2273_v36 = vmul.f32 %v7007_v37, %v12439_v61  ;;  %v12446_v18 = vld [vmem:[#allocation22_spill] sm:$0xff] }
 0x15a   : > { %12442 = vst [vmem:[#allocation4_spill] sm:$0xff] %v7908_v55  ;;  %v1993_v7 = vrot.slane %v1787_v38, 1  ;;  %v2274_v40 = vmul.f32 %v7009_v53, %v12440_v30  ;;  %v5801_v20 = vsel %vm5673_vm13, %v5737_v26, %v5609_v56  ;;  %v11869_v34 = vrot.slane %v7908_v55, 1 }
 0x15b   : > { %12444 = vst [vmem:[#allocation11_spill] sm:$0xff] %v7912_v33  ;;  %v7918_v51 = vpop.eup %6174  ;;  %v11870_v29 = vrot.slane %v7912_v33, 1  ;;  %v7926_v17 = vmul.f32 %v7007_v37, %v12445_v13  ;;  %v5802_v47 = vsel %vm5674_vm14, %v5738_v48, %v5610_v45  ;;  %v5865_v39 = vadd.f32 1.0, %v5801_v20  ;;  %v2740_v45 = vld [vmem:[#allocation2 + $0x138] sm:$0xee] }
 0x15c   : > { %v7928_v1 = vpop.eup %6176  ;;  %v4715_v28 = vmul.f32 1.0614054, %v7918_v51  ;;  %v7935_v44 = vmul.f32 %v7009_v53, %v12446_v18  ;;  %v5866_v38 = vadd.f32 1.0, %v5802_v47  ;;  %v1992_v50 = vsel %vm1472_vm1, %v1990_v10, %v11869_v34 }
 0x15d   : > { %v7937_v56 = vpop.eup %6178  ;;  %v4716_v26 = vmul.f32 1.0614054, %v7928_v1  ;;  %v1995_v4 = vsel %vm1472_vm1, %v1993_v7, %v11870_v29  ;;  %v5929_v20 = vmul.f32 %v5865_v39, %v7853_v21  ;;  %v2196_v30 = vadd.f32 %v1992_v50, %v1709_v15 }
 0x15e   : > { %v7946_v48 = vpop.eup %6180  ;;  %v4779_v25 = vadd.f32 -1.4531521, %v4715_v28  ;;  %v2197_v61 = vadd.f32 %v1995_v4, %v1710_v46  ;;  %v5930_v47 = vmul.f32 %v5866_v38, %v7856_v62  ;;  %v2477_v43 = vrot.slane %v2273_v36, 1  ;;  %v12449_v36 = vld [vmem:[#allocation6_spill] sm:$0xff]  ;;  %v12450_v38 = vld [vmem:[#allocation63_spill] sm:$0xff] }
 0x15f   : > { %v4780_v52 = vadd.f32 -1.4531521, %v4716_v26  ;;  %v11873_v55 = vrot.slane %v7926_v17, 1  ;;  %v2480_v34 = vrot.slane %v2274_v40, 1  ;;  %v11872_v7 = vrot.slane %v7935_v44, 1 }
 0x160   : > { %v4843_v10 = vmul.f32 %v7918_v51, %v4779_v25  ;;  %v7953_v29 = vunpack.c.l.bf16 %v2740_v45  ;;  %v5989_v33 = vpack.c.bf16 %v5930_v47, %v5929_v20  ;;  %v7959_v62 = vunpack.c.h.bf16 %v2740_v45  ;;  %v12452_v47 = vld [vmem:[#allocation57_spill] sm:$0xff] }
 0x161   : > { %v4844_v21 = vmul.f32 %v7928_v1, %v4780_v52  ;;  %v2479_v50 = vsel %vm1472_vm1, %v2477_v43, %v11873_v55  ;;  %v2482_v46 = vsel %vm1472_vm1, %v2480_v34, %v11872_v7  ;;  %v2814_v40 = vmul.f32 %v7046_v24, %v12449_v36  ;;  %v12451_v34 = vld [vmem:[#allocation19_spill] sm:$0xff] }
 0x162   : > { %12447 = vst [vmem:[#allocation12_spill] sm:$0xff] %v7953_v29  ;;  %v4907_v15 = vadd.f32 1.4214138, %v4843_v10  ;;  %v2683_v25 = vadd.f32 %v2479_v50, %v2196_v30  ;;  %v2684_v28 = vadd.f32 %v2482_v46, %v2197_v61  ;;  %v2815_v52 = vmul.f32 %v7057_v2, %v12450_v38 }
 0x163   : > { %12448 = vst [vmem:[#allocation65_spill] sm:$0xff] %v7959_v62  ;;  %v4908_v39 = vadd.f32 1.4214138, %v4844_v21  ;;  %v7971_v43 = vmul.f32 %v7046_v24, %v12400_v11  ;;  %v7976_v4 = vmul.f32 %v7057_v2, %v12402_v57  ;;  %v3019_v30 = vrot.slane %v2814_v40, 2 }
 0x164   : > { %6021 = vst [vmem:[%s7389_s16 + $0x20] sm:$0xff] %v5989_v33  ;;  %v4971_v26 = vmul.f32 %v7918_v51, %v4907_v15  ;;  %v3302_v45 = vmul.f32 %v7072_v3, %v12451_v34  ;;  %v3022_v20 = vrot.slane %v2815_v52, 2  ;;  %v3303_v10 = vmul.f32 %v12429_v9, %v12452_v47 }
 0x165   : > { %v4972_v33 = vmul.f32 %v7928_v1, %v4908_v39  ;;  %v11877_v61 = vrot.slane %v7971_v43, 2  ;;  %v11876_v50 = vrot.slane %v7976_v4, 2  ;;  %v7987_v15 = vmul.f32 %v7072_v3, %v12441_v27 }
 0x166   : > { %v5035_v21 = vadd.f32 -0.28449672, %v4971_v26  ;;  %v7991_v46 = vmul.f32 %v12429_v9, %v12443_v54  ;;  %v3506_v39 = vrot.slane %v3302_v45, 2  ;;  %v3509_v38 = vrot.slane %v3303_v10, 2 }
 0x167   : > { %v5036_v36 = vadd.f32 -0.28449672, %v4972_v33  ;;  %v3021_v40 = vsel %vm2988_vm4, %v3019_v30, %v11877_v61  ;;  %v3024_v26 = vsel %vm2988_vm4, %v3022_v20, %v11876_v50  ;;  %v11875_v55 = vrot.slane %v7987_v15, 2 }
 0x168   : > { %v5099_v52 = vmul.f32 %v7918_v51, %v5035_v21  ;;  %v3225_v7 = vadd.f32 %v3021_v40, %v2683_v25  ;;  %v3226_v34 = vadd.f32 %v3024_v26, %v2684_v28  ;;  %v11880_v33 = vrot.slane %v7991_v46, 2 }
 0x169   : > { %v5100_v47 = vmul.f32 %v7928_v1, %v5036_v36  ;;  %v3789_v9 = vmul.f32 %v7077_v0, %v7953_v29  ;;  %v3508_v45 = vsel %vm2988_vm4, %v3506_v39, %v11875_v55  ;;  %v3790_v10 = vmul.f32 %v7079_v5, %v7959_v62 }
 0x16a   : > { %v5163_v30 = vadd.f32 0.2548296, %v5099_v52  ;;  %v8012_v25 = vmul.f32 %v7077_v0, %v12445_v13  ;;  %v3511_v28 = vsel %vm2988_vm4, %v3509_v38, %v11880_v33  ;;  %v3712_v21 = vadd.f32 %v3508_v45, %v3225_v7 }
 0x16b   : > { %v5164_v20 = vadd.f32 0.2548296, %v5100_v47  ;;  %v8019_v36 = vmul.f32 %v7079_v5, %v12446_v18  ;;  %v3713_v39 = vadd.f32 %v3511_v28, %v3226_v34  ;;  %v3993_v52 = vrot.slane %v3789_v9, 2 }
 0x16c   : > { %v5227_v40 = vmul.f32 %v7918_v51, %v5163_v30  ;;  %v11879_v26 = vrot.slane %v8012_v25, 2  ;;  %v3996_v50 = vrot.slane %v3790_v10, 2  ;;  %v899_v61 = vmul.f32 %v6917_v23, %v12400_v11 }
 0x16d   : > { %v5228_v55 = vmul.f32 %v7928_v1, %v5164_v20  ;;  %v11878_v47 = vrot.slane %v8019_v36, 2  ;;  %v900_v51 = vmul.f32 %v6930_v19, %v12402_v57  ;;  %v970_v9 = vmul.f32 %v6933_v14, %v12441_v27 }
 0x16e   : > { %v5547_v7 = vmul.f32 %v7937_v56, %v5227_v40  ;;  %v3995_v38 = vsel %vm2988_vm4, %v3993_v52, %v11879_v26  ;;  %v971_v11 = vmul.f32 %v12351_v49, %v12443_v54  ;;  %v4331_v56 = vmul.f32 0.5, %v7860_v59 }
 0x16f   : > { %v5548_v1 = vmul.f32 %v7946_v48, %v5228_v55  ;;  %v3998_v34 = vsel %vm2988_vm4, %v3996_v50, %v11878_v47  ;;  %v4199_v30 = vadd.f32 %v3995_v38, %v3712_v21  ;;  %v1034_v20 = vadd.f32 %v970_v9, %v899_v61  ;;  %v12454_v9 = vld [vmem:[#allocation62_spill] sm:$0xff] }
 0x170   : > { %v5611_v45 = vsub.f32 1.0, %v5547_v7  ;;  %v4200_v10 = vadd.f32 %v3998_v34, %v3713_v39  ;;  %v1035_v40 = vadd.f32 %v971_v11, %v900_v51  ;;  %v1105_v55 = vmul.f32 %v6941_v22, %v12445_v13  ;;  %v12453_v51 = vld [vmem:[#allocation28_spill] sm:$0xff] }
 0x171   : > { %v5612_v28 = vsub.f32 1.0, %v5548_v1  ;;  %v8043_v57 = vadd.f32 %v7119_v6, %v4199_v30  ;;  %v1106_v21 = vmul.f32 %v6960_v31, %v12446_v18  ;;  %v1302_v59 = vmul.f32 %v6966_v58, %v12418_v60 }
 0x172   : > { %v5739_v48 = vsub.f32 0.0, %v5611_v45  ;;  %v8048_v50 = vadd.f32 %v7127_v16, %v4200_v10  ;;  %v4332_v61 = vmul.f32 0.5, %v7864_v32  ;;  %vm5675_vm15 = vcmp.lt.f32.partialorder %v7869_v35, 0.0 }
 0x173   : > { %v5740_v39 = vsub.f32 0.0, %v5612_v28  ;;  %v8057_v52 = vmul.f32 0.70710677, %v8043_v57  ;;  %vm5676_vm0 = vcmp.lt.f32.partialorder %v7874_v42, 0.0  ;;  %v1303_v1 = vmul.f32 %v12454_v9, %v12453_v51 }
 0x174   : > { %v5803_v7 = vsel %vm5675_vm15, %v5739_v48, %v5611_v45  ;;  %v8061_v38 = vmul.f32 0.70710677, %v8048_v50  ;;  %v1169_v32 = vadd.f32 %v1105_v55, %v1034_v20  ;;  %v1170_v47 = vadd.f32 %v1106_v21, %v1035_v40 }
 0x175   : > { %v5804_v34 = vsel %vm5676_vm0, %v5740_v39, %v5612_v28  ;;  %v5867_v30 = vadd.f32 1.0, %v5803_v7  ;;  %v4461_v11 = vand.u32 2147483647, %v8057_v52  ;;  %v1509_v26 = vrot.slane %v1302_v59, 1  ;;  %v6391_v39 = vld [vmem:[#allocation2 + $0x38] sm:$0xff] }
 0x176   : > { %v5868_v10 = vadd.f32 1.0, %v5804_v34  ;;  %v4462_v35 = vand.u32 2147483647, %v8061_v38  ;;  %v1511_v45 = vrot.slane %v1303_v1, 1  ;;  %v12455_v13 = vrot.slane %v7882_v8, 1 }
 0x177   : > { %v5931_v33 = vmul.f32 %v5867_v30, %v4331_v56  ;;  %v4525_v62 = vmul.f32 0.3275911, %v4461_v11  ;;  %v5293_v42 = vsub.f32 0.0, %v4461_v11  ;;  %v8070_v7 = vunpack.c.l.bf16 %v6391_v39  ;;  %v12459_v30 = vld [vmem:[#allocation31_spill] sm:$0xff] }
 0x178   : > { %v5932_v48 = vmul.f32 %v5868_v10, %v4332_v61  ;;  %v4526_v29 = vmul.f32 0.3275911, %v4462_v35  ;;  %v5294_v18 = vsub.f32 0.0, %v4462_v35  ;;  %v1510_v28 = vsel %vm1472_vm1, %v12455_v13, %v1509_v26  ;;  %v12460_v13 = vld [vmem:[#allocation32_spill] sm:$0xff]  ;;  %v12462_v10 = vld [vmem:[#allocation34_spill] sm:$0xff] }
 0x179   : > { %12456 = vst [vmem:[#allocation66_spill] sm:$0xff] %v8070_v7  ;;  %v4589_v20 = vadd.f32 1.0, %v4525_v62  ;;  %v5357_v55 = vmul.f32 %v5293_v42, %v4461_v11  ;;  %v12457_v40 = vrot.slane %v7888_v41, 1  ;;  %v8075_v21 = vunpack.c.h.bf16 %v6391_v39  ;;  %v12461_v11 = vld [vmem:[#allocation33_spill] sm:$0xff]  ;;  %v12463_v39 = vld [vmem:[#allocation4_spill] sm:$0xff] }
 0x17a   : > { %v5990_v59 = vpack.c.bf16 %v5932_v48, %v5931_v33  ;;  %v4590_v61 = vadd.f32 1.0, %v4526_v29  ;;  %v5358_v1 = vmul.f32 %v5294_v18, %v4462_v35  ;;  %v1711_v34 = vadd.f32 %v1510_v28, %v1169_v32 }
 0x17b   : > { %v1512_v56 = vsel %vm1472_vm1, %v12457_v40, %v1511_v45  ;;  %12458 = vst [vmem:[#allocation20_spill] sm:$0xff] %v8075_v21  ;;  %6182 = vrcp.f32 %v4589_v20  ;;  %v1790_v8 = vmul.f32 %v6972_v12, %v12459_v30  ;;  %v1791_v26 = vmul.f32 %v12357_v63, %v12460_v13  ;;  %v12465_v40 = vld [vmem:[#allocation11_spill] sm:$0xff] }
 0x17c   : > { %6022 = vst [vmem:[%s7389_s16 + $0x28] sm:$0xff] %v5990_v59  ;;  %6184 = vrcp.f32 %v4590_v61  ;;  %v1712_v62 = vadd.f32 %v1512_v56, %v1170_v47  ;;  %v2277_v41 = vmul.f32 %v7007_v37, %v12461_v11  ;;  %v2278_v42 = vmul.f32 %v7009_v53, %v12462_v10 }
 0x17d   : > { %v5433_v33 = vmul.f32 1.442695, %v5357_v55  ;;  %v1996_v29 = vrot.slane %v1790_v8, 1  ;;  %v1998_v18 = vrot.slane %v1791_v26, 1  ;;  %v2818_v32 = vmul.f32 %v7046_v24, %v12418_v60 }
 0x17e   : > { %v5435_v35 = vmul.f32 1.442695, %v5358_v1  ;;  %v2483_v45 = vrot.slane %v2277_v41, 1  ;;  %v2485_v48 = vrot.slane %v2278_v42, 1  ;;  %v2819_v28 = vmul.f32 %v7057_v2, %v12453_v51 }
 0x17f   : > { %v12464_v47 = vrot.slane %v12463_v39, 1  ;;  %v12466_v56 = vrot.slane %v12465_v40, 1  ;;  %v3025_v55 = vrot.slane %v2818_v32, 2  ;;  %v3306_v61 = vmul.f32 %v7072_v3, %v12459_v30  ;;  %v12470_v39 = vld [vmem:[#allocation68_spill] sm:$0xff] }
 0x180   : > { %v12467_v1 = vrot.slane %v7926_v17, 1  ;;  %v12468_v51 = vrot.slane %v7935_v44, 1  ;;  %v3027_v32 = vrot.slane %v2819_v28, 2  ;;  %v3793_v44 = vmul.f32 %v7077_v0, %v12461_v11 }
 0x181   : > { %v1997_v20 = vsel %vm1472_vm1, %v12464_v47, %v1996_v29  ;;  %v1999_v59 = vsel %vm1472_vm1, %v12466_v56, %v1998_v18  ;;  %v8104_v42 = vpop.eup %6182  ;;  %v12469_v29 = vrot.slane %v7971_v43, 2  ;;  %v3307_v47 = vmul.f32 %v12470_v39, %v12460_v13 }
 0x182   : > { %v2198_v8 = vadd.f32 %v1997_v20, %v1711_v34  ;;  %v2199_v60 = vadd.f32 %v1999_v59, %v1712_v62  ;;  %v2484_v26 = vsel %vm1472_vm1, %v12467_v1, %v2483_v45  ;;  %v2486_v41 = vsel %vm1472_vm1, %v12468_v51, %v2485_v48  ;;  %v8111_v62 = vpop.eup %6184 }
 0x183   : > { %v3026_v18 = vsel %vm2988_vm4, %v12469_v29, %v3025_v55  ;;  %v3512_v34 = vrot.slane %v3306_v61, 2  ;;  %v4717_v17 = vmul.f32 1.0614054, %v8104_v42  ;;  %v4718_v48 = vmul.f32 1.0614054, %v8111_v62 }
 0x184   : > { %v2685_v45 = vadd.f32 %v2484_v26, %v2198_v8  ;;  %v2686_v20 = vadd.f32 %v2486_v41, %v2199_v60  ;;  %v12471_v43 = vrot.slane %v7976_v4, 2  ;;  %v12472_v28 = vrot.slane %v7987_v15, 2  ;;  %v12474_v4 = vld [vmem:[#allocation13_spill] sm:$0xff] }
 0x185   : > { %v3514_v59 = vrot.slane %v3307_v47, 2  ;;  %v4781_v55 = vadd.f32 -1.4531521, %v4717_v17  ;;  %v3794_v8 = vmul.f32 %v7079_v5, %v12462_v10  ;;  %v4782_v60 = vadd.f32 -1.4531521, %v4718_v48  ;;  %v12477_v48 = vld [vmem:[#allocation17_spill] sm:$0xff] }
 0x186   : > { %v3028_v40 = vsel %vm2988_vm4, %v12471_v43, %v3027_v32  ;;  %v3513_v56 = vsel %vm2988_vm4, %v12472_v28, %v3512_v34  ;;  %v3227_v61 = vadd.f32 %v3026_v18, %v2685_v45  ;;  %v12473_v26 = vrot.slane %v7991_v46, 2 }
 0x187   : > { %v3228_v1 = vadd.f32 %v3028_v40, %v2686_v20  ;;  %v3999_v41 = vrot.slane %v3793_v44, 2  ;;  %v901_v29 = vmul.f32 %v6917_v23, %v12474_v4  ;;  %v4845_v15 = vmul.f32 %v8104_v42, %v4781_v55  ;;  %v12476_v20 = vld [vmem:[#allocation14_spill] sm:$0xff] }
 0x188   : > { %v3515_v51 = vsel %vm2988_vm4, %v12473_v26, %v3514_v59  ;;  %v3714_v32 = vadd.f32 %v3513_v56, %v3227_v61  ;;  %v4001_v47 = vrot.slane %v3794_v8, 2  ;;  %v4846_v18 = vmul.f32 %v8111_v62, %v4782_v60  ;;  %v12479_v59 = vld [vmem:[#allocation18_spill] sm:$0xff]  ;;  %v12480_v8 = vld [vmem:[#allocation23_spill] sm:$0xff] }
 0x189   : > { %v3715_v34 = vadd.f32 %v3515_v51, %v3228_v1  ;;  %v12475_v17 = vrot.slane %v8012_v25, 2  ;;  %v902_v46 = vmul.f32 %v6930_v19, %v12476_v20  ;;  %v972_v44 = vmul.f32 %v6933_v14, %v12477_v48 }
 0x18a   : > { %v4909_v43 = vadd.f32 1.4214138, %v4845_v15  ;;  %v12478_v40 = vrot.slane %v8019_v36, 2  ;;  %v973_v55 = vmul.f32 %v12351_v49, %v12479_v59  ;;  %v4910_v61 = vadd.f32 1.4214138, %v4846_v18 }
 0x18b   : > { %v4000_v45 = vsel %vm2988_vm4, %v12475_v17, %v3999_v41  ;;  %v1036_v25 = vadd.f32 %v972_v44, %v901_v29  ;;  %v1107_v60 = vmul.f32 %v6941_v22, %v12480_v8  ;;  %v8147_v26 = vmul.f32 0.5, %v8043_v57 }
 0x18c   : > { %v4002_v28 = vsel %vm2988_vm4, %v12478_v40, %v4001_v47  ;;  %v4201_v56 = vadd.f32 %v4000_v45, %v3714_v32  ;;  %v8150_v51 = vmul.f32 0.5, %v8048_v50  ;;  %v4973_v36 = vmul.f32 %v8104_v42, %v4909_v43 }
 0x18d   : > { %v4202_v1 = vadd.f32 %v4002_v28, %v3715_v34  ;;  %v4974_v15 = vmul.f32 %v8111_v62, %v4910_v61  ;;  %v1037_v29 = vadd.f32 %v973_v55, %v902_v46  ;;  %v12481_v34 = vld [vmem:[#allocation24_spill] sm:$0xff]  ;;  %6186 = vpow2.f32 %v5433_v33 }
 0x18e   : > { %v8154_v41 = vadd.f32 %v7119_v6, %v4201_v56  ;;  %v1108_v47 = vmul.f32 %v6960_v31, %v12481_v34  ;;  %v5037_v18 = vadd.f32 -0.28449672, %v4973_v36  ;;  %v1304_v50 = vmul.f32 %v6966_v58, %v12474_v4 }
 0x18f   : > { %v8158_v32 = vadd.f32 %v7127_v16, %v4202_v1  ;;  %v5038_v17 = vadd.f32 -0.28449672, %v4974_v15  ;;  %6188 = vpow2.f32 %v5435_v35  ;;  %v1171_v44 = vadd.f32 %v1107_v60, %v1036_v25 }
 0x190   : > { %v8163_v57 = vmul.f32 0.70710677, %v8154_v41  ;;  %v5101_v43 = vmul.f32 %v8104_v42, %v5037_v18  ;;  %v1305_v40 = vmul.f32 %v12454_v9, %v12476_v20  ;;  %v8176_v33 = vmul.f32 %v6966_v58, %v12441_v27 }
 0x191   : > { %v8168_v45 = vmul.f32 0.70710677, %v8158_v32  ;;  %v5102_v28 = vmul.f32 %v8111_v62, %v5038_v17  ;;  %v1172_v35 = vadd.f32 %v1108_v47, %v1037_v29  ;;  %v8182_v56 = vmul.f32 %v12454_v9, %v12443_v54 }
 0x192   : > { %v4463_v46 = vand.u32 2147483647, %v8163_v57  ;;  %v5165_v55 = vadd.f32 0.2548296, %v5101_v43  ;;  %v1513_v25 = vrot.slane %v1304_v50, 1  ;;  %vm5677_vm2 = vcmp.lt.f32.partialorder %v8057_v52, 0.0 }
 0x193   : > { %v4464_v4 = vand.u32 2147483647, %v8168_v45  ;;  %v5166_v60 = vadd.f32 0.2548296, %v5102_v28  ;;  %v11894_v15 = vrot.slane %v8176_v33, 1  ;;  %v6187_v18 = vpop.eup %6186  ;;  %vm5678_vm3 = vcmp.lt.f32.partialorder %v8061_v38, 0.0 }
 0x194   : > { %v4527_v61 = vmul.f32 0.3275911, %v4463_v46  ;;  %v5295_v1 = vsub.f32 0.0, %v4463_v46  ;;  %v5229_v17 = vmul.f32 %v8104_v42, %v5165_v55  ;;  %v1516_v21 = vrot.slane %v1305_v40, 1 }
 0x195   : > { %v4528_v20 = vmul.f32 0.3275911, %v4464_v4  ;;  %v5296_v36 = vsub.f32 0.0, %v4464_v4  ;;  %v6189_v7 = vpop.eup %6188  ;;  %v5230_v43 = vmul.f32 %v8111_v62, %v5166_v60  ;;  %v1515_v28 = vsel %vm1472_vm1, %v1513_v25, %v11894_v15 }
 0x196   : > { %v4591_v29 = vadd.f32 1.0, %v4527_v61  ;;  %v5359_v47 = vmul.f32 %v5295_v1, %v4463_v46  ;;  %v5549_v11 = vmul.f32 %v6187_v18, %v5229_v17  ;;  %v11893_v13 = vrot.slane %v8182_v56, 1 }
 0x197   : > { %v4592_v10 = vadd.f32 1.0, %v4528_v20  ;;  %v5360_v50 = vmul.f32 %v5296_v36, %v4464_v4  ;;  %v5550_v42 = vmul.f32 %v6189_v7, %v5230_v43  ;;  %v1713_v61 = vadd.f32 %v1515_v28, %v1171_v44  ;;  %v12482_v7 = vld [vmem:[#allocation21_spill] sm:$0xff] }
 0x198   : > { %6190 = vrcp.f32 %v4591_v29  ;;  %v5437_v9 = vmul.f32 1.442695, %v5359_v47  ;;  %v5613_v46 = vsub.f32 1.0, %v5549_v11  ;;  %v1518_v62 = vsel %vm1472_vm1, %v1516_v21, %v11893_v13  ;;  %v12484_v11 = vld [vmem:[#allocation22_spill] sm:$0xff]  ;;  %v12486_v43 = vld [vmem:[#allocation25_spill] sm:$0xff] }
 0x199   : > { %6192 = vrcp.f32 %v4592_v10  ;;  %v5439_v55 = vmul.f32 1.442695, %v5360_v50  ;;  %v1792_v40 = vmul.f32 %v6972_v12, %v12477_v48  ;;  %v5614_v4 = vsub.f32 1.0, %v5550_v42 }
 0x19a   : > { %6194 = vpow2.f32 %v5437_v9  ;;  %v1714_v1 = vadd.f32 %v1518_v62, %v1172_v35  ;;  %v1793_v25 = vmul.f32 %v12357_v63, %v12479_v59  ;;  %v5741_v60 = vsub.f32 0.0, %v5613_v46 }
 0x19b   : > { %6196 = vpow2.f32 %v5439_v55  ;;  %v8202_v10 = vmul.f32 %v6972_v12, %v12482_v7  ;;  %v8206_v9 = vmul.f32 %v12357_v63, %v12484_v11  ;;  %v2000_v44 = vrot.slane %v1792_v40, 1  ;;  %v12487_v40 = vld [vmem:[#allocation26_spill] sm:$0xff] }
 0x19c   : > { %v5742_v21 = vsub.f32 0.0, %v5614_v4  ;;  %v2003_v20 = vrot.slane %v1793_v25, 1  ;;  %v2279_v36 = vmul.f32 %v7007_v37, %v12480_v8  ;;  %v2280_v35 = vmul.f32 %v7009_v53, %v12481_v34 }
 0x19d   : > { %12483 = vst [vmem:[#allocation27_spill] sm:$0xff] %v8202_v10  ;;  %v5805_v17 = vsel %vm5677_vm2, %v5741_v60, %v5613_v46  ;;  %v11900_v29 = vrot.slane %v8202_v10, 1  ;;  %v11901_v47 = vrot.slane %v8206_v9, 1  ;;  %v8220_v50 = vmul.f32 %v7007_v37, %v12486_v43 }
 0x19e   : > { %12485 = vst [vmem:[#allocation64_spill] sm:$0xff] %v8206_v9  ;;  %v8212_v18 = vpop.eup %6190  ;;  %v5806_v42 = vsel %vm5678_vm3, %v5742_v21, %v5614_v4  ;;  %v5869_v55 = vadd.f32 1.0, %v5805_v17  ;;  %v8229_v52 = vmul.f32 %v7009_v53, %v12487_v40  ;;  %v2741_v4 = vld [vmem:[#allocation2 + $0x160] sm:$0xee]  ;;  %v2487_v48 = vrot.slane %v2279_v36, 1  ;;  %v12490_v36 = vld [vmem:[#allocation19_spill] sm:$0xff] }
 0x19f   : > { %v8222_v28 = vpop.eup %6192  ;;  %v4719_v62 = vmul.f32 1.0614054, %v8212_v18  ;;  %v5870_v25 = vadd.f32 1.0, %v5806_v42  ;;  %v2002_v13 = vsel %vm1472_vm1, %v2000_v44, %v11900_v29  ;;  %v2005_v38 = vsel %vm1472_vm1, %v2003_v20, %v11901_v47 }
 0x1a0   : > { %v8231_v46 = vpop.eup %6194  ;;  %v4720_v60 = vmul.f32 1.0614054, %v8222_v28  ;;  %v5933_v17 = vmul.f32 %v5869_v55, %v8147_v26  ;;  %v2200_v34 = vadd.f32 %v2002_v13, %v1713_v61  ;;  %v2201_v8 = vadd.f32 %v2005_v38, %v1714_v1 }
 0x1a1   : > { %v8240_v21 = vpop.eup %6196  ;;  %v4783_v15 = vadd.f32 -1.4531521, %v4719_v62  ;;  %v5934_v42 = vmul.f32 %v5870_v25, %v8150_v51  ;;  %v11904_v10 = vrot.slane %v8220_v50, 1  ;;  %v2490_v29 = vrot.slane %v2280_v35, 1  ;;  %v12491_v25 = vld [vmem:[#allocation57_spill] sm:$0xff] }
 0x1a2   : > { %v4784_v59 = vadd.f32 -1.4531521, %v4720_v60  ;;  %v11903_v20 = vrot.slane %v8229_v52, 1  ;;  %v8247_v47 = vunpack.c.l.bf16 %v2741_v4  ;;  %v8253_v51 = vunpack.c.h.bf16 %v2741_v4 }
 0x1a3   : > { %v4847_v44 = vmul.f32 %v8212_v18, %v4783_v15  ;;  %v5991_v9 = vpack.c.bf16 %v5934_v42, %v5933_v17  ;;  %v2489_v13 = vsel %vm1472_vm1, %v2487_v48, %v11904_v10  ;;  %v2820_v35 = vmul.f32 %v7046_v24, %v12490_v36  ;;  %v12493_v42 = vld [vmem:[#allocation65_spill] sm:$0xff] }
 0x1a4   : > { %12488 = vst [vmem:[#allocation69_spill] sm:$0xff] %v8247_v47  ;;  %v4848_v26 = vmul.f32 %v8222_v28, %v4784_v59  ;;  %v2492_v1 = vsel %vm1472_vm1, %v2490_v29, %v11903_v20  ;;  %v2687_v15 = vadd.f32 %v2489_v13, %v2200_v34  ;;  %v2821_v59 = vmul.f32 %v7057_v2, %v12491_v25  ;;  %v12492_v29 = vld [vmem:[#allocation12_spill] sm:$0xff] }
 0x1a5   : > { %12489 = vst [vmem:[#allocation9_spill] sm:$0xff] %v8253_v51  ;;  %v4911_v61 = vadd.f32 1.4214138, %v4847_v44  ;;  %v2688_v62 = vadd.f32 %v2492_v1, %v2201_v8  ;;  %v8265_v48 = vmul.f32 %v7046_v24, %v12441_v27  ;;  %v8270_v38 = vmul.f32 %v7057_v2, %v12443_v54 }
 0x1a6   : > { %6023 = vst [vmem:[%s7389_s16 + $0x30] sm:$0xff] %v5991_v9  ;;  %v4912_v55 = vadd.f32 1.4214138, %v4848_v26  ;;  %v3029_v34 = vrot.slane %v2820_v35, 2  ;;  %v3308_v4 = vmul.f32 %v7072_v3, %v12492_v29  ;;  %v3032_v17 = vrot.slane %v2821_v59, 2 }
 0x1a7   : > { %v4975_v60 = vmul.f32 %v8212_v18, %v4911_v61  ;;  %v11908_v8 = vrot.slane %v8265_v48, 2  ;;  %v3309_v44 = vmul.f32 %v12470_v39, %v12493_v42  ;;  %v11907_v13 = vrot.slane %v8270_v38, 2 }
 0x1a8   : > { %v4976_v9 = vmul.f32 %v8222_v28, %v4912_v55  ;;  %v8281_v61 = vmul.f32 %v7072_v3, %v12482_v7  ;;  %v8285_v1 = vmul.f32 %v12470_v39, %v12484_v11  ;;  %v3516_v55 = vrot.slane %v3308_v4, 2 }
 0x1a9   : > { %v5039_v26 = vadd.f32 -0.28449672, %v4975_v60  ;;  %v3031_v35 = vsel %vm2988_vm4, %v3029_v34, %v11908_v8  ;;  %v3519_v25 = vrot.slane %v3309_v44, 2  ;;  %v3034_v60 = vsel %vm2988_vm4, %v3032_v17, %v11907_v13 }
 0x1aa   : > { %v5040_v36 = vadd.f32 -0.28449672, %v4976_v9  ;;  %v3229_v20 = vadd.f32 %v3031_v35, %v2687_v15  ;;  %v11906_v10 = vrot.slane %v8281_v61, 2  ;;  %v3230_v29 = vadd.f32 %v3034_v60, %v2688_v62 }
 0x1ab   : > { %v5103_v59 = vmul.f32 %v8212_v18, %v5039_v26  ;;  %v11911_v9 = vrot.slane %v8285_v1, 2  ;;  %v3795_v39 = vmul.f32 %v7077_v0, %v8247_v47  ;;  %v3796_v44 = vmul.f32 %v7079_v5, %v8253_v51 }
 0x1ac   : > { %v5104_v42 = vmul.f32 %v8222_v28, %v5040_v36  ;;  %v3518_v4 = vsel %vm2988_vm4, %v3516_v55, %v11906_v10  ;;  %v8306_v15 = vmul.f32 %v7077_v0, %v12486_v43  ;;  %v8313_v36 = vmul.f32 %v7079_v5, %v12487_v40 }
 0x1ad   : > { %v5167_v34 = vadd.f32 0.2548296, %v5103_v59  ;;  %v3521_v62 = vsel %vm2988_vm4, %v3519_v25, %v11911_v9  ;;  %v3716_v26 = vadd.f32 %v3518_v4, %v3229_v20  ;;  %v4003_v59 = vrot.slane %v3795_v39, 2 }
 0x1ae   : > { %v5168_v17 = vadd.f32 0.2548296, %v5104_v42  ;;  %v3717_v55 = vadd.f32 %v3521_v62, %v3230_v29  ;;  %v11910_v60 = vrot.slane %v8306_v15, 2  ;;  %v4006_v13 = vrot.slane %v3796_v44, 2 }
 0x1af   : > { %v5231_v35 = vmul.f32 %v8212_v18, %v5167_v34  ;;  %v11909_v42 = vrot.slane %v8313_v36, 2  ;;  %v903_v8 = vmul.f32 %v6917_v23, %v12441_v27  ;;  %v904_v18 = vmul.f32 %v6930_v19, %v12443_v54 }
 0x1b0   : > { %v5232_v10 = vmul.f32 %v8222_v28, %v5168_v17  ;;  %v4005_v25 = vsel %vm2988_vm4, %v4003_v59, %v11910_v60  ;;  %v974_v39 = vmul.f32 %v6933_v14, %v12482_v7  ;;  %v975_v27 = vmul.f32 %v12351_v49, %v12484_v11 }
 0x1b1   : > { %v5551_v20 = vmul.f32 %v8231_v46, %v5231_v35  ;;  %v4008_v29 = vsel %vm2988_vm4, %v4006_v13, %v11909_v42  ;;  %v4203_v34 = vadd.f32 %v4005_v25, %v3716_v26  ;;  %v4335_v46 = vmul.f32 0.5, %v8154_v41 }
 0x1b2   : > { %v5552_v28 = vmul.f32 %v8240_v21, %v5232_v10  ;;  %v4204_v44 = vadd.f32 %v4008_v29, %v3717_v55  ;;  %v1038_v17 = vadd.f32 %v974_v39, %v903_v8  ;;  %v1039_v35 = vadd.f32 %v975_v27, %v904_v18  ;;  %v12494_v18 = vld [vmem:[#allocation32_spill] sm:$0xff]  ;;  %v12495_v39 = vld [vmem:[#allocation62_spill] sm:$0xff] }
 0x1b3   : > { %v5615_v4 = vsub.f32 1.0, %v5551_v20  ;;  %v8337_v54 = vadd.f32 %v7119_v6, %v4203_v34  ;;  %v1109_v10 = vmul.f32 %v6941_v22, %v12486_v43  ;;  %v1110_v26 = vmul.f32 %v6960_v31, %v12487_v40 }
 0x1b4   : > { %v5616_v62 = vsub.f32 1.0, %v5552_v28  ;;  %v8342_v13 = vadd.f32 %v7127_v16, %v4204_v44  ;;  %v1308_v41 = vmul.f32 %v6966_v58, %v12459_v30  ;;  %v4336_v8 = vmul.f32 0.5, %v8158_v32 }
 0x1b5   : > { %v5743_v21 = vsub.f32 0.0, %v5615_v4  ;;  %vm5679_vm5 = vcmp.lt.f32.partialorder %v8163_v57, 0.0  ;;  %v8351_v59 = vmul.f32 0.70710677, %v8337_v54  ;;  %vm5680_vm6 = vcmp.lt.f32.partialorder %v8168_v45, 0.0 }
 0x1b6   : > { %v5744_v55 = vsub.f32 0.0, %v5616_v62  ;;  %v8355_v25 = vmul.f32 0.70710677, %v8342_v13  ;;  %v1309_v28 = vmul.f32 %v12495_v39, %v12494_v18  ;;  %v1173_v32 = vadd.f32 %v1109_v10, %v1038_v17 }
 0x1b7   : > { %v5807_v20 = vsel %vm5679_vm5, %v5743_v21, %v5615_v4  ;;  %v4465_v27 = vand.u32 2147483647, %v8351_v59  ;;  %v1174_v42 = vadd.f32 %v1110_v26, %v1039_v35  ;;  %v1519_v60 = vrot.slane %v1308_v41, 1 }
 0x1b8   : > { %v5808_v29 = vsel %vm5680_vm6, %v5744_v55, %v5616_v62  ;;  %v5871_v34 = vadd.f32 1.0, %v5807_v20  ;;  %v4466_v57 = vand.u32 2147483647, %v8355_v25  ;;  %v1521_v4 = vrot.slane %v1309_v28, 1  ;;  %v6392_v55 = vld [vmem:[#allocation2 + $0x120] sm:$0xff] }
 0x1b9   : > { %v5872_v44 = vadd.f32 1.0, %v5808_v29  ;;  %v4529_v51 = vmul.f32 0.3275911, %v4465_v27  ;;  %v5297_v45 = vsub.f32 0.0, %v4465_v27  ;;  %v12496_v43 = vrot.slane %v8176_v33, 1 }
 0x1ba   : > { %v5935_v9 = vmul.f32 %v5871_v34, %v4335_v46  ;;  %v4530_v47 = vmul.f32 0.3275911, %v4466_v57  ;;  %v5298_v40 = vsub.f32 0.0, %v4466_v57  ;;  %v8364_v20 = vunpack.c.l.bf16 %v6392_v55  ;;  %v12500_v34 = vld [vmem:[#allocation33_spill] sm:$0xff] }
 0x1bb   : > { %v5936_v21 = vmul.f32 %v5872_v44, %v4336_v8  ;;  %v1520_v62 = vsel %vm1472_vm1, %v12496_v43, %v1519_v60  ;;  %v4593_v17 = vadd.f32 1.0, %v4529_v51  ;;  %v5361_v10 = vmul.f32 %v5297_v45, %v4465_v27  ;;  %v12501_v43 = vld [vmem:[#allocation34_spill] sm:$0xff]  ;;  %v12502_v27 = vld [vmem:[#allocation37_spill] sm:$0xff] }
 0x1bc   : > { %12497 = vst [vmem:[#allocation10_spill] sm:$0xff] %v8364_v20  ;;  %v12498_v35 = vrot.slane %v8182_v56, 1  ;;  %v8369_v26 = vunpack.c.h.bf16 %v6392_v55  ;;  %v4594_v8 = vadd.f32 1.0, %v4530_v47  ;;  %v5362_v28 = vmul.f32 %v5298_v40, %v4466_v57  ;;  %v12503_v44 = vld [vmem:[#allocation38_spill] sm:$0xff]  ;;  %v12504_v55 = vld [vmem:[#allocation27_spill] sm:$0xff] }
 0x1bd   : > { %v5992_v41 = vpack.c.bf16 %v5936_v21, %v5935_v9  ;;  %6198 = vrcp.f32 %v4593_v17  ;;  %v1715_v29 = vadd.f32 %v1520_v62, %v1173_v32  ;;  %v1796_v33 = vmul.f32 %v6972_v12, %v12500_v34 }
 0x1be   : > { %v1522_v46 = vsel %vm1472_vm1, %v12498_v35, %v1521_v4  ;;  %12499 = vst [vmem:[#allocation15_spill] sm:$0xff] %v8369_v26  ;;  %v1797_v60 = vmul.f32 %v12357_v63, %v12501_v43  ;;  %6200 = vrcp.f32 %v4594_v8  ;;  %v2283_v56 = vmul.f32 %v7007_v37, %v12502_v27  ;;  %v12506_v35 = vld [vmem:[#allocation64_spill] sm:$0xff] }
 0x1bf   : > { %6024 = vst [vmem:[%s7389_s16 + $0x38] sm:$0xff] %v5992_v41  ;;  %v1716_v51 = vadd.f32 %v1522_v46, %v1174_v42  ;;  %v2284_v45 = vmul.f32 %v7009_v53, %v12503_v44  ;;  %v5441_v9 = vmul.f32 1.442695, %v5361_v10  ;;  %v2006_v47 = vrot.slane %v1796_v33, 1 }
 0x1c0   : > { %v2008_v40 = vrot.slane %v1797_v60, 1  ;;  %v2824_v32 = vmul.f32 %v7046_v24, %v12459_v30  ;;  %v5443_v57 = vmul.f32 1.442695, %v5362_v28  ;;  %v2493_v4 = vrot.slane %v2283_v56, 1 }
 0x1c1   : > { %v2495_v21 = vrot.slane %v2284_v45, 1  ;;  %v2825_v62 = vmul.f32 %v7057_v2, %v12494_v18  ;;  %v12505_v42 = vrot.slane %v12504_v55, 1  ;;  %v12507_v46 = vrot.slane %v12506_v35, 1  ;;  %v12511_v55 = vld [vmem:[#allocation68_spill] sm:$0xff] }
 0x1c2   : > { %v3035_v10 = vrot.slane %v2824_v32, 2  ;;  %v3312_v8 = vmul.f32 %v7072_v3, %v12500_v34  ;;  %v12508_v28 = vrot.slane %v8220_v50, 1  ;;  %v12509_v18 = vrot.slane %v8229_v52, 1 }
 0x1c3   : > { %v2007_v17 = vsel %vm1472_vm1, %v12505_v42, %v2006_v47  ;;  %v2009_v41 = vsel %vm1472_vm1, %v12507_v46, %v2008_v40  ;;  %v8398_v45 = vpop.eup %6198  ;;  %v12510_v47 = vrot.slane %v8265_v48, 2  ;;  %v3037_v32 = vrot.slane %v2825_v62, 2 }
 0x1c4   : > { %v2202_v33 = vadd.f32 %v2007_v17, %v1715_v29  ;;  %v2203_v30 = vadd.f32 %v2009_v41, %v1716_v51  ;;  %v2494_v60 = vsel %vm1472_vm1, %v12508_v28, %v2493_v4  ;;  %v2496_v56 = vsel %vm1472_vm1, %v12509_v18, %v2495_v21  ;;  %v8405_v51 = vpop.eup %6200 }
 0x1c5   : > { %v3036_v40 = vsel %vm2988_vm4, %v12510_v47, %v3035_v10  ;;  %v3313_v42 = vmul.f32 %v12511_v55, %v12501_v43  ;;  %v3522_v29 = vrot.slane %v3312_v8, 2  ;;  %v4721_v50 = vmul.f32 1.0614054, %v8398_v45 }
 0x1c6   : > { %v2689_v4 = vadd.f32 %v2494_v60, %v2202_v33  ;;  %v2690_v17 = vadd.f32 %v2496_v56, %v2203_v30  ;;  %v3799_v52 = vmul.f32 %v7077_v0, %v12502_v27  ;;  %v4722_v21 = vmul.f32 1.0614054, %v8405_v51 }
 0x1c7   : > { %v12512_v48 = vrot.slane %v8270_v38, 2  ;;  %v12513_v62 = vrot.slane %v8281_v61, 2  ;;  %v3524_v41 = vrot.slane %v3313_v42, 2  ;;  %v4785_v10 = vadd.f32 -1.4531521, %v4721_v50  ;;  %v12515_v38 = vld [vmem:[#allocation17_spill] sm:$0xff] }
 0x1c8   : > { %v3231_v8 = vadd.f32 %v3036_v40, %v2689_v4  ;;  %v3800_v33 = vmul.f32 %v7079_v5, %v12503_v44  ;;  %v4786_v30 = vadd.f32 -1.4531521, %v4722_v21  ;;  %v12514_v60 = vrot.slane %v8285_v1, 2  ;;  %v12518_v21 = vld [vmem:[#allocation23_spill] sm:$0xff] }
 0x1c9   : > { %v3038_v35 = vsel %vm2988_vm4, %v12512_v48, %v3037_v32  ;;  %v3523_v46 = vsel %vm2988_vm4, %v12513_v62, %v3522_v29  ;;  %v4009_v56 = vrot.slane %v3799_v52, 2  ;;  %v905_v47 = vmul.f32 %v6917_v23, %v12515_v38 }
 0x1ca   : > { %v3232_v28 = vadd.f32 %v3038_v35, %v2690_v17  ;;  %v3525_v18 = vsel %vm2988_vm4, %v12514_v60, %v3524_v41  ;;  %v4849_v61 = vmul.f32 %v8398_v45, %v4785_v10  ;;  %v3718_v32 = vadd.f32 %v3523_v46, %v3231_v8  ;;  %v12517_v17 = vld [vmem:[#allocation18_spill] sm:$0xff]  ;;  %v12520_v41 = vld [vmem:[#allocation24_spill] sm:$0xff] }
 0x1cb   : > { %v4011_v42 = vrot.slane %v3800_v33, 2  ;;  %v4850_v40 = vmul.f32 %v8405_v51, %v4786_v30  ;;  %v12516_v50 = vrot.slane %v8306_v15, 2  ;;  %v906_v1 = vmul.f32 %v6930_v19, %v12517_v17  ;;  %v12521_v33 = vld [vmem:[#allocation29_spill] sm:$0xff] }
 0x1cc   : > { %v3719_v29 = vadd.f32 %v3525_v18, %v3232_v28  ;;  %v976_v52 = vmul.f32 %v6933_v14, %v12518_v21  ;;  %v4913_v48 = vadd.f32 1.4214138, %v4849_v61  ;;  %v12519_v35 = vrot.slane %v8313_v36, 2 }
 0x1cd   : > { %v4010_v4 = vsel %vm2988_vm4, %v12516_v50, %v4009_v56  ;;  %v977_v10 = vmul.f32 %v12351_v49, %v12520_v41  ;;  %v4914_v8 = vadd.f32 1.4214138, %v4850_v40  ;;  %v1111_v30 = vmul.f32 %v6941_v22, %v12521_v33 }
 0x1ce   : > { %v4012_v62 = vsel %vm2988_vm4, %v12519_v35, %v4011_v42  ;;  %v4205_v46 = vadd.f32 %v4010_v4, %v3718_v32  ;;  %v1040_v15 = vadd.f32 %v976_v52, %v905_v47  ;;  %v8441_v60 = vmul.f32 0.5, %v8337_v54 }
 0x1cf   : > { %v4206_v28 = vadd.f32 %v4012_v62, %v3719_v29  ;;  %v8444_v18 = vmul.f32 0.5, %v8342_v13  ;;  %v4977_v36 = vmul.f32 %v8398_v45, %v4913_v48  ;;  %v4978_v61 = vmul.f32 %v8405_v51, %v4914_v8  ;;  %v12522_v29 = vld [vmem:[#allocation30_spill] sm:$0xff] }
 0x1d0   : > { %v8448_v56 = vadd.f32 %v7119_v6, %v4205_v46  ;;  %v1041_v47 = vadd.f32 %v977_v10, %v906_v1  ;;  %v1112_v42 = vmul.f32 %v6960_v31, %v12522_v29  ;;  %6202 = vpow2.f32 %v5441_v9 }
 0x1d1   : > { %v8452_v32 = vadd.f32 %v7127_v16, %v4206_v28  ;;  %v5041_v40 = vadd.f32 -0.28449672, %v4977_v36  ;;  %v1310_v13 = vmul.f32 %v6966_v58, %v12515_v38  ;;  %v5042_v50 = vadd.f32 -0.28449672, %v4978_v61 }
 0x1d2   : > { %v8457_v54 = vmul.f32 0.70710677, %v8448_v56  ;;  %6204 = vpow2.f32 %v5443_v57  ;;  %v1175_v52 = vadd.f32 %v1111_v30, %v1040_v15  ;;  %v1311_v35 = vmul.f32 %v12495_v39, %v12517_v17 }
 0x1d3   : > { %v8462_v4 = vmul.f32 0.70710677, %v8452_v32  ;;  %v5105_v48 = vmul.f32 %v8398_v45, %v5041_v40  ;;  %v8470_v9 = vmul.f32 %v6966_v58, %v12482_v7  ;;  %v5106_v62 = vmul.f32 %v8405_v51, %v5042_v50 }
 0x1d4   : > { %v4467_v1 = vand.u32 2147483647, %v8457_v54  ;;  %v1176_v57 = vadd.f32 %v1112_v42, %v1041_v47  ;;  %v8476_v46 = vmul.f32 %v12495_v39, %v12484_v11  ;;  %v1523_v15 = vrot.slane %v1310_v13, 1 }
 0x1d5   : > { %v4468_v38 = vand.u32 2147483647, %v8462_v4  ;;  %v5169_v10 = vadd.f32 0.2548296, %v5105_v48  ;;  %v5170_v30 = vadd.f32 0.2548296, %v5106_v62 }
 0x1d6   : > { %v4531_v8 = vmul.f32 0.3275911, %v4467_v1  ;;  %v5299_v28 = vsub.f32 0.0, %v4467_v1  ;;  %vm5681_vm7 = vcmp.lt.f32.partialorder %v8351_v59, 0.0  ;;  %v11925_v61 = vrot.slane %v8470_v9, 1  ;;  %v6203_v40 = vpop.eup %6202 }
 0x1d7   : > { %v4532_v17 = vmul.f32 0.3275911, %v4468_v38  ;;  %v5300_v36 = vsub.f32 0.0, %v4468_v38  ;;  %v5233_v50 = vmul.f32 %v8398_v45, %v5169_v10  ;;  %vm5682_vm8 = vcmp.lt.f32.partialorder %v8355_v25, 0.0 }
 0x1d8   : > { %v4595_v47 = vadd.f32 1.0, %v4531_v8  ;;  %v5363_v42 = vmul.f32 %v5299_v28, %v4467_v1  ;;  %v1526_v26 = vrot.slane %v1311_v35, 1  ;;  %v6205_v20 = vpop.eup %6204  ;;  %v5234_v48 = vmul.f32 %v8405_v51, %v5170_v30 }
 0x1d9   : > { %v4596_v44 = vadd.f32 1.0, %v4532_v17  ;;  %v5364_v13 = vmul.f32 %v5300_v36, %v4468_v38  ;;  %v1525_v62 = vsel %vm1472_vm1, %v1523_v15, %v11925_v61  ;;  %v5553_v27 = vmul.f32 %v6203_v40, %v5233_v50 }
 0x1da   : > { %6206 = vrcp.f32 %v4595_v47  ;;  %v5445_v39 = vmul.f32 1.442695, %v5363_v42  ;;  %v11924_v43 = vrot.slane %v8476_v46, 1  ;;  %v5554_v45 = vmul.f32 %v6205_v20, %v5234_v48  ;;  %v12523_v20 = vld [vmem:[#allocation25_spill] sm:$0xff]  ;;  %v12527_v48 = vld [vmem:[#allocation35_spill] sm:$0xff] }
 0x1db   : > { %6208 = vrcp.f32 %v4596_v44  ;;  %v5447_v10 = vmul.f32 1.442695, %v5364_v13  ;;  %v1717_v8 = vadd.f32 %v1525_v62, %v1175_v52  ;;  %v5617_v1 = vsub.f32 1.0, %v5553_v27  ;;  %v12525_v27 = vld [vmem:[#allocation26_spill] sm:$0xff] }
 0x1dc   : > { %6210 = vpow2.f32 %v5445_v39  ;;  %v1528_v51 = vsel %vm1472_vm1, %v1526_v26, %v11924_v43  ;;  %v1798_v35 = vmul.f32 %v6972_v12, %v12518_v21  ;;  %v5618_v38 = vsub.f32 1.0, %v5554_v45 }
 0x1dd   : > { %6212 = vpow2.f32 %v5447_v10  ;;  %v1718_v28 = vadd.f32 %v1528_v51, %v1176_v57  ;;  %v1799_v15 = vmul.f32 %v12357_v63, %v12520_v41  ;;  %v5745_v30 = vsub.f32 0.0, %v5617_v1 }
 0x1de   : > { %v8496_v44 = vmul.f32 %v6972_v12, %v12523_v20  ;;  %v8500_v39 = vmul.f32 %v12357_v63, %v12525_v27  ;;  %v2010_v52 = vrot.slane %v1798_v35, 1  ;;  %v5746_v26 = vsub.f32 0.0, %v5618_v38  ;;  %v12528_v35 = vld [vmem:[#allocation36_spill] sm:$0xff] }
 0x1df   : > { %v2013_v17 = vrot.slane %v1799_v15, 1  ;;  %v2285_v36 = vmul.f32 %v7007_v37, %v12521_v33  ;;  %v2286_v57 = vmul.f32 %v7009_v53, %v12522_v29  ;;  %v5809_v50 = vsel %vm5681_vm7, %v5745_v30, %v5617_v1 }
 0x1e0   : > { %12524 = vst [vmem:[#allocation16_spill] sm:$0xff] %v8496_v44  ;;  %v8506_v40 = vpop.eup %6206  ;;  %v11931_v47 = vrot.slane %v8496_v44, 1  ;;  %v11932_v42 = vrot.slane %v8500_v39, 1  ;;  %v8514_v13 = vmul.f32 %v7007_v37, %v12527_v48  ;;  %v5810_v45 = vsel %vm5682_vm8, %v5746_v26, %v5618_v38  ;;  %v2742_v38 = vld [vmem:[#allocation2 + $0x68] sm:$0xee] }
 0x1e1   : > { %12526 = vst [vmem:[#allocation6_spill] sm:$0xff] %v8500_v39  ;;  %v8516_v62 = vpop.eup %6208  ;;  %v5873_v10 = vadd.f32 1.0, %v5809_v50  ;;  %v4723_v51 = vmul.f32 1.0614054, %v8506_v40  ;;  %v8523_v59 = vmul.f32 %v7009_v53, %v12528_v35  ;;  %v5874_v15 = vadd.f32 1.0, %v5810_v45 }
 0x1e2   : > { %v8525_v1 = vpop.eup %6210  ;;  %v4724_v30 = vmul.f32 1.0614054, %v8516_v62  ;;  %v2012_v43 = vsel %vm1472_vm1, %v2010_v52, %v11931_v47  ;;  %v2015_v25 = vsel %vm1472_vm1, %v2013_v17, %v11932_v42  ;;  %v2497_v21 = vrot.slane %v2285_v36, 1  ;;  %v12531_v36 = vld [vmem:[#allocation12_spill] sm:$0xff] }
 0x1e3   : > { %v8534_v26 = vpop.eup %6212  ;;  %v5937_v50 = vmul.f32 %v5873_v10, %v8441_v60  ;;  %v4787_v61 = vadd.f32 -1.4531521, %v4723_v51  ;;  %v2204_v29 = vadd.f32 %v2012_v43, %v1717_v8  ;;  %v2205_v33 = vadd.f32 %v2015_v25, %v1718_v28 }
 0x1e4   : > { %v5938_v45 = vmul.f32 %v5874_v15, %v8444_v18  ;;  %v4788_v41 = vadd.f32 -1.4531521, %v4724_v30  ;;  %v11935_v44 = vrot.slane %v8514_v13, 1  ;;  %v2500_v47 = vrot.slane %v2286_v57, 1  ;;  %v12532_v15 = vld [vmem:[#allocation65_spill] sm:$0xff] }
 0x1e5   : > { %v4851_v52 = vmul.f32 %v8506_v40, %v4787_v61  ;;  %v11934_v17 = vrot.slane %v8523_v59, 1  ;;  %v8541_v42 = vunpack.c.l.bf16 %v2742_v38  ;;  %v8547_v18 = vunpack.c.h.bf16 %v2742_v38 }
 0x1e6   : > { %v5993_v39 = vpack.c.bf16 %v5938_v45, %v5937_v50  ;;  %v4852_v60 = vmul.f32 %v8516_v62, %v4788_v41  ;;  %v2499_v43 = vsel %vm1472_vm1, %v2497_v21, %v11935_v44  ;;  %v2826_v57 = vmul.f32 %v7046_v24, %v12531_v36  ;;  %v12534_v45 = vld [vmem:[#allocation9_spill] sm:$0xff] }
 0x1e7   : > { %12529 = vst [vmem:[#allocation63_spill] sm:$0xff] %v8541_v42  ;;  %v4915_v8 = vadd.f32 1.4214138, %v4851_v52  ;;  %v2502_v28 = vsel %vm1472_vm1, %v2500_v47, %v11934_v17  ;;  %v2691_v61 = vadd.f32 %v2499_v43, %v2204_v29  ;;  %v2827_v41 = vmul.f32 %v7057_v2, %v12532_v15  ;;  %v12533_v47 = vld [vmem:[#allocation69_spill] sm:$0xff] }
 0x1e8   : > { %12530 = vst [vmem:[#allocation28_spill] sm:$0xff] %v8547_v18  ;;  %v4916_v10 = vadd.f32 1.4214138, %v4852_v60  ;;  %v2692_v51 = vadd.f32 %v2502_v28, %v2205_v33  ;;  %v8559_v21 = vmul.f32 %v7046_v24, %v12482_v7  ;;  %v8564_v25 = vmul.f32 %v7057_v2, %v12484_v11 }
 0x1e9   : > { %6025 = vst [vmem:[%s7389_s16 + $0x40] sm:$0xff] %v5993_v39  ;;  %v4979_v30 = vmul.f32 %v8506_v40, %v4915_v8  ;;  %v3039_v29 = vrot.slane %v2826_v57, 2  ;;  %v3314_v38 = vmul.f32 %v7072_v3, %v12533_v47  ;;  %v3042_v50 = vrot.slane %v2827_v41, 2 }
 0x1ea   : > { %v4980_v39 = vmul.f32 %v8516_v62, %v4916_v10  ;;  %v11939_v33 = vrot.slane %v8559_v21, 2  ;;  %v3315_v52 = vmul.f32 %v12511_v55, %v12534_v45  ;;  %v11938_v43 = vrot.slane %v8564_v25, 2 }
 0x1eb   : > { %v5043_v60 = vadd.f32 -0.28449672, %v4979_v30  ;;  %v8575_v8 = vmul.f32 %v7072_v3, %v12523_v20  ;;  %v8579_v28 = vmul.f32 %v12511_v55, %v12525_v27  ;;  %v3526_v10 = vrot.slane %v3314_v38, 2 }
 0x1ec   : > { %v5044_v36 = vadd.f32 -0.28449672, %v4980_v39  ;;  %v3041_v57 = vsel %vm2988_vm4, %v3039_v29, %v11939_v33  ;;  %v3529_v15 = vrot.slane %v3315_v52, 2  ;;  %v3044_v30 = vsel %vm2988_vm4, %v3042_v50, %v11938_v43 }
 0x1ed   : > { %v5107_v41 = vmul.f32 %v8506_v40, %v5043_v60  ;;  %v3233_v17 = vadd.f32 %v3041_v57, %v2691_v61  ;;  %v11937_v44 = vrot.slane %v8575_v8, 2  ;;  %v3234_v47 = vadd.f32 %v3044_v30, %v2692_v51 }
 0x1ee   : > { %v5108_v45 = vmul.f32 %v8516_v62, %v5044_v36  ;;  %v11942_v39 = vrot.slane %v8579_v28, 2  ;;  %v3801_v55 = vmul.f32 %v7077_v0, %v8541_v42  ;;  %v3802_v52 = vmul.f32 %v7079_v5, %v8547_v18 }
 0x1ef   : > { %v5171_v29 = vadd.f32 0.2548296, %v5107_v41  ;;  %v3528_v38 = vsel %vm2988_vm4, %v3526_v10, %v11937_v44  ;;  %v8600_v61 = vmul.f32 %v7077_v0, %v12527_v48  ;;  %v8607_v36 = vmul.f32 %v7079_v5, %v12528_v35 }
 0x1f0   : > { %v5172_v50 = vadd.f32 0.2548296, %v5108_v45  ;;  %v3531_v51 = vsel %vm2988_vm4, %v3529_v15, %v11942_v39  ;;  %v3720_v60 = vadd.f32 %v3528_v38, %v3233_v17  ;;  %v4013_v41 = vrot.slane %v3801_v55, 2 }
 0x1f1   : > { %v5235_v57 = vmul.f32 %v8506_v40, %v5171_v29  ;;  %v3721_v10 = vadd.f32 %v3531_v51, %v3234_v47  ;;  %v11941_v30 = vrot.slane %v8600_v61, 2  ;;  %v4016_v43 = vrot.slane %v3802_v52, 2 }
 0x1f2   : > { %v5236_v44 = vmul.f32 %v8516_v62, %v5172_v50  ;;  %v11940_v45 = vrot.slane %v8607_v36, 2  ;;  %v907_v33 = vmul.f32 %v6917_v23, %v12482_v7  ;;  %v908_v40 = vmul.f32 %v6930_v19, %v12484_v11 }
 0x1f3   : > { %v5555_v17 = vmul.f32 %v8525_v1, %v5235_v57  ;;  %v4015_v15 = vsel %vm2988_vm4, %v4013_v41, %v11941_v30  ;;  %v978_v55 = vmul.f32 %v6933_v14, %v12523_v20  ;;  %v979_v7 = vmul.f32 %v12351_v49, %v12525_v27 }
 0x1f4   : > { %v5556_v62 = vmul.f32 %v8534_v26, %v5236_v44  ;;  %v4018_v47 = vsel %vm2988_vm4, %v4016_v43, %v11940_v45  ;;  %v4207_v29 = vadd.f32 %v4015_v15, %v3720_v60  ;;  %v4339_v1 = vmul.f32 0.5, %v8448_v56 }
 0x1f5   : > { %v5619_v38 = vsub.f32 1.0, %v5555_v17  ;;  %v4208_v52 = vadd.f32 %v4018_v47, %v3721_v10  ;;  %v1042_v50 = vadd.f32 %v978_v55, %v907_v33  ;;  %v1043_v57 = vadd.f32 %v979_v7, %v908_v40  ;;  %v12535_v40 = vld [vmem:[#allocation34_spill] sm:$0xff] }
 0x1f6   : > { %v5620_v51 = vsub.f32 1.0, %v5556_v62  ;;  %v8631_v11 = vadd.f32 %v7119_v6, %v4207_v29  ;;  %v1113_v44 = vmul.f32 %v6941_v22, %v12527_v48  ;;  %v1114_v60 = vmul.f32 %v6960_v31, %v12528_v35  ;;  %v12536_v55 = vld [vmem:[#allocation62_spill] sm:$0xff] }
 0x1f7   : > { %v5747_v26 = vsub.f32 0.0, %v5619_v38  ;;  %v8636_v43 = vadd.f32 %v7127_v16, %v4208_v52  ;;  %v1314_v56 = vmul.f32 %v6966_v58, %v12500_v34  ;;  %v4340_v33 = vmul.f32 0.5, %v8452_v32 }
 0x1f8   : > { %vm5683_vm9 = vcmp.lt.f32.partialorder %v8457_v54, 0.0  ;;  %v5748_v10 = vsub.f32 0.0, %v5620_v51  ;;  %v8645_v41 = vmul.f32 0.70710677, %v8631_v11  ;;  %vm5684_vm10 = vcmp.lt.f32.partialorder %v8462_v4, 0.0 }
 0x1f9   : > { %v5811_v17 = vsel %vm5683_vm9, %v5747_v26, %v5619_v38  ;;  %v8649_v15 = vmul.f32 0.70710677, %v8636_v43  ;;  %v1315_v62 = vmul.f32 %v12536_v55, %v12535_v40  ;;  %v1177_v32 = vadd.f32 %v1113_v44, %v1042_v50 }
 0x1fa   : > { %v5812_v47 = vsel %vm5684_vm10, %v5748_v10, %v5620_v51  ;;  %v5875_v29 = vadd.f32 1.0, %v5811_v17  ;;  %v4469_v7 = vand.u32 2147483647, %v8645_v41  ;;  %v1178_v45 = vadd.f32 %v1114_v60, %v1043_v57  ;;  %v6393_v10 = vld [vmem:[#allocation2 + $0xf0] sm:$0xff] }
 0x1fb   : > { %v5876_v52 = vadd.f32 1.0, %v5812_v47  ;;  %v4470_v54 = vand.u32 2147483647, %v8649_v15  ;;  %v1529_v30 = vrot.slane %v1314_v56, 1  ;;  %v1531_v38 = vrot.slane %v1315_v62, 1 }
 0x1fc   : > { %v5939_v39 = vmul.f32 %v5875_v29, %v4339_v1  ;;  %v4533_v18 = vmul.f32 0.3275911, %v4469_v7  ;;  %v5301_v4 = vsub.f32 0.0, %v4469_v7  ;;  %v12537_v48 = vrot.slane %v8470_v9, 1  ;;  %v12541_v29 = vld [vmem:[#allocation37_spill] sm:$0xff] }
 0x1fd   : > { %v5940_v26 = vmul.f32 %v5876_v52, %v4340_v33  ;;  %v4534_v42 = vmul.f32 0.3275911, %v4470_v54  ;;  %v5302_v35 = vsub.f32 0.0, %v4470_v54  ;;  %v8658_v17 = vunpack.c.l.bf16 %v6393_v10  ;;  %v12544_v52 = vld [vmem:[#allocation48_spill] sm:$0xff] }
 0x1fe   : > { %v1530_v51 = vsel %vm1472_vm1, %v12537_v48, %v1529_v30  ;;  %v4597_v50 = vadd.f32 1.0, %v4533_v18  ;;  %v5365_v44 = vmul.f32 %v5301_v4, %v4469_v7  ;;  %v12539_v57 = vrot.slane %v8476_v46, 1  ;;  %v12542_v48 = vld [vmem:[#allocation38_spill] sm:$0xff]  ;;  %v12543_v7 = vld [vmem:[#allocation45_spill] sm:$0xff] }
 0x1ff   : > { %12538 = vst [vmem:[#allocation31_spill] sm:$0xff] %v8658_v17  ;;  %v8663_v60 = vunpack.c.h.bf16 %v6393_v10  ;;  %v5994_v56 = vpack.c.bf16 %v5940_v26, %v5939_v39  ;;  %v4598_v33 = vadd.f32 1.0, %v4534_v42  ;;  %v5366_v62 = vmul.f32 %v5302_v35, %v4470_v54  ;;  %v12545_v10 = vld [vmem:[#allocation16_spill] sm:$0xff] }
 0x200   : > { %v1532_v1 = vsel %vm1472_vm1, %v12539_v57, %v1531_v38  ;;  %6214 = vrcp.f32 %v4597_v50  ;;  %v1719_v47 = vadd.f32 %v1530_v51, %v1177_v32  ;;  %v1802_v9 = vmul.f32 %v6972_v12, %v12541_v29  ;;  %v12547_v57 = vld [vmem:[#allocation6_spill] sm:$0xff] }
 0x201   : > { %12540 = vst [vmem:[#allocation4_spill] sm:$0xff] %v8663_v60  ;;  %v1803_v30 = vmul.f32 %v12357_v63, %v12542_v48  ;;  %6216 = vrcp.f32 %v4598_v33  ;;  %v1720_v18 = vadd.f32 %v1532_v1, %v1178_v45  ;;  %v2289_v46 = vmul.f32 %v7007_v37, %v12543_v7 }
 0x202   : > { %6026 = vst [vmem:[%s7389_s16 + $0x48] sm:$0xff] %v5994_v56  ;;  %v2290_v4 = vmul.f32 %v7009_v53, %v12544_v52  ;;  %v5449_v39 = vmul.f32 1.442695, %v5365_v44  ;;  %v2016_v42 = vrot.slane %v1802_v9, 1  ;;  %v2830_v32 = vmul.f32 %v7046_v24, %v12500_v34 }
 0x203   : > { %v2018_v35 = vrot.slane %v1803_v30, 1  ;;  %v5451_v54 = vmul.f32 1.442695, %v5366_v62  ;;  %v2503_v38 = vrot.slane %v2289_v46, 1  ;;  %v2831_v51 = vmul.f32 %v7057_v2, %v12535_v40 }
 0x204   : > { %v2505_v26 = vrot.slane %v2290_v4, 1  ;;  %v12546_v45 = vrot.slane %v12545_v10, 1  ;;  %v12548_v1 = vrot.slane %v12547_v57, 1  ;;  %v3045_v44 = vrot.slane %v2830_v32, 2  ;;  %v12552_v10 = vld [vmem:[#allocation68_spill] sm:$0xff] }
 0x205   : > { %v3318_v33 = vmul.f32 %v7072_v3, %v12541_v29  ;;  %v12549_v62 = vrot.slane %v8514_v13, 1  ;;  %v12550_v40 = vrot.slane %v8523_v59, 1  ;;  %v3047_v32 = vrot.slane %v2831_v51, 2 }
 0x206   : > { %v2017_v50 = vsel %vm1472_vm1, %v12546_v45, %v2016_v42  ;;  %v2019_v56 = vsel %vm1472_vm1, %v12548_v1, %v2018_v35  ;;  %v8692_v4 = vpop.eup %6214  ;;  %v12551_v42 = vrot.slane %v8559_v21, 2  ;;  %v3319_v45 = vmul.f32 %v12552_v10, %v12542_v48 }
 0x207   : > { %v2206_v9 = vadd.f32 %v2017_v50, %v1719_v47  ;;  %v2207_v34 = vadd.f32 %v2019_v56, %v1720_v18  ;;  %v2504_v30 = vsel %vm1472_vm1, %v12549_v62, %v2503_v38  ;;  %v2506_v46 = vsel %vm1472_vm1, %v12550_v40, %v2505_v26  ;;  %v8699_v18 = vpop.eup %6216 }
 0x208   : > { %v3046_v35 = vsel %vm2988_vm4, %v12551_v42, %v3045_v44  ;;  %v3532_v47 = vrot.slane %v3318_v33, 2  ;;  %v4725_v13 = vmul.f32 1.0614054, %v8692_v4  ;;  %v3805_v59 = vmul.f32 %v7077_v0, %v12543_v7 }
 0x209   : > { %v2693_v38 = vadd.f32 %v2504_v30, %v2206_v9  ;;  %v2694_v50 = vadd.f32 %v2506_v46, %v2207_v34  ;;  %v4726_v26 = vmul.f32 1.0614054, %v8699_v18  ;;  %v12553_v21 = vrot.slane %v8564_v25, 2  ;;  %v12556_v25 = vld [vmem:[#allocation23_spill] sm:$0xff] }
 0x20a   : > { %v12554_v51 = vrot.slane %v8575_v8, 2  ;;  %v3534_v56 = vrot.slane %v3319_v45, 2  ;;  %v4789_v44 = vadd.f32 -1.4531521, %v4725_v13  ;;  %v3806_v9 = vmul.f32 %v7079_v5, %v12544_v52 }
 0x20b   : > { %v3048_v57 = vsel %vm2988_vm4, %v12553_v21, %v3047_v32  ;;  %v3235_v33 = vadd.f32 %v3046_v35, %v2693_v38  ;;  %v4790_v34 = vadd.f32 -1.4531521, %v4726_v26  ;;  %v12555_v30 = vrot.slane %v8579_v28, 2  ;;  %v12559_v26 = vld [vmem:[#allocation29_spill] sm:$0xff] }
 0x20c   : > { %v3533_v1 = vsel %vm2988_vm4, %v12554_v51, %v3532_v47  ;;  %v3236_v62 = vadd.f32 %v3048_v57, %v2694_v50  ;;  %v4019_v46 = vrot.slane %v3805_v59, 2  ;;  %v909_v42 = vmul.f32 %v6917_v23, %v12556_v25  ;;  %v12558_v50 = vld [vmem:[#allocation24_spill] sm:$0xff] }
 0x20d   : > { %v3535_v40 = vsel %vm2988_vm4, %v12555_v30, %v3534_v56  ;;  %v4853_v8 = vmul.f32 %v8692_v4, %v4789_v44  ;;  %v3722_v32 = vadd.f32 %v3533_v1, %v3235_v33  ;;  %v4021_v45 = vrot.slane %v3806_v9, 2  ;;  %v12561_v56 = vld [vmem:[#allocation30_spill] sm:$0xff]  ;;  %v12562_v9 = vld [vmem:[#allocation39_spill] sm:$0xff] }
 0x20e   : > { %v3723_v47 = vadd.f32 %v3535_v40, %v3236_v62  ;;  %v4854_v35 = vmul.f32 %v8699_v18, %v4790_v34  ;;  %v12557_v13 = vrot.slane %v8600_v61, 2  ;;  %v910_v28 = vmul.f32 %v6930_v19, %v12558_v50 }
 0x20f   : > { %v980_v59 = vmul.f32 %v6933_v14, %v12559_v26  ;;  %v4917_v21 = vadd.f32 1.4214138, %v4853_v8  ;;  %v12560_v57 = vrot.slane %v8607_v36, 2  ;;  %v981_v44 = vmul.f32 %v12351_v49, %v12561_v56 }
 0x210   : > { %v4020_v38 = vsel %vm2988_vm4, %v12557_v13, %v4019_v46  ;;  %v4918_v33 = vadd.f32 1.4214138, %v4854_v35  ;;  %v1115_v34 = vmul.f32 %v6941_v22, %v12562_v9  ;;  %v8735_v30 = vmul.f32 0.5, %v8631_v11 }
 0x211   : > { %v4022_v51 = vsel %vm2988_vm4, %v12560_v57, %v4021_v45  ;;  %v4209_v1 = vadd.f32 %v4020_v38, %v3722_v32  ;;  %v1044_v61 = vadd.f32 %v980_v59, %v909_v42  ;;  %v8738_v40 = vmul.f32 0.5, %v8636_v43 }
 0x212   : > { %v4210_v62 = vadd.f32 %v4022_v51, %v3723_v47  ;;  %v4981_v36 = vmul.f32 %v8692_v4, %v4917_v21  ;;  %v4982_v8 = vmul.f32 %v8699_v18, %v4918_v33  ;;  %v1045_v42 = vadd.f32 %v981_v44, %v910_v28  ;;  %v12563_v47 = vld [vmem:[#allocation40_spill] sm:$0xff] }
 0x213   : > { %v8742_v46 = vadd.f32 %v7119_v6, %v4209_v1  ;;  %v1116_v45 = vmul.f32 %v6960_v31, %v12563_v47  ;;  %6218 = vpow2.f32 %v5449_v39  ;;  %v1316_v43 = vmul.f32 %v6966_v58, %v12556_v25 }
 0x214   : > { %v8746_v32 = vadd.f32 %v7127_v16, %v4210_v62  ;;  %v5045_v35 = vadd.f32 -0.28449672, %v4981_v36  ;;  %v5046_v13 = vadd.f32 -0.28449672, %v4982_v8  ;;  %6220 = vpow2.f32 %v5451_v54 }
 0x215   : > { %v8751_v11 = vmul.f32 0.70710677, %v8742_v46  ;;  %v1179_v59 = vadd.f32 %v1115_v34, %v1044_v61  ;;  %v1317_v57 = vmul.f32 %v12536_v55, %v12558_v50  ;;  %v8764_v39 = vmul.f32 %v6966_v58, %v12523_v20 }
 0x216   : > { %v8756_v38 = vmul.f32 0.70710677, %v8746_v32  ;;  %v5109_v21 = vmul.f32 %v8692_v4, %v5045_v35  ;;  %v5110_v51 = vmul.f32 %v8699_v18, %v5046_v13  ;;  %v1180_v54 = vadd.f32 %v1116_v45, %v1045_v42 }
 0x217   : > { %v4471_v28 = vand.u32 2147483647, %v8751_v11  ;;  %v8770_v1 = vmul.f32 %v12536_v55, %v12525_v27  ;;  %v1533_v61 = vrot.slane %v1316_v43, 1  ;;  %vm5685_vm11 = vcmp.lt.f32.partialorder %v8645_v41, 0.0 }
 0x218   : > { %v4472_v25 = vand.u32 2147483647, %v8756_v38  ;;  %v5173_v44 = vadd.f32 0.2548296, %v5109_v21  ;;  %v5174_v34 = vadd.f32 0.2548296, %v5110_v51 }
 0x219   : > { %v4535_v33 = vmul.f32 0.3275911, %v4471_v28  ;;  %v5303_v62 = vsub.f32 0.0, %v4471_v28  ;;  %v11956_v8 = vrot.slane %v8764_v39, 1  ;;  %v6219_v35 = vpop.eup %6218  ;;  %vm5686_vm12 = vcmp.lt.f32.partialorder %v8649_v15, 0.0 }
 0x21a   : > { %v4536_v50 = vmul.f32 0.3275911, %v4472_v25  ;;  %v5304_v36 = vsub.f32 0.0, %v4472_v25  ;;  %v5237_v13 = vmul.f32 %v8692_v4, %v5173_v44  ;;  %v1536_v60 = vrot.slane %v1317_v57, 1  ;;  %v6221_v17 = vpop.eup %6220 }
 0x21b   : > { %v4599_v42 = vadd.f32 1.0, %v4535_v33  ;;  %v5367_v45 = vmul.f32 %v5303_v62, %v4471_v28  ;;  %v5238_v21 = vmul.f32 %v8699_v18, %v5174_v34  ;;  %v1535_v51 = vsel %vm1472_vm1, %v1533_v61, %v11956_v8 }
 0x21c   : > { %v4600_v52 = vadd.f32 1.0, %v4536_v50  ;;  %v5368_v43 = vmul.f32 %v5304_v36, %v4472_v25  ;;  %v5557_v7 = vmul.f32 %v6219_v35, %v5237_v13  ;;  %v11955_v48 = vrot.slane %v8770_v1, 1 }
 0x21d   : > { %6222 = vrcp.f32 %v4599_v42  ;;  %v5453_v55 = vmul.f32 1.442695, %v5367_v45  ;;  %v5558_v4 = vmul.f32 %v6221_v17, %v5238_v21  ;;  %v1721_v33 = vadd.f32 %v1535_v51, %v1179_v59  ;;  %v12564_v17 = vld [vmem:[#allocation35_spill] sm:$0xff]  ;;  %v12568_v21 = vld [vmem:[#allocation41_spill] sm:$0xff] }
 0x21e   : > { %6224 = vrcp.f32 %v4600_v52  ;;  %v5455_v44 = vmul.f32 1.442695, %v5368_v43  ;;  %v5621_v28 = vsub.f32 1.0, %v5557_v7  ;;  %v1538_v18 = vsel %vm1472_vm1, %v1536_v60, %v11955_v48  ;;  %v12566_v7 = vld [vmem:[#allocation36_spill] sm:$0xff] }
 0x21f   : > { %6226 = vpow2.f32 %v5453_v55  ;;  %v1804_v57 = vmul.f32 %v6972_v12, %v12559_v26  ;;  %v5622_v25 = vsub.f32 1.0, %v5558_v4  ;;  %v1722_v62 = vadd.f32 %v1538_v18, %v1180_v54 }
 0x220   : > { %6228 = vpow2.f32 %v5455_v44  ;;  %v1805_v61 = vmul.f32 %v12357_v63, %v12561_v56  ;;  %v5749_v34 = vsub.f32 0.0, %v5621_v28  ;;  %v8790_v52 = vmul.f32 %v6972_v12, %v12564_v17 }
 0x221   : > { %v8794_v55 = vmul.f32 %v12357_v63, %v12566_v7  ;;  %v2020_v59 = vrot.slane %v1804_v57, 1  ;;  %v5750_v60 = vsub.f32 0.0, %v5622_v25  ;;  %v2291_v36 = vmul.f32 %v7007_v37, %v12562_v9  ;;  %v12569_v57 = vld [vmem:[#allocation42_spill] sm:$0xff] }
 0x222   : > { %12565 = vst [vmem:[#allocation11_spill] sm:$0xff] %v8790_v52  ;;  %v2023_v50 = vrot.slane %v1805_v61, 1  ;;  %v2292_v54 = vmul.f32 %v7009_v53, %v12563_v47  ;;  %v5813_v13 = vsel %vm5685_vm11, %v5749_v34, %v5621_v28  ;;  %v11962_v42 = vrot.slane %v8790_v52, 1 }
 0x223   : > { %12567 = vst [vmem:[#allocation13_spill] sm:$0xff] %v8794_v55  ;;  %v8800_v35 = vpop.eup %6222  ;;  %v11963_v45 = vrot.slane %v8794_v55, 1  ;;  %v8808_v43 = vmul.f32 %v7007_v37, %v12568_v21  ;;  %v5814_v4 = vsel %vm5686_vm12, %v5750_v60, %v5622_v25  ;;  %v5877_v44 = vadd.f32 1.0, %v5813_v13  ;;  %v2743_v25 = vld [vmem:[#allocation2 + $0x118] sm:$0xee] }
 0x224   : > { %v8810_v51 = vpop.eup %6224  ;;  %v4727_v18 = vmul.f32 1.0614054, %v8800_v35  ;;  %v8817_v41 = vmul.f32 %v7009_v53, %v12569_v57  ;;  %v5878_v61 = vadd.f32 1.0, %v5814_v4  ;;  %v2022_v48 = vsel %vm1472_vm1, %v2020_v59, %v11962_v42 }
 0x225   : > { %v8819_v28 = vpop.eup %6226  ;;  %v4728_v34 = vmul.f32 1.0614054, %v8810_v51  ;;  %v2025_v15 = vsel %vm1472_vm1, %v2023_v50, %v11963_v45  ;;  %v5941_v13 = vmul.f32 %v5877_v44, %v8735_v30  ;;  %v2208_v47 = vadd.f32 %v2022_v48, %v1721_v33 }
 0x226   : > { %v8828_v60 = vpop.eup %6228  ;;  %v4791_v8 = vadd.f32 -1.4531521, %v4727_v18  ;;  %v2209_v9 = vadd.f32 %v2025_v15, %v1722_v62  ;;  %v5942_v4 = vmul.f32 %v5878_v61, %v8738_v40  ;;  %v2507_v26 = vrot.slane %v2291_v36, 1  ;;  %v12572_v36 = vld [vmem:[#allocation69_spill] sm:$0xff] }
 0x227   : > { %v4792_v56 = vadd.f32 -1.4531521, %v4728_v34  ;;  %v11966_v52 = vrot.slane %v8808_v43, 1  ;;  %v2510_v42 = vrot.slane %v2292_v54, 1  ;;  %v11965_v50 = vrot.slane %v8817_v41, 1  ;;  %v12573_v61 = vld [vmem:[#allocation9_spill] sm:$0xff] }
 0x228   : > { %v4855_v59 = vmul.f32 %v8800_v35, %v4791_v8  ;;  %v8835_v45 = vunpack.c.l.bf16 %v2743_v25  ;;  %v5995_v55 = vpack.c.bf16 %v5942_v4, %v5941_v13  ;;  %v8841_v40 = vunpack.c.h.bf16 %v2743_v25  ;;  %v12575_v4 = vld [vmem:[#allocation28_spill] sm:$0xff] }
 0x229   : > { %v4856_v30 = vmul.f32 %v8810_v51, %v4792_v56  ;;  %v2509_v48 = vsel %vm1472_vm1, %v2507_v26, %v11966_v52  ;;  %v2512_v62 = vsel %vm1472_vm1, %v2510_v42, %v11965_v50  ;;  %v2832_v54 = vmul.f32 %v7046_v24, %v12572_v36  ;;  %v12574_v42 = vld [vmem:[#allocation63_spill] sm:$0xff] }
 0x22a   : > { %12570 = vst [vmem:[#allocation14_spill] sm:$0xff] %v8835_v45  ;;  %v4919_v33 = vadd.f32 1.4214138, %v4855_v59  ;;  %v2695_v8 = vadd.f32 %v2509_v48, %v2208_v47  ;;  %v2696_v18 = vadd.f32 %v2512_v62, %v2209_v9  ;;  %v2833_v56 = vmul.f32 %v7057_v2, %v12573_v61 }
 0x22b   : > { %12571 = vst [vmem:[#allocation21_spill] sm:$0xff] %v8841_v40  ;;  %v4920_v44 = vadd.f32 1.4214138, %v4856_v30  ;;  %v8853_v26 = vmul.f32 %v7046_v24, %v12523_v20  ;;  %v8858_v15 = vmul.f32 %v7057_v2, %v12525_v27  ;;  %v3049_v47 = vrot.slane %v2832_v54, 2 }
 0x22c   : > { %6027 = vst [vmem:[%s7389_s16 + $0x50] sm:$0xff] %v5995_v55  ;;  %v4983_v34 = vmul.f32 %v8800_v35, %v4919_v33  ;;  %v3320_v25 = vmul.f32 %v7072_v3, %v12574_v42  ;;  %v3052_v13 = vrot.slane %v2833_v56, 2  ;;  %v3321_v59 = vmul.f32 %v12552_v10, %v12575_v4 }
 0x22d   : > { %v4984_v55 = vmul.f32 %v8810_v51, %v4920_v44  ;;  %v11970_v9 = vrot.slane %v8853_v26, 2  ;;  %v11969_v48 = vrot.slane %v8858_v15, 2  ;;  %v8869_v33 = vmul.f32 %v7072_v3, %v12564_v17 }
 0x22e   : > { %v5047_v30 = vadd.f32 -0.28449672, %v4983_v34  ;;  %v8873_v62 = vmul.f32 %v12552_v10, %v12566_v7  ;;  %v3536_v44 = vrot.slane %v3320_v25, 2  ;;  %v3539_v61 = vrot.slane %v3321_v59, 2 }
 0x22f   : > { %v5048_v36 = vadd.f32 -0.28449672, %v4984_v55  ;;  %v3051_v54 = vsel %vm2988_vm4, %v3049_v47, %v11970_v9  ;;  %v3054_v34 = vsel %vm2988_vm4, %v3052_v13, %v11969_v48  ;;  %v11968_v52 = vrot.slane %v8869_v33, 2 }
 0x230   : > { %v5111_v56 = vmul.f32 %v8800_v35, %v5047_v30  ;;  %v3237_v50 = vadd.f32 %v3051_v54, %v2695_v8  ;;  %v3238_v42 = vadd.f32 %v3054_v34, %v2696_v18  ;;  %v11973_v55 = vrot.slane %v8873_v62, 2 }
 0x231   : > { %v5112_v4 = vmul.f32 %v8810_v51, %v5048_v36  ;;  %v3807_v10 = vmul.f32 %v7077_v0, %v8835_v45  ;;  %v3538_v25 = vsel %vm2988_vm4, %v3536_v44, %v11968_v52  ;;  %v3808_v59 = vmul.f32 %v7079_v5, %v8841_v40 }
 0x232   : > { %v5175_v47 = vadd.f32 0.2548296, %v5111_v56  ;;  %v8894_v8 = vmul.f32 %v7077_v0, %v12568_v21  ;;  %v3541_v18 = vsel %vm2988_vm4, %v3539_v61, %v11973_v55  ;;  %v3724_v30 = vadd.f32 %v3538_v25, %v3237_v50 }
 0x233   : > { %v5176_v13 = vadd.f32 0.2548296, %v5112_v4  ;;  %v8901_v36 = vmul.f32 %v7079_v5, %v12569_v57  ;;  %v3725_v44 = vadd.f32 %v3541_v18, %v3238_v42  ;;  %v4023_v56 = vrot.slane %v3807_v10, 2 }
 0x234   : > { %v5239_v54 = vmul.f32 %v8800_v35, %v5175_v47  ;;  %v11972_v34 = vrot.slane %v8894_v8, 2  ;;  %v4026_v48 = vrot.slane %v3808_v59, 2  ;;  %v911_v9 = vmul.f32 %v6917_v23, %v12523_v20 }
 0x235   : > { %v5240_v52 = vmul.f32 %v8810_v51, %v5176_v13  ;;  %v11971_v4 = vrot.slane %v8901_v36, 2  ;;  %v912_v35 = vmul.f32 %v6930_v19, %v12525_v27  ;;  %v982_v10 = vmul.f32 %v6933_v14, %v12564_v17 }
 0x236   : > { %v5559_v50 = vmul.f32 %v8819_v28, %v5239_v54  ;;  %v4025_v61 = vsel %vm2988_vm4, %v4023_v56, %v11972_v34  ;;  %v983_v20 = vmul.f32 %v12351_v49, %v12566_v7  ;;  %v4343_v28 = vmul.f32 0.5, %v8742_v46 }
 0x237   : > { %v5560_v51 = vmul.f32 %v8828_v60, %v5240_v52  ;;  %v4028_v42 = vsel %vm2988_vm4, %v4026_v48, %v11971_v4  ;;  %v4211_v47 = vadd.f32 %v4025_v61, %v3724_v30  ;;  %v1046_v13 = vadd.f32 %v982_v10, %v911_v9  ;;  %v12577_v10 = vld [vmem:[#allocation62_spill] sm:$0xff] }
 0x238   : > { %v5623_v25 = vsub.f32 1.0, %v5559_v50  ;;  %v4212_v59 = vadd.f32 %v4028_v42, %v3725_v44  ;;  %v1047_v54 = vadd.f32 %v983_v20, %v912_v35  ;;  %v1117_v52 = vmul.f32 %v6941_v22, %v12568_v21  ;;  %v12576_v35 = vld [vmem:[#allocation38_spill] sm:$0xff] }
 0x239   : > { %v5624_v18 = vsub.f32 1.0, %v5560_v51  ;;  %v8925_v27 = vadd.f32 %v7119_v6, %v4211_v47  ;;  %v1118_v30 = vmul.f32 %v6960_v31, %v12569_v57  ;;  %v1320_v46 = vmul.f32 %v6966_v58, %v12541_v29 }
 0x23a   : > { %v5751_v60 = vsub.f32 0.0, %v5623_v25  ;;  %v8930_v48 = vadd.f32 %v7127_v16, %v4212_v59  ;;  %v4344_v9 = vmul.f32 0.5, %v8746_v32  ;;  %vm5687_vm13 = vcmp.lt.f32.partialorder %v8751_v11, 0.0  ;;  %v1231_v59 = vld [vmem:[#allocation2 + $0x168] sm:$0x11] }
 0x23b   : > { %v5752_v44 = vsub.f32 0.0, %v5624_v18  ;;  %v8939_v56 = vmul.f32 0.70710677, %v8925_v27  ;;  %vm5688_vm14 = vcmp.lt.f32.partialorder %v8756_v38, 0.0  ;;  %v1321_v51 = vmul.f32 %v12577_v10, %v12576_v35 }
 0x23c   : > { %v5815_v50 = vsel %vm5687_vm13, %v5751_v60, %v5623_v25  ;;  %v8943_v61 = vmul.f32 0.70710677, %v8930_v48  ;;  %v1181_v32 = vadd.f32 %v1117_v52, %v1046_v13  ;;  %v1182_v34 = vadd.f32 %v1118_v30, %v1047_v54 }
 0x23d   : > { %v5816_v42 = vsel %vm5688_vm14, %v5752_v44, %v5624_v18  ;;  %v5879_v47 = vadd.f32 1.0, %v5815_v50  ;;  %v4473_v20 = vand.u32 2147483647, %v8939_v56  ;;  %v1539_v55 = vrot.slane %v1320_v46, 1 }
 0x23e   : > { %v5880_v11 = vadd.f32 1.0, %v5816_v42  ;;  %v4474_v4 = vand.u32 2147483647, %v8943_v61  ;;  %v1541_v60 = vrot.slane %v1321_v51, 1  ;;  %v12578_v18 = vrot.slane %v8764_v39, 1 }
 0x23f   : > { %v5943_v40 = vmul.f32 %v5879_v47, %v4343_v28  ;;  %v4537_v38 = vmul.f32 0.3275911, %v4473_v20  ;;  %v5305_v25 = vsub.f32 0.0, %v4473_v20  ;;  %v8952_v50 = vunpack.c.l.bf16 %v1231_v59  ;;  %v12582_v47 = vld [vmem:[#allocation45_spill] sm:$0xff] }
 0x240   : > { %v5944_v45 = vmul.f32 %v5880_v11, %v4344_v9  ;;  %v4538_v57 = vmul.f32 0.3275911, %v4474_v4  ;;  %v5306_v21 = vsub.f32 0.0, %v4474_v4  ;;  %v1540_v44 = vsel %vm1472_vm1, %v12578_v18, %v1539_v55  ;;  %v12583_v11 = vld [vmem:[#allocation48_spill] sm:$0xff] }
 0x241   : > { %12579 = vst [vmem:[#allocation22_spill] sm:$0xff] %v8952_v50  ;;  %v4601_v13 = vadd.f32 1.0, %v4537_v38  ;;  %v5369_v52 = vmul.f32 %v5305_v25, %v4473_v20  ;;  %v12580_v42 = vrot.slane %v8770_v1, 1  ;;  %v8957_v28 = vunpack.c.h.bf16 %v1231_v59  ;;  %v12584_v38 = vld [vmem:[#allocation51_spill] sm:$0xff]  ;;  %v12585_v25 = vld [vmem:[#allocation52_spill] sm:$0xff] }
 0x242   : > { %v5996_v30 = vpack.c.bf16 %v5944_v45, %v5943_v40  ;;  %v4602_v46 = vadd.f32 1.0, %v4538_v57  ;;  %v5370_v9 = vmul.f32 %v5306_v21, %v4474_v4  ;;  %v1723_v51 = vadd.f32 %v1540_v44, %v1181_v32  ;;  %v12586_v44 = vld [vmem:[#allocation11_spill] sm:$0xff] }
 0x243   : > { %v1542_v54 = vsel %vm1472_vm1, %v12580_v42, %v1541_v60  ;;  %12581 = vst [vmem:[#allocation19_spill] sm:$0xff] %v8957_v28  ;;  %6230 = vrcp.f32 %v4601_v13  ;;  %v1808_v39 = vmul.f32 %v6972_v12, %v12582_v47  ;;  %v1809_v55 = vmul.f32 %v12357_v63, %v12583_v11  ;;  %v12588_v42 = vld [vmem:[#allocation13_spill] sm:$0xff] }
 0x244   : > { %6028 = vst [vmem:[%s7389_s16 + $0x58] sm:$0xff] %v5996_v30  ;;  %6232 = vrcp.f32 %v4602_v46  ;;  %v1724_v20 = vadd.f32 %v1542_v54, %v1182_v34  ;;  %v2295_v1 = vmul.f32 %v7007_v37, %v12584_v38  ;;  %v2296_v59 = vmul.f32 %v7009_v53, %v12585_v25 }
 0x245   : > { %v5457_v45 = vmul.f32 1.442695, %v5369_v52  ;;  %v2026_v57 = vrot.slane %v1808_v39, 1  ;;  %v2028_v21 = vrot.slane %v1809_v55, 1  ;;  %v2836_v40 = vmul.f32 %v7046_v24, %v12541_v29 }
 0x246   : > { %v5459_v4 = vmul.f32 1.442695, %v5370_v9  ;;  %v2513_v32 = vrot.slane %v2295_v1, 1  ;;  %v2515_v60 = vrot.slane %v2296_v59, 1  ;;  %v2837_v18 = vmul.f32 %v7057_v2, %v12576_v35 }
 0x247   : > { %v12587_v34 = vrot.slane %v12586_v44, 1  ;;  %v12589_v54 = vrot.slane %v12588_v42, 1  ;;  %v3055_v52 = vrot.slane %v2836_v40, 2  ;;  %v3324_v46 = vmul.f32 %v7072_v3, %v12582_v47  ;;  %v12593_v44 = vld [vmem:[#allocation68_spill] sm:$0xff] }
 0x248   : > { %v12590_v9 = vrot.slane %v8808_v43, 1  ;;  %v12591_v35 = vrot.slane %v8817_v41, 1  ;;  %v3057_v40 = vrot.slane %v2837_v18, 2  ;;  %v3811_v41 = vmul.f32 %v7077_v0, %v12584_v38 }
 0x249   : > { %v2027_v13 = vsel %vm1472_vm1, %v12587_v34, %v2026_v57  ;;  %v2029_v30 = vsel %vm1472_vm1, %v12589_v54, %v2028_v21  ;;  %v8986_v59 = vpop.eup %6230  ;;  %v12592_v57 = vrot.slane %v8853_v26, 2  ;;  %v3325_v34 = vmul.f32 %v12593_v44, %v12583_v11 }
 0x24a   : > { %v2210_v39 = vadd.f32 %v2027_v13, %v1723_v51  ;;  %v2211_v29 = vadd.f32 %v2029_v30, %v1724_v20  ;;  %v2514_v55 = vsel %vm1472_vm1, %v12590_v9, %v2513_v32  ;;  %v2516_v1 = vsel %vm1472_vm1, %v12591_v35, %v2515_v60  ;;  %v8993_v20 = vpop.eup %6232 }
 0x24b   : > { %v3056_v21 = vsel %vm2988_vm4, %v12592_v57, %v3055_v52  ;;  %v3542_v51 = vrot.slane %v3324_v46, 2  ;;  %v4729_v43 = vmul.f32 1.0614054, %v8986_v59  ;;  %v4730_v60 = vmul.f32 1.0614054, %v8993_v20 }
 0x24c   : > { %v2697_v32 = vadd.f32 %v2514_v55, %v2210_v39  ;;  %v2698_v13 = vadd.f32 %v2516_v1, %v2211_v29  ;;  %v12594_v26 = vrot.slane %v8858_v15, 2  ;;  %v12595_v18 = vrot.slane %v8869_v33, 2  ;;  %v12597_v15 = vld [vmem:[#allocation29_spill] sm:$0xff] }
 0x24d   : > { %v3544_v30 = vrot.slane %v3325_v34, 2  ;;  %v4793_v52 = vadd.f32 -1.4531521, %v4729_v43  ;;  %v3812_v39 = vmul.f32 %v7079_v5, %v12585_v25  ;;  %v4794_v29 = vadd.f32 -1.4531521, %v4730_v60  ;;  %v12600_v60 = vld [vmem:[#allocation39_spill] sm:$0xff] }
 0x24e   : > { %v3058_v42 = vsel %vm2988_vm4, %v12594_v26, %v3057_v40  ;;  %v3543_v54 = vsel %vm2988_vm4, %v12595_v18, %v3542_v51  ;;  %v3239_v46 = vadd.f32 %v3056_v21, %v2697_v32  ;;  %v12596_v55 = vrot.slane %v8873_v62, 2 }
 0x24f   : > { %v3240_v9 = vadd.f32 %v3058_v42, %v2698_v13  ;;  %v4029_v1 = vrot.slane %v3811_v41, 2  ;;  %v913_v57 = vmul.f32 %v6917_v23, %v12597_v15  ;;  %v4857_v33 = vmul.f32 %v8986_v59, %v4793_v52  ;;  %v12599_v13 = vld [vmem:[#allocation30_spill] sm:$0xff] }
 0x250   : > { %v3545_v35 = vsel %vm2988_vm4, %v12596_v55, %v3544_v30  ;;  %v3726_v40 = vadd.f32 %v3543_v54, %v3239_v46  ;;  %v4031_v34 = vrot.slane %v3812_v39, 2  ;;  %v4858_v21 = vmul.f32 %v8993_v20, %v4794_v29  ;;  %v12602_v30 = vld [vmem:[#allocation40_spill] sm:$0xff]  ;;  %v12603_v39 = vld [vmem:[#allocation43_spill] sm:$0xff] }
 0x251   : > { %v3727_v51 = vadd.f32 %v3545_v35, %v3240_v9  ;;  %v12598_v43 = vrot.slane %v8894_v8, 2  ;;  %v914_v62 = vmul.f32 %v6930_v19, %v12599_v13  ;;  %v984_v41 = vmul.f32 %v6933_v14, %v12600_v60 }
 0x252   : > { %v4921_v26 = vadd.f32 1.4214138, %v4857_v33  ;;  %v12601_v42 = vrot.slane %v8901_v36, 2  ;;  %v985_v52 = vmul.f32 %v12351_v49, %v12602_v30  ;;  %v4922_v46 = vadd.f32 1.4214138, %v4858_v21 }
 0x253   : > { %v4030_v32 = vsel %vm2988_vm4, %v12598_v43, %v4029_v1  ;;  %v1048_v8 = vadd.f32 %v984_v41, %v913_v57  ;;  %v1119_v29 = vmul.f32 %v6941_v22, %v12603_v39  ;;  %v9029_v55 = vmul.f32 0.5, %v8925_v27 }
 0x254   : > { %v4032_v18 = vsel %vm2988_vm4, %v12601_v42, %v4031_v34  ;;  %v4213_v54 = vadd.f32 %v4030_v32, %v3726_v40  ;;  %v9032_v35 = vmul.f32 0.5, %v8930_v48  ;;  %v4985_v36 = vmul.f32 %v8986_v59, %v4921_v26 }
 0x255   : > { %v4214_v9 = vadd.f32 %v4032_v18, %v3727_v51  ;;  %v4986_v33 = vmul.f32 %v8993_v20, %v4922_v46  ;;  %v1049_v57 = vadd.f32 %v985_v52, %v914_v62  ;;  %v12604_v51 = vld [vmem:[#allocation44_spill] sm:$0xff]  ;;  %6234 = vpow2.f32 %v5457_v45 }
 0x256   : > { %v9036_v1 = vadd.f32 %v7119_v6, %v4213_v54  ;;  %v1120_v34 = vmul.f32 %v6960_v31, %v12604_v51  ;;  %v5049_v21 = vadd.f32 -0.28449672, %v4985_v36  ;;  %v1322_v48 = vmul.f32 %v6966_v58, %v12597_v15 }
 0x257   : > { %v9040_v40 = vadd.f32 %v7127_v16, %v4214_v9  ;;  %v5050_v43 = vadd.f32 -0.28449672, %v4986_v33  ;;  %6236 = vpow2.f32 %v5459_v4  ;;  %v1183_v41 = vadd.f32 %v1119_v29, %v1048_v8 }
 0x258   : > { %v9045_v27 = vmul.f32 0.70710677, %v9036_v1  ;;  %v5113_v26 = vmul.f32 %v8986_v59, %v5049_v21  ;;  %v1323_v42 = vmul.f32 %v12577_v10, %v12599_v13  ;;  %v9058_v45 = vmul.f32 %v6966_v58, %v12564_v17 }
 0x259   : > { %v9050_v32 = vmul.f32 0.70710677, %v9040_v40  ;;  %v5114_v18 = vmul.f32 %v8993_v20, %v5050_v43  ;;  %v1184_v4 = vadd.f32 %v1120_v34, %v1049_v57  ;;  %v9064_v54 = vmul.f32 %v12577_v10, %v12566_v7 }
 0x25a   : > { %v4475_v62 = vand.u32 2147483647, %v9045_v27  ;;  %v5177_v52 = vadd.f32 0.2548296, %v5113_v26  ;;  %v1543_v8 = vrot.slane %v1322_v48, 1  ;;  %vm5689_vm15 = vcmp.lt.f32.partialorder %v8939_v56, 0.0 }
 0x25b   : > { %v4476_v15 = vand.u32 2147483647, %v9050_v32  ;;  %v5178_v29 = vadd.f32 0.2548296, %v5114_v18  ;;  %v11987_v33 = vrot.slane %v9058_v45, 1  ;;  %v6235_v21 = vpop.eup %6234  ;;  %vm5690_vm0 = vcmp.lt.f32.partialorder %v8943_v61, 0.0 }
 0x25c   : > { %v4539_v46 = vmul.f32 0.3275911, %v4475_v62  ;;  %v5307_v9 = vsub.f32 0.0, %v4475_v62  ;;  %v5241_v43 = vmul.f32 %v8986_v59, %v5177_v52  ;;  %v1546_v28 = vrot.slane %v1323_v42, 1 }
 0x25d   : > { %v4540_v13 = vmul.f32 0.3275911, %v4476_v15  ;;  %v5308_v36 = vsub.f32 0.0, %v4476_v15  ;;  %v6237_v50 = vpop.eup %6236  ;;  %v5242_v26 = vmul.f32 %v8993_v20, %v5178_v29  ;;  %v1545_v18 = vsel %vm1472_vm1, %v1543_v8, %v11987_v33 }
 0x25e   : > { %v4603_v57 = vadd.f32 1.0, %v4539_v46  ;;  %v5371_v34 = vmul.f32 %v5307_v9, %v4475_v62  ;;  %v5561_v38 = vmul.f32 %v6235_v21, %v5241_v43  ;;  %v11986_v11 = vrot.slane %v9064_v54, 1 }
 0x25f   : > { %v4604_v25 = vadd.f32 1.0, %v4540_v13  ;;  %v5372_v48 = vmul.f32 %v5308_v36, %v4476_v15  ;;  %v5562_v59 = vmul.f32 %v6237_v50, %v5242_v26  ;;  %v1725_v46 = vadd.f32 %v1545_v18, %v1183_v41  ;;  %v12605_v50 = vld [vmem:[#allocation41_spill] sm:$0xff]  ;;  %v12609_v26 = vld [vmem:[#allocation46_spill] sm:$0xff] }
 0x260   : > { %6238 = vrcp.f32 %v4603_v57  ;;  %v5461_v10 = vmul.f32 1.442695, %v5371_v34  ;;  %v5625_v62 = vsub.f32 1.0, %v5561_v38  ;;  %v1548_v20 = vsel %vm1472_vm1, %v1546_v28, %v11986_v11  ;;  %v12607_v38 = vld [vmem:[#allocation42_spill] sm:$0xff] }
 0x261   : > { %6240 = vrcp.f32 %v4604_v25  ;;  %v5463_v52 = vmul.f32 1.442695, %v5372_v48  ;;  %v1810_v42 = vmul.f32 %v6972_v12, %v12600_v60  ;;  %v5626_v15 = vsub.f32 1.0, %v5562_v59 }
 0x262   : > { %6242 = vpow2.f32 %v5461_v10  ;;  %v1726_v9 = vadd.f32 %v1548_v20, %v1184_v4  ;;  %v1811_v8 = vmul.f32 %v12357_v63, %v12602_v30  ;;  %v5753_v29 = vsub.f32 0.0, %v5625_v62 }
 0x263   : > { %6244 = vpow2.f32 %v5463_v52  ;;  %v9084_v25 = vmul.f32 %v6972_v12, %v12605_v50  ;;  %v9088_v10 = vmul.f32 %v12357_v63, %v12607_v38  ;;  %v2030_v41 = vrot.slane %v1810_v42, 1  ;;  %v12610_v42 = vld [vmem:[#allocation47_spill] sm:$0xff] }
 0x264   : > { %v5754_v28 = vsub.f32 0.0, %v5626_v15  ;;  %v2033_v13 = vrot.slane %v1811_v8, 1  ;;  %v2297_v36 = vmul.f32 %v7007_v37, %v12603_v39  ;;  %v2298_v4 = vmul.f32 %v7009_v53, %v12604_v51 }
 0x265   : > { %12606 = vst [vmem:[#allocation57_spill] sm:$0xff] %v9084_v25  ;;  %v5817_v43 = vsel %vm5689_vm15, %v5753_v29, %v5625_v62  ;;  %v11993_v57 = vrot.slane %v9084_v25, 1  ;;  %v11994_v34 = vrot.slane %v9088_v10, 1  ;;  %v9102_v48 = vmul.f32 %v7007_v37, %v12609_v26 }
 0x266   : > { %12608 = vst [vmem:[#allocation32_spill] sm:$0xff] %v9088_v10  ;;  %v9094_v21 = vpop.eup %6238  ;;  %v5818_v59 = vsel %vm5690_vm0, %v5754_v28, %v5626_v15  ;;  %v5881_v52 = vadd.f32 1.0, %v5817_v43  ;;  %v9111_v56 = vmul.f32 %v7009_v53, %v12610_v42  ;;  %v2744_v15 = vld [vmem:[#allocation2 + $0x90] sm:$0xee]  ;;  %v2517_v60 = vrot.slane %v2297_v36, 1 }
 0x267   : > { %v9104_v18 = vpop.eup %6240  ;;  %v4731_v20 = vmul.f32 1.0614054, %v9094_v21  ;;  %v5882_v8 = vadd.f32 1.0, %v5818_v59  ;;  %v2032_v11 = vsel %vm1472_vm1, %v2030_v41, %v11993_v57  ;;  %v2035_v61 = vsel %vm1472_vm1, %v2033_v13, %v11994_v34  ;;  %v12613_v36 = vld [vmem:[#allocation63_spill] sm:$0xff] }
 0x268   : > { %v9113_v62 = vpop.eup %6242  ;;  %v4732_v29 = vmul.f32 1.0614054, %v9104_v18  ;;  %v5945_v43 = vmul.f32 %v5881_v52, %v9029_v55  ;;  %v2212_v51 = vadd.f32 %v2032_v11, %v1725_v46  ;;  %v2213_v39 = vadd.f32 %v2035_v61, %v1726_v9 }
 0x269   : > { %v9122_v28 = vpop.eup %6244  ;;  %v4795_v33 = vadd.f32 -1.4531521, %v4731_v20  ;;  %v5946_v59 = vmul.f32 %v5882_v8, %v9032_v35  ;;  %v11997_v25 = vrot.slane %v9102_v48, 1  ;;  %v2520_v57 = vrot.slane %v2298_v4, 1  ;;  %v12614_v8 = vld [vmem:[#allocation28_spill] sm:$0xff] }
 0x26a   : > { %v4796_v30 = vadd.f32 -1.4531521, %v4732_v29  ;;  %v11996_v13 = vrot.slane %v9111_v56, 1  ;;  %v9129_v34 = vunpack.c.l.bf16 %v2744_v15  ;;  %v9135_v35 = vunpack.c.h.bf16 %v2744_v15 }
 0x26b   : > { %v4859_v41 = vmul.f32 %v9094_v21, %v4795_v33  ;;  %v5997_v10 = vpack.c.bf16 %v5946_v59, %v5945_v43  ;;  %v2519_v11 = vsel %vm1472_vm1, %v2517_v60, %v11997_v25  ;;  %v2838_v4 = vmul.f32 %v7046_v24, %v12613_v36  ;;  %v12616_v59 = vld [vmem:[#allocation21_spill] sm:$0xff] }
 0x26c   : > { %12611 = vst [vmem:[#allocation33_spill] sm:$0xff] %v9129_v34  ;;  %v4860_v55 = vmul.f32 %v9104_v18, %v4796_v30  ;;  %v2522_v9 = vsel %vm1472_vm1, %v2520_v57, %v11996_v13  ;;  %v2699_v33 = vadd.f32 %v2519_v11, %v2212_v51  ;;  %v2839_v30 = vmul.f32 %v7057_v2, %v12614_v8  ;;  %v12615_v57 = vld [vmem:[#allocation14_spill] sm:$0xff] }
 0x26d   : > { %12612 = vst [vmem:[#allocation27_spill] sm:$0xff] %v9135_v35  ;;  %v4923_v46 = vadd.f32 1.4214138, %v4859_v41  ;;  %v2700_v20 = vadd.f32 %v2522_v9, %v2213_v39  ;;  %v9147_v60 = vmul.f32 %v7046_v24, %v12564_v17  ;;  %v9152_v61 = vmul.f32 %v7057_v2, %v12566_v7 }
 0x26e   : > { %6029 = vst [vmem:[%s7389_s16 + $0x60] sm:$0xff] %v5997_v10  ;;  %v4924_v52 = vadd.f32 1.4214138, %v4860_v55  ;;  %v3059_v51 = vrot.slane %v2838_v4, 2  ;;  %v3326_v15 = vmul.f32 %v7072_v3, %v12615_v57  ;;  %v3062_v43 = vrot.slane %v2839_v30, 2 }
 0x26f   : > { %v4987_v29 = vmul.f32 %v9094_v21, %v4923_v46  ;;  %v12001_v39 = vrot.slane %v9147_v60, 2  ;;  %v3327_v41 = vmul.f32 %v12593_v44, %v12616_v59  ;;  %v12000_v11 = vrot.slane %v9152_v61, 2 }
 0x270   : > { %v4988_v10 = vmul.f32 %v9104_v18, %v4924_v52  ;;  %v9163_v46 = vmul.f32 %v7072_v3, %v12605_v50  ;;  %v9167_v9 = vmul.f32 %v12593_v44, %v12607_v38  ;;  %v3546_v52 = vrot.slane %v3326_v15, 2 }
 0x271   : > { %v5051_v55 = vadd.f32 -0.28449672, %v4987_v29  ;;  %v3061_v4 = vsel %vm2988_vm4, %v3059_v51, %v12001_v39  ;;  %v3549_v8 = vrot.slane %v3327_v41, 2  ;;  %v3064_v29 = vsel %vm2988_vm4, %v3062_v43, %v12000_v11 }
 0x272   : > { %v5052_v36 = vadd.f32 -0.28449672, %v4988_v10  ;;  %v3241_v13 = vadd.f32 %v3061_v4, %v2699_v33  ;;  %v11999_v25 = vrot.slane %v9163_v46, 2  ;;  %v3242_v57 = vadd.f32 %v3064_v29, %v2700_v20 }
 0x273   : > { %v5115_v30 = vmul.f32 %v9094_v21, %v5051_v55  ;;  %v12004_v10 = vrot.slane %v9167_v9, 2  ;;  %v3813_v44 = vmul.f32 %v7077_v0, %v9129_v34  ;;  %v3814_v41 = vmul.f32 %v7079_v5, %v9135_v35 }
 0x274   : > { %v5116_v59 = vmul.f32 %v9104_v18, %v5052_v36  ;;  %v3548_v15 = vsel %vm2988_vm4, %v3546_v52, %v11999_v25  ;;  %v9188_v33 = vmul.f32 %v7077_v0, %v12609_v26  ;;  %v9195_v36 = vmul.f32 %v7079_v5, %v12610_v42 }
 0x275   : > { %v5179_v51 = vadd.f32 0.2548296, %v5115_v30  ;;  %v3551_v20 = vsel %vm2988_vm4, %v3549_v8, %v12004_v10  ;;  %v3728_v55 = vadd.f32 %v3548_v15, %v3241_v13  ;;  %v4033_v30 = vrot.slane %v3813_v44, 2 }
 0x276   : > { %v5180_v43 = vadd.f32 0.2548296, %v5116_v59  ;;  %v3729_v52 = vadd.f32 %v3551_v20, %v3242_v57  ;;  %v12003_v29 = vrot.slane %v9188_v33, 2  ;;  %v4036_v11 = vrot.slane %v3814_v41, 2 }
 0x277   : > { %v5243_v4 = vmul.f32 %v9094_v21, %v5179_v51  ;;  %v12002_v59 = vrot.slane %v9195_v36, 2  ;;  %v915_v39 = vmul.f32 %v6917_v23, %v12564_v17  ;;  %v916_v21 = vmul.f32 %v6930_v19, %v12566_v7 }
 0x278   : > { %v5244_v25 = vmul.f32 %v9104_v18, %v5180_v43  ;;  %v4035_v8 = vsel %vm2988_vm4, %v4033_v30, %v12003_v29  ;;  %v986_v44 = vmul.f32 %v6933_v14, %v12605_v50  ;;  %v987_v17 = vmul.f32 %v12351_v49, %v12607_v38 }
 0x279   : > { %v5563_v13 = vmul.f32 %v9113_v62, %v5243_v4  ;;  %v4038_v57 = vsel %vm2988_vm4, %v4036_v11, %v12002_v59  ;;  %v4215_v51 = vadd.f32 %v4035_v8, %v3728_v55  ;;  %v4347_v62 = vmul.f32 0.5, %v9036_v1 }
 0x27a   : > { %v5564_v18 = vmul.f32 %v9122_v28, %v5244_v25  ;;  %v4216_v41 = vadd.f32 %v4038_v57, %v3729_v52  ;;  %v1050_v43 = vadd.f32 %v986_v44, %v915_v39  ;;  %v1051_v4 = vadd.f32 %v987_v17, %v916_v21  ;;  %v12617_v21 = vld [vmem:[#allocation48_spill] sm:$0xff]  ;;  %v12618_v44 = vld [vmem:[#allocation62_spill] sm:$0xff] }
 0x27b   : > { %v5627_v15 = vsub.f32 1.0, %v5563_v13  ;;  %v9219_v7 = vadd.f32 %v7119_v6, %v4215_v51  ;;  %v1121_v25 = vmul.f32 %v6941_v22, %v12609_v26  ;;  %v1122_v55 = vmul.f32 %v6960_v31, %v12610_v42 }
 0x27c   : > { %v5628_v20 = vsub.f32 1.0, %v5564_v18  ;;  %v9224_v11 = vadd.f32 %v7127_v16, %v4216_v41  ;;  %v1326_v1 = vmul.f32 %v6966_v58, %v12582_v47  ;;  %v4348_v39 = vmul.f32 0.5, %v9040_v40 }
 0x27d   : > { %v5755_v28 = vsub.f32 0.0, %v5627_v15  ;;  %vm5691_vm2 = vcmp.lt.f32.partialorder %v9045_v27, 0.0  ;;  %v9233_v30 = vmul.f32 0.70710677, %v9219_v7  ;;  %vm5692_vm3 = vcmp.lt.f32.partialorder %v9050_v32, 0.0 }
 0x27e   : > { %v5756_v52 = vsub.f32 0.0, %v5628_v20  ;;  %v9237_v8 = vmul.f32 0.70710677, %v9224_v11  ;;  %v1327_v18 = vmul.f32 %v12618_v44, %v12617_v21  ;;  %v1185_v40 = vadd.f32 %v1121_v25, %v1050_v43 }
 0x27f   : > { %v5819_v13 = vsel %vm5691_vm2, %v5755_v28, %v5627_v15  ;;  %v4477_v17 = vand.u32 2147483647, %v9233_v30  ;;  %v1186_v59 = vadd.f32 %v1122_v55, %v1051_v4  ;;  %v1549_v29 = vrot.slane %v1326_v1, 1 }
 0x280   : > { %v5820_v57 = vsel %vm5692_vm3, %v5756_v52, %v5628_v20  ;;  %v5883_v51 = vadd.f32 1.0, %v5819_v13  ;;  %v4478_v27 = vand.u32 2147483647, %v9237_v8  ;;  %v1551_v15 = vrot.slane %v1327_v18, 1  ;;  %v6394_v52 = vld [vmem:[#allocation2 + $0xb8] sm:$0xff] }
 0x281   : > { %v5884_v41 = vadd.f32 1.0, %v5820_v57  ;;  %v4541_v35 = vmul.f32 0.3275911, %v4477_v17  ;;  %v5309_v32 = vsub.f32 0.0, %v4477_v17  ;;  %v12619_v26 = vrot.slane %v9058_v45, 1 }
 0x282   : > { %v5947_v10 = vmul.f32 %v5883_v51, %v4347_v62  ;;  %v4542_v34 = vmul.f32 0.3275911, %v4478_v27  ;;  %v5310_v42 = vsub.f32 0.0, %v4478_v27  ;;  %v9246_v13 = vunpack.c.l.bf16 %v6394_v52  ;;  %v12623_v51 = vld [vmem:[#allocation51_spill] sm:$0xff] }
 0x283   : > { %v5948_v28 = vmul.f32 %v5884_v41, %v4348_v39  ;;  %v1550_v20 = vsel %vm1472_vm1, %v12619_v26, %v1549_v29  ;;  %v4605_v43 = vadd.f32 1.0, %v4541_v35  ;;  %v5373_v25 = vmul.f32 %v5309_v32, %v4477_v17  ;;  %v12624_v26 = vld [vmem:[#allocation52_spill] sm:$0xff]  ;;  %v12625_v17 = vld [vmem:[#allocation58_spill] sm:$0xff]  ;;  %v12626_v41 = vld [vmem:[#allocation59_spill] sm:$0xff] }
 0x284   : > { %12620 = vst [vmem:[#allocation64_spill] sm:$0xff] %v9246_v13  ;;  %v12621_v4 = vrot.slane %v9064_v54, 1  ;;  %v9251_v55 = vunpack.c.h.bf16 %v6394_v52  ;;  %v4606_v39 = vadd.f32 1.0, %v4542_v34  ;;  %v5374_v18 = vmul.f32 %v5310_v42, %v4478_v27  ;;  %v12627_v52 = vld [vmem:[#allocation57_spill] sm:$0xff] }
 0x285   : > { %v5998_v1 = vpack.c.bf16 %v5948_v28, %v5947_v10  ;;  %6246 = vrcp.f32 %v4605_v43  ;;  %v1727_v57 = vadd.f32 %v1550_v20, %v1185_v40  ;;  %v1814_v45 = vmul.f32 %v6972_v12, %v12623_v51 }
 0x286   : > { %v1552_v62 = vsel %vm1472_vm1, %v12621_v4, %v1551_v15  ;;  %12622 = vst [vmem:[#allocation17_spill] sm:$0xff] %v9251_v55  ;;  %v1815_v29 = vmul.f32 %v12357_v63, %v12624_v26  ;;  %6248 = vrcp.f32 %v4606_v39  ;;  %v2301_v54 = vmul.f32 %v7007_v37, %v12625_v17  ;;  %v12629_v4 = vld [vmem:[#allocation32_spill] sm:$0xff] }
 0x287   : > { %6030 = vst [vmem:[%s7389_s16 + $0x68] sm:$0xff] %v5998_v1  ;;  %v1728_v35 = vadd.f32 %v1552_v62, %v1186_v59  ;;  %v2302_v32 = vmul.f32 %v7009_v53, %v12626_v41  ;;  %v5465_v10 = vmul.f32 1.442695, %v5373_v25  ;;  %v2036_v34 = vrot.slane %v1814_v45, 1 }
 0x288   : > { %v2038_v42 = vrot.slane %v1815_v29, 1  ;;  %v2842_v40 = vmul.f32 %v7046_v24, %v12582_v47  ;;  %v5467_v27 = vmul.f32 1.442695, %v5374_v18  ;;  %v2523_v15 = vrot.slane %v2301_v54, 1 }
 0x289   : > { %v2525_v28 = vrot.slane %v2302_v32, 1  ;;  %v2843_v20 = vmul.f32 %v7057_v2, %v12617_v21  ;;  %v12628_v59 = vrot.slane %v12627_v52, 1  ;;  %v12630_v62 = vrot.slane %v12629_v4, 1  ;;  %v12634_v52 = vld [vmem:[#allocation68_spill] sm:$0xff] }
 0x28a   : > { %v3065_v25 = vrot.slane %v2842_v40, 2  ;;  %v3330_v39 = vmul.f32 %v7072_v3, %v12623_v51  ;;  %v12631_v18 = vrot.slane %v9102_v48, 1  ;;  %v12632_v21 = vrot.slane %v9111_v56, 1 }
 0x28b   : > { %v2037_v43 = vsel %vm1472_vm1, %v12628_v59, %v2036_v34  ;;  %v2039_v1 = vsel %vm1472_vm1, %v12630_v62, %v2038_v42  ;;  %v9280_v32 = vpop.eup %6246  ;;  %v12633_v34 = vrot.slane %v9147_v60, 2  ;;  %v3067_v40 = vrot.slane %v2843_v20, 2 }
 0x28c   : > { %v2214_v45 = vadd.f32 %v2037_v43, %v1727_v57  ;;  %v2215_v47 = vadd.f32 %v2039_v1, %v1728_v35  ;;  %v2524_v29 = vsel %vm1472_vm1, %v12631_v18, %v2523_v15  ;;  %v2526_v54 = vsel %vm1472_vm1, %v12632_v21, %v2525_v28  ;;  %v9287_v35 = vpop.eup %6248 }
 0x28d   : > { %v3066_v42 = vsel %vm2988_vm4, %v12633_v34, %v3065_v25  ;;  %v3331_v59 = vmul.f32 %v12634_v52, %v12624_v26  ;;  %v3552_v57 = vrot.slane %v3330_v39, 2  ;;  %v4733_v48 = vmul.f32 1.0614054, %v9280_v32 }
 0x28e   : > { %v2701_v15 = vadd.f32 %v2524_v29, %v2214_v45  ;;  %v2702_v43 = vadd.f32 %v2526_v54, %v2215_v47  ;;  %v3817_v56 = vmul.f32 %v7077_v0, %v12625_v17  ;;  %v4734_v28 = vmul.f32 1.0614054, %v9287_v35 }
 0x28f   : > { %v12635_v60 = vrot.slane %v9152_v61, 2  ;;  %v12636_v20 = vrot.slane %v9163_v46, 2  ;;  %v3554_v1 = vrot.slane %v3331_v59, 2  ;;  %v4797_v25 = vadd.f32 -1.4531521, %v4733_v48  ;;  %v12638_v61 = vld [vmem:[#allocation39_spill] sm:$0xff] }
 0x290   : > { %v3243_v39 = vadd.f32 %v3066_v42, %v2701_v15  ;;  %v3818_v45 = vmul.f32 %v7079_v5, %v12626_v41  ;;  %v4798_v47 = vadd.f32 -1.4531521, %v4734_v28  ;;  %v12637_v29 = vrot.slane %v9167_v9, 2  ;;  %v12641_v28 = vld [vmem:[#allocation43_spill] sm:$0xff] }
 0x291   : > { %v3068_v4 = vsel %vm2988_vm4, %v12635_v60, %v3067_v40  ;;  %v3553_v62 = vsel %vm2988_vm4, %v12636_v20, %v3552_v57  ;;  %v4039_v54 = vrot.slane %v3817_v56, 2  ;;  %v917_v34 = vmul.f32 %v6917_v23, %v12638_v61 }
 0x292   : > { %v3244_v18 = vadd.f32 %v3068_v4, %v2702_v43  ;;  %v3555_v21 = vsel %vm2988_vm4, %v12637_v29, %v3554_v1  ;;  %v4861_v46 = vmul.f32 %v9280_v32, %v4797_v25  ;;  %v3730_v40 = vadd.f32 %v3553_v62, %v3243_v39  ;;  %v12640_v43 = vld [vmem:[#allocation40_spill] sm:$0xff] }
 0x293   : > { %v4041_v59 = vrot.slane %v3818_v45, 2  ;;  %v4862_v42 = vmul.f32 %v9287_v35, %v4798_v47  ;;  %v12639_v48 = vrot.slane %v9188_v33, 2  ;;  %v918_v9 = vmul.f32 %v6930_v19, %v12640_v43  ;;  %v12643_v1 = vld [vmem:[#allocation44_spill] sm:$0xff]  ;;  %v12644_v45 = vld [vmem:[#allocation49_spill] sm:$0xff] }
 0x294   : > { %v3731_v57 = vadd.f32 %v3555_v21, %v3244_v18  ;;  %v988_v56 = vmul.f32 %v6933_v14, %v12641_v28  ;;  %v4925_v60 = vadd.f32 1.4214138, %v4861_v46  ;;  %v12642_v4 = vrot.slane %v9195_v36, 2 }
 0x295   : > { %v4040_v15 = vsel %vm2988_vm4, %v12639_v48, %v4039_v54  ;;  %v989_v25 = vmul.f32 %v12351_v49, %v12643_v1  ;;  %v4926_v39 = vadd.f32 1.4214138, %v4862_v42  ;;  %v1123_v47 = vmul.f32 %v6941_v22, %v12644_v45 }
 0x296   : > { %v4042_v20 = vsel %vm2988_vm4, %v12642_v4, %v4041_v59  ;;  %v4217_v62 = vadd.f32 %v4040_v15, %v3730_v40  ;;  %v1052_v33 = vadd.f32 %v988_v56, %v917_v34  ;;  %v9323_v29 = vmul.f32 0.5, %v9219_v7 }
 0x297   : > { %v4218_v18 = vadd.f32 %v4042_v20, %v3731_v57  ;;  %v9326_v21 = vmul.f32 0.5, %v9224_v11  ;;  %v4989_v36 = vmul.f32 %v9280_v32, %v4925_v60  ;;  %v4990_v46 = vmul.f32 %v9287_v35, %v4926_v39  ;;  %v12645_v57 = vld [vmem:[#allocation50_spill] sm:$0xff] }
 0x298   : > { %v9330_v54 = vadd.f32 %v7119_v6, %v4217_v62  ;;  %v1053_v34 = vadd.f32 %v989_v25, %v918_v9  ;;  %v1124_v59 = vmul.f32 %v6960_v31, %v12645_v57  ;;  %6250 = vpow2.f32 %v5465_v10 }
 0x299   : > { %v9334_v40 = vadd.f32 %v7127_v16, %v4218_v18  ;;  %v5053_v42 = vadd.f32 -0.28449672, %v4989_v36  ;;  %v1328_v11 = vmul.f32 %v6966_v58, %v12638_v61  ;;  %v5054_v48 = vadd.f32 -0.28449672, %v4990_v46 }
 0x29a   : > { %v9339_v7 = vmul.f32 0.70710677, %v9330_v54  ;;  %6252 = vpow2.f32 %v5467_v27  ;;  %v1187_v56 = vadd.f32 %v1123_v47, %v1052_v33  ;;  %v1329_v4 = vmul.f32 %v12618_v44, %v12640_v43 }
 0x29b   : > { %v9344_v15 = vmul.f32 0.70710677, %v9334_v40  ;;  %v5117_v60 = vmul.f32 %v9280_v32, %v5053_v42  ;;  %v9352_v10 = vmul.f32 %v6966_v58, %v12605_v50  ;;  %v5118_v20 = vmul.f32 %v9287_v35, %v5054_v48 }
 0x29c   : > { %v4479_v9 = vand.u32 2147483647, %v9339_v7  ;;  %v1188_v27 = vadd.f32 %v1124_v59, %v1053_v34  ;;  %v9358_v62 = vmul.f32 %v12618_v44, %v12607_v38  ;;  %v1553_v33 = vrot.slane %v1328_v11, 1 }
 0x29d   : > { %v4480_v61 = vand.u32 2147483647, %v9344_v15  ;;  %v5181_v25 = vadd.f32 0.2548296, %v5117_v60  ;;  %v5182_v47 = vadd.f32 0.2548296, %v5118_v20 }
 0x29e   : > { %v4543_v39 = vmul.f32 0.3275911, %v4479_v9  ;;  %v5311_v18 = vsub.f32 0.0, %v4479_v9  ;;  %vm5693_vm5 = vcmp.lt.f32.partialorder %v9233_v30, 0.0  ;;  %v12018_v46 = vrot.slane %v9352_v10, 1  ;;  %v6251_v42 = vpop.eup %6250 }
 0x29f   : > { %v4544_v43 = vmul.f32 0.3275911, %v4480_v61  ;;  %v5312_v36 = vsub.f32 0.0, %v4480_v61  ;;  %v5245_v48 = vmul.f32 %v9280_v32, %v5181_v25  ;;  %vm5694_vm6 = vcmp.lt.f32.partialorder %v9237_v8, 0.0 }
 0x2a0   : > { %v4607_v34 = vadd.f32 1.0, %v4543_v39  ;;  %v5375_v59 = vmul.f32 %v5311_v18, %v4479_v9  ;;  %v1556_v55 = vrot.slane %v1329_v4, 1  ;;  %v6253_v13 = vpop.eup %6252  ;;  %v5246_v60 = vmul.f32 %v9287_v35, %v5182_v47 }
 0x2a1   : > { %v4608_v41 = vadd.f32 1.0, %v4544_v43  ;;  %v5376_v11 = vmul.f32 %v5312_v36, %v4480_v61  ;;  %v1555_v20 = vsel %vm1472_vm1, %v1553_v33, %v12018_v46  ;;  %v5565_v17 = vmul.f32 %v6251_v42, %v5245_v48 }
 0x2a2   : > { %6254 = vrcp.f32 %v4607_v34  ;;  %v5469_v44 = vmul.f32 1.442695, %v5375_v59  ;;  %v12017_v26 = vrot.slane %v9358_v62, 1  ;;  %v5566_v32 = vmul.f32 %v6253_v13, %v5246_v60  ;;  %v12646_v13 = vld [vmem:[#allocation46_spill] sm:$0xff]  ;;  %v12650_v60 = vld [vmem:[#allocation53_spill] sm:$0xff] }
 0x2a3   : > { %6256 = vrcp.f32 %v4608_v41  ;;  %v5471_v25 = vmul.f32 1.442695, %v5376_v11  ;;  %v1729_v39 = vadd.f32 %v1555_v20, %v1187_v56  ;;  %v5629_v9 = vsub.f32 1.0, %v5565_v17  ;;  %v12648_v17 = vld [vmem:[#allocation47_spill] sm:$0xff] }
 0x2a4   : > { %6258 = vpow2.f32 %v5469_v44  ;;  %v1558_v35 = vsel %vm1472_vm1, %v1556_v55, %v12017_v26  ;;  %v1816_v4 = vmul.f32 %v6972_v12, %v12641_v28  ;;  %v5630_v61 = vsub.f32 1.0, %v5566_v32 }
 0x2a5   : > { %6260 = vpow2.f32 %v5471_v25  ;;  %v1730_v18 = vadd.f32 %v1558_v35, %v1188_v27  ;;  %v1817_v33 = vmul.f32 %v12357_v63, %v12643_v1  ;;  %v5757_v47 = vsub.f32 0.0, %v5629_v9 }
 0x2a6   : > { %v9378_v41 = vmul.f32 %v6972_v12, %v12646_v13  ;;  %v9382_v44 = vmul.f32 %v12357_v63, %v12648_v17  ;;  %v2040_v56 = vrot.slane %v1816_v4, 1  ;;  %v5758_v55 = vsub.f32 0.0, %v5630_v61  ;;  %v12651_v4 = vld [vmem:[#allocation54_spill] sm:$0xff] }
 0x2a7   : > { %v2043_v43 = vrot.slane %v1817_v33, 1  ;;  %v2303_v36 = vmul.f32 %v7007_v37, %v12644_v45  ;;  %v2304_v27 = vmul.f32 %v7009_v53, %v12645_v57  ;;  %v5821_v48 = vsel %vm5693_vm5, %v5757_v47, %v5629_v9 }
 0x2a8   : > { %12647 = vst [vmem:[#allocation18_spill] sm:$0xff] %v9378_v41  ;;  %v9388_v42 = vpop.eup %6254  ;;  %v12024_v34 = vrot.slane %v9378_v41, 1  ;;  %v12025_v59 = vrot.slane %v9382_v44, 1  ;;  %v9396_v11 = vmul.f32 %v7007_v37, %v12650_v60  ;;  %v5822_v32 = vsel %vm5694_vm6, %v5758_v55, %v5630_v61  ;;  %v2745_v61 = vld [vmem:[#allocation2 + $0xa0] sm:$0xee] }
 0x2a9   : > { %12649 = vst [vmem:[#allocation25_spill] sm:$0xff] %v9382_v44  ;;  %v9398_v20 = vpop.eup %6256  ;;  %v5885_v25 = vadd.f32 1.0, %v5821_v48  ;;  %v4735_v35 = vmul.f32 1.0614054, %v9388_v42  ;;  %v9405_v30 = vmul.f32 %v7009_v53, %v12651_v4  ;;  %v5886_v33 = vadd.f32 1.0, %v5822_v32 }
 0x2aa   : > { %v9407_v9 = vpop.eup %6258  ;;  %v4736_v47 = vmul.f32 1.0614054, %v9398_v20  ;;  %v2042_v26 = vsel %vm1472_vm1, %v2040_v56, %v12024_v34  ;;  %v2045_v8 = vsel %vm1472_vm1, %v2043_v43, %v12025_v59  ;;  %v2527_v28 = vrot.slane %v2303_v36, 1  ;;  %v12654_v36 = vld [vmem:[#allocation14_spill] sm:$0xff] }
 0x2ab   : > { %v9416_v55 = vpop.eup %6260  ;;  %v5949_v48 = vmul.f32 %v5885_v25, %v9323_v29  ;;  %v4799_v46 = vadd.f32 -1.4531521, %v4735_v35  ;;  %v2216_v57 = vadd.f32 %v2042_v26, %v1729_v39  ;;  %v2217_v45 = vadd.f32 %v2045_v8, %v1730_v18 }
 0x2ac   : > { %v5950_v32 = vmul.f32 %v5886_v33, %v9326_v21  ;;  %v4800_v1 = vadd.f32 -1.4531521, %v4736_v47  ;;  %v12028_v41 = vrot.slane %v9396_v11, 1  ;;  %v2530_v34 = vrot.slane %v2304_v27, 1  ;;  %v12655_v33 = vld [vmem:[#allocation21_spill] sm:$0xff] }
 0x2ad   : > { %v4863_v56 = vmul.f32 %v9388_v42, %v4799_v46  ;;  %v12027_v43 = vrot.slane %v9405_v30, 1  ;;  %v9423_v59 = vunpack.c.l.bf16 %v2745_v61  ;;  %v9429_v21 = vunpack.c.h.bf16 %v2745_v61 }
 0x2ae   : > { %v5999_v44 = vpack.c.bf16 %v5950_v32, %v5949_v48  ;;  %v4864_v29 = vmul.f32 %v9398_v20, %v4800_v1  ;;  %v2529_v26 = vsel %vm1472_vm1, %v2527_v28, %v12028_v41  ;;  %v2844_v27 = vmul.f32 %v7046_v24, %v12654_v36  ;;  %v12657_v32 = vld [vmem:[#allocation27_spill] sm:$0xff] }
 0x2af   : > { %12652 = vst [vmem:[#allocation26_spill] sm:$0xff] %v9423_v59  ;;  %v4927_v39 = vadd.f32 1.4214138, %v4863_v56  ;;  %v2532_v18 = vsel %vm1472_vm1, %v2530_v34, %v12027_v43  ;;  %v2703_v46 = vadd.f32 %v2529_v26, %v2216_v57  ;;  %v2845_v1 = vmul.f32 %v7057_v2, %v12655_v33  ;;  %v12656_v34 = vld [vmem:[#allocation33_spill] sm:$0xff] }
 0x2b0   : > { %12653 = vst [vmem:[#allocation12_spill] sm:$0xff] %v9429_v21  ;;  %v4928_v25 = vadd.f32 1.4214138, %v4864_v29  ;;  %v2704_v35 = vadd.f32 %v2532_v18, %v2217_v45  ;;  %v9441_v28 = vmul.f32 %v7046_v24, %v12605_v50  ;;  %v9446_v8 = vmul.f32 %v7057_v2, %v12607_v38 }
 0x2b1   : > { %6031 = vst [vmem:[%s7389_s16 + $0x70] sm:$0xff] %v5999_v44  ;;  %v4991_v47 = vmul.f32 %v9388_v42, %v4927_v39  ;;  %v3069_v57 = vrot.slane %v2844_v27, 2  ;;  %v3332_v61 = vmul.f32 %v7072_v3, %v12656_v34  ;;  %v3072_v48 = vrot.slane %v2845_v1, 2 }
 0x2b2   : > { %v4992_v44 = vmul.f32 %v9398_v20, %v4928_v25  ;;  %v12032_v45 = vrot.slane %v9441_v28, 2  ;;  %v3333_v56 = vmul.f32 %v12634_v52, %v12657_v32  ;;  %v12031_v26 = vrot.slane %v9446_v8, 2 }
 0x2b3   : > { %v5055_v29 = vadd.f32 -0.28449672, %v4991_v47  ;;  %v9457_v39 = vmul.f32 %v7072_v3, %v12646_v13  ;;  %v9461_v18 = vmul.f32 %v12634_v52, %v12648_v17  ;;  %v3556_v25 = vrot.slane %v3332_v61, 2 }
 0x2b4   : > { %v5056_v36 = vadd.f32 -0.28449672, %v4992_v44  ;;  %v3071_v27 = vsel %vm2988_vm4, %v3069_v57, %v12032_v45  ;;  %v3559_v33 = vrot.slane %v3333_v56, 2  ;;  %v3074_v47 = vsel %vm2988_vm4, %v3072_v48, %v12031_v26 }
 0x2b5   : > { %v5119_v1 = vmul.f32 %v9388_v42, %v5055_v29  ;;  %v3245_v43 = vadd.f32 %v3071_v27, %v2703_v46  ;;  %v12030_v41 = vrot.slane %v9457_v39, 2  ;;  %v3246_v34 = vadd.f32 %v3074_v47, %v2704_v35 }
 0x2b6   : > { %v5120_v32 = vmul.f32 %v9398_v20, %v5056_v36  ;;  %v12035_v44 = vrot.slane %v9461_v18, 2  ;;  %v3819_v52 = vmul.f32 %v7077_v0, %v9423_v59  ;;  %v3820_v56 = vmul.f32 %v7079_v5, %v9429_v21 }
 0x2b7   : > { %v5183_v57 = vadd.f32 0.2548296, %v5119_v1  ;;  %v3558_v61 = vsel %vm2988_vm4, %v3556_v25, %v12030_v41  ;;  %v9482_v46 = vmul.f32 %v7077_v0, %v12650_v60  ;;  %v9489_v36 = vmul.f32 %v7079_v5, %v12651_v4 }
 0x2b8   : > { %v5184_v48 = vadd.f32 0.2548296, %v5120_v32  ;;  %v3561_v35 = vsel %vm2988_vm4, %v3559_v33, %v12035_v44  ;;  %v3732_v29 = vadd.f32 %v3558_v61, %v3245_v43  ;;  %v4043_v1 = vrot.slane %v3819_v52, 2 }
 0x2b9   : > { %v5247_v27 = vmul.f32 %v9388_v42, %v5183_v57  ;;  %v3733_v25 = vadd.f32 %v3561_v35, %v3246_v34  ;;  %v12034_v47 = vrot.slane %v9482_v46, 2  ;;  %v4046_v26 = vrot.slane %v3820_v56, 2 }
 0x2ba   : > { %v5248_v41 = vmul.f32 %v9398_v20, %v5184_v48  ;;  %v12033_v32 = vrot.slane %v9489_v36, 2  ;;  %v919_v45 = vmul.f32 %v6917_v23, %v12605_v50  ;;  %v920_v42 = vmul.f32 %v6930_v19, %v12607_v38 }
 0x2bb   : > { %v5567_v43 = vmul.f32 %v9407_v9, %v5247_v27  ;;  %v4045_v33 = vsel %vm2988_vm4, %v4043_v1, %v12034_v47  ;;  %v990_v52 = vmul.f32 %v6933_v14, %v12646_v13  ;;  %v991_v50 = vmul.f32 %v12351_v49, %v12648_v17 }
 0x2bc   : > { %v5568_v20 = vmul.f32 %v9416_v55, %v5248_v41  ;;  %v4048_v34 = vsel %vm2988_vm4, %v4046_v26, %v12033_v32  ;;  %v4219_v57 = vadd.f32 %v4045_v33, %v3732_v29  ;;  %v4351_v9 = vmul.f32 0.5, %v9330_v54 }
 0x2bd   : > { %v5631_v61 = vsub.f32 1.0, %v5567_v43  ;;  %v4220_v56 = vadd.f32 %v4048_v34, %v3733_v25  ;;  %v1054_v48 = vadd.f32 %v990_v52, %v919_v45  ;;  %v1055_v27 = vadd.f32 %v991_v50, %v920_v42  ;;  %v12658_v42 = vld [vmem:[#allocation52_spill] sm:$0xff]  ;;  %v12659_v52 = vld [vmem:[#allocation62_spill] sm:$0xff] }
 0x2be   : > { %v5632_v35 = vsub.f32 1.0, %v5568_v20  ;;  %v9513_v38 = vadd.f32 %v7119_v6, %v4219_v57  ;;  %v1125_v41 = vmul.f32 %v6941_v22, %v12650_v60  ;;  %v1126_v29 = vmul.f32 %v6960_v31, %v12651_v4 }
 0x2bf   : > { %v5759_v55 = vsub.f32 0.0, %v5631_v61  ;;  %v9518_v26 = vadd.f32 %v7127_v16, %v4220_v56  ;;  %v1332_v54 = vmul.f32 %v6966_v58, %v12623_v51  ;;  %v4352_v45 = vmul.f32 0.5, %v9334_v40 }
 0x2c0   : > { %vm5695_vm7 = vcmp.lt.f32.partialorder %v9339_v7, 0.0  ;;  %v5760_v25 = vsub.f32 0.0, %v5632_v35  ;;  %v9527_v1 = vmul.f32 0.70710677, %v9513_v38  ;;  %vm5696_vm8 = vcmp.lt.f32.partialorder %v9344_v15, 0.0 }
 0x2c1   : > { %v5823_v43 = vsel %vm5695_vm7, %v5759_v55, %v5631_v61  ;;  %v9531_v33 = vmul.f32 0.70710677, %v9518_v26  ;;  %v1333_v20 = vmul.f32 %v12659_v52, %v12658_v42  ;;  %v1189_v40 = vadd.f32 %v1125_v41, %v1054_v48 }
 0x2c2   : > { %v5824_v34 = vsel %vm5696_vm8, %v5760_v25, %v5632_v35  ;;  %v5887_v57 = vadd.f32 1.0, %v5823_v43  ;;  %v4481_v50 = vand.u32 2147483647, %v9527_v1  ;;  %v1190_v32 = vadd.f32 %v1126_v29, %v1055_v27  ;;  %v6395_v25 = vld [vmem:[#allocation2 + $0x170] sm:$0xff] }
 0x2c3   : > { %v5888_v56 = vadd.f32 1.0, %v5824_v34  ;;  %v4482_v7 = vand.u32 2147483647, %v9531_v33  ;;  %v1559_v47 = vrot.slane %v1332_v54, 1  ;;  %v1561_v61 = vrot.slane %v1333_v20, 1 }
 0x2c4   : > { %v5951_v44 = vmul.f32 %v5887_v57, %v4351_v9  ;;  %v4545_v21 = vmul.f32 0.3275911, %v4481_v50  ;;  %v5313_v15 = vsub.f32 0.0, %v4481_v50  ;;  %v12660_v60 = vrot.slane %v9352_v10, 1  ;;  %v12664_v57 = vld [vmem:[#allocation58_spill] sm:$0xff] }
 0x2c5   : > { %v5952_v55 = vmul.f32 %v5888_v56, %v4352_v45  ;;  %v4546_v59 = vmul.f32 0.3275911, %v4482_v7  ;;  %v5314_v4 = vsub.f32 0.0, %v4482_v7  ;;  %v9540_v43 = vunpack.c.l.bf16 %v6395_v25  ;;  %v12667_v56 = vld [vmem:[#allocation8_spill] sm:$0xff] }
 0x2c6   : > { %v1560_v35 = vsel %vm1472_vm1, %v12660_v60, %v1559_v47  ;;  %v4609_v48 = vadd.f32 1.0, %v4545_v21  ;;  %v5377_v41 = vmul.f32 %v5313_v15, %v4481_v50  ;;  %v12662_v27 = vrot.slane %v9358_v62, 1  ;;  %v12665_v60 = vld [vmem:[#allocation59_spill] sm:$0xff] }
 0x2c7   : > { %12661 = vst [vmem:[#allocation65_spill] sm:$0xff] %v9540_v43  ;;  %v9545_v29 = vunpack.c.h.bf16 %v6395_v25  ;;  %v6000_v54 = vpack.c.bf16 %v5952_v55, %v5951_v44  ;;  %v4610_v45 = vadd.f32 1.0, %v4546_v59  ;;  %v5378_v20 = vmul.f32 %v5314_v4, %v4482_v7  ;;  %v12666_v50 = vld [vmem:[#allocation7_spill] sm:$0xff]  ;;  %v12668_v25 = vld [vmem:[#allocation18_spill] sm:$0xff] }
 0x2c8   : > { %v1562_v9 = vsel %vm1472_vm1, %v12662_v27, %v1561_v61  ;;  %6262 = vrcp.f32 %v4609_v48  ;;  %v1731_v34 = vadd.f32 %v1560_v35, %v1189_v40  ;;  %v1820_v10 = vmul.f32 %v6972_v12, %v12664_v57  ;;  %v12670_v27 = vld [vmem:[#allocation25_spill] sm:$0xff] }
 0x2c9   : > { %12663 = vst [vmem:[#allocation34_spill] sm:$0xff] %v9545_v29  ;;  %v1821_v47 = vmul.f32 %v12357_v63, %v12665_v60  ;;  %6264 = vrcp.f32 %v4610_v45  ;;  %v1732_v21 = vadd.f32 %v1562_v9, %v1190_v32  ;;  %v2307_v62 = vmul.f32 %v7007_v37, %v12666_v50 }
 0x2ca   : > { %6032 = vst [vmem:[%s7389_s16 + $0x78] sm:$0xff] %v6000_v54  ;;  %v2308_v15 = vmul.f32 %v7009_v53, %v12667_v56  ;;  %v5473_v44 = vmul.f32 1.442695, %v5377_v41  ;;  %v2046_v59 = vrot.slane %v1820_v10, 1  ;;  %v2848_v40 = vmul.f32 %v7046_v24, %v12623_v51 }
 0x2cb   : > { %v2048_v4 = vrot.slane %v1821_v47, 1  ;;  %v5475_v7 = vmul.f32 1.442695, %v5378_v20  ;;  %v2533_v61 = vrot.slane %v2307_v62, 1  ;;  %v2849_v35 = vmul.f32 %v7057_v2, %v12658_v42 }
 0x2cc   : > { %v2535_v55 = vrot.slane %v2308_v15, 1  ;;  %v12669_v32 = vrot.slane %v12668_v25, 1  ;;  %v12671_v9 = vrot.slane %v12670_v27, 1  ;;  %v3075_v41 = vrot.slane %v2848_v40, 2  ;;  %v12675_v25 = vld [vmem:[#allocation68_spill] sm:$0xff] }
 0x2cd   : > { %v3336_v45 = vmul.f32 %v7072_v3, %v12664_v57  ;;  %v12672_v20 = vrot.slane %v9396_v11, 1  ;;  %v12673_v42 = vrot.slane %v9405_v30, 1  ;;  %v3077_v40 = vrot.slane %v2849_v35, 2 }
 0x2ce   : > { %v2047_v48 = vsel %vm1472_vm1, %v12669_v32, %v2046_v59  ;;  %v2049_v54 = vsel %vm1472_vm1, %v12671_v9, %v2048_v4  ;;  %v9574_v15 = vpop.eup %6262  ;;  %v12674_v59 = vrot.slane %v9441_v28, 2  ;;  %v3337_v32 = vmul.f32 %v12675_v25, %v12665_v60 }
 0x2cf   : > { %v2218_v10 = vadd.f32 %v2047_v48, %v1731_v34  ;;  %v2219_v51 = vadd.f32 %v2049_v54, %v1732_v21  ;;  %v2534_v47 = vsel %vm1472_vm1, %v12672_v20, %v2533_v61  ;;  %v2536_v62 = vsel %vm1472_vm1, %v12673_v42, %v2535_v55  ;;  %v9581_v21 = vpop.eup %6264 }
 0x2d0   : > { %v3076_v4 = vsel %vm2988_vm4, %v12674_v59, %v3075_v41  ;;  %v3562_v34 = vrot.slane %v3336_v45, 2  ;;  %v4737_v11 = vmul.f32 1.0614054, %v9574_v15  ;;  %v3823_v30 = vmul.f32 %v7077_v0, %v12666_v50 }
 0x2d1   : > { %v2705_v61 = vadd.f32 %v2534_v47, %v2218_v10  ;;  %v2706_v48 = vadd.f32 %v2536_v62, %v2219_v51  ;;  %v4738_v55 = vmul.f32 1.0614054, %v9581_v21  ;;  %v12676_v28 = vrot.slane %v9446_v8, 2  ;;  %v12679_v8 = vld [vmem:[#allocation43_spill] sm:$0xff] }
 0x2d2   : > { %v12677_v35 = vrot.slane %v9457_v39, 2  ;;  %v3564_v54 = vrot.slane %v3337_v32, 2  ;;  %v4801_v41 = vadd.f32 -1.4531521, %v4737_v11  ;;  %v3824_v10 = vmul.f32 %v7079_v5, %v12667_v56 }
 0x2d3   : > { %v3078_v27 = vsel %vm2988_vm4, %v12676_v28, %v3077_v40  ;;  %v3247_v45 = vadd.f32 %v3076_v4, %v2705_v61  ;;  %v4802_v51 = vadd.f32 -1.4531521, %v4738_v55  ;;  %v12678_v47 = vrot.slane %v9461_v18, 2  ;;  %v12682_v55 = vld [vmem:[#allocation49_spill] sm:$0xff] }
 0x2d4   : > { %v3563_v9 = vsel %vm2988_vm4, %v12677_v35, %v3562_v34  ;;  %v3248_v20 = vadd.f32 %v3078_v27, %v2706_v48  ;;  %v4049_v62 = vrot.slane %v3823_v30, 2  ;;  %v921_v59 = vmul.f32 %v6917_v23, %v12679_v8  ;;  %v12681_v48 = vld [vmem:[#allocation44_spill] sm:$0xff] }
 0x2d5   : > { %v3565_v42 = vsel %vm2988_vm4, %v12678_v47, %v3564_v54  ;;  %v4865_v39 = vmul.f32 %v9574_v15, %v4801_v41  ;;  %v3734_v40 = vadd.f32 %v3563_v9, %v3247_v45  ;;  %v4051_v32 = vrot.slane %v3824_v10, 2  ;;  %v12684_v54 = vld [vmem:[#allocation50_spill] sm:$0xff]  ;;  %v12685_v10 = vld [vmem:[#allocation55_spill] sm:$0xff] }
 0x2d6   : > { %v3735_v34 = vadd.f32 %v3565_v42, %v3248_v20  ;;  %v4866_v4 = vmul.f32 %v9581_v21, %v4802_v51  ;;  %v12680_v11 = vrot.slane %v9482_v46, 2  ;;  %v922_v18 = vmul.f32 %v6930_v19, %v12681_v48 }
 0x2d7   : > { %v992_v30 = vmul.f32 %v6933_v14, %v12682_v55  ;;  %v4929_v28 = vadd.f32 1.4214138, %v4865_v39  ;;  %v12683_v27 = vrot.slane %v9489_v36, 2  ;;  %v993_v41 = vmul.f32 %v12351_v49, %v12684_v54 }
 0x2d8   : > { %v4050_v61 = vsel %vm2988_vm4, %v12680_v11, %v4049_v62  ;;  %v4930_v45 = vadd.f32 1.4214138, %v4866_v4  ;;  %v1127_v51 = vmul.f32 %v6941_v22, %v12685_v10  ;;  %v9617_v47 = vmul.f32 0.5, %v9513_v38 }
 0x2d9   : > { %v4052_v35 = vsel %vm2988_vm4, %v12683_v27, %v4051_v32  ;;  %v4221_v9 = vadd.f32 %v4050_v61, %v3734_v40  ;;  %v1056_v46 = vadd.f32 %v992_v30, %v921_v59  ;;  %v9620_v42 = vmul.f32 0.5, %v9518_v26 }
 0x2da   : > { %v4222_v20 = vadd.f32 %v4052_v35, %v3735_v34  ;;  %v4993_v36 = vmul.f32 %v9574_v15, %v4929_v28  ;;  %v4994_v39 = vmul.f32 %v9581_v21, %v4930_v45  ;;  %v1057_v59 = vadd.f32 %v993_v41, %v922_v18  ;;  %v12686_v34 = vld [vmem:[#allocation56_spill] sm:$0xff] }
 0x2db   : > { %v9624_v62 = vadd.f32 %v7119_v6, %v4221_v9  ;;  %v1128_v32 = vmul.f32 %v6960_v31, %v12686_v34  ;;  %6266 = vpow2.f32 %v5473_v44  ;;  %v1334_v26 = vmul.f32 %v6966_v58, %v12679_v8 }
 0x2dc   : > { %v9628_v40 = vadd.f32 %v7127_v16, %v4222_v20  ;;  %v5057_v4 = vadd.f32 -0.28449672, %v4993_v36  ;;  %v5058_v11 = vadd.f32 -0.28449672, %v4994_v39  ;;  %6268 = vpow2.f32 %v5475_v7 }
 0x2dd   : > { %v9633_v38 = vmul.f32 0.70710677, %v9624_v62  ;;  %v1191_v30 = vadd.f32 %v1127_v51, %v1056_v46  ;;  %v1335_v27 = vmul.f32 %v12659_v52, %v12681_v48  ;;  %v9646_v44 = vmul.f32 %v6966_v58, %v12646_v13 }
 0x2de   : > { %v9638_v61 = vmul.f32 0.70710677, %v9628_v40  ;;  %v5121_v28 = vmul.f32 %v9574_v15, %v5057_v4  ;;  %v5122_v35 = vmul.f32 %v9581_v21, %v5058_v11  ;;  %v1192_v7 = vadd.f32 %v1128_v32, %v1057_v59 }
 0x2df   : > { %v4483_v18 = vand.u32 2147483647, %v9633_v38  ;;  %v9652_v9 = vmul.f32 %v12659_v52, %v12648_v17  ;;  %v1563_v46 = vrot.slane %v1334_v26, 1  ;;  %vm5697_vm9 = vcmp.lt.f32.partialorder %v9527_v1, 0.0 }
 0x2e0   : > { %v4484_v8 = vand.u32 2147483647, %v9638_v61  ;;  %v5185_v41 = vadd.f32 0.2548296, %v5121_v28  ;;  %v5186_v51 = vadd.f32 0.2548296, %v5122_v35 }
 0x2e1   : > { %v4547_v45 = vmul.f32 0.3275911, %v4483_v18  ;;  %v5315_v20 = vsub.f32 0.0, %v4483_v18  ;;  %v12049_v39 = vrot.slane %v9646_v44, 1  ;;  %v6267_v4 = vpop.eup %6266  ;;  %vm5698_vm10 = vcmp.lt.f32.partialorder %v9531_v33, 0.0 }
 0x2e2   : > { %v4548_v48 = vmul.f32 0.3275911, %v4484_v8  ;;  %v5316_v36 = vsub.f32 0.0, %v4484_v8  ;;  %v5249_v11 = vmul.f32 %v9574_v15, %v5185_v41  ;;  %v1566_v29 = vrot.slane %v1335_v27, 1  ;;  %v6269_v43 = vpop.eup %6268 }
 0x2e3   : > { %v4611_v59 = vadd.f32 1.0, %v4547_v45  ;;  %v5379_v32 = vmul.f32 %v5315_v20, %v4483_v18  ;;  %v5250_v28 = vmul.f32 %v9581_v21, %v5186_v51  ;;  %v1565_v35 = vsel %vm1472_vm1, %v1563_v46, %v12049_v39 }
 0x2e4   : > { %v4612_v56 = vadd.f32 1.0, %v4548_v48  ;;  %v5380_v26 = vmul.f32 %v5316_v36, %v4484_v8  ;;  %v5569_v50 = vmul.f32 %v6267_v4, %v5249_v11  ;;  %v12048_v60 = vrot.slane %v9652_v9, 1 }
 0x2e5   : > { %6270 = vrcp.f32 %v4611_v59  ;;  %v5477_v52 = vmul.f32 1.442695, %v5379_v32  ;;  %v5570_v15 = vmul.f32 %v6269_v43, %v5250_v28  ;;  %v1733_v45 = vadd.f32 %v1565_v35, %v1191_v30  ;;  %v12687_v43 = vld [vmem:[#allocation53_spill] sm:$0xff]  ;;  %v12691_v28 = vld [vmem:[#allocation70_spill] sm:$0xff] }
 0x2e6   : > { %6272 = vrcp.f32 %v4612_v56  ;;  %v5479_v41 = vmul.f32 1.442695, %v5380_v26  ;;  %v5633_v18 = vsub.f32 1.0, %v5569_v50  ;;  %v1568_v21 = vsel %vm1472_vm1, %v1566_v29, %v12048_v60  ;;  %v12689_v50 = vld [vmem:[#allocation54_spill] sm:$0xff] }
 0x2e7   : > { %6274 = vpow2.f32 %v5477_v52  ;;  %v1822_v27 = vmul.f32 %v6972_v12, %v12682_v55  ;;  %v5634_v8 = vsub.f32 1.0, %v5570_v15  ;;  %v1734_v20 = vadd.f32 %v1568_v21, %v1192_v7 }
 0x2e8   : > { %6276 = vpow2.f32 %v5479_v41  ;;  %v1823_v46 = vmul.f32 %v12357_v63, %v12684_v54  ;;  %v5761_v51 = vsub.f32 0.0, %v5633_v18  ;;  %v9672_v56 = vmul.f32 %v6972_v12, %v12687_v43 }
 0x2e9   : > { %v9676_v52 = vmul.f32 %v12357_v63, %v12689_v50  ;;  %v2050_v30 = vrot.slane %v1822_v27, 1  ;;  %v5762_v29 = vsub.f32 0.0, %v5634_v8  ;;  %v2309_v36 = vmul.f32 %v7007_v37, %v12685_v10  ;;  %v12692_v27 = vld [vmem:[#allocation71_spill] sm:$0xff] }
 0x2ea   : > { %12688 = vst [vmem:[#allocation37_spill] sm:$0xff] %v9672_v56  ;;  %v2053_v48 = vrot.slane %v1823_v46, 1  ;;  %v2310_v7 = vmul.f32 %v7009_v53, %v12686_v34  ;;  %v5825_v11 = vsel %vm5697_vm9, %v5761_v51, %v5633_v18  ;;  %v12055_v59 = vrot.slane %v9672_v56, 1 }
 0x2eb   : > { %12690 = vst [vmem:[#allocation16_spill] sm:$0xff] %v9676_v52  ;;  %v9682_v4 = vpop.eup %6270  ;;  %v12056_v32 = vrot.slane %v9676_v52, 1  ;;  %v9690_v26 = vmul.f32 %v7007_v37, %v12691_v28  ;;  %v5826_v15 = vsel %vm5698_vm10, %v5762_v29, %v5634_v8  ;;  %v5889_v41 = vadd.f32 1.0, %v5825_v11  ;;  %v2746_v8 = vld [vmem:[#allocation2 + $0x110] sm:$0xee] }
 0x2ec   : > { %v9692_v35 = vpop.eup %6272  ;;  %v4739_v21 = vmul.f32 1.0614054, %v9682_v4  ;;  %v9699_v1 = vmul.f32 %v7009_v53, %v12692_v27  ;;  %v5890_v46 = vadd.f32 1.0, %v5826_v15  ;;  %v2052_v60 = vsel %vm1472_vm1, %v2050_v30, %v12055_v59 }
 0x2ed   : > { %v9701_v18 = vpop.eup %6274  ;;  %v4740_v51 = vmul.f32 1.0614054, %v9692_v35  ;;  %v2055_v33 = vsel %vm1472_vm1, %v2053_v48, %v12056_v32  ;;  %v5953_v11 = vmul.f32 %v5889_v41, %v9617_v47  ;;  %v2220_v34 = vadd.f32 %v2052_v60, %v1733_v45 }
 0x2ee   : > { %v9710_v29 = vpop.eup %6276  ;;  %v4803_v39 = vadd.f32 -1.4531521, %v4739_v21  ;;  %v2221_v10 = vadd.f32 %v2055_v33, %v1734_v20  ;;  %v5954_v15 = vmul.f32 %v5890_v46, %v9620_v42  ;;  %v2537_v55 = vrot.slane %v2309_v36, 1  ;;  %v12695_v36 = vld [vmem:[#allocation33_spill] sm:$0xff]  ;;  %v12696_v46 = vld [vmem:[#allocation27_spill] sm:$0xff] }
 0x2ef   : > { %v4804_v54 = vadd.f32 -1.4531521, %v4740_v51  ;;  %v12059_v56 = vrot.slane %v9690_v26, 1  ;;  %v2540_v59 = vrot.slane %v2310_v7, 1  ;;  %v12058_v48 = vrot.slane %v9699_v1, 1 }
 0x2f0   : > { %v4867_v30 = vmul.f32 %v9682_v4, %v4803_v39  ;;  %v9717_v32 = vunpack.c.l.bf16 %v2746_v8  ;;  %v6001_v52 = vpack.c.bf16 %v5954_v15, %v5953_v11  ;;  %v9723_v42 = vunpack.c.h.bf16 %v2746_v8  ;;  %v12698_v15 = vld [vmem:[#allocation12_spill] sm:$0xff] }
 0x2f1   : > { %v4868_v47 = vmul.f32 %v9692_v35, %v4804_v54  ;;  %v2539_v60 = vsel %vm1472_vm1, %v2537_v55, %v12059_v56  ;;  %v2542_v20 = vsel %vm1472_vm1, %v2540_v59, %v12058_v48  ;;  %v2850_v7 = vmul.f32 %v7046_v24, %v12695_v36  ;;  %v12697_v59 = vld [vmem:[#allocation26_spill] sm:$0xff] }
 0x2f2   : > { %12693 = vst [vmem:[#allocation6_spill] sm:$0xff] %v9717_v32  ;;  %v4931_v45 = vadd.f32 1.4214138, %v4867_v30  ;;  %v2707_v39 = vadd.f32 %v2539_v60, %v2220_v34  ;;  %v2708_v21 = vadd.f32 %v2542_v20, %v2221_v10  ;;  %v2851_v54 = vmul.f32 %v7057_v2, %v12696_v46 }
 0x2f3   : > { %12694 = vst [vmem:[#allocation23_spill] sm:$0xff] %v9723_v42  ;;  %v4932_v41 = vadd.f32 1.4214138, %v4868_v47  ;;  %v9735_v55 = vmul.f32 %v7046_v24, %v12646_v13  ;;  %v9740_v33 = vmul.f32 %v7057_v2, %v12648_v17  ;;  %v3079_v34 = vrot.slane %v2850_v7, 2 }
 0x2f4   : > { %6033 = vst [vmem:[%s7389_s16 + $0x80] sm:$0xff] %v6001_v52  ;;  %v4995_v51 = vmul.f32 %v9682_v4, %v4931_v45  ;;  %v3338_v8 = vmul.f32 %v7072_v3, %v12697_v59  ;;  %v3082_v11 = vrot.slane %v2851_v54, 2  ;;  %v3339_v30 = vmul.f32 %v12675_v25, %v12698_v15 }
 0x2f5   : > { %v4996_v52 = vmul.f32 %v9692_v35, %v4932_v41  ;;  %v12063_v10 = vrot.slane %v9735_v55, 2  ;;  %v12062_v60 = vrot.slane %v9740_v33, 2  ;;  %v9751_v45 = vmul.f32 %v7072_v3, %v12687_v43 }
 0x2f6   : > { %v5059_v47 = vadd.f32 -0.28449672, %v4995_v51  ;;  %v9755_v20 = vmul.f32 %v12675_v25, %v12689_v50  ;;  %v3566_v41 = vrot.slane %v3338_v8, 2  ;;  %v3569_v46 = vrot.slane %v3339_v30, 2 }
 0x2f7   : > { %v5060_v36 = vadd.f32 -0.28449672, %v4996_v52  ;;  %v3081_v7 = vsel %vm2988_vm4, %v3079_v34, %v12063_v10  ;;  %v3084_v51 = vsel %vm2988_vm4, %v3082_v11, %v12062_v60  ;;  %v12061_v56 = vrot.slane %v9751_v45, 2 }
 0x2f8   : > { %v5123_v54 = vmul.f32 %v9682_v4, %v5059_v47  ;;  %v3249_v48 = vadd.f32 %v3081_v7, %v2707_v39  ;;  %v3250_v59 = vadd.f32 %v3084_v51, %v2708_v21  ;;  %v12066_v52 = vrot.slane %v9755_v20, 2 }
 0x2f9   : > { %v5124_v15 = vmul.f32 %v9692_v35, %v5060_v36  ;;  %v3825_v25 = vmul.f32 %v7077_v0, %v9717_v32  ;;  %v3568_v8 = vsel %vm2988_vm4, %v3566_v41, %v12061_v56  ;;  %v3826_v30 = vmul.f32 %v7079_v5, %v9723_v42 }
 0x2fa   : > { %v5187_v34 = vadd.f32 0.2548296, %v5123_v54  ;;  %v9776_v39 = vmul.f32 %v7077_v0, %v12691_v28  ;;  %v3571_v21 = vsel %vm2988_vm4, %v3569_v46, %v12066_v52  ;;  %v3736_v47 = vadd.f32 %v3568_v8, %v3249_v48 }
 0x2fb   : > { %v5188_v11 = vadd.f32 0.2548296, %v5124_v15  ;;  %v9783_v36 = vmul.f32 %v7079_v5, %v12692_v27  ;;  %v3737_v41 = vadd.f32 %v3571_v21, %v3250_v59  ;;  %v4053_v54 = vrot.slane %v3825_v25, 2 }
 0x2fc   : > { %v5251_v7 = vmul.f32 %v9682_v4, %v5187_v34  ;;  %v12065_v51 = vrot.slane %v9776_v39, 2  ;;  %v4056_v60 = vrot.slane %v3826_v30, 2  ;;  %v923_v10 = vmul.f32 %v6917_v23, %v12646_v13 }
 0x2fd   : > { %v5252_v56 = vmul.f32 %v9692_v35, %v5188_v11  ;;  %v12064_v15 = vrot.slane %v9783_v36, 2  ;;  %v924_v4 = vmul.f32 %v6930_v19, %v12648_v17  ;;  %v994_v25 = vmul.f32 %v6933_v14, %v12687_v43 }
 0x2fe   : > { %v5571_v48 = vmul.f32 %v9701_v18, %v5251_v7  ;;  %v4055_v46 = vsel %vm2988_vm4, %v4053_v54, %v12065_v51  ;;  %v995_v13 = vmul.f32 %v12351_v49, %v12689_v50  ;;  %v4355_v18 = vmul.f32 0.5, %v9624_v62 }
 0x2ff   : > { %v5572_v35 = vmul.f32 %v9710_v29, %v5252_v56  ;;  %v4058_v59 = vsel %vm2988_vm4, %v4056_v60, %v12064_v15  ;;  %v4223_v34 = vadd.f32 %v4055_v46, %v3736_v47  ;;  %v1058_v11 = vadd.f32 %v994_v25, %v923_v10  ;;  %v12700_v25 = vld [vmem:[#allocation62_spill] sm:$0xff] }
 0x300   : > { %v5635_v8 = vsub.f32 1.0, %v5571_v48  ;;  %v4224_v30 = vadd.f32 %v4058_v59, %v3737_v41  ;;  %v1059_v7 = vadd.f32 %v995_v13, %v924_v4  ;;  %v1129_v56 = vmul.f32 %v6941_v22, %v12691_v28  ;;  %v12699_v4 = vld [vmem:[#allocation59_spill] sm:$0xff] }
 0x301   : > { %v5636_v21 = vsub.f32 1.0, %v5572_v35  ;;  %v9807_v17 = vadd.f32 %v7119_v6, %v4223_v34  ;;  %v1130_v47 = vmul.f32 %v6960_v31, %v12692_v27  ;;  %v1338_v62 = vmul.f32 %v6966_v58, %v12664_v57 }
 0x302   : > { %v5763_v29 = vsub.f32 0.0, %v5635_v8  ;;  %v9812_v60 = vadd.f32 %v7127_v16, %v4224_v30  ;;  %v4356_v10 = vmul.f32 0.5, %v9628_v40  ;;  %vm5699_vm11 = vcmp.lt.f32.partialorder %v9633_v38, 0.0  ;;  %v1232_v30 = vld [vmem:[#allocation2 + $0xe0] sm:$0x11] }
 0x303   : > { %v5764_v41 = vsub.f32 0.0, %v5636_v21  ;;  %v9821_v54 = vmul.f32 0.70710677, %v9807_v17  ;;  %vm5700_vm12 = vcmp.lt.f32.partialorder %v9638_v61, 0.0  ;;  %v1339_v35 = vmul.f32 %v12700_v25, %v12699_v4 }
 0x304   : > { %v5827_v48 = vsel %vm5699_vm11, %v5763_v29, %v5635_v8  ;;  %v9825_v46 = vmul.f32 0.70710677, %v9812_v60  ;;  %v1193_v40 = vadd.f32 %v1129_v56, %v1058_v11  ;;  %v1194_v51 = vadd.f32 %v1130_v47, %v1059_v7 }
 0x305   : > { %v5828_v59 = vsel %vm5700_vm12, %v5764_v41, %v5636_v21  ;;  %v5891_v34 = vadd.f32 1.0, %v5827_v48  ;;  %v4485_v13 = vand.u32 2147483647, %v9821_v54  ;;  %v1569_v52 = vrot.slane %v1338_v62, 1 }
 0x306   : > { %v5892_v38 = vadd.f32 1.0, %v5828_v59  ;;  %v4486_v15 = vand.u32 2147483647, %v9825_v46  ;;  %v1571_v29 = vrot.slane %v1339_v35, 1  ;;  %v12701_v21 = vrot.slane %v9646_v44, 1 }
 0x307   : > { %v5955_v42 = vmul.f32 %v5891_v34, %v4355_v18  ;;  %v4549_v61 = vmul.f32 0.3275911, %v4485_v13  ;;  %v5317_v8 = vsub.f32 0.0, %v4485_v13  ;;  %v9834_v48 = vunpack.c.l.bf16 %v1232_v30  ;;  %v12705_v34 = vld [vmem:[#allocation7_spill] sm:$0xff] }
 0x308   : > { %v5956_v32 = vmul.f32 %v5892_v38, %v4356_v10  ;;  %v4550_v27 = vmul.f32 0.3275911, %v4486_v15  ;;  %v5318_v28 = vsub.f32 0.0, %v4486_v15  ;;  %v1570_v41 = vsel %vm1472_vm1, %v12701_v21, %v1569_v52  ;;  %v12706_v38 = vld [vmem:[#allocation8_spill] sm:$0xff] }
 0x309   : > { %12702 = vst [vmem:[#allocation24_spill] sm:$0xff] %v9834_v48  ;;  %v4613_v11 = vadd.f32 1.0, %v4549_v61  ;;  %v5381_v56 = vmul.f32 %v5317_v8, %v4485_v13  ;;  %v12703_v59 = vrot.slane %v9652_v9, 1  ;;  %v9839_v18 = vunpack.c.h.bf16 %v1232_v30  ;;  %v12707_v61 = vld [vmem:[#allocation5_spill] sm:$0xff]  ;;  %v12708_v8 = vld [vmem:[#allocation3_spill] sm:$0xff] }
 0x30a   : > { %v6002_v47 = vpack.c.bf16 %v5956_v32, %v5955_v42  ;;  %v4614_v62 = vadd.f32 1.0, %v4550_v27  ;;  %v5382_v10 = vmul.f32 %v5318_v28, %v4486_v15  ;;  %v1735_v35 = vadd.f32 %v1570_v41, %v1193_v40  ;;  %v12709_v41 = vld [vmem:[#allocation37_spill] sm:$0xff] }
 0x30b   : > { %v1572_v7 = vsel %vm1472_vm1, %v12703_v59, %v1571_v29  ;;  %12704 = vst [vmem:[#allocation35_spill] sm:$0xff] %v9839_v18  ;;  %6278 = vrcp.f32 %v4613_v11  ;;  %v1826_v44 = vmul.f32 %v6972_v12, %v12705_v34  ;;  %v1827_v52 = vmul.f32 %v12357_v63, %v12706_v38  ;;  %v12711_v59 = vld [vmem:[#allocation16_spill] sm:$0xff] }
 0x30c   : > { %6034 = vst [vmem:[%s7389_s16 + $0x88] sm:$0xff] %v6002_v47  ;;  %6280 = vrcp.f32 %v4614_v62  ;;  %v1736_v13 = vadd.f32 %v1572_v7, %v1194_v51  ;;  %v2313_v9 = vmul.f32 %v7007_v37, %v12707_v61  ;;  %v2314_v30 = vmul.f32 %v7009_v53, %v12708_v8 }
 0x30d   : > { %v5481_v32 = vmul.f32 1.442695, %v5381_v56  ;;  %v2056_v27 = vrot.slane %v1826_v44, 1  ;;  %v2058_v28 = vrot.slane %v1827_v52, 1  ;;  %v2854_v42 = vmul.f32 %v7046_v24, %v12664_v57 }
 0x30e   : > { %v5483_v15 = vmul.f32 1.442695, %v5382_v10  ;;  %v2543_v40 = vrot.slane %v2313_v9, 1  ;;  %v2545_v29 = vrot.slane %v2314_v30, 1  ;;  %v2855_v21 = vmul.f32 %v7057_v2, %v12699_v4 }
 0x30f   : > { %v12710_v51 = vrot.slane %v12709_v41, 1  ;;  %v12712_v7 = vrot.slane %v12711_v59, 1  ;;  %v3085_v56 = vrot.slane %v2854_v42, 2  ;;  %v3342_v62 = vmul.f32 %v7072_v3, %v12705_v34  ;;  %v12716_v41 = vld [vmem:[#allocation68_spill] sm:$0xff] }
 0x310   : > { %v12713_v10 = vrot.slane %v9690_v26, 1  ;;  %v12714_v4 = vrot.slane %v9699_v1, 1  ;;  %v3087_v42 = vrot.slane %v2855_v21, 2  ;;  %v3829_v1 = vmul.f32 %v7077_v0, %v12707_v61 }
 0x311   : > { %v2057_v11 = vsel %vm1472_vm1, %v12710_v51, %v2056_v27  ;;  %v2059_v47 = vsel %vm1472_vm1, %v12712_v7, %v2058_v28  ;;  %v9868_v30 = vpop.eup %6278  ;;  %v12715_v27 = vrot.slane %v9735_v55, 2  ;;  %v3343_v51 = vmul.f32 %v12716_v41, %v12706_v38 }
 0x312   : > { %v2222_v44 = vadd.f32 %v2057_v11, %v1735_v35  ;;  %v2223_v57 = vadd.f32 %v2059_v47, %v1736_v13  ;;  %v2544_v52 = vsel %vm1472_vm1, %v12713_v10, %v2543_v40  ;;  %v2546_v9 = vsel %vm1472_vm1, %v12714_v4, %v2545_v29  ;;  %v9875_v13 = vpop.eup %6280 }
 0x313   : > { %v3086_v28 = vsel %vm2988_vm4, %v12715_v27, %v3085_v56  ;;  %v3572_v35 = vrot.slane %v3342_v62, 2  ;;  %v4741_v26 = vmul.f32 1.0614054, %v9868_v30  ;;  %v4742_v29 = vmul.f32 1.0614054, %v9875_v13 }
 0x314   : > { %v2709_v40 = vadd.f32 %v2544_v52, %v2222_v44  ;;  %v2710_v11 = vadd.f32 %v2546_v9, %v2223_v57  ;;  %v12717_v55 = vrot.slane %v9740_v33, 2  ;;  %v12718_v21 = vrot.slane %v9751_v45, 2  ;;  %v12720_v33 = vld [vmem:[#allocation49_spill] sm:$0xff] }
 0x315   : > { %v3574_v47 = vrot.slane %v3343_v51, 2  ;;  %v4805_v56 = vadd.f32 -1.4531521, %v4741_v26  ;;  %v3830_v44 = vmul.f32 %v7079_v5, %v12708_v8  ;;  %v4806_v57 = vadd.f32 -1.4531521, %v4742_v29  ;;  %v12723_v29 = vld [vmem:[#allocation55_spill] sm:$0xff] }
 0x316   : > { %v3088_v59 = vsel %vm2988_vm4, %v12717_v55, %v3087_v42  ;;  %v3573_v7 = vsel %vm2988_vm4, %v12718_v21, %v3572_v35  ;;  %v3251_v62 = vadd.f32 %v3086_v28, %v2709_v40  ;;  %v12719_v52 = vrot.slane %v9755_v20, 2 }
 0x317   : > { %v3252_v10 = vadd.f32 %v3088_v59, %v2710_v11  ;;  %v4059_v9 = vrot.slane %v3829_v1, 2  ;;  %v925_v27 = vmul.f32 %v6917_v23, %v12720_v33  ;;  %v4869_v45 = vmul.f32 %v9868_v30, %v4805_v56  ;;  %v12722_v11 = vld [vmem:[#allocation50_spill] sm:$0xff] }
 0x318   : > { %v3575_v4 = vsel %vm2988_vm4, %v12719_v52, %v3574_v47  ;;  %v3738_v42 = vadd.f32 %v3573_v7, %v3251_v62  ;;  %v4061_v51 = vrot.slane %v3830_v44, 2  ;;  %v4870_v28 = vmul.f32 %v9875_v13, %v4806_v57  ;;  %v12725_v47 = vld [vmem:[#allocation56_spill] sm:$0xff] }
 0x319   : > { %v3739_v35 = vadd.f32 %v3575_v4, %v3252_v10  ;;  %v12721_v26 = vrot.slane %v9776_v39, 2  ;;  %v926_v20 = vmul.f32 %v6930_v19, %v12722_v11  ;;  %v996_v1 = vmul.f32 %v6933_v14, %v12723_v29  ;;  %v12726_v44 = vld [vmem:[#allocation72_spill] sm:$0xff] }
 0x31a   : > { %v4933_v55 = vadd.f32 1.4214138, %v4869_v45  ;;  %v12724_v59 = vrot.slane %v9783_v36, 2  ;;  %v997_v56 = vmul.f32 %v12351_v49, %v12725_v47  ;;  %v4934_v62 = vadd.f32 1.4214138, %v4870_v28 }
 0x31b   : > { %v4060_v40 = vsel %vm2988_vm4, %v12721_v26, %v4059_v9  ;;  %v1060_v39 = vadd.f32 %v996_v1, %v925_v27  ;;  %v1131_v57 = vmul.f32 %v6941_v22, %v12726_v44  ;;  %v9911_v52 = vmul.f32 0.5, %v9807_v17 }
 0x31c   : > { %v4062_v21 = vsel %vm2988_vm4, %v12724_v59, %v4061_v51  ;;  %v4225_v7 = vadd.f32 %v4060_v40, %v3738_v42  ;;  %v9914_v4 = vmul.f32 0.5, %v9812_v60  ;;  %v4997_v36 = vmul.f32 %v9868_v30, %v4933_v55 }
 0x31d   : > { %v4226_v10 = vadd.f32 %v4062_v21, %v3739_v35  ;;  %v4998_v45 = vmul.f32 %v9875_v13, %v4934_v62  ;;  %v1061_v27 = vadd.f32 %v997_v56, %v926_v20  ;;  %v12727_v35 = vld [vmem:[#allocation73_spill] sm:$0xff]  ;;  %6282 = vpow2.f32 %v5481_v32 }
 0x31e   : > { %v9918_v9 = vadd.f32 %v7119_v6, %v4225_v7  ;;  %v1132_v51 = vmul.f32 %v6960_v31, %v12727_v35  ;;  %v5061_v28 = vadd.f32 -0.28449672, %v4997_v36  ;;  %v1340_v60 = vmul.f32 %v6966_v58, %v12720_v33 }
 0x31f   : > { %v9922_v42 = vadd.f32 %v7127_v16, %v4226_v10  ;;  %v5062_v26 = vadd.f32 -0.28449672, %v4998_v45  ;;  %6284 = vpow2.f32 %v5483_v15  ;;  %v1195_v1 = vadd.f32 %v1131_v57, %v1060_v39 }
 0x320   : > { %v9927_v17 = vmul.f32 0.70710677, %v9918_v9  ;;  %v5125_v55 = vmul.f32 %v9868_v30, %v5061_v28  ;;  %v1341_v59 = vmul.f32 %v12700_v25, %v12722_v11  ;;  %v9940_v32 = vmul.f32 %v6966_v58, %v12687_v43 }
 0x321   : > { %v9932_v40 = vmul.f32 0.70710677, %v9922_v42  ;;  %v5126_v21 = vmul.f32 %v9875_v13, %v5062_v26  ;;  %v1196_v15 = vadd.f32 %v1132_v51, %v1061_v27  ;;  %v9946_v7 = vmul.f32 %v12700_v25, %v12689_v50 }
 0x322   : > { %v4487_v20 = vand.u32 2147483647, %v9927_v17  ;;  %v5189_v56 = vadd.f32 0.2548296, %v5125_v55  ;;  %v1573_v39 = vrot.slane %v1340_v60, 1  ;;  %vm5701_vm13 = vcmp.lt.f32.partialorder %v9821_v54, 0.0 }
 0x323   : > { %v4488_v33 = vand.u32 2147483647, %v9932_v40  ;;  %v5190_v57 = vadd.f32 0.2548296, %v5126_v21  ;;  %v12080_v45 = vrot.slane %v9940_v32, 1  ;;  %v6283_v28 = vpop.eup %6282  ;;  %vm5702_vm14 = vcmp.lt.f32.partialorder %v9825_v46, 0.0 }
 0x324   : > { %v4551_v62 = vmul.f32 0.3275911, %v4487_v20  ;;  %v5319_v10 = vsub.f32 0.0, %v4487_v20  ;;  %v5253_v26 = vmul.f32 %v9868_v30, %v5189_v56  ;;  %v1576_v18 = vrot.slane %v1341_v59, 1 }
 0x325   : > { %v4552_v11 = vmul.f32 0.3275911, %v4488_v33  ;;  %v5320_v36 = vsub.f32 0.0, %v4488_v33  ;;  %v6285_v48 = vpop.eup %6284  ;;  %v5254_v55 = vmul.f32 %v9875_v13, %v5190_v57  ;;  %v1575_v21 = vsel %vm1472_vm1, %v1573_v39, %v12080_v45 }
 0x326   : > { %v4615_v27 = vadd.f32 1.0, %v4551_v62  ;;  %v5383_v51 = vmul.f32 %v5319_v10, %v4487_v20  ;;  %v5573_v61 = vmul.f32 %v6283_v28, %v5253_v26  ;;  %v12079_v38 = vrot.slane %v9946_v7, 1 }
 0x327   : > { %v4616_v8 = vadd.f32 1.0, %v4552_v11  ;;  %v5384_v60 = vmul.f32 %v5320_v36, %v4488_v33  ;;  %v5574_v30 = vmul.f32 %v6285_v48, %v5254_v55  ;;  %v1737_v62 = vadd.f32 %v1575_v21, %v1195_v1  ;;  %v12728_v48 = vld [vmem:[#allocation70_spill] sm:$0xff] }
 0x328   : > { %6286 = vrcp.f32 %v4615_v27  ;;  %v5485_v25 = vmul.f32 1.442695, %v5383_v51  ;;  %v5637_v20 = vsub.f32 1.0, %v5573_v61  ;;  %v1578_v13 = vsel %vm1472_vm1, %v1576_v18, %v12079_v38  ;;  %v12730_v61 = vld [vmem:[#allocation71_spill] sm:$0xff]  ;;  %v12732_v55 = vld [vmem:[#allocation74_spill] sm:$0xff] }
 0x329   : > { %6288 = vrcp.f32 %v4616_v8  ;;  %v5487_v56 = vmul.f32 1.442695, %v5384_v60  ;;  %v1828_v59 = vmul.f32 %v6972_v12, %v12723_v29  ;;  %v5638_v33 = vsub.f32 1.0, %v5574_v30 }
 0x32a   : > { %6290 = vpow2.f32 %v5485_v25  ;;  %v1738_v10 = vadd.f32 %v1578_v13, %v1196_v15  ;;  %v1829_v39 = vmul.f32 %v12357_v63, %v12725_v47  ;;  %v5765_v57 = vsub.f32 0.0, %v5637_v20 }
 0x32b   : > { %6292 = vpow2.f32 %v5487_v56  ;;  %v9966_v8 = vmul.f32 %v6972_v12, %v12728_v48  ;;  %v9970_v25 = vmul.f32 %v12357_v63, %v12730_v61  ;;  %v2060_v1 = vrot.slane %v1828_v59, 1  ;;  %v12733_v59 = vld [vmem:[#allocation75_spill] sm:$0xff] }
 0x32c   : > { %v5766_v18 = vsub.f32 0.0, %v5638_v33  ;;  %v2063_v11 = vrot.slane %v1829_v39, 1  ;;  %v2315_v36 = vmul.f32 %v7007_v37, %v12726_v44  ;;  %v2316_v15 = vmul.f32 %v7009_v53, %v12727_v35 }
 0x32d   : > { %12729 = vst [vmem:[#allocation36_spill] sm:$0xff] %v9966_v8  ;;  %v5829_v26 = vsel %vm5701_vm13, %v5765_v57, %v5637_v20  ;;  %v12086_v27 = vrot.slane %v9966_v8, 1  ;;  %v12087_v51 = vrot.slane %v9970_v25, 1  ;;  %v9984_v60 = vmul.f32 %v7007_v37, %v12732_v55 }
 0x32e   : > { %12731 = vst [vmem:[#allocation69_spill] sm:$0xff] %v9970_v25  ;;  %v9976_v28 = vpop.eup %6286  ;;  %v5830_v30 = vsel %vm5702_vm14, %v5766_v18, %v5638_v33  ;;  %v5893_v56 = vadd.f32 1.0, %v5829_v26  ;;  %v9993_v54 = vmul.f32 %v7009_v53, %v12733_v59  ;;  %v2747_v33 = vld [vmem:[#allocation2 + $0x20] sm:$0xee]  ;;  %v2547_v29 = vrot.slane %v2315_v36, 1  ;;  %v12736_v36 = vld [vmem:[#allocation26_spill] sm:$0xff] }
 0x32f   : > { %v9986_v21 = vpop.eup %6288  ;;  %v4743_v13 = vmul.f32 1.0614054, %v9976_v28  ;;  %v5894_v39 = vadd.f32 1.0, %v5830_v30  ;;  %v2062_v38 = vsel %vm1472_vm1, %v2060_v1, %v12086_v27  ;;  %v2065_v46 = vsel %vm1472_vm1, %v2063_v11, %v12087_v51 }
 0x330   : > { %v9995_v20 = vpop.eup %6290  ;;  %v4744_v57 = vmul.f32 1.0614054, %v9986_v21  ;;  %v5957_v26 = vmul.f32 %v5893_v56, %v9911_v52  ;;  %v2224_v35 = vadd.f32 %v2062_v38, %v1737_v62  ;;  %v2225_v44 = vadd.f32 %v2065_v46, %v1738_v10 }
 0x331   : > { %v10004_v18 = vpop.eup %6292  ;;  %v4807_v45 = vadd.f32 -1.4531521, %v4743_v13  ;;  %v5958_v30 = vmul.f32 %v5894_v39, %v9914_v4  ;;  %v12090_v8 = vrot.slane %v9984_v60, 1  ;;  %v2550_v27 = vrot.slane %v2316_v15, 1  ;;  %v12737_v39 = vld [vmem:[#allocation12_spill] sm:$0xff] }
 0x332   : > { %v4808_v47 = vadd.f32 -1.4531521, %v4744_v57  ;;  %v12089_v11 = vrot.slane %v9993_v54, 1  ;;  %v10011_v51 = vunpack.c.l.bf16 %v2747_v33  ;;  %v10017_v4 = vunpack.c.h.bf16 %v2747_v33 }
 0x333   : > { %v4871_v1 = vmul.f32 %v9976_v28, %v4807_v45  ;;  %v6003_v25 = vpack.c.bf16 %v5958_v30, %v5957_v26  ;;  %v2549_v38 = vsel %vm1472_vm1, %v2547_v29, %v12090_v8  ;;  %v2856_v15 = vmul.f32 %v7046_v24, %v12736_v36  ;;  %v12739_v30 = vld [vmem:[#allocation23_spill] sm:$0xff] }
 0x334   : > { %12734 = vst [vmem:[#allocation9_spill] sm:$0xff] %v10011_v51  ;;  %v4872_v52 = vmul.f32 %v9986_v21, %v4808_v47  ;;  %v2552_v10 = vsel %vm1472_vm1, %v2550_v27, %v12089_v11  ;;  %v2711_v45 = vadd.f32 %v2549_v38, %v2224_v35  ;;  %v2857_v47 = vmul.f32 %v7057_v2, %v12737_v39  ;;  %v12738_v27 = vld [vmem:[#allocation6_spill] sm:$0xff] }
 0x335   : > { %12735 = vst [vmem:[#allocation38_spill] sm:$0xff] %v10017_v4  ;;  %v4935_v62 = vadd.f32 1.4214138, %v4871_v1  ;;  %v2712_v13 = vadd.f32 %v2552_v10, %v2225_v44  ;;  %v10029_v29 = vmul.f32 %v7046_v24, %v12687_v43  ;;  %v10034_v46 = vmul.f32 %v7057_v2, %v12689_v50 }
 0x336   : > { %6035 = vst [vmem:[%s7389_s16 + $0x90] sm:$0xff] %v6003_v25  ;;  %v4936_v56 = vadd.f32 1.4214138, %v4872_v52  ;;  %v3089_v35 = vrot.slane %v2856_v15, 2  ;;  %v3344_v33 = vmul.f32 %v7072_v3, %v12738_v27  ;;  %v3092_v26 = vrot.slane %v2857_v47, 2 }
 0x337   : > { %v4999_v57 = vmul.f32 %v9976_v28, %v4935_v62  ;;  %v12094_v44 = vrot.slane %v10029_v29, 2  ;;  %v3345_v1 = vmul.f32 %v12716_v41, %v12739_v30  ;;  %v12093_v38 = vrot.slane %v10034_v46, 2 }
 0x338   : > { %v5000_v25 = vmul.f32 %v9986_v21, %v4936_v56  ;;  %v10045_v62 = vmul.f32 %v7072_v3, %v12728_v48  ;;  %v10049_v10 = vmul.f32 %v12716_v41, %v12730_v61  ;;  %v3576_v56 = vrot.slane %v3344_v33, 2 }
 0x339   : > { %v5063_v52 = vadd.f32 -0.28449672, %v4999_v57  ;;  %v3091_v15 = vsel %vm2988_vm4, %v3089_v35, %v12094_v44  ;;  %v3579_v39 = vrot.slane %v3345_v1, 2  ;;  %v3094_v57 = vsel %vm2988_vm4, %v3092_v26, %v12093_v38 }
 0x33a   : > { %v5064_v36 = vadd.f32 -0.28449672, %v5000_v25  ;;  %v3253_v11 = vadd.f32 %v3091_v15, %v2711_v45  ;;  %v12092_v8 = vrot.slane %v10045_v62, 2  ;;  %v3254_v27 = vadd.f32 %v3094_v57, %v2712_v13 }
 0x33b   : > { %v5127_v47 = vmul.f32 %v9976_v28, %v5063_v52  ;;  %v12097_v25 = vrot.slane %v10049_v10, 2  ;;  %v3831_v41 = vmul.f32 %v7077_v0, %v10011_v51  ;;  %v3832_v1 = vmul.f32 %v7079_v5, %v10017_v4 }
 0x33c   : > { %v5128_v30 = vmul.f32 %v9986_v21, %v5064_v36  ;;  %v3578_v33 = vsel %vm2988_vm4, %v3576_v56, %v12092_v8  ;;  %v10070_v45 = vmul.f32 %v7077_v0, %v12732_v55  ;;  %v10077_v36 = vmul.f32 %v7079_v5, %v12733_v59 }
 0x33d   : > { %v5191_v35 = vadd.f32 0.2548296, %v5127_v47  ;;  %v3581_v13 = vsel %vm2988_vm4, %v3579_v39, %v12097_v25  ;;  %v3740_v52 = vadd.f32 %v3578_v33, %v3253_v11  ;;  %v4063_v47 = vrot.slane %v3831_v41, 2 }
 0x33e   : > { %v5192_v26 = vadd.f32 0.2548296, %v5128_v30  ;;  %v3741_v56 = vadd.f32 %v3581_v13, %v3254_v27  ;;  %v12096_v57 = vrot.slane %v10070_v45, 2  ;;  %v4066_v38 = vrot.slane %v3832_v1, 2 }
 0x33f   : > { %v5255_v15 = vmul.f32 %v9976_v28, %v5191_v35  ;;  %v12095_v30 = vrot.slane %v10077_v36, 2  ;;  %v927_v44 = vmul.f32 %v6917_v23, %v12687_v43  ;;  %v928_v28 = vmul.f32 %v6930_v19, %v12689_v50 }
 0x340   : > { %v5256_v8 = vmul.f32 %v9986_v21, %v5192_v26  ;;  %v4065_v39 = vsel %vm2988_vm4, %v4063_v47, %v12096_v57  ;;  %v998_v41 = vmul.f32 %v6933_v14, %v12728_v48  ;;  %v999_v43 = vmul.f32 %v12351_v49, %v12730_v61 }
 0x341   : > { %v5575_v11 = vmul.f32 %v9995_v20, %v5255_v15  ;;  %v4068_v27 = vsel %vm2988_vm4, %v4066_v38, %v12095_v30  ;;  %v4227_v35 = vadd.f32 %v4065_v39, %v3740_v52  ;;  %v4359_v20 = vmul.f32 0.5, %v9918_v9 }
 0x342   : > { %v5576_v21 = vmul.f32 %v10004_v18, %v5256_v8  ;;  %v4228_v1 = vadd.f32 %v4068_v27, %v3741_v56  ;;  %v1062_v26 = vadd.f32 %v998_v41, %v927_v44  ;;  %v1063_v15 = vadd.f32 %v999_v43, %v928_v28  ;;  %v12740_v28 = vld [vmem:[#allocation8_spill] sm:$0xff]  ;;  %v12741_v41 = vld [vmem:[#allocation62_spill] sm:$0xff] }
 0x343   : > { %v5639_v33 = vsub.f32 1.0, %v5575_v11  ;;  %v10101_v50 = vadd.f32 %v7119_v6, %v4227_v35  ;;  %v1133_v8 = vmul.f32 %v6941_v22, %v12732_v55  ;;  %v1134_v52 = vmul.f32 %v6960_v31, %v12733_v59 }
 0x344   : > { %v5640_v13 = vsub.f32 1.0, %v5576_v21  ;;  %v10106_v38 = vadd.f32 %v7127_v16, %v4228_v1  ;;  %v1344_v9 = vmul.f32 %v6966_v58, %v12705_v34  ;;  %v4360_v44 = vmul.f32 0.5, %v9922_v42 }
 0x345   : > { %v5767_v18 = vsub.f32 0.0, %v5639_v33  ;;  %vm5703_vm15 = vcmp.lt.f32.partialorder %v9927_v17, 0.0  ;;  %v10115_v47 = vmul.f32 0.70710677, %v10101_v50  ;;  %vm5704_vm0 = vcmp.lt.f32.partialorder %v9932_v40, 0.0 }
 0x346   : > { %v5768_v56 = vsub.f32 0.0, %v5640_v13  ;;  %v10119_v39 = vmul.f32 0.70710677, %v10106_v38  ;;  %v1345_v21 = vmul.f32 %v12741_v41, %v12740_v28  ;;  %v1197_v42 = vadd.f32 %v1133_v8, %v1062_v26 }
 0x347   : > { %v5831_v11 = vsel %vm5703_vm15, %v5767_v18, %v5639_v33  ;;  %v4489_v43 = vand.u32 2147483647, %v10115_v47  ;;  %v1198_v30 = vadd.f32 %v1134_v52, %v1063_v15  ;;  %v1579_v57 = vrot.slane %v1344_v9, 1 }
 0x348   : > { %v5832_v27 = vsel %vm5704_vm0, %v5768_v56, %v5640_v13  ;;  %v5895_v35 = vadd.f32 1.0, %v5831_v11  ;;  %v4490_v17 = vand.u32 2147483647, %v10119_v39  ;;  %v1581_v33 = vrot.slane %v1345_v21, 1  ;;  %v6396_v56 = vld [vmem:[#allocation2 + $0x178] sm:$0xff] }
 0x349   : > { %v5896_v1 = vadd.f32 1.0, %v5832_v27  ;;  %v4553_v4 = vmul.f32 0.3275911, %v4489_v43  ;;  %v5321_v40 = vsub.f32 0.0, %v4489_v43  ;;  %v12742_v55 = vrot.slane %v9940_v32, 1 }
 0x34a   : > { %v5959_v25 = vmul.f32 %v5895_v35, %v4359_v20  ;;  %v4554_v51 = vmul.f32 0.3275911, %v4490_v17  ;;  %v5322_v59 = vsub.f32 0.0, %v4490_v17  ;;  %v10128_v11 = vunpack.c.l.bf16 %v6396_v56  ;;  %v12746_v35 = vld [vmem:[#allocation5_spill] sm:$0xff] }
 0x34b   : > { %v5960_v18 = vmul.f32 %v5896_v1, %v4360_v44  ;;  %v1580_v13 = vsel %vm1472_vm1, %v12742_v55, %v1579_v57  ;;  %v4617_v26 = vadd.f32 1.0, %v4553_v4  ;;  %v5385_v8 = vmul.f32 %v5321_v40, %v4489_v43  ;;  %v12747_v55 = vld [vmem:[#allocation3_spill] sm:$0xff]  ;;  %v12748_v43 = vld [vmem:[#allocation22_spill] sm:$0xff] }
 0x34c   : > { %12743 = vst [vmem:[#allocation45_spill] sm:$0xff] %v10128_v11  ;;  %v12744_v15 = vrot.slane %v9946_v7, 1  ;;  %v10133_v52 = vunpack.c.h.bf16 %v6396_v56  ;;  %v4618_v44 = vadd.f32 1.0, %v4554_v51  ;;  %v5386_v21 = vmul.f32 %v5322_v59, %v4490_v17  ;;  %v12749_v1 = vld [vmem:[#allocation19_spill] sm:$0xff]  ;;  %v12750_v56 = vld [vmem:[#allocation36_spill] sm:$0xff] }
 0x34d   : > { %v6004_v9 = vpack.c.bf16 %v5960_v18, %v5959_v25  ;;  %6294 = vrcp.f32 %v4617_v26  ;;  %v1739_v27 = vadd.f32 %v1580_v13, %v1197_v42  ;;  %v1832_v32 = vmul.f32 %v6972_v12, %v12746_v35 }
 0x34e   : > { %v1582_v20 = vsel %vm1472_vm1, %v12744_v15, %v1581_v33  ;;  %12745 = vst [vmem:[#allocation11_spill] sm:$0xff] %v10133_v52  ;;  %v1833_v57 = vmul.f32 %v12357_v63, %v12747_v55  ;;  %6296 = vrcp.f32 %v4618_v44  ;;  %v2319_v7 = vmul.f32 %v7007_v37, %v12748_v43  ;;  %v12752_v15 = vld [vmem:[#allocation69_spill] sm:$0xff] }
 0x34f   : > { %6036 = vst [vmem:[%s7389_s16 + $0x98] sm:$0xff] %v6004_v9  ;;  %v1740_v4 = vadd.f32 %v1582_v20, %v1198_v30  ;;  %v2320_v40 = vmul.f32 %v7009_v53, %v12749_v1  ;;  %v5489_v25 = vmul.f32 1.442695, %v5385_v8  ;;  %v2066_v51 = vrot.slane %v1832_v32, 1 }
 0x350   : > { %v2068_v59 = vrot.slane %v1833_v57, 1  ;;  %v2860_v42 = vmul.f32 %v7046_v24, %v12705_v34  ;;  %v5491_v17 = vmul.f32 1.442695, %v5386_v21  ;;  %v2553_v33 = vrot.slane %v2319_v7, 1 }
 0x351   : > { %v2555_v18 = vrot.slane %v2320_v40, 1  ;;  %v2861_v13 = vmul.f32 %v7057_v2, %v12740_v28  ;;  %v12751_v30 = vrot.slane %v12750_v56, 1  ;;  %v12753_v20 = vrot.slane %v12752_v15, 1  ;;  %v12757_v56 = vld [vmem:[#allocation68_spill] sm:$0xff] }
 0x352   : > { %v3095_v8 = vrot.slane %v2860_v42, 2  ;;  %v3348_v44 = vmul.f32 %v7072_v3, %v12746_v35  ;;  %v12754_v21 = vrot.slane %v9984_v60, 1  ;;  %v12755_v28 = vrot.slane %v9993_v54, 1 }
 0x353   : > { %v2067_v26 = vsel %vm1472_vm1, %v12751_v30, %v2066_v51  ;;  %v2069_v9 = vsel %vm1472_vm1, %v12753_v20, %v2068_v59  ;;  %v10162_v40 = vpop.eup %6294  ;;  %v12756_v51 = vrot.slane %v10029_v29, 2  ;;  %v3097_v42 = vrot.slane %v2861_v13, 2 }
 0x354   : > { %v2226_v32 = vadd.f32 %v2067_v26, %v1739_v27  ;;  %v2227_v34 = vadd.f32 %v2069_v9, %v1740_v4  ;;  %v2554_v57 = vsel %vm1472_vm1, %v12754_v21, %v2553_v33  ;;  %v2556_v7 = vsel %vm1472_vm1, %v12755_v28, %v2555_v18  ;;  %v10169_v4 = vpop.eup %6296 }
 0x355   : > { %v3096_v59 = vsel %vm2988_vm4, %v12756_v51, %v3095_v8  ;;  %v3349_v30 = vmul.f32 %v12757_v56, %v12747_v55  ;;  %v3582_v27 = vrot.slane %v3348_v44, 2  ;;  %v4745_v60 = vmul.f32 1.0614054, %v10162_v40 }
 0x356   : > { %v2713_v33 = vadd.f32 %v2554_v57, %v2226_v32  ;;  %v2714_v26 = vadd.f32 %v2556_v7, %v2227_v34  ;;  %v3835_v54 = vmul.f32 %v7077_v0, %v12748_v43  ;;  %v4746_v18 = vmul.f32 1.0614054, %v10169_v4 }
 0x357   : > { %v12758_v29 = vrot.slane %v10034_v46, 2  ;;  %v12759_v13 = vrot.slane %v10045_v62, 2  ;;  %v3584_v9 = vrot.slane %v3349_v30, 2  ;;  %v4809_v8 = vadd.f32 -1.4531521, %v4745_v60  ;;  %v12761_v46 = vld [vmem:[#allocation55_spill] sm:$0xff] }
 0x358   : > { %v3255_v44 = vadd.f32 %v3096_v59, %v2713_v33  ;;  %v3836_v32 = vmul.f32 %v7079_v5, %v12749_v1  ;;  %v4810_v34 = vadd.f32 -1.4531521, %v4746_v18  ;;  %v12760_v57 = vrot.slane %v10049_v10, 2  ;;  %v12764_v18 = vld [vmem:[#allocation72_spill] sm:$0xff] }
 0x359   : > { %v3098_v15 = vsel %vm2988_vm4, %v12758_v29, %v3097_v42  ;;  %v3583_v20 = vsel %vm2988_vm4, %v12759_v13, %v3582_v27  ;;  %v4069_v7 = vrot.slane %v3835_v54, 2  ;;  %v929_v51 = vmul.f32 %v6917_v23, %v12761_v46 }
 0x35a   : > { %v3256_v21 = vadd.f32 %v3098_v15, %v2714_v26  ;;  %v3585_v28 = vsel %vm2988_vm4, %v12760_v57, %v3584_v9  ;;  %v4873_v62 = vmul.f32 %v10162_v40, %v4809_v8  ;;  %v3742_v42 = vadd.f32 %v3583_v20, %v3255_v44  ;;  %v12763_v26 = vld [vmem:[#allocation56_spill] sm:$0xff]  ;;  %v12766_v9 = vld [vmem:[#allocation73_spill] sm:$0xff] }
 0x35b   : > { %v4071_v30 = vrot.slane %v3836_v32, 2  ;;  %v4874_v59 = vmul.f32 %v10169_v4, %v4810_v34  ;;  %v12762_v60 = vrot.slane %v10070_v45, 2  ;;  %v930_v10 = vmul.f32 %v6930_v19, %v12763_v26  ;;  %v12767_v32 = vld [vmem:[#allocation66_spill] sm:$0xff] }
 0x35c   : > { %v3743_v27 = vadd.f32 %v3585_v28, %v3256_v21  ;;  %v1000_v54 = vmul.f32 %v6933_v14, %v12764_v18  ;;  %v4937_v29 = vadd.f32 1.4214138, %v4873_v62  ;;  %v12765_v15 = vrot.slane %v10077_v36, 2 }
 0x35d   : > { %v4070_v33 = vsel %vm2988_vm4, %v12762_v60, %v4069_v7  ;;  %v1001_v8 = vmul.f32 %v12351_v49, %v12766_v9  ;;  %v4938_v44 = vadd.f32 1.4214138, %v4874_v59  ;;  %v1135_v34 = vmul.f32 %v6941_v22, %v12767_v32 }
 0x35e   : > { %v4072_v13 = vsel %vm2988_vm4, %v12765_v15, %v4071_v30  ;;  %v4229_v20 = vadd.f32 %v4070_v33, %v3742_v42  ;;  %v1064_v45 = vadd.f32 %v1000_v54, %v929_v51  ;;  %v10205_v57 = vmul.f32 0.5, %v10101_v50 }
 0x35f   : > { %v4230_v21 = vadd.f32 %v4072_v13, %v3743_v27  ;;  %v10208_v28 = vmul.f32 0.5, %v10106_v38  ;;  %v5001_v36 = vmul.f32 %v10162_v40, %v4937_v29  ;;  %v5002_v62 = vmul.f32 %v10169_v4, %v4938_v44  ;;  %v12768_v27 = vld [vmem:[#allocation20_spill] sm:$0xff] }
 0x360   : > { %v10212_v7 = vadd.f32 %v7119_v6, %v4229_v20  ;;  %v1065_v51 = vadd.f32 %v1001_v8, %v930_v10  ;;  %v1136_v30 = vmul.f32 %v6960_v31, %v12768_v27  ;;  %6298 = vpow2.f32 %v5489_v25 }
 0x361   : > { %v10216_v42 = vadd.f32 %v7127_v16, %v4230_v21  ;;  %v5065_v59 = vadd.f32 -0.28449672, %v5001_v36  ;;  %v1346_v38 = vmul.f32 %v6966_v58, %v12761_v46  ;;  %v5066_v60 = vadd.f32 -0.28449672, %v5002_v62 }
 0x362   : > { %v10221_v50 = vmul.f32 0.70710677, %v10212_v7  ;;  %6300 = vpow2.f32 %v5491_v17  ;;  %v1199_v54 = vadd.f32 %v1135_v34, %v1064_v45  ;;  %v1347_v15 = vmul.f32 %v12741_v41, %v12763_v26 }
 0x363   : > { %v10226_v33 = vmul.f32 0.70710677, %v10216_v42  ;;  %v5129_v29 = vmul.f32 %v10162_v40, %v5065_v59  ;;  %v10234_v25 = vmul.f32 %v6966_v58, %v12728_v48  ;;  %v5130_v13 = vmul.f32 %v10169_v4, %v5066_v60 }
 0x364   : > { %v4491_v10 = vand.u32 2147483647, %v10221_v50  ;;  %v1200_v17 = vadd.f32 %v1136_v30, %v1065_v51  ;;  %v10240_v20 = vmul.f32 %v12741_v41, %v12730_v61  ;;  %v1583_v45 = vrot.slane %v1346_v38, 1 }
 0x365   : > { %v4492_v46 = vand.u32 2147483647, %v10226_v33  ;;  %v5193_v8 = vadd.f32 0.2548296, %v5129_v29  ;;  %v5194_v34 = vadd.f32 0.2548296, %v5130_v13 }
 0x366   : > { %v4555_v44 = vmul.f32 0.3275911, %v4491_v10  ;;  %v5323_v21 = vsub.f32 0.0, %v4491_v10  ;;  %vm5705_vm2 = vcmp.lt.f32.partialorder %v10115_v47, 0.0  ;;  %v12111_v62 = vrot.slane %v10234_v25, 1  ;;  %v6299_v59 = vpop.eup %6298 }
 0x367   : > { %v4556_v26 = vmul.f32 0.3275911, %v4492_v46  ;;  %v5324_v36 = vsub.f32 0.0, %v4492_v46  ;;  %v5257_v60 = vmul.f32 %v10162_v40, %v5193_v8  ;;  %vm5706_vm3 = vcmp.lt.f32.partialorder %v10119_v39, 0.0 }
 0x368   : > { %v4619_v51 = vadd.f32 1.0, %v4555_v44  ;;  %v5387_v30 = vmul.f32 %v5323_v21, %v4491_v10  ;;  %v1586_v52 = vrot.slane %v1347_v15, 1  ;;  %v6301_v11 = vpop.eup %6300  ;;  %v5258_v29 = vmul.f32 %v10169_v4, %v5194_v34 }
 0x369   : > { %v4620_v1 = vadd.f32 1.0, %v4556_v26  ;;  %v5388_v38 = vmul.f32 %v5324_v36, %v4492_v46  ;;  %v1585_v13 = vsel %vm1472_vm1, %v1583_v45, %v12111_v62  ;;  %v5577_v43 = vmul.f32 %v6299_v59, %v5257_v60 }
 0x36a   : > { %6302 = vrcp.f32 %v4619_v51  ;;  %v5493_v41 = vmul.f32 1.442695, %v5387_v30  ;;  %v12110_v55 = vrot.slane %v10240_v20, 1  ;;  %v5578_v40 = vmul.f32 %v6301_v11, %v5258_v29  ;;  %v12769_v11 = vld [vmem:[#allocation74_spill] sm:$0xff] }
 0x36b   : > { %6304 = vrcp.f32 %v4620_v1  ;;  %v5495_v8 = vmul.f32 1.442695, %v5388_v38  ;;  %v1741_v44 = vadd.f32 %v1585_v13, %v1199_v54  ;;  %v5641_v10 = vsub.f32 1.0, %v5577_v43  ;;  %v12771_v43 = vld [vmem:[#allocation75_spill] sm:$0xff]  ;;  %v12773_v29 = vld [vmem:[#allocation10_spill] sm:$0xff] }
 0x36c   : > { %6306 = vpow2.f32 %v5493_v41  ;;  %v1588_v4 = vsel %vm1472_vm1, %v1586_v52, %v12110_v55  ;;  %v1834_v15 = vmul.f32 %v6972_v12, %v12764_v18  ;;  %v5642_v46 = vsub.f32 1.0, %v5578_v40 }
 0x36d   : > { %6308 = vpow2.f32 %v5495_v8  ;;  %v1742_v21 = vadd.f32 %v1588_v4, %v1200_v17  ;;  %v1835_v45 = vmul.f32 %v12357_v63, %v12766_v9  ;;  %v5769_v34 = vsub.f32 0.0, %v5641_v10 }
 0x36e   : > { %v10260_v1 = vmul.f32 %v6972_v12, %v12769_v11  ;;  %v10264_v41 = vmul.f32 %v12357_v63, %v12771_v43  ;;  %v2070_v54 = vrot.slane %v1834_v15, 1  ;;  %v5770_v52 = vsub.f32 0.0, %v5642_v46  ;;  %v12774_v15 = vld [vmem:[#allocation15_spill] sm:$0xff] }
 0x36f   : > { %v2073_v26 = vrot.slane %v1835_v45, 1  ;;  %v2321_v36 = vmul.f32 %v7007_v37, %v12767_v32  ;;  %v2322_v17 = vmul.f32 %v7009_v53, %v12768_v27  ;;  %v5833_v60 = vsel %vm5705_vm2, %v5769_v34, %v5641_v10 }
 0x370   : > { %12770 = vst [vmem:[#allocation13_spill] sm:$0xff] %v10260_v1  ;;  %v10270_v59 = vpop.eup %6302  ;;  %v12117_v51 = vrot.slane %v10260_v1, 1  ;;  %v12118_v30 = vrot.slane %v10264_v41, 1  ;;  %v10278_v38 = vmul.f32 %v7007_v37, %v12773_v29  ;;  %v5834_v40 = vsel %vm5706_vm3, %v5770_v52, %v5642_v46  ;;  %v2748_v46 = vld [vmem:[#allocation2 + $0x38] sm:$0xee] }
 0x371   : > { %12772 = vst [vmem:[#allocation29_spill] sm:$0xff] %v10264_v41  ;;  %v10280_v13 = vpop.eup %6304  ;;  %v5897_v8 = vadd.f32 1.0, %v5833_v60  ;;  %v4747_v4 = vmul.f32 1.0614054, %v10270_v59  ;;  %v10287_v47 = vmul.f32 %v7009_v53, %v12774_v15  ;;  %v5898_v45 = vadd.f32 1.0, %v5834_v40 }
 0x372   : > { %v10289_v10 = vpop.eup %6306  ;;  %v4748_v34 = vmul.f32 1.0614054, %v10280_v13  ;;  %v2072_v55 = vsel %vm1472_vm1, %v2070_v54, %v12117_v51  ;;  %v2075_v39 = vsel %vm1472_vm1, %v2073_v26, %v12118_v30  ;;  %v2557_v18 = vrot.slane %v2321_v36, 1  ;;  %v12777_v36 = vld [vmem:[#allocation6_spill] sm:$0xff] }
 0x373   : > { %v10298_v52 = vpop.eup %6308  ;;  %v5961_v60 = vmul.f32 %v5897_v8, %v10205_v57  ;;  %v4811_v62 = vadd.f32 -1.4531521, %v4747_v4  ;;  %v2228_v27 = vadd.f32 %v2072_v55, %v1741_v44  ;;  %v2229_v32 = vadd.f32 %v2075_v39, %v1742_v21 }
 0x374   : > { %v5962_v40 = vmul.f32 %v5898_v45, %v10208_v28  ;;  %v4812_v9 = vadd.f32 -1.4531521, %v4748_v34  ;;  %v12121_v1 = vrot.slane %v10278_v38, 1  ;;  %v2560_v51 = vrot.slane %v2322_v17, 1  ;;  %v12778_v45 = vld [vmem:[#allocation23_spill] sm:$0xff] }
 0x375   : > { %v4875_v54 = vmul.f32 %v10270_v59, %v4811_v62  ;;  %v12120_v26 = vrot.slane %v10287_v47, 1  ;;  %v10305_v30 = vunpack.c.l.bf16 %v2748_v46  ;;  %v10311_v28 = vunpack.c.h.bf16 %v2748_v46 }
 0x376   : > { %v6005_v41 = vpack.c.bf16 %v5962_v40, %v5961_v60  ;;  %v4876_v57 = vmul.f32 %v10280_v13, %v4812_v9  ;;  %v2559_v55 = vsel %vm1472_vm1, %v2557_v18, %v12121_v1  ;;  %v2862_v17 = vmul.f32 %v7046_v24, %v12777_v36  ;;  %v12780_v40 = vld [vmem:[#allocation38_spill] sm:$0xff] }
 0x377   : > { %12775 = vst [vmem:[#allocation30_spill] sm:$0xff] %v10305_v30  ;;  %v4939_v44 = vadd.f32 1.4214138, %v4875_v54  ;;  %v2562_v21 = vsel %vm1472_vm1, %v2560_v51, %v12120_v26  ;;  %v2715_v62 = vadd.f32 %v2559_v55, %v2228_v27  ;;  %v2863_v9 = vmul.f32 %v7057_v2, %v12778_v45  ;;  %v12779_v51 = vld [vmem:[#allocation9_spill] sm:$0xff] }
 0x378   : > { %12776 = vst [vmem:[#allocation41_spill] sm:$0xff] %v10311_v28  ;;  %v4940_v8 = vadd.f32 1.4214138, %v4876_v57  ;;  %v2716_v4 = vadd.f32 %v2562_v21, %v2229_v32  ;;  %v10323_v18 = vmul.f32 %v7046_v24, %v12728_v48  ;;  %v10328_v39 = vmul.f32 %v7057_v2, %v12730_v61 }
 0x379   : > { %6037 = vst [vmem:[%s7389_s16 + $0xa0] sm:$0xff] %v6005_v41  ;;  %v5003_v34 = vmul.f32 %v10270_v59, %v4939_v44  ;;  %v3099_v27 = vrot.slane %v2862_v17, 2  ;;  %v3350_v46 = vmul.f32 %v7072_v3, %v12779_v51  ;;  %v3102_v60 = vrot.slane %v2863_v9, 2 }
 0x37a   : > { %v5004_v41 = vmul.f32 %v10280_v13, %v4940_v8  ;;  %v12125_v32 = vrot.slane %v10323_v18, 2  ;;  %v3351_v54 = vmul.f32 %v12757_v56, %v12780_v40  ;;  %v12124_v55 = vrot.slane %v10328_v39, 2 }
 0x37b   : > { %v5067_v57 = vadd.f32 -0.28449672, %v5003_v34  ;;  %v10339_v44 = vmul.f32 %v7072_v3, %v12769_v11  ;;  %v10343_v21 = vmul.f32 %v12757_v56, %v12771_v43  ;;  %v3586_v8 = vrot.slane %v3350_v46, 2 }
 0x37c   : > { %v5068_v36 = vadd.f32 -0.28449672, %v5004_v41  ;;  %v3101_v17 = vsel %vm2988_vm4, %v3099_v27, %v12125_v32  ;;  %v3589_v45 = vrot.slane %v3351_v54, 2  ;;  %v3104_v34 = vsel %vm2988_vm4, %v3102_v60, %v12124_v55 }
 0x37d   : > { %v5131_v9 = vmul.f32 %v10270_v59, %v5067_v57  ;;  %v3257_v26 = vadd.f32 %v3101_v17, %v2715_v62  ;;  %v12123_v1 = vrot.slane %v10339_v44, 2  ;;  %v3258_v51 = vadd.f32 %v3104_v34, %v2716_v4 }
 0x37e   : > { %v5132_v40 = vmul.f32 %v10280_v13, %v5068_v36  ;;  %v12128_v41 = vrot.slane %v10343_v21, 2  ;;  %v3837_v56 = vmul.f32 %v7077_v0, %v10305_v30  ;;  %v3838_v54 = vmul.f32 %v7079_v5, %v10311_v28 }
 0x37f   : > { %v5195_v27 = vadd.f32 0.2548296, %v5131_v9  ;;  %v3588_v46 = vsel %vm2988_vm4, %v3586_v8, %v12123_v1  ;;  %v10364_v62 = vmul.f32 %v7077_v0, %v12773_v29  ;;  %v10371_v36 = vmul.f32 %v7079_v5, %v12774_v15 }
 0x380   : > { %v5196_v60 = vadd.f32 0.2548296, %v5132_v40  ;;  %v3591_v4 = vsel %vm2988_vm4, %v3589_v45, %v12128_v41  ;;  %v3744_v57 = vadd.f32 %v3588_v46, %v3257_v26  ;;  %v4073_v9 = vrot.slane %v3837_v56, 2 }
 0x381   : > { %v5259_v17 = vmul.f32 %v10270_v59, %v5195_v27  ;;  %v3745_v8 = vadd.f32 %v3591_v4, %v3258_v51  ;;  %v12127_v34 = vrot.slane %v10364_v62, 2  ;;  %v4076_v55 = vrot.slane %v3838_v54, 2 }
 0x382   : > { %v5260_v1 = vmul.f32 %v10280_v13, %v5196_v60  ;;  %v12126_v40 = vrot.slane %v10371_v36, 2  ;;  %v931_v32 = vmul.f32 %v6917_v23, %v12728_v48  ;;  %v932_v59 = vmul.f32 %v6930_v19, %v12730_v61 }
 0x383   : > { %v5579_v26 = vmul.f32 %v10289_v10, %v5259_v17  ;;  %v4075_v45 = vsel %vm2988_vm4, %v4073_v9, %v12127_v34  ;;  %v1002_v56 = vmul.f32 %v6933_v14, %v12769_v11  ;;  %v1003_v48 = vmul.f32 %v12351_v49, %v12771_v43 }
 0x384   : > { %v5580_v13 = vmul.f32 %v10298_v52, %v5260_v1  ;;  %v4078_v51 = vsel %vm2988_vm4, %v4076_v55, %v12126_v40  ;;  %v4231_v27 = vadd.f32 %v4075_v45, %v3744_v57  ;;  %v4363_v10 = vmul.f32 0.5, %v10212_v7 }
 0x385   : > { %v5643_v46 = vsub.f32 1.0, %v5579_v26  ;;  %v4232_v54 = vadd.f32 %v4078_v51, %v3745_v8  ;;  %v1066_v60 = vadd.f32 %v1002_v56, %v931_v32  ;;  %v1067_v17 = vadd.f32 %v1003_v48, %v932_v59  ;;  %v12781_v59 = vld [vmem:[#allocation3_spill] sm:$0xff]  ;;  %v12782_v56 = vld [vmem:[#allocation62_spill] sm:$0xff] }
 0x386   : > { %v5644_v4 = vsub.f32 1.0, %v5580_v13  ;;  %v10395_v61 = vadd.f32 %v7119_v6, %v4231_v27  ;;  %v1137_v1 = vmul.f32 %v6941_v22, %v12773_v29  ;;  %v1138_v57 = vmul.f32 %v6960_v31, %v12774_v15 }
 0x387   : > { %v5771_v52 = vsub.f32 0.0, %v5643_v46  ;;  %v10400_v55 = vadd.f32 %v7127_v16, %v4232_v54  ;;  %v1350_v7 = vmul.f32 %v6966_v58, %v12746_v35  ;;  %v4364_v32 = vmul.f32 0.5, %v10216_v42  ;;  %v1233_v54 = vld [vmem:[#allocation2 + $0x158] sm:$0x11] }
 0x388   : > { %vm5707_vm5 = vcmp.lt.f32.partialorder %v10221_v50, 0.0  ;;  %v5772_v8 = vsub.f32 0.0, %v5644_v4  ;;  %v10409_v9 = vmul.f32 0.70710677, %v10395_v61  ;;  %vm5708_vm6 = vcmp.lt.f32.partialorder %v10226_v33, 0.0 }
 0x389   : > { %v5835_v26 = vsel %vm5707_vm5, %v5771_v52, %v5643_v46  ;;  %v10413_v45 = vmul.f32 0.70710677, %v10400_v55  ;;  %v1351_v13 = vmul.f32 %v12782_v56, %v12781_v59  ;;  %v1201_v42 = vadd.f32 %v1137_v1, %v1066_v60 }
 0x38a   : > { %v5836_v51 = vsel %vm5708_vm6, %v5772_v8, %v5644_v4  ;;  %v5899_v27 = vadd.f32 1.0, %v5835_v26  ;;  %v4493_v48 = vand.u32 2147483647, %v10409_v9  ;;  %v1202_v34 = vadd.f32 %v1138_v57, %v1067_v17 }
 0x38b   : > { %v5900_v50 = vadd.f32 1.0, %v5836_v51  ;;  %v4494_v40 = vand.u32 2147483647, %v10413_v45  ;;  %v1589_v41 = vrot.slane %v1350_v7, 1  ;;  %v1591_v52 = vrot.slane %v1351_v13, 1 }
 0x38c   : > { %v5963_v28 = vmul.f32 %v5899_v27, %v4363_v10  ;;  %v4557_v33 = vmul.f32 0.3275911, %v4493_v48  ;;  %v5325_v46 = vsub.f32 0.0, %v4493_v48  ;;  %v12783_v4 = vrot.slane %v10234_v25, 1  ;;  %v12787_v27 = vld [vmem:[#allocation22_spill] sm:$0xff] }
 0x38d   : > { %v5964_v30 = vmul.f32 %v5900_v50, %v4364_v32  ;;  %v4558_v15 = vmul.f32 0.3275911, %v4494_v40  ;;  %v5326_v29 = vsub.f32 0.0, %v4494_v40  ;;  %v10422_v26 = vunpack.c.l.bf16 %v1233_v54  ;;  %v12788_v50 = vld [vmem:[#allocation19_spill] sm:$0xff] }
 0x38e   : > { %v1590_v8 = vsel %vm1472_vm1, %v12783_v4, %v1589_v41  ;;  %v4621_v60 = vadd.f32 1.0, %v4557_v33  ;;  %v5389_v1 = vmul.f32 %v5325_v46, %v4493_v48  ;;  %v12785_v51 = vrot.slane %v10240_v20, 1  ;;  %v12789_v33 = vld [vmem:[#allocation24_spill] sm:$0xff]  ;;  %v12790_v46 = vld [vmem:[#allocation35_spill] sm:$0xff] }
 0x38f   : > { %12784 = vst [vmem:[#allocation42_spill] sm:$0xff] %v10422_v26  ;;  %v10427_v10 = vunpack.c.h.bf16 %v1233_v54  ;;  %v6006_v57 = vpack.c.bf16 %v5964_v30, %v5963_v28  ;;  %v4622_v7 = vadd.f32 1.0, %v4558_v15  ;;  %v5390_v32 = vmul.f32 %v5326_v29, %v4494_v40 }
 0x390   : > { %v1592_v17 = vsel %vm1472_vm1, %v12785_v51, %v1591_v52  ;;  %6310 = vrcp.f32 %v4621_v60  ;;  %v1743_v13 = vadd.f32 %v1590_v8, %v1201_v42  ;;  %v1838_v25 = vmul.f32 %v6972_v12, %v12787_v27  ;;  %v12791_v8 = vld [vmem:[#allocation13_spill] sm:$0xff] }
 0x391   : > { %12786 = vst [vmem:[#allocation63_spill] sm:$0xff] %v10427_v10  ;;  %v1839_v41 = vmul.f32 %v12357_v63, %v12788_v50  ;;  %6312 = vrcp.f32 %v4622_v7  ;;  %v1744_v48 = vadd.f32 %v1592_v17, %v1202_v34  ;;  %v2325_v20 = vmul.f32 %v7007_v37, %v12789_v33  ;;  %v12793_v51 = vld [vmem:[#allocation29_spill] sm:$0xff] }
 0x392   : > { %6038 = vst [vmem:[%s7389_s16 + $0xa8] sm:$0xff] %v6006_v57  ;;  %v2326_v54 = vmul.f32 %v7009_v53, %v12790_v46  ;;  %v5497_v30 = vmul.f32 1.442695, %v5389_v1  ;;  %v2076_v15 = vrot.slane %v1838_v25, 1  ;;  %v2866_v28 = vmul.f32 %v7046_v24, %v12746_v35 }
 0x393   : > { %v2078_v29 = vrot.slane %v1839_v41, 1  ;;  %v5499_v40 = vmul.f32 1.442695, %v5390_v32  ;;  %v2563_v42 = vrot.slane %v2325_v20, 1  ;;  %v2867_v4 = vmul.f32 %v7057_v2, %v12781_v59 }
 0x394   : > { %v2565_v52 = vrot.slane %v2326_v54, 1  ;;  %v12792_v34 = vrot.slane %v12791_v8, 1  ;;  %v12794_v17 = vrot.slane %v12793_v51, 1  ;;  %v3105_v1 = vrot.slane %v2866_v28, 2  ;;  %v12798_v8 = vld [vmem:[#allocation68_spill] sm:$0xff] }
 0x395   : > { %v3354_v7 = vmul.f32 %v7072_v3, %v12787_v27  ;;  %v12795_v32 = vrot.slane %v10278_v38, 1  ;;  %v12796_v59 = vrot.slane %v10287_v47, 1  ;;  %v3107_v28 = vrot.slane %v2867_v4, 2 }
 0x396   : > { %v2077_v60 = vsel %vm1472_vm1, %v12792_v34, %v2076_v15  ;;  %v2079_v57 = vsel %vm1472_vm1, %v12794_v17, %v2078_v29  ;;  %v10456_v54 = vpop.eup %6310  ;;  %v12797_v15 = vrot.slane %v10323_v18, 2  ;;  %v3355_v34 = vmul.f32 %v12798_v8, %v12788_v50 }
 0x397   : > { %v2230_v25 = vadd.f32 %v2077_v60, %v1743_v13  ;;  %v2231_v35 = vadd.f32 %v2079_v57, %v1744_v48  ;;  %v2564_v41 = vsel %vm1472_vm1, %v12795_v32, %v2563_v42  ;;  %v2566_v20 = vsel %vm1472_vm1, %v12796_v59, %v2565_v52  ;;  %v10463_v48 = vpop.eup %6312 }
 0x398   : > { %v3106_v29 = vsel %vm2988_vm4, %v12797_v15, %v3105_v1  ;;  %v3592_v13 = vrot.slane %v3354_v7, 2  ;;  %v4749_v38 = vmul.f32 1.0614054, %v10456_v54  ;;  %v3841_v47 = vmul.f32 %v7077_v0, %v12789_v33 }
 0x399   : > { %v2717_v42 = vadd.f32 %v2564_v41, %v2230_v25  ;;  %v2718_v60 = vadd.f32 %v2566_v20, %v2231_v35  ;;  %v4750_v52 = vmul.f32 1.0614054, %v10463_v48  ;;  %v12799_v18 = vrot.slane %v10328_v39, 2  ;;  %v12802_v39 = vld [vmem:[#allocation72_spill] sm:$0xff] }
 0x39a   : > { %v12800_v4 = vrot.slane %v10339_v44, 2  ;;  %v3594_v57 = vrot.slane %v3355_v34, 2  ;;  %v4813_v1 = vadd.f32 -1.4531521, %v4749_v38  ;;  %v3842_v25 = vmul.f32 %v7079_v5, %v12790_v46 }
 0x39b   : > { %v3108_v51 = vsel %vm2988_vm4, %v12799_v18, %v3107_v28  ;;  %v3259_v7 = vadd.f32 %v3106_v29, %v2717_v42  ;;  %v4814_v35 = vadd.f32 -1.4531521, %v4750_v52  ;;  %v12801_v41 = vrot.slane %v10343_v21, 2  ;;  %v12805_v52 = vld [vmem:[#allocation66_spill] sm:$0xff] }
 0x39c   : > { %v3593_v17 = vsel %vm2988_vm4, %v12800_v4, %v3592_v13  ;;  %v3260_v32 = vadd.f32 %v3108_v51, %v2718_v60  ;;  %v4079_v20 = vrot.slane %v3841_v47, 2  ;;  %v933_v15 = vmul.f32 %v6917_v23, %v12802_v39  ;;  %v12804_v60 = vld [vmem:[#allocation73_spill] sm:$0xff] }
 0x39d   : > { %v3595_v59 = vsel %vm2988_vm4, %v12801_v41, %v3594_v57  ;;  %v4877_v44 = vmul.f32 %v10456_v54, %v4813_v1  ;;  %v3746_v28 = vadd.f32 %v3593_v17, %v3259_v7  ;;  %v4081_v34 = vrot.slane %v3842_v25, 2  ;;  %v12807_v57 = vld [vmem:[#allocation20_spill] sm:$0xff]  ;;  %v12808_v25 = vld [vmem:[#allocation31_spill] sm:$0xff] }
 0x39e   : > { %v3747_v13 = vadd.f32 %v3595_v59, %v3260_v32  ;;  %v4878_v29 = vmul.f32 %v10463_v48, %v4814_v35  ;;  %v12803_v38 = vrot.slane %v10364_v62, 2  ;;  %v934_v21 = vmul.f32 %v6930_v19, %v12804_v60 }
 0x39f   : > { %v1004_v47 = vmul.f32 %v6933_v14, %v12805_v52  ;;  %v4941_v18 = vadd.f32 1.4214138, %v4877_v44  ;;  %v12806_v51 = vrot.slane %v10371_v36, 2  ;;  %v1005_v1 = vmul.f32 %v12351_v49, %v12807_v57 }
 0x3a0   : > { %v4080_v42 = vsel %vm2988_vm4, %v12803_v38, %v4079_v20  ;;  %v4942_v7 = vadd.f32 1.4214138, %v4878_v29  ;;  %v1139_v35 = vmul.f32 %v6941_v22, %v12808_v25  ;;  %v10499_v41 = vmul.f32 0.5, %v10395_v61 }
 0x3a1   : > { %v4082_v4 = vsel %vm2988_vm4, %v12806_v51, %v4081_v34  ;;  %v4233_v17 = vadd.f32 %v4080_v42, %v3746_v28  ;;  %v1068_v62 = vadd.f32 %v1004_v47, %v933_v15  ;;  %v10502_v59 = vmul.f32 0.5, %v10400_v55 }
 0x3a2   : > { %v4234_v32 = vadd.f32 %v4082_v4, %v3747_v13  ;;  %v5005_v36 = vmul.f32 %v10456_v54, %v4941_v18  ;;  %v5006_v44 = vmul.f32 %v10463_v48, %v4942_v7  ;;  %v1069_v15 = vadd.f32 %v1005_v1, %v934_v21  ;;  %v12809_v13 = vld [vmem:[#allocation4_spill] sm:$0xff] }
 0x3a3   : > { %v10506_v20 = vadd.f32 %v7119_v6, %v4233_v17  ;;  %v1140_v34 = vmul.f32 %v6960_v31, %v12809_v13  ;;  %6314 = vpow2.f32 %v5497_v30  ;;  %v1352_v55 = vmul.f32 %v6966_v58, %v12802_v39 }
 0x3a4   : > { %v10510_v28 = vadd.f32 %v7127_v16, %v4234_v32  ;;  %v5069_v29 = vadd.f32 -0.28449672, %v5005_v36  ;;  %v5070_v38 = vadd.f32 -0.28449672, %v5006_v44  ;;  %6316 = vpow2.f32 %v5499_v40 }
 0x3a5   : > { %v10515_v61 = vmul.f32 0.70710677, %v10506_v20  ;;  %v1203_v47 = vadd.f32 %v1139_v35, %v1068_v62  ;;  %v1353_v51 = vmul.f32 %v12782_v56, %v12804_v60  ;;  %v10528_v30 = vmul.f32 %v6966_v58, %v12769_v11 }
 0x3a6   : > { %v10520_v42 = vmul.f32 0.70710677, %v10510_v28  ;;  %v5133_v18 = vmul.f32 %v10456_v54, %v5069_v29  ;;  %v5134_v4 = vmul.f32 %v10463_v48, %v5070_v38  ;;  %v1204_v40 = vadd.f32 %v1140_v34, %v1069_v15 }
 0x3a7   : > { %v4495_v21 = vand.u32 2147483647, %v10515_v61  ;;  %v10534_v17 = vmul.f32 %v12782_v56, %v12771_v43  ;;  %v1593_v62 = vrot.slane %v1352_v55, 1  ;;  %vm5709_vm7 = vcmp.lt.f32.partialorder %v10409_v9, 0.0 }
 0x3a8   : > { %v4496_v39 = vand.u32 2147483647, %v10520_v42  ;;  %v5197_v1 = vadd.f32 0.2548296, %v5133_v18  ;;  %v5198_v35 = vadd.f32 0.2548296, %v5134_v4 }
 0x3a9   : > { %v4559_v7 = vmul.f32 0.3275911, %v4495_v21  ;;  %v5327_v32 = vsub.f32 0.0, %v4495_v21  ;;  %v12142_v44 = vrot.slane %v10528_v30, 1  ;;  %v6315_v29 = vpop.eup %6314  ;;  %vm5710_vm8 = vcmp.lt.f32.partialorder %v10413_v45, 0.0 }
 0x3aa   : > { %v4560_v60 = vmul.f32 0.3275911, %v4496_v39  ;;  %v5328_v36 = vsub.f32 0.0, %v4496_v39  ;;  %v5261_v38 = vmul.f32 %v10456_v54, %v5197_v1  ;;  %v1596_v10 = vrot.slane %v1353_v51, 1  ;;  %v6317_v26 = vpop.eup %6316 }
 0x3ab   : > { %v4623_v15 = vadd.f32 1.0, %v4559_v7  ;;  %v5391_v34 = vmul.f32 %v5327_v32, %v4495_v21  ;;  %v5262_v18 = vmul.f32 %v10463_v48, %v5198_v35  ;;  %v1595_v4 = vsel %vm1472_vm1, %v1593_v62, %v12142_v44 }
 0x3ac   : > { %v4624_v46 = vadd.f32 1.0, %v4560_v60  ;;  %v5392_v55 = vmul.f32 %v5328_v36, %v4496_v39  ;;  %v5581_v33 = vmul.f32 %v6315_v29, %v5261_v38  ;;  %v12141_v50 = vrot.slane %v10534_v17, 1 }
 0x3ad   : > { %6318 = vrcp.f32 %v4623_v15  ;;  %v5501_v56 = vmul.f32 1.442695, %v5391_v34  ;;  %v5582_v54 = vmul.f32 %v6317_v26, %v5262_v18  ;;  %v1745_v7 = vadd.f32 %v1595_v4, %v1203_v47  ;;  %v12810_v26 = vld [vmem:[#allocation10_spill] sm:$0xff]  ;;  %v12814_v18 = vld [vmem:[#allocation64_spill] sm:$0xff] }
 0x3ae   : > { %6320 = vrcp.f32 %v4624_v46  ;;  %v5503_v1 = vmul.f32 1.442695, %v5392_v55  ;;  %v5645_v21 = vsub.f32 1.0, %v5581_v33  ;;  %v1598_v48 = vsel %vm1472_vm1, %v1596_v10, %v12141_v50  ;;  %v12812_v33 = vld [vmem:[#allocation15_spill] sm:$0xff] }
 0x3af   : > { %6322 = vpow2.f32 %v5501_v56  ;;  %v1840_v51 = vmul.f32 %v6972_v12, %v12805_v52  ;;  %v5646_v39 = vsub.f32 1.0, %v5582_v54  ;;  %v1746_v32 = vadd.f32 %v1598_v48, %v1204_v40 }
 0x3b0   : > { %6324 = vpow2.f32 %v5503_v1  ;;  %v1841_v62 = vmul.f32 %v12357_v63, %v12807_v57  ;;  %v5773_v35 = vsub.f32 0.0, %v5645_v21  ;;  %v10554_v46 = vmul.f32 %v6972_v12, %v12810_v26 }
 0x3b1   : > { %v10558_v56 = vmul.f32 %v12357_v63, %v12812_v33  ;;  %v2080_v47 = vrot.slane %v1840_v51, 1  ;;  %v5774_v10 = vsub.f32 0.0, %v5646_v39  ;;  %v2327_v36 = vmul.f32 %v7007_v37, %v12808_v25  ;;  %v12815_v51 = vld [vmem:[#allocation17_spill] sm:$0xff] }
 0x3b2   : > { %12811 = vst [vmem:[#allocation28_spill] sm:$0xff] %v10554_v46  ;;  %v2083_v60 = vrot.slane %v1841_v62, 1  ;;  %v2328_v40 = vmul.f32 %v7009_v53, %v12809_v13  ;;  %v5837_v38 = vsel %vm5709_vm7, %v5773_v35, %v5645_v21  ;;  %v12148_v15 = vrot.slane %v10554_v46, 1 }
 0x3b3   : > { %12813 = vst [vmem:[#allocation48_spill] sm:$0xff] %v10558_v56  ;;  %v10564_v29 = vpop.eup %6318  ;;  %v12149_v34 = vrot.slane %v10558_v56, 1  ;;  %v10572_v55 = vmul.f32 %v7007_v37, %v12814_v18  ;;  %v5838_v54 = vsel %vm5710_vm8, %v5774_v10, %v5646_v39  ;;  %v5901_v1 = vadd.f32 1.0, %v5837_v38  ;;  %v2749_v39 = vld [vmem:[#allocation2 + $0xf0] sm:$0xee] }
 0x3b4   : > { %v10574_v4 = vpop.eup %6320  ;;  %v4751_v48 = vmul.f32 1.0614054, %v10564_v29  ;;  %v10581_v9 = vmul.f32 %v7009_v53, %v12815_v51  ;;  %v5902_v62 = vadd.f32 1.0, %v5838_v54  ;;  %v2082_v50 = vsel %vm1472_vm1, %v2080_v47, %v12148_v15 }
 0x3b5   : > { %v10583_v21 = vpop.eup %6322  ;;  %v4752_v35 = vmul.f32 1.0614054, %v10574_v4  ;;  %v2085_v45 = vsel %vm1472_vm1, %v2083_v60, %v12149_v34  ;;  %v5965_v38 = vmul.f32 %v5901_v1, %v10499_v41  ;;  %v2232_v13 = vadd.f32 %v2082_v50, %v1745_v7 }
 0x3b6   : > { %v10592_v10 = vpop.eup %6324  ;;  %v4815_v44 = vadd.f32 -1.4531521, %v4751_v48  ;;  %v2233_v25 = vadd.f32 %v2085_v45, %v1746_v32  ;;  %v5966_v54 = vmul.f32 %v5902_v62, %v10502_v59  ;;  %v2567_v52 = vrot.slane %v2327_v36, 1  ;;  %v12818_v36 = vld [vmem:[#allocation9_spill] sm:$0xff]  ;;  %v12819_v62 = vld [vmem:[#allocation38_spill] sm:$0xff] }
 0x3b7   : > { %v4816_v57 = vadd.f32 -1.4531521, %v4752_v35  ;;  %v12152_v46 = vrot.slane %v10572_v55, 1  ;;  %v2570_v15 = vrot.slane %v2328_v40, 1  ;;  %v12151_v60 = vrot.slane %v10581_v9, 1 }
 0x3b8   : > { %v4879_v47 = vmul.f32 %v10564_v29, %v4815_v44  ;;  %v10599_v34 = vunpack.c.l.bf16 %v2749_v39  ;;  %v6007_v56 = vpack.c.bf16 %v5966_v54, %v5965_v38  ;;  %v10605_v59 = vunpack.c.h.bf16 %v2749_v39  ;;  %v12821_v54 = vld [vmem:[#allocation41_spill] sm:$0xff] }
 0x3b9   : > { %v4880_v41 = vmul.f32 %v10574_v4, %v4816_v57  ;;  %v2569_v50 = vsel %vm1472_vm1, %v2567_v52, %v12152_v46  ;;  %v2572_v32 = vsel %vm1472_vm1, %v2570_v15, %v12151_v60  ;;  %v2868_v40 = vmul.f32 %v7046_v24, %v12818_v36  ;;  %v12820_v15 = vld [vmem:[#allocation30_spill] sm:$0xff] }
 0x3ba   : > { %12816 = vst [vmem:[#allocation51_spill] sm:$0xff] %v10599_v34  ;;  %v4943_v7 = vadd.f32 1.4214138, %v4879_v47  ;;  %v2719_v44 = vadd.f32 %v2569_v50, %v2232_v13  ;;  %v2720_v48 = vadd.f32 %v2572_v32, %v2233_v25  ;;  %v2869_v57 = vmul.f32 %v7057_v2, %v12819_v62 }
 0x3bb   : > { %12817 = vst [vmem:[#allocation57_spill] sm:$0xff] %v10605_v59  ;;  %v4944_v1 = vadd.f32 1.4214138, %v4880_v41  ;;  %v10617_v52 = vmul.f32 %v7046_v24, %v12769_v11  ;;  %v10622_v45 = vmul.f32 %v7057_v2, %v12771_v43  ;;  %v3109_v13 = vrot.slane %v2868_v40, 2 }
 0x3bc   : > { %6039 = vst [vmem:[%s7389_s16 + $0xb0] sm:$0xff] %v6007_v56  ;;  %v5007_v35 = vmul.f32 %v10564_v29, %v4943_v7  ;;  %v3356_v39 = vmul.f32 %v7072_v3, %v12820_v15  ;;  %v3112_v38 = vrot.slane %v2869_v57, 2  ;;  %v3357_v47 = vmul.f32 %v12798_v8, %v12821_v54 }
 0x3bd   : > { %v5008_v56 = vmul.f32 %v10574_v4, %v4944_v1  ;;  %v12156_v25 = vrot.slane %v10617_v52, 2  ;;  %v12155_v50 = vrot.slane %v10622_v45, 2  ;;  %v10633_v7 = vmul.f32 %v7072_v3, %v12810_v26 }
 0x3be   : > { %v5071_v41 = vadd.f32 -0.28449672, %v5007_v35  ;;  %v10637_v32 = vmul.f32 %v12798_v8, %v12812_v33  ;;  %v3596_v1 = vrot.slane %v3356_v39, 2  ;;  %v3599_v62 = vrot.slane %v3357_v47, 2 }
 0x3bf   : > { %v5072_v36 = vadd.f32 -0.28449672, %v5008_v56  ;;  %v3111_v40 = vsel %vm2988_vm4, %v3109_v13, %v12156_v25  ;;  %v3114_v35 = vsel %vm2988_vm4, %v3112_v38, %v12155_v50  ;;  %v12154_v46 = vrot.slane %v10633_v7, 2 }
 0x3c0   : > { %v5135_v57 = vmul.f32 %v10564_v29, %v5071_v41  ;;  %v3261_v60 = vadd.f32 %v3111_v40, %v2719_v44  ;;  %v3262_v15 = vadd.f32 %v3114_v35, %v2720_v48  ;;  %v12159_v56 = vrot.slane %v10637_v32, 2 }
 0x3c1   : > { %v5136_v54 = vmul.f32 %v10574_v4, %v5072_v36  ;;  %v3843_v8 = vmul.f32 %v7077_v0, %v10599_v34  ;;  %v3598_v39 = vsel %vm2988_vm4, %v3596_v1, %v12154_v46  ;;  %v3844_v47 = vmul.f32 %v7079_v5, %v10605_v59 }
 0x3c2   : > { %v5199_v13 = vadd.f32 0.2548296, %v5135_v57  ;;  %v10658_v44 = vmul.f32 %v7077_v0, %v12814_v18  ;;  %v3601_v48 = vsel %vm2988_vm4, %v3599_v62, %v12159_v56  ;;  %v3748_v41 = vadd.f32 %v3598_v39, %v3261_v60 }
 0x3c3   : > { %v5200_v38 = vadd.f32 0.2548296, %v5136_v54  ;;  %v10665_v36 = vmul.f32 %v7079_v5, %v12815_v51  ;;  %v3749_v1 = vadd.f32 %v3601_v48, %v3262_v15  ;;  %v4083_v57 = vrot.slane %v3843_v8, 2 }
 0x3c4   : > { %v5263_v40 = vmul.f32 %v10564_v29, %v5199_v13  ;;  %v12158_v35 = vrot.slane %v10658_v44, 2  ;;  %v4086_v50 = vrot.slane %v3844_v47, 2  ;;  %v935_v25 = vmul.f32 %v6917_v23, %v12769_v11 }
 0x3c5   : > { %v5264_v46 = vmul.f32 %v10574_v4, %v5200_v38  ;;  %v12157_v54 = vrot.slane %v10665_v36, 2  ;;  %v936_v29 = vmul.f32 %v6930_v19, %v12771_v43  ;;  %v1006_v8 = vmul.f32 %v6933_v14, %v12810_v26 }
 0x3c6   : > { %v5583_v60 = vmul.f32 %v10583_v21, %v5263_v40  ;;  %v4085_v62 = vsel %vm2988_vm4, %v4083_v57, %v12158_v35  ;;  %v1007_v11 = vmul.f32 %v12351_v49, %v12812_v33  ;;  %v4367_v21 = vmul.f32 0.5, %v10506_v20 }
 0x3c7   : > { %v5584_v4 = vmul.f32 %v10592_v10, %v5264_v46  ;;  %v4088_v15 = vsel %vm2988_vm4, %v4086_v50, %v12157_v54  ;;  %v4235_v13 = vadd.f32 %v4085_v62, %v3748_v41  ;;  %v1070_v38 = vadd.f32 %v1006_v8, %v935_v25  ;;  %v12823_v8 = vld [vmem:[#allocation62_spill] sm:$0xff] }
 0x3c8   : > { %v5647_v39 = vsub.f32 1.0, %v5583_v60  ;;  %v4236_v47 = vadd.f32 %v4088_v15, %v3749_v1  ;;  %v1071_v40 = vadd.f32 %v1007_v11, %v936_v29  ;;  %v1141_v46 = vmul.f32 %v6941_v22, %v12814_v18  ;;  %v12822_v29 = vld [vmem:[#allocation19_spill] sm:$0xff] }
 0x3c9   : > { %v5648_v48 = vsub.f32 1.0, %v5584_v4  ;;  %v10689_v43 = vadd.f32 %v7119_v6, %v4235_v13  ;;  %v1142_v41 = vmul.f32 %v6960_v31, %v12815_v51  ;;  %v1356_v20 = vmul.f32 %v6966_v58, %v12787_v27 }
 0x3ca   : > { %v5775_v10 = vsub.f32 0.0, %v5647_v39  ;;  %v10694_v50 = vadd.f32 %v7127_v16, %v4236_v47  ;;  %v4368_v25 = vmul.f32 0.5, %v10510_v28  ;;  %vm5711_vm9 = vcmp.lt.f32.partialorder %v10515_v61, 0.0  ;;  %v1234_v47 = vld [vmem:[#allocation2 + $0x58] sm:$0x11] }
 0x3cb   : > { %v5776_v1 = vsub.f32 0.0, %v5648_v48  ;;  %v10703_v57 = vmul.f32 0.70710677, %v10689_v43  ;;  %vm5712_vm10 = vcmp.lt.f32.partialorder %v10520_v42, 0.0  ;;  %v1357_v4 = vmul.f32 %v12823_v8, %v12822_v29 }
 0x3cc   : > { %v5839_v60 = vsel %vm5711_vm9, %v5775_v10, %v5647_v39  ;;  %v10707_v62 = vmul.f32 0.70710677, %v10694_v50  ;;  %v1205_v28 = vadd.f32 %v1141_v46, %v1070_v38  ;;  %v1206_v35 = vadd.f32 %v1142_v41, %v1071_v40 }
 0x3cd   : > { %v5840_v15 = vsel %vm5712_vm10, %v5776_v1, %v5648_v48  ;;  %v5903_v13 = vadd.f32 1.0, %v5839_v60  ;;  %v4497_v11 = vand.u32 2147483647, %v10703_v57  ;;  %v1599_v56 = vrot.slane %v1356_v20, 1 }
 0x3ce   : > { %v5904_v61 = vadd.f32 1.0, %v5840_v15  ;;  %v4498_v54 = vand.u32 2147483647, %v10707_v62  ;;  %v1601_v10 = vrot.slane %v1357_v4, 1  ;;  %v12824_v48 = vrot.slane %v10528_v30, 1 }
 0x3cf   : > { %v5967_v59 = vmul.f32 %v5903_v13, %v4367_v21  ;;  %v4561_v42 = vmul.f32 0.3275911, %v4497_v11  ;;  %v5329_v39 = vsub.f32 0.0, %v4497_v11  ;;  %v10716_v60 = vunpack.c.l.bf16 %v1234_v47  ;;  %v12828_v13 = vld [vmem:[#allocation24_spill] sm:$0xff] }
 0x3d0   : > { %v5968_v34 = vmul.f32 %v5904_v61, %v4368_v25  ;;  %v4562_v51 = vmul.f32 0.3275911, %v4498_v54  ;;  %v5330_v18 = vsub.f32 0.0, %v4498_v54  ;;  %v1600_v1 = vsel %vm1472_vm1, %v12824_v48, %v1599_v56  ;;  %v12829_v61 = vld [vmem:[#allocation35_spill] sm:$0xff] }
 0x3d1   : > { %12825 = vst [vmem:[#allocation32_spill] sm:$0xff] %v10716_v60  ;;  %v4625_v38 = vadd.f32 1.0, %v4561_v42  ;;  %v5393_v46 = vmul.f32 %v5329_v39, %v4497_v11  ;;  %v12826_v15 = vrot.slane %v10534_v17, 1  ;;  %v10721_v21 = vunpack.c.h.bf16 %v1234_v47  ;;  %v12830_v42 = vld [vmem:[#allocation42_spill] sm:$0xff]  ;;  %v12831_v39 = vld [vmem:[#allocation63_spill] sm:$0xff] }
 0x3d2   : > { %v6008_v41 = vpack.c.bf16 %v5968_v34, %v5967_v59  ;;  %v4626_v20 = vadd.f32 1.0, %v4562_v51  ;;  %v5394_v25 = vmul.f32 %v5330_v18, %v4498_v54  ;;  %v1747_v4 = vadd.f32 %v1600_v1, %v1205_v28  ;;  %v12832_v1 = vld [vmem:[#allocation28_spill] sm:$0xff] }
 0x3d3   : > { %v1602_v40 = vsel %vm1472_vm1, %v12826_v15, %v1601_v10  ;;  %12827 = vst [vmem:[#allocation39_spill] sm:$0xff] %v10721_v21  ;;  %6326 = vrcp.f32 %v4625_v38  ;;  %v1844_v30 = vmul.f32 %v6972_v12, %v12828_v13  ;;  %v1845_v56 = vmul.f32 %v12357_v63, %v12829_v61  ;;  %v12834_v15 = vld [vmem:[#allocation48_spill] sm:$0xff] }
 0x3d4   : > { %6040 = vst [vmem:[%s7389_s16 + $0xb8] sm:$0xff] %v6008_v41  ;;  %6328 = vrcp.f32 %v4626_v20  ;;  %v1748_v11 = vadd.f32 %v1602_v40, %v1206_v35  ;;  %v2331_v17 = vmul.f32 %v7007_v37, %v12830_v42  ;;  %v2332_v47 = vmul.f32 %v7009_v53, %v12831_v39 }
 0x3d5   : > { %v5505_v34 = vmul.f32 1.442695, %v5393_v46  ;;  %v2086_v51 = vrot.slane %v1844_v30, 1  ;;  %v2088_v18 = vrot.slane %v1845_v56, 1  ;;  %v2872_v59 = vmul.f32 %v7046_v24, %v12787_v27 }
 0x3d6   : > { %v5507_v54 = vmul.f32 1.442695, %v5394_v25  ;;  %v2573_v28 = vrot.slane %v2331_v17, 1  ;;  %v2575_v10 = vrot.slane %v2332_v47, 1  ;;  %v2873_v48 = vmul.f32 %v7057_v2, %v12822_v29 }
 0x3d7   : > { %v12833_v35 = vrot.slane %v12832_v1, 1  ;;  %v12835_v40 = vrot.slane %v12834_v15, 1  ;;  %v3115_v46 = vrot.slane %v2872_v59, 2  ;;  %v3360_v20 = vmul.f32 %v7072_v3, %v12828_v13  ;;  %v12839_v1 = vld [vmem:[#allocation68_spill] sm:$0xff] }
 0x3d8   : > { %v12836_v25 = vrot.slane %v10572_v55, 1  ;;  %v12837_v29 = vrot.slane %v10581_v9, 1  ;;  %v3117_v59 = vrot.slane %v2873_v48, 2  ;;  %v3847_v9 = vmul.f32 %v7077_v0, %v12830_v42 }
 0x3d9   : > { %v2087_v38 = vsel %vm1472_vm1, %v12833_v35, %v2086_v51  ;;  %v2089_v41 = vsel %vm1472_vm1, %v12835_v40, %v2088_v18  ;;  %v10750_v47 = vpop.eup %6326  ;;  %v12838_v51 = vrot.slane %v10617_v52, 2  ;;  %v3361_v35 = vmul.f32 %v12839_v1, %v12829_v61 }
 0x3da   : > { %v2234_v30 = vadd.f32 %v2087_v38, %v1747_v4  ;;  %v2235_v27 = vadd.f32 %v2089_v41, %v1748_v11  ;;  %v2574_v56 = vsel %vm1472_vm1, %v12836_v25, %v2573_v28  ;;  %v2576_v17 = vsel %vm1472_vm1, %v12837_v29, %v2575_v10  ;;  %v10757_v11 = vpop.eup %6328 }
 0x3db   : > { %v3116_v18 = vsel %vm2988_vm4, %v12838_v51, %v3115_v46  ;;  %v3602_v4 = vrot.slane %v3360_v20, 2  ;;  %v4753_v55 = vmul.f32 1.0614054, %v10750_v47  ;;  %v4754_v10 = vmul.f32 1.0614054, %v10757_v11 }
 0x3dc   : > { %v2721_v28 = vadd.f32 %v2574_v56, %v2234_v30  ;;  %v2722_v38 = vadd.f32 %v2576_v17, %v2235_v27  ;;  %v12840_v52 = vrot.slane %v10622_v45, 2  ;;  %v12841_v48 = vrot.slane %v10633_v7, 2  ;;  %v12843_v45 = vld [vmem:[#allocation66_spill] sm:$0xff] }
 0x3dd   : > { %v3604_v41 = vrot.slane %v3361_v35, 2  ;;  %v4817_v46 = vadd.f32 -1.4531521, %v4753_v55  ;;  %v3848_v30 = vmul.f32 %v7079_v5, %v12831_v39  ;;  %v4818_v27 = vadd.f32 -1.4531521, %v4754_v10  ;;  %v12846_v10 = vld [vmem:[#allocation31_spill] sm:$0xff] }
 0x3de   : > { %v3118_v15 = vsel %vm2988_vm4, %v12840_v52, %v3117_v59  ;;  %v3603_v40 = vsel %vm2988_vm4, %v12841_v48, %v3602_v4  ;;  %v3263_v20 = vadd.f32 %v3116_v18, %v2721_v28  ;;  %v12842_v56 = vrot.slane %v10637_v32, 2 }
 0x3df   : > { %v3264_v25 = vadd.f32 %v3118_v15, %v2722_v38  ;;  %v4089_v17 = vrot.slane %v3847_v9, 2  ;;  %v937_v51 = vmul.f32 %v6917_v23, %v12843_v45  ;;  %v4881_v7 = vmul.f32 %v10750_v47, %v4817_v46  ;;  %v12845_v38 = vld [vmem:[#allocation20_spill] sm:$0xff] }
 0x3e0   : > { %v3605_v29 = vsel %vm2988_vm4, %v12842_v56, %v3604_v41  ;;  %v3750_v59 = vadd.f32 %v3603_v40, %v3263_v20  ;;  %v4091_v35 = vrot.slane %v3848_v30, 2  ;;  %v4882_v18 = vmul.f32 %v10757_v11, %v4818_v27  ;;  %v12848_v41 = vld [vmem:[#allocation4_spill] sm:$0xff]  ;;  %v12849_v30 = vld [vmem:[#allocation65_spill] sm:$0xff] }
 0x3e1   : > { %v3751_v4 = vadd.f32 %v3605_v29, %v3264_v25  ;;  %v12844_v55 = vrot.slane %v10658_v44, 2  ;;  %v938_v32 = vmul.f32 %v6930_v19, %v12845_v38  ;;  %v1008_v9 = vmul.f32 %v6933_v14, %v12846_v10 }
 0x3e2   : > { %v4945_v52 = vadd.f32 1.4214138, %v4881_v7  ;;  %v12847_v15 = vrot.slane %v10665_v36, 2  ;;  %v1009_v46 = vmul.f32 %v12351_v49, %v12848_v41  ;;  %v4946_v20 = vadd.f32 1.4214138, %v4882_v18 }
 0x3e3   : > { %v4090_v28 = vsel %vm2988_vm4, %v12844_v55, %v4089_v17  ;;  %v1072_v44 = vadd.f32 %v1008_v9, %v937_v51  ;;  %v1143_v27 = vmul.f32 %v6941_v22, %v12849_v30  ;;  %v10793_v56 = vmul.f32 0.5, %v10689_v43 }
 0x3e4   : > { %v4092_v48 = vsel %vm2988_vm4, %v12847_v15, %v4091_v35  ;;  %v4237_v40 = vadd.f32 %v4090_v28, %v3750_v59  ;;  %v10796_v29 = vmul.f32 0.5, %v10694_v50  ;;  %v5009_v36 = vmul.f32 %v10750_v47, %v4945_v52 }
 0x3e5   : > { %v4238_v25 = vadd.f32 %v4092_v48, %v3751_v4  ;;  %v5010_v7 = vmul.f32 %v10757_v11, %v4946_v20  ;;  %v1073_v51 = vadd.f32 %v1009_v46, %v938_v32  ;;  %v12850_v4 = vld [vmem:[#allocation34_spill] sm:$0xff]  ;;  %6330 = vpow2.f32 %v5505_v34 }
 0x3e6   : > { %v10800_v17 = vadd.f32 %v7119_v6, %v4237_v40  ;;  %v1144_v35 = vmul.f32 %v6960_v31, %v12850_v4  ;;  %v5073_v18 = vadd.f32 -0.28449672, %v5009_v36  ;;  %v1358_v50 = vmul.f32 %v6966_v58, %v12843_v45 }
 0x3e7   : > { %v10804_v59 = vadd.f32 %v7127_v16, %v4238_v25  ;;  %v5074_v55 = vadd.f32 -0.28449672, %v5010_v7  ;;  %6332 = vpow2.f32 %v5507_v54  ;;  %v1207_v9 = vadd.f32 %v1143_v27, %v1072_v44 }
 0x3e8   : > { %v10809_v43 = vmul.f32 0.70710677, %v10800_v17  ;;  %v5137_v52 = vmul.f32 %v10750_v47, %v5073_v18  ;;  %v1359_v15 = vmul.f32 %v12823_v8, %v12845_v38  ;;  %v10822_v34 = vmul.f32 %v6966_v58, %v12810_v26 }
 0x3e9   : > { %v10814_v28 = vmul.f32 0.70710677, %v10804_v59  ;;  %v5138_v48 = vmul.f32 %v10757_v11, %v5074_v55  ;;  %v1208_v54 = vadd.f32 %v1144_v35, %v1073_v51  ;;  %v10828_v40 = vmul.f32 %v12823_v8, %v12812_v33 }
 0x3ea   : > { %v4499_v32 = vand.u32 2147483647, %v10809_v43  ;;  %v5201_v46 = vadd.f32 0.2548296, %v5137_v52  ;;  %v1603_v44 = vrot.slane %v1358_v50, 1  ;;  %vm5713_vm11 = vcmp.lt.f32.partialorder %v10703_v57, 0.0 }
 0x3eb   : > { %v4500_v45 = vand.u32 2147483647, %v10814_v28  ;;  %v5202_v27 = vadd.f32 0.2548296, %v5138_v48  ;;  %v12173_v7 = vrot.slane %v10822_v34, 1  ;;  %v6331_v18 = vpop.eup %6330  ;;  %vm5714_vm12 = vcmp.lt.f32.partialorder %v10707_v62, 0.0 }
 0x3ec   : > { %v4563_v20 = vmul.f32 0.3275911, %v4499_v32  ;;  %v5331_v25 = vsub.f32 0.0, %v4499_v32  ;;  %v5265_v55 = vmul.f32 %v10750_v47, %v5201_v46  ;;  %v1606_v21 = vrot.slane %v1359_v15, 1 }
 0x3ed   : > { %v4564_v38 = vmul.f32 0.3275911, %v4500_v45  ;;  %v5332_v36 = vsub.f32 0.0, %v4500_v45  ;;  %v6333_v60 = vpop.eup %6332  ;;  %v5266_v52 = vmul.f32 %v10757_v11, %v5202_v27  ;;  %v1605_v48 = vsel %vm1472_vm1, %v1603_v44, %v12173_v7 }
 0x3ee   : > { %v4627_v51 = vadd.f32 1.0, %v4563_v20  ;;  %v5395_v35 = vmul.f32 %v5331_v25, %v4499_v32  ;;  %v5585_v42 = vmul.f32 %v6331_v18, %v5265_v55  ;;  %v12172_v61 = vrot.slane %v10828_v40, 1 }
 0x3ef   : > { %v4628_v39 = vadd.f32 1.0, %v4564_v38  ;;  %v5396_v50 = vmul.f32 %v5332_v36, %v4500_v45  ;;  %v5586_v47 = vmul.f32 %v6333_v60, %v5266_v52  ;;  %v1749_v20 = vadd.f32 %v1605_v48, %v1207_v9  ;;  %v12851_v60 = vld [vmem:[#allocation64_spill] sm:$0xff]  ;;  %v12855_v52 = vld [vmem:[#allocation45_spill] sm:$0xff] }
 0x3f0   : > { %6334 = vrcp.f32 %v4627_v51  ;;  %v5509_v8 = vmul.f32 1.442695, %v5395_v35  ;;  %v5649_v32 = vsub.f32 1.0, %v5585_v42  ;;  %v1608_v11 = vsel %vm1472_vm1, %v1606_v21, %v12172_v61  ;;  %v12853_v42 = vld [vmem:[#allocation17_spill] sm:$0xff] }
 0x3f1   : > { %6336 = vrcp.f32 %v4628_v39  ;;  %v5511_v46 = vmul.f32 1.442695, %v5396_v50  ;;  %v1846_v15 = vmul.f32 %v6972_v12, %v12846_v10  ;;  %v5650_v45 = vsub.f32 1.0, %v5586_v47 }
 0x3f2   : > { %6338 = vpow2.f32 %v5509_v8  ;;  %v1750_v25 = vadd.f32 %v1608_v11, %v1208_v54  ;;  %v1847_v44 = vmul.f32 %v12357_v63, %v12848_v41  ;;  %v5777_v27 = vsub.f32 0.0, %v5649_v32 }
 0x3f3   : > { %6340 = vpow2.f32 %v5511_v46  ;;  %v10848_v39 = vmul.f32 %v6972_v12, %v12851_v60  ;;  %v10852_v8 = vmul.f32 %v12357_v63, %v12853_v42  ;;  %v2090_v9 = vrot.slane %v1846_v15, 1  ;;  %v12856_v15 = vld [vmem:[#allocation11_spill] sm:$0xff] }
 0x3f4   : > { %v5778_v21 = vsub.f32 0.0, %v5650_v45  ;;  %v2093_v38 = vrot.slane %v1847_v44, 1  ;;  %v2333_v36 = vmul.f32 %v7007_v37, %v12849_v30  ;;  %v2334_v54 = vmul.f32 %v7009_v53, %v12850_v4 }
 0x3f5   : > { %12852 = vst [vmem:[#allocation40_spill] sm:$0xff] %v10848_v39  ;;  %v5841_v55 = vsel %vm5713_vm11, %v5777_v27, %v5649_v32  ;;  %v12179_v51 = vrot.slane %v10848_v39, 1  ;;  %v12180_v35 = vrot.slane %v10852_v8, 1  ;;  %v10866_v50 = vmul.f32 %v7007_v37, %v12855_v52 }
 0x3f6   : > { %12854 = vst [vmem:[#allocation46_spill] sm:$0xff] %v10852_v8  ;;  %v10858_v18 = vpop.eup %6334  ;;  %v5842_v47 = vsel %vm5714_vm12, %v5778_v21, %v5650_v45  ;;  %v5905_v46 = vadd.f32 1.0, %v5841_v55  ;;  %v10875_v57 = vmul.f32 %v7009_v53, %v12856_v15  ;;  %v2750_v45 = vld [vmem:[#allocation2 + $0x170] sm:$0xee]  ;;  %v2577_v10 = vrot.slane %v2333_v36, 1  ;;  %v12859_v36 = vld [vmem:[#allocation30_spill] sm:$0xff] }
 0x3f7   : > { %v10868_v48 = vpop.eup %6336  ;;  %v4755_v11 = vmul.f32 1.0614054, %v10858_v18  ;;  %v5906_v44 = vadd.f32 1.0, %v5842_v47  ;;  %v2092_v61 = vsel %vm1472_vm1, %v2090_v9, %v12179_v51  ;;  %v2095_v62 = vsel %vm1472_vm1, %v2093_v38, %v12180_v35 }
 0x3f8   : > { %v10877_v32 = vpop.eup %6338  ;;  %v4756_v27 = vmul.f32 1.0614054, %v10868_v48  ;;  %v5969_v55 = vmul.f32 %v5905_v46, %v10793_v56  ;;  %v2236_v4 = vadd.f32 %v2092_v61, %v1749_v20  ;;  %v2237_v30 = vadd.f32 %v2095_v62, %v1750_v25 }
 0x3f9   : > { %v10886_v21 = vpop.eup %6340  ;;  %v4819_v7 = vadd.f32 -1.4531521, %v4755_v11  ;;  %v5970_v47 = vmul.f32 %v5906_v44, %v10796_v29  ;;  %v12183_v39 = vrot.slane %v10866_v50, 1  ;;  %v2580_v51 = vrot.slane %v2334_v54, 1  ;;  %v12860_v44 = vld [vmem:[#allocation41_spill] sm:$0xff] }
 0x3fa   : > { %v4820_v41 = vadd.f32 -1.4531521, %v4756_v27  ;;  %v12182_v38 = vrot.slane %v10875_v57, 1  ;;  %v10893_v35 = vunpack.c.l.bf16 %v2750_v45  ;;  %v10899_v29 = vunpack.c.h.bf16 %v2750_v45 }
 0x3fb   : > { %v4883_v9 = vmul.f32 %v10858_v18, %v4819_v7  ;;  %v6009_v8 = vpack.c.bf16 %v5970_v47, %v5969_v55  ;;  %v2579_v61 = vsel %vm1472_vm1, %v2577_v10, %v12183_v39  ;;  %v2874_v54 = vmul.f32 %v7046_v24, %v12859_v36  ;;  %v12862_v47 = vld [vmem:[#allocation57_spill] sm:$0xff] }
 0x3fc   : > { %12857 = vst [vmem:[#allocation47_spill] sm:$0xff] %v10893_v35  ;;  %v4884_v56 = vmul.f32 %v10868_v48, %v4820_v41  ;;  %v2582_v25 = vsel %vm1472_vm1, %v2580_v51, %v12182_v38  ;;  %v2723_v7 = vadd.f32 %v2579_v61, %v2236_v4  ;;  %v2875_v41 = vmul.f32 %v7057_v2, %v12860_v44  ;;  %v12861_v51 = vld [vmem:[#allocation51_spill] sm:$0xff] }
 0x3fd   : > { %12858 = vst [vmem:[#allocation14_spill] sm:$0xff] %v10899_v29  ;;  %v4947_v20 = vadd.f32 1.4214138, %v4883_v9  ;;  %v2724_v11 = vadd.f32 %v2582_v25, %v2237_v30  ;;  %v10911_v10 = vmul.f32 %v7046_v24, %v12810_v26  ;;  %v10916_v62 = vmul.f32 %v7057_v2, %v12812_v33 }
 0x3fe   : > { %6041 = vst [vmem:[%s7389_s16 + $0xc0] sm:$0xff] %v6009_v8  ;;  %v4948_v46 = vadd.f32 1.4214138, %v4884_v56  ;;  %v3119_v4 = vrot.slane %v2874_v54, 2  ;;  %v3362_v45 = vmul.f32 %v7072_v3, %v12861_v51  ;;  %v3122_v55 = vrot.slane %v2875_v41, 2 }
 0x3ff   : > { %v5011_v27 = vmul.f32 %v10858_v18, %v4947_v20  ;;  %v12187_v30 = vrot.slane %v10911_v10, 2  ;;  %v3363_v9 = vmul.f32 %v12839_v1, %v12862_v47  ;;  %v12186_v61 = vrot.slane %v10916_v62, 2 }
 0x400   : > { %v5012_v8 = vmul.f32 %v10868_v48, %v4948_v46  ;;  %v10927_v20 = vmul.f32 %v7072_v3, %v12851_v60  ;;  %v10931_v25 = vmul.f32 %v12839_v1, %v12853_v42  ;;  %v3606_v46 = vrot.slane %v3362_v45, 2 }
 0x401   : > { %v5075_v56 = vadd.f32 -0.28449672, %v5011_v27  ;;  %v3121_v54 = vsel %vm2988_vm4, %v3119_v4, %v12187_v30  ;;  %v3609_v44 = vrot.slane %v3363_v9, 2  ;;  %v3124_v27 = vsel %vm2988_vm4, %v3122_v55, %v12186_v61 }
 0x402   : > { %v5076_v36 = vadd.f32 -0.28449672, %v5012_v8  ;;  %v3265_v38 = vadd.f32 %v3121_v54, %v2723_v7  ;;  %v12185_v39 = vrot.slane %v10927_v20, 2  ;;  %v3266_v51 = vadd.f32 %v3124_v27, %v2724_v11 }
 0x403   : > { %v5139_v41 = vmul.f32 %v10858_v18, %v5075_v56  ;;  %v12190_v8 = vrot.slane %v10931_v25, 2  ;;  %v3849_v1 = vmul.f32 %v7077_v0, %v10893_v35  ;;  %v3850_v9 = vmul.f32 %v7079_v5, %v10899_v29 }
 0x404   : > { %v5140_v47 = vmul.f32 %v10868_v48, %v5076_v36  ;;  %v3608_v45 = vsel %vm2988_vm4, %v3606_v46, %v12185_v39  ;;  %v10952_v7 = vmul.f32 %v7077_v0, %v12855_v52  ;;  %v10959_v36 = vmul.f32 %v7079_v5, %v12856_v15 }
 0x405   : > { %v5203_v4 = vadd.f32 0.2548296, %v5139_v41  ;;  %v3611_v11 = vsel %vm2988_vm4, %v3609_v44, %v12190_v8  ;;  %v3752_v56 = vadd.f32 %v3608_v45, %v3265_v38  ;;  %v4093_v41 = vrot.slane %v3849_v1, 2 }
 0x406   : > { %v5204_v55 = vadd.f32 0.2548296, %v5140_v47  ;;  %v3753_v46 = vadd.f32 %v3611_v11, %v3266_v51  ;;  %v12189_v27 = vrot.slane %v10952_v7, 2  ;;  %v4096_v61 = vrot.slane %v3850_v9, 2 }
 0x407   : > { %v5267_v54 = vmul.f32 %v10858_v18, %v5203_v4  ;;  %v12188_v47 = vrot.slane %v10959_v36, 2  ;;  %v939_v30 = vmul.f32 %v6917_v23, %v12810_v26  ;;  %v940_v18 = vmul.f32 %v6930_v19, %v12812_v33 }
 0x408   : > { %v5268_v39 = vmul.f32 %v10868_v48, %v5204_v55  ;;  %v4095_v44 = vsel %vm2988_vm4, %v4093_v41, %v12189_v27  ;;  %v1010_v1 = vmul.f32 %v6933_v14, %v12851_v60  ;;  %v1011_v26 = vmul.f32 %v12351_v49, %v12853_v42 }
 0x409   : > { %v5587_v38 = vmul.f32 %v10877_v32, %v5267_v54  ;;  %v4098_v51 = vsel %vm2988_vm4, %v4096_v61, %v12188_v47  ;;  %v4239_v4 = vadd.f32 %v4095_v44, %v3752_v56  ;;  %v4371_v32 = vmul.f32 0.5, %v10800_v17 }
 0x40a   : > { %v5588_v48 = vmul.f32 %v10886_v21, %v5268_v39  ;;  %v4240_v9 = vadd.f32 %v4098_v51, %v3753_v46  ;;  %v1074_v55 = vadd.f32 %v1010_v1, %v939_v30  ;;  %v1075_v54 = vadd.f32 %v1011_v26, %v940_v18  ;;  %v12863_v18 = vld [vmem:[#allocation35_spill] sm:$0xff]  ;;  %v12864_v1 = vld [vmem:[#allocation62_spill] sm:$0xff] }
 0x40b   : > { %v5651_v45 = vsub.f32 1.0, %v5587_v38  ;;  %v10983_v33 = vadd.f32 %v7119_v6, %v4239_v4  ;;  %v1145_v39 = vmul.f32 %v6941_v22, %v12855_v52  ;;  %v1146_v56 = vmul.f32 %v6960_v31, %v12856_v15 }
 0x40c   : > { %v5652_v11 = vsub.f32 1.0, %v5588_v48  ;;  %v10988_v61 = vadd.f32 %v7127_v16, %v4240_v9  ;;  %v1362_v17 = vmul.f32 %v6966_v58, %v12828_v13  ;;  %v4372_v30 = vmul.f32 0.5, %v10804_v59 }
 0x40d   : > { %v5779_v21 = vsub.f32 0.0, %v5651_v45  ;;  %vm5715_vm13 = vcmp.lt.f32.partialorder %v10809_v43, 0.0  ;;  %v10997_v41 = vmul.f32 0.70710677, %v10983_v33  ;;  %vm5716_vm14 = vcmp.lt.f32.partialorder %v10814_v28, 0.0 }
 0x40e   : > { %v5780_v46 = vsub.f32 0.0, %v5652_v11  ;;  %v11001_v44 = vmul.f32 0.70710677, %v10988_v61  ;;  %v1363_v48 = vmul.f32 %v12864_v1, %v12863_v18  ;;  %v1209_v59 = vadd.f32 %v1145_v39, %v1074_v55 }
 0x40f   : > { %v5843_v38 = vsel %vm5715_vm13, %v5779_v21, %v5651_v45  ;;  %v4501_v26 = vand.u32 2147483647, %v10997_v41  ;;  %v1210_v47 = vadd.f32 %v1146_v56, %v1075_v54  ;;  %v1609_v27 = vrot.slane %v1362_v17, 1 }
 0x410   : > { %v5844_v51 = vsel %vm5716_vm14, %v5780_v46, %v5652_v11  ;;  %v5907_v4 = vadd.f32 1.0, %v5843_v38  ;;  %v4502_v43 = vand.u32 2147483647, %v11001_v44  ;;  %v1611_v45 = vrot.slane %v1363_v48, 1  ;;  %v6397_v46 = vld [vmem:[#allocation2 + $0x128] sm:$0xff] }
 0x411   : > { %v5908_v9 = vadd.f32 1.0, %v5844_v51  ;;  %v4565_v29 = vmul.f32 0.3275911, %v4501_v26  ;;  %v5333_v28 = vsub.f32 0.0, %v4501_v26  ;;  %v12865_v52 = vrot.slane %v10822_v34, 1 }
 0x412   : > { %v5971_v8 = vmul.f32 %v5907_v4, %v4371_v32  ;;  %v4566_v35 = vmul.f32 0.3275911, %v4502_v43  ;;  %v5334_v15 = vsub.f32 0.0, %v4502_v43  ;;  %v11010_v38 = vunpack.c.l.bf16 %v6397_v46  ;;  %v12869_v4 = vld [vmem:[#allocation42_spill] sm:$0xff] }
 0x413   : > { %v5972_v21 = vmul.f32 %v5908_v9, %v4372_v30  ;;  %v1610_v11 = vsel %vm1472_vm1, %v12865_v52, %v1609_v27  ;;  %v4629_v55 = vadd.f32 1.0, %v4565_v29  ;;  %v5397_v39 = vmul.f32 %v5333_v28, %v4501_v26  ;;  %v12870_v52 = vld [vmem:[#allocation63_spill] sm:$0xff]  ;;  %v12871_v26 = vld [vmem:[#allocation32_spill] sm:$0xff] }
 0x414   : > { %12866 = vst [vmem:[#allocation21_spill] sm:$0xff] %v11010_v38  ;;  %v12867_v54 = vrot.slane %v10828_v40, 1  ;;  %v11015_v56 = vunpack.c.h.bf16 %v6397_v46  ;;  %v4630_v30 = vadd.f32 1.0, %v4566_v35  ;;  %v5398_v48 = vmul.f32 %v5334_v15, %v4502_v43  ;;  %v12872_v9 = vld [vmem:[#allocation39_spill] sm:$0xff] }
 0x415   : > { %v6010_v17 = vpack.c.bf16 %v5972_v21, %v5971_v8  ;;  %6342 = vrcp.f32 %v4629_v55  ;;  %v1751_v51 = vadd.f32 %v1610_v11, %v1209_v59  ;;  %v1850_v34 = vmul.f32 %v6972_v12, %v12869_v4  ;;  %v12873_v11 = vld [vmem:[#allocation40_spill] sm:$0xff] }
 0x416   : > { %v1612_v32 = vsel %vm1472_vm1, %v12867_v54, %v1611_v45  ;;  %12868 = vst [vmem:[#allocation52_spill] sm:$0xff] %v11015_v56  ;;  %v1851_v27 = vmul.f32 %v12357_v63, %v12870_v52  ;;  %6344 = vrcp.f32 %v4630_v30  ;;  %v2337_v40 = vmul.f32 %v7007_v37, %v12871_v26  ;;  %v12875_v54 = vld [vmem:[#allocation46_spill] sm:$0xff] }
 0x417   : > { %6042 = vst [vmem:[%s7389_s16 + $0xc8] sm:$0xff] %v6010_v17  ;;  %v1752_v29 = vadd.f32 %v1612_v32, %v1210_v47  ;;  %v2338_v28 = vmul.f32 %v7009_v53, %v12872_v9  ;;  %v11026_v8 = vmul.f32 1.442695, %v5397_v39  ;;  %v2096_v35 = vrot.slane %v1850_v34, 1 }
 0x418   : > { %v2098_v15 = vrot.slane %v1851_v27, 1  ;;  %v2878_v59 = vmul.f32 %v7046_v24, %v12828_v13  ;;  %v11030_v43 = vmul.f32 1.442695, %v5398_v48  ;;  %v2583_v45 = vrot.slane %v2337_v40, 1 }
 0x419   : > { %v2585_v21 = vrot.slane %v2338_v28, 1  ;;  %v2879_v47 = vmul.f32 %v7057_v2, %v12863_v18  ;;  %v12874_v46 = vrot.slane %v12873_v11, 1  ;;  %v12876_v32 = vrot.slane %v12875_v54, 1  ;;  %v12880_v11 = vld [vmem:[#allocation68_spill] sm:$0xff] }
 0x41a   : > { %v3125_v17 = vrot.slane %v2878_v59, 2  ;;  %v3366_v30 = vmul.f32 %v7072_v3, %v12869_v4  ;;  %v12877_v34 = vrot.slane %v10866_v50, 1  ;;  %v12878_v18 = vrot.slane %v10875_v57, 1 }
 0x41b   : > { %v2097_v55 = vsel %vm1472_vm1, %v12874_v46, %v2096_v35  ;;  %v2099_v39 = vsel %vm1472_vm1, %v12876_v32, %v2098_v15  ;;  %v11048_v28 = vpop.eup %6342  ;;  %v12879_v35 = vrot.slane %v10911_v10, 2  ;;  %v3127_v59 = vrot.slane %v2879_v47, 2 }
 0x41c   : > { %v2238_v13 = vadd.f32 %v2097_v55, %v1751_v51  ;;  %v2239_v48 = vadd.f32 %v2099_v39, %v1752_v29  ;;  %v2584_v27 = vsel %vm1472_vm1, %v12877_v34, %v2583_v45  ;;  %v2586_v40 = vsel %vm1472_vm1, %v12878_v18, %v2585_v21  ;;  %v11055_v29 = vpop.eup %6344  ;;  %v803_v21 = vld [vmem:[#allocation2 + $0x98] sm:$0xff] }
 0x41d   : > { %v3126_v15 = vsel %vm2988_vm4, %v12879_v35, %v3125_v17  ;;  %v3367_v46 = vmul.f32 %v12880_v11, %v12870_v52  ;;  %v3612_v51 = vrot.slane %v3366_v30, 2  ;;  %v4757_v50 = vmul.f32 1.0614054, %v11048_v28 }
 0x41e   : > { %v2725_v45 = vadd.f32 %v2584_v27, %v2238_v13  ;;  %v2726_v55 = vadd.f32 %v2586_v40, %v2239_v48  ;;  %v3853_v57 = vmul.f32 %v7077_v0, %v12871_v26  ;;  %v4758_v54 = vmul.f32 1.0614054, %v11055_v29 }
 0x41f   : > { %v12881_v10 = vrot.slane %v10916_v62, 2  ;;  %v12882_v32 = vrot.slane %v10927_v20, 2  ;;  %v3614_v17 = vrot.slane %v3367_v46, 2  ;;  %v4821_v30 = vadd.f32 -1.4531521, %v4757_v50 }
 0x420   : > { %v3267_v34 = vadd.f32 %v3126_v15, %v2725_v45  ;;  %v3854_v13 = vmul.f32 %v7079_v5, %v12872_v9  ;;  %v4822_v48 = vadd.f32 -1.4531521, %v4758_v54  ;;  %v12883_v27 = vrot.slane %v10931_v25, 2 }
 0x421   : > { %v3128_v47 = vsel %vm2988_vm4, %v12881_v10, %v3127_v59  ;;  %v3613_v39 = vsel %vm2988_vm4, %v12882_v32, %v3612_v51  ;;  %v4099_v35 = vrot.slane %v3853_v57, 2  ;;  %v11072_v62 = vunpack.c.l.bf16 %v803_v21 }
 0x422   : > { %v3268_v18 = vadd.f32 %v3128_v47, %v2726_v55  ;;  %v3615_v40 = vsel %vm2988_vm4, %v12883_v27, %v3614_v17  ;;  %v4885_v59 = vmul.f32 %v11048_v28, %v4821_v30  ;;  %v3754_v20 = vadd.f32 %v3613_v39, %v3267_v34  ;;  %v12887_v55 = vld [vmem:[#allocation31_spill] sm:$0xff]  ;;  %v12889_v39 = vld [vmem:[#allocation4_spill] sm:$0xff] }
 0x423   : > { %12884 = vst [vmem:[#allocation58_spill] sm:$0xff] %v11072_v62  ;;  %v4101_v51 = vrot.slane %v3854_v13, 2  ;;  %v4886_v46 = vmul.f32 %v11055_v29, %v4822_v48  ;;  %v12885_v15 = vrot.slane %v10952_v7, 2  ;;  %v11079_v45 = vunpack.c.h.bf16 %v803_v21  ;;  %v12891_v13 = vld [vmem:[#allocation34_spill] sm:$0xff] }
 0x424   : > { %v3755_v10 = vadd.f32 %v3615_v40, %v3268_v18  ;;  %v941_v25 = vmul.f32 %v6917_v23, %v12887_v55  ;;  %v4949_v54 = vadd.f32 1.4214138, %v4885_v59  ;;  %v12888_v57 = vrot.slane %v10959_v36, 2  ;;  %v12890_v18 = vld [vmem:[#allocation65_spill] sm:$0xff] }
 0x425   : > { %v4100_v50 = vsel %vm2988_vm4, %v12885_v15, %v4099_v35  ;;  %12886 = vst [vmem:[#allocation18_spill] sm:$0xff] %v11079_v45  ;;  %v942_v17 = vmul.f32 %v6930_v19, %v12889_v39  ;;  %v4950_v30 = vadd.f32 1.4214138, %v4886_v46  ;;  %v1012_v7 = vmul.f32 %v6933_v14, %v12890_v18 }
 0x426   : > { %v4102_v47 = vsel %vm2988_vm4, %v12888_v57, %v4101_v51  ;;  %v4241_v32 = vadd.f32 %v4100_v50, %v3754_v20  ;;  %v1013_v21 = vmul.f32 %v12351_v49, %v12891_v13  ;;  %v5013_v48 = vmul.f32 %v11048_v28, %v4949_v54 }
 0x427   : > { %v4242_v34 = vadd.f32 %v4102_v47, %v3755_v10  ;;  %v1147_v36 = vmul.f32 %v6941_v22, %v11072_v62  ;;  %v1148_v40 = vmul.f32 %v6960_v31, %v11079_v45  ;;  %v5014_v35 = vmul.f32 %v11055_v29, %v4950_v30 }
 0x428   : > { %v11094_v27 = vadd.f32 %v7119_v6, %v4241_v32  ;;  %v1076_v20 = vadd.f32 %v1012_v7, %v941_v25  ;;  %v1077_v10 = vadd.f32 %v1013_v21, %v942_v17  ;;  %v11105_v51 = vmul.f32 0.5, %v10983_v33 }
 0x429   : > { %v11102_v59 = vadd.f32 %v7127_v16, %v4242_v34  ;;  %v5077_v46 = vadd.f32 -0.28449672, %v5013_v48  ;;  %6346 = vpow2.f32 %v11026_v8  ;;  %v11112_v50 = vmul.f32 0.5, %v10988_v61 }
 0x42a   : > { %v11109_v15 = vmul.f32 0.70710677, %v11094_v27  ;;  %v5078_v54 = vadd.f32 -0.28449672, %v5014_v35  ;;  %6348 = vpow2.f32 %v11030_v43  ;;  %v1211_v47 = vadd.f32 %v1147_v36, %v1076_v20 }
 0x42b   : > { %v11116_v57 = vmul.f32 0.70710677, %v11102_v59  ;;  %v5141_v25 = vmul.f32 %v11048_v28, %v5077_v46  ;;  %v1364_v8 = vmul.f32 %v6966_v58, %v12887_v55  ;;  %v1212_v61 = vadd.f32 %v1148_v40, %v1077_v10 }
 0x42c   : > { %v4503_v33 = vand.u32 2147483647, %v11109_v15  ;;  %v5142_v32 = vmul.f32 %v11055_v29, %v5078_v54  ;;  %v1365_v30 = vmul.f32 %v12864_v1, %v12889_v39  ;;  %v11128_v21 = vmul.f32 %v6966_v58, %v12851_v60 }
 0x42d   : > { %v4504_v17 = vand.u32 2147483647, %v11116_v57  ;;  %v5205_v43 = vadd.f32 0.2548296, %v5141_v25  ;;  %vm5717_vm15 = vcmp.lt.f32.partialorder %v10997_v41, 0.0  ;;  %v11133_v35 = vmul.f32 %v12864_v1, %v12853_v42 }
 0x42e   : > { %v4567_v34 = vmul.f32 0.3275911, %v4503_v33  ;;  %v5335_v7 = vsub.f32 0.0, %v4503_v33  ;;  %v5206_v48 = vadd.f32 0.2548296, %v5142_v32  ;;  %vm5718_vm0 = vcmp.lt.f32.partialorder %v11001_v44, 0.0 }
 0x42f   : > { %v4568_v36 = vmul.f32 0.3275911, %v4504_v17  ;;  %v5336_v55 = vsub.f32 0.0, %v4504_v17  ;;  %v6347_v40 = vpop.eup %6346  ;;  %v5269_v20 = vmul.f32 %v11048_v28, %v5205_v43  ;;  %v1613_v46 = vrot.slane %v1364_v8, 1 }
 0x430   : > { %v4631_v39 = vadd.f32 1.0, %v4567_v34  ;;  %v5399_v10 = vmul.f32 %v5335_v7, %v4503_v33  ;;  %v6349_v54 = vpop.eup %6348  ;;  %v5270_v25 = vmul.f32 %v11055_v29, %v5206_v48  ;;  %v12210_v26 = vrot.slane %v11128_v21, 1  ;;  %v12892_v7 = vld [vmem:[#allocation45_spill] sm:$0xff] }
 0x431   : > { %v4632_v32 = vadd.f32 1.0, %v4568_v36  ;;  %v5400_v9 = vmul.f32 %v5336_v55, %v4504_v17  ;;  %v5589_v52 = vmul.f32 %v6347_v40, %v5269_v20  ;;  %v1616_v1 = vrot.slane %v1365_v30, 1 }
 0x432   : > { %6350 = vrcp.f32 %v4631_v39  ;;  %v5517_v58 = vmul.f32 1.442695, %v5399_v10  ;;  %v5590_v4 = vmul.f32 %v6349_v54, %v5270_v25  ;;  %v1615_v28 = vsel %vm1472_vm1, %v1613_v46, %v12210_v26 }
 0x433   : > { %6352 = vrcp.f32 %v4632_v32  ;;  %v5519_v31 = vmul.f32 1.442695, %v5400_v9  ;;  %v5653_v33 = vsub.f32 1.0, %v5589_v52  ;;  %v12208_v8 = vrot.slane %v11133_v35, 1 }
 0x434   : > { %6354 = vpow2.f32 %v5517_v58  ;;  %v1753_v29 = vadd.f32 %v1615_v28, %v1211_v47  ;;  %v5654_v43 = vsub.f32 1.0, %v5590_v4  ;;  %v1852_v17 = vmul.f32 %v6972_v12, %v12890_v18  ;;  %v12893_v58 = vld [vmem:[#allocation11_spill] sm:$0xff] }
 0x435   : > { %6356 = vpow2.f32 %v5519_v31  ;;  %v1853_v30 = vmul.f32 %v12357_v63, %v12891_v13  ;;  %v5781_v34 = vsub.f32 0.0, %v5653_v33  ;;  %v1618_v9 = vsel %vm1472_vm1, %v1616_v1, %v12208_v8 }
 0x436   : > { %v11152_v52 = vmul.f32 %v6972_v12, %v12892_v7  ;;  %v11156_v47 = vmul.f32 %v12357_v63, %v12893_v58  ;;  %v5782_v31 = vsub.f32 0.0, %v5654_v43  ;;  %v1754_v4 = vadd.f32 %v1618_v9, %v1212_v61 }
 0x437   : > { %v2100_v48 = vrot.slane %v1852_v17, 1  ;;  %v2103_v36 = vrot.slane %v1853_v30, 1  ;;  %v5845_v40 = vsel %vm5717_vm15, %v5781_v34, %v5653_v33  ;;  %v2339_v39 = vmul.f32 %v7007_v37, %v11072_v62 }
 0x438   : > { %v11158_v55 = vpop.eup %6350  ;;  %v12207_v20 = vrot.slane %v11152_v52, 1  ;;  %v12206_v1 = vrot.slane %v11156_v47, 1  ;;  %v5846_v46 = vsel %vm5718_vm0, %v5782_v31, %v5654_v43  ;;  %v5909_v61 = vadd.f32 1.0, %v5845_v40  ;;  %v11182_v43 = vld [vmem:[#allocation2 + $0x98] sm:$0xee] }
 0x439   : > { %v11166_v10 = vpop.eup %6352  ;;  %v4759_v54 = vmul.f32 1.0614054, %v11158_v55  ;;  %v2340_v25 = vmul.f32 %v7009_v53, %v11079_v45  ;;  %v5910_v32 = vadd.f32 1.0, %v5846_v46  ;;  %12894 = vst [vmem:[#allocation25_spill] sm:$0xff] %v11182_v43  ;;  %v12899_v62 = vunpack.c.l.bf16 %v11182_v43 }
 0x43a   : > { %v11173_v41 = vpop.eup %6354  ;;  %v4760_v28 = vmul.f32 1.0614054, %v11166_v10  ;;  %v2102_v33 = vsel %vm1472_vm1, %v2100_v48, %v12207_v20  ;;  %v2105_v44 = vsel %vm1472_vm1, %v2103_v36, %v12206_v1  ;;  %v5973_v30 = vmul.f32 %v5909_v61, %v11105_v51  ;;  %v12898_v51 = vld [vmem:[#allocation14_spill] sm:$0xff] }
 0x43b   : > { %v11184_v17 = vpop.eup %6356  ;;  %v4823_v34 = vadd.f32 -1.4531521, %v4759_v54  ;;  %v2240_v9 = vadd.f32 %v2102_v33, %v1753_v29  ;;  %v2241_v31 = vadd.f32 %v2105_v44, %v1754_v4  ;;  %v5974_v40 = vmul.f32 %v5910_v32, %v11112_v50  ;;  %v12896_v44 = vld [vmem:[#allocation57_spill] sm:$0xff] }
 0x43c   : > { %v4824_v46 = vadd.f32 -1.4531521, %v4760_v28  ;;  %v11190_v48 = vmul.f32 %v7007_v37, %v11010_v38  ;;  %v11194_v36 = vmul.f32 %v7009_v53, %v11015_v56  ;;  %v2587_v20 = vrot.slane %v2339_v39, 1  ;;  %v12895_v28 = vld [vmem:[#allocation51_spill] sm:$0xff] }
 0x43d   : > { %v4887_v1 = vmul.f32 %v11158_v55, %v4823_v34  ;;  %v2590_v8 = vrot.slane %v2340_v25, 1  ;;  %v6011_v29 = vpack.c.bf16 %v5974_v40, %v5973_v30  ;;  %v2880_v33 = vmul.f32 %v7046_v24, %v12895_v28 }
 0x43e   : > { %v4888_v4 = vmul.f32 %v11166_v10, %v4824_v46  ;;  %v12209_v50 = vrot.slane %v11190_v48, 1  ;;  %v12211_v61 = vrot.slane %v11194_v36, 1  ;;  %v2881_v34 = vmul.f32 %v7057_v2, %v12896_v44 }
 0x43f   : > { %v4951_v54 = vadd.f32 1.4214138, %v4887_v1  ;;  %6043 = vst [vmem:[%s7389_s16 + $0xd0] sm:$0xff] %v6011_v29  ;;  %v11215_v1 = vmul.f32 %v7046_v24, %v12851_v60  ;;  %v11220_v29 = vmul.f32 %v7057_v2, %v12853_v42  ;;  %v3129_v44 = vrot.slane %v2880_v33, 2 }
 0x440   : > { %v4952_v39 = vadd.f32 1.4214138, %v4888_v4  ;;  %v2589_v25 = vsel %vm1472_vm1, %v2587_v20, %v12209_v50  ;;  %v2592_v30 = vsel %vm1472_vm1, %v2590_v8, %v12211_v61  ;;  %v3132_v50 = vrot.slane %v2881_v34, 2  ;;  %v12897_v61 = vld [vmem:[#allocation47_spill] sm:$0xff] }
 0x441   : > { %v5015_v40 = vmul.f32 %v11158_v55, %v4951_v54  ;;  %v2727_v46 = vadd.f32 %v2589_v25, %v2240_v9  ;;  %v2728_v28 = vadd.f32 %v2592_v30, %v2241_v31  ;;  %v12212_v20 = vrot.slane %v11215_v1, 2 }
 0x442   : > { %v5016_v4 = vmul.f32 %v11166_v10, %v4952_v39  ;;  %v12220_v8 = vrot.slane %v11220_v29, 2  ;;  %v3368_v32 = vmul.f32 %v7072_v3, %v12897_v61  ;;  %v3369_v9 = vmul.f32 %v12880_v11, %v12898_v51 }
 0x443   : > { %v5079_v26 = vadd.f32 -0.28449672, %v5015_v40  ;;  %v3131_v54 = vsel %vm2988_vm4, %v3129_v44, %v12212_v20  ;;  %v11234_v33 = vmul.f32 %v7072_v3, %v12892_v7  ;;  %v11238_v34 = vmul.f32 %v12880_v11, %v12893_v58 }
 0x444   : > { %v5080_v31 = vadd.f32 -0.28449672, %v5016_v4  ;;  %v3134_v25 = vsel %vm2988_vm4, %v3132_v50, %v12220_v8  ;;  %v3269_v30 = vadd.f32 %v3131_v54, %v2727_v46  ;;  %v3616_v40 = vrot.slane %v3368_v32, 2 }
 0x445   : > { %v5143_v39 = vmul.f32 %v11158_v55, %v5079_v26  ;;  %v3270_v51 = vadd.f32 %v3134_v25, %v2728_v28  ;;  %v12219_v44 = vrot.slane %v11234_v33, 2  ;;  %v3619_v20 = vrot.slane %v3369_v9, 2 }
 0x446   : > { %v5144_v4 = vmul.f32 %v11166_v10, %v5080_v31  ;;  %v12223_v45 = vrot.slane %v11238_v34, 2  ;;  %v3855_v13 = vmul.f32 %v7077_v0, %v12899_v62  ;;  %v12900_v26 = vunpack.c.h.bf16 %v11182_v43 }
 0x447   : > { %v5207_v61 = vadd.f32 0.2548296, %v5143_v39  ;;  %v3618_v32 = vsel %vm2988_vm4, %v3616_v40, %v12219_v44  ;;  %v11258_v46 = vmul.f32 %v7077_v0, %v11010_v38  ;;  %v11262_v28 = vmul.f32 %v7079_v5, %v11015_v56 }
 0x448   : > { %v3856_v18 = vmul.f32 %v7079_v5, %v12900_v26  ;;  %v5208_v50 = vadd.f32 0.2548296, %v5144_v4  ;;  %v3621_v62 = vsel %vm2988_vm4, %v3619_v20, %v12223_v45  ;;  %v3756_v31 = vadd.f32 %v3618_v32, %v3269_v30 }
 0x449   : > { %v5271_v9 = vmul.f32 %v11158_v55, %v5207_v61  ;;  %v4103_v54 = vrot.slane %v3855_v13, 2  ;;  %v3757_v25 = vadd.f32 %v3621_v62, %v3270_v51  ;;  %v12222_v40 = vrot.slane %v11258_v46, 2 }
 0x44a   : > { %v5272_v39 = vmul.f32 %v11166_v10, %v5208_v50  ;;  %v4106_v4 = vrot.slane %v3856_v18, 2  ;;  %v12221_v44 = vrot.slane %v11262_v28, 2  ;;  %v943_v8 = vmul.f32 %v6917_v23, %v12851_v60 }
 0x44b   : > { %v5591_v26 = vmul.f32 %v11173_v41, %v5271_v9  ;;  %v4105_v61 = vsel %vm2988_vm4, %v4103_v54, %v12222_v40  ;;  %v944_v13 = vmul.f32 %v6930_v19, %v12853_v42  ;;  %v1014_v10 = vmul.f32 %v6933_v14, %v12892_v7  ;;  %v1235_v54 = vld [vmem:[#allocation2 + $0x140] sm:$0x11] }
 0x44c   : > { %v5592_v55 = vmul.f32 %v11184_v17, %v5272_v39  ;;  %v4108_v41 = vsel %vm2988_vm4, %v4106_v4, %v12221_v44  ;;  %v4243_v51 = vadd.f32 %v4105_v61, %v3756_v31  ;;  %v1015_v60 = vmul.f32 %v12351_v49, %v12893_v58  ;;  %v12901_v4 = vld [vmem:[#allocation60_spill] sm:$0xff]  ;;  %v12907_v44 = vld [vmem:[#allocation63_spill] sm:$0xff] }
 0x44d   : > { %v5655_v18 = vsub.f32 1.0, %v5591_v26  ;;  %v4375_v17 = vmul.f32 0.5, %v11094_v27  ;;  %v4376_v20 = vmul.f32 0.5, %v11102_v59  ;;  %v4244_v50 = vadd.f32 %v4108_v41, %v3757_v25 }
 0x44e   : > { %v5656_v30 = vsub.f32 1.0, %v5592_v55  ;;  %v4313_v42 = vadd.f32 %v7119_v6, %v4243_v51  ;;  %v1078_v9 = vadd.f32 %v1014_v10, %v943_v8  ;;  %v1149_v62 = vmul.f32 %v6941_v22, %v11010_v38  ;;  %v12904_v51 = vld [vmem:[#allocation42_spill] sm:$0xff] }
 0x44f   : > { %v5783_v32 = vsub.f32 0.0, %v5655_v18  ;;  %vm5719_vm2 = vcmp.lt.f32.partialorder %v11109_v15, 0.0  ;;  %vm5720_vm3 = vcmp.lt.f32.partialorder %v11116_v57, 0.0  ;;  %v11295_v39 = vadd.f32 %v7127_v16, %v4244_v50  ;;  %v12905_v50 = vld [vmem:[#allocation61_spill] sm:$0xff] }
 0x450   : > { %v5784_v31 = vsub.f32 0.0, %v5656_v30  ;;  %v11297_v59 = vmul.f32 0.70710677, %v4313_v42  ;;  %v1079_v25 = vadd.f32 %v1015_v60, %v944_v13  ;;  %v1150_v26 = vmul.f32 %v12901_v4, %v11015_v56 }
 0x451   : > { %v5847_v27 = vsel %vm5719_vm2, %v5783_v32, %v5655_v18  ;;  %v11302_v61 = vmul.f32 0.70710677, %v11295_v39  ;;  %v11304_v10 = vunpack.c.l.bf16 %v1235_v54  ;;  %v1213_v41 = vadd.f32 %v1149_v62, %v1078_v9  ;;  %v12909_v9 = vld [vmem:[#allocation32_spill] sm:$0xff] }
 0x452   : > { %v5848_v8 = vsel %vm5720_vm3, %v5784_v31, %v5656_v30  ;;  %v5911_v55 = vadd.f32 1.0, %v5847_v27  ;;  %v4505_v57 = vand.u32 2147483647, %v11297_v59  ;;  %v1368_v18 = vmul.f32 %v12905_v50, %v12904_v51  ;;  %v12908_v30 = vld [vmem:[#allocation62_spill] sm:$0xff] }
 0x453   : > { %12902 = vst [vmem:[#allocation43_spill] sm:$0xff] %v11302_v61  ;;  %v5912_v15 = vadd.f32 1.0, %v5848_v8  ;;  %v4506_v13 = vand.u32 2147483647, %v11302_v61  ;;  %v11310_v60 = vunpack.c.h.bf16 %v1235_v54  ;;  %v1369_v31 = vmul.f32 %v12908_v30, %v12907_v44 }
 0x454   : > { %12903 = vst [vmem:[#allocation44_spill] sm:$0xff] %v11304_v10  ;;  %v5975_v32 = vmul.f32 %v5911_v55, %v4375_v17  ;;  %v4569_v40 = vmul.f32 0.3275911, %v4505_v57  ;;  %v5337_v45 = vsub.f32 0.0, %v4505_v57  ;;  %v1619_v43 = vrot.slane %v1368_v18, 1 }
 0x455   : > { %12906 = vst [vmem:[#allocation53_spill] sm:$0xff] %v11310_v60  ;;  %v5976_v27 = vmul.f32 %v5912_v15, %v4376_v20  ;;  %v4570_v8 = vmul.f32 0.3275911, %v4506_v13  ;;  %v1214_v56 = vadd.f32 %v1150_v26, %v1079_v25  ;;  %v1621_v38 = vrot.slane %v1369_v31, 1  ;;  %v12912_v26 = vld [vmem:[#allocation39_spill] sm:$0xff] }
 0x456   : > { %v1856_v62 = vmul.f32 %v6972_v12, %v12909_v9  ;;  %v4633_v17 = vadd.f32 1.0, %v4569_v40  ;;  %v5338_v55 = vsub.f32 0.0, %v4506_v13  ;;  %v12910_v54 = vrot.slane %v11128_v21, 1 }
 0x457   : > { %v6012_v58 = vpack.c.bf16 %v5976_v27, %v5975_v32  ;;  %v4634_v61 = vadd.f32 1.0, %v4570_v8  ;;  %v5401_v30 = vmul.f32 %v5337_v45, %v4505_v57  ;;  %v12911_v20 = vrot.slane %v11133_v35, 1 }
 0x458   : > { %v1620_v7 = vsel %vm1472_vm1, %v12910_v54, %v1619_v43  ;;  %v11323_v18 = vmul.f32 0.5, %v4313_v42  ;;  %6358 = vrcp.f32 %v4633_v17  ;;  %v1857_v32 = vmul.f32 %v12357_v63, %v12912_v26 }
 0x459   : > { %v1622_v15 = vsel %vm1472_vm1, %v12911_v20, %v1621_v38  ;;  %6044 = vst [vmem:[%s7389_s16 + $0xd8] sm:$0xff] %v6012_v58  ;;  %v1755_v25 = vadd.f32 %v1620_v7, %v1213_v41  ;;  %6360 = vrcp.f32 %v4634_v61  ;;  %v2106_v31 = vrot.slane %v1856_v62, 1 }
 0x45a   : > { %v1756_v40 = vadd.f32 %v1622_v15, %v1214_v56  ;;  %v2343_v21 = vmul.f32 %v7007_v37, %v11304_v10  ;;  %v5402_v43 = vmul.f32 %v5338_v55, %v4506_v13  ;;  %v2108_v45 = vrot.slane %v1857_v32, 1 }
 0x45b   : > { %v2344_v35 = vmul.f32 %v7009_v53, %v11310_v60  ;;  %v2884_v38 = vmul.f32 %v7046_v24, %v12904_v51  ;;  %v5521_v58 = vmul.f32 1.442695, %v5401_v30  ;;  %v12913_v7 = vrot.slane %v11152_v52, 1 }
 0x45c   : > { %v2593_v57 = vrot.slane %v2343_v21, 1  ;;  %v2885_v56 = vmul.f32 %v7057_v2, %v12907_v44  ;;  %v12914_v61 = vrot.slane %v11156_v47, 1  ;;  %v12915_v17 = vrot.slane %v11190_v48, 1 }
 0x45d   : > { %v2107_v42 = vsel %vm1472_vm1, %v12913_v7, %v2106_v31  ;;  %v2595_v27 = vrot.slane %v2344_v35, 1  ;;  %v3135_v8 = vrot.slane %v2884_v38, 2  ;;  %v3372_v52 = vmul.f32 %v7072_v3, %v12909_v9 }
 0x45e   : > { %v2109_v41 = vsel %vm1472_vm1, %v12914_v61, %v2108_v45  ;;  %v2242_v13 = vadd.f32 %v2107_v42, %v1755_v25  ;;  %v2594_v51 = vsel %vm1472_vm1, %v12915_v17, %v2593_v57  ;;  %v3137_v30 = vrot.slane %v2885_v56, 2  ;;  %v11346_v55 = vpop.eup %6358 }
 0x45f   : > { %v2243_v62 = vadd.f32 %v2109_v41, %v1756_v40  ;;  %v12916_v44 = vrot.slane %v11194_v36, 1  ;;  %v12917_v20 = vrot.slane %v11215_v1, 2  ;;  %v3373_v48 = vmul.f32 %v12880_v11, %v12912_v26  ;;  %v11356_v25 = vpop.eup %6360 }
 0x460   : > { %v2729_v54 = vadd.f32 %v2594_v51, %v2242_v13  ;;  %v4761_v32 = vmul.f32 1.0614054, %v11346_v55  ;;  %v12918_v31 = vrot.slane %v11220_v29, 2  ;;  %v3622_v36 = vrot.slane %v3372_v52, 2  ;;  %v11370_v29 = vld [vmem:[#allocation2 + $0x60] sm:$0xff] }
 0x461   : > { %v2596_v47 = vsel %vm1472_vm1, %v12916_v44, %v2595_v27  ;;  %v3136_v15 = vsel %vm2988_vm4, %v12917_v20, %v3135_v8  ;;  %v4762_v45 = vmul.f32 1.0614054, %v11356_v25  ;;  %v3624_v38 = vrot.slane %v3373_v48, 2 }
 0x462   : > { %v2730_v40 = vadd.f32 %v2596_v47, %v2243_v62  ;;  %v3138_v21 = vsel %vm2988_vm4, %v12918_v31, %v3137_v30  ;;  %v3271_v35 = vadd.f32 %v3136_v15, %v2729_v54  ;;  %v3859_v1 = vmul.f32 %v7077_v0, %v11304_v10  ;;  %v12923_v31 = vld [vmem:[#allocation65_spill] sm:$0xff] }
 0x463   : > { %v4825_v7 = vadd.f32 -1.4531521, %v4761_v32  ;;  %v12919_v57 = vrot.slane %v11234_v33, 2  ;;  %v3860_v61 = vmul.f32 %v7079_v5, %v11310_v60  ;;  %v4826_v41 = vadd.f32 -1.4531521, %v4762_v45 }
 0x464   : > { %v3272_v42 = vadd.f32 %v3138_v21, %v2730_v40  ;;  %v12920_v13 = vrot.slane %v11238_v34, 2  ;;  %v4109_v62 = vrot.slane %v3859_v1, 2  ;;  %v5523_v51 = vmul.f32 1.442695, %v5402_v43 }
 0x465   : > { %v3623_v56 = vsel %vm2988_vm4, %v12919_v57, %v3622_v36  ;;  %v4889_v17 = vmul.f32 %v11346_v55, %v4825_v7  ;;  %v4111_v52 = vrot.slane %v3860_v61, 2  ;;  %v4890_v33 = vmul.f32 %v11356_v25, %v4826_v41 }
 0x466   : > { %v3625_v27 = vsel %vm2988_vm4, %v12920_v13, %v3624_v38  ;;  %v3758_v8 = vadd.f32 %v3623_v56, %v3271_v35  ;;  %6362 = vpow2.f32 %v5521_v58  ;;  %v12921_v44 = vrot.slane %v11258_v46, 2  ;;  %v12924_v58 = vld [vmem:[#allocation34_spill] sm:$0xff] }
 0x467   : > { %v3759_v30 = vadd.f32 %v3625_v27, %v3272_v42  ;;  %v12235_v54 = vunpack.c.l.bf16 %v11370_v29  ;;  %v4953_v20 = vadd.f32 1.4214138, %v4889_v17  ;;  %v12922_v34 = vrot.slane %v11262_v28, 2  ;;  %v12925_v35 = vld [vmem:[#allocation58_spill] sm:$0xff] }
 0x468   : > { %v4110_v47 = vsel %vm2988_vm4, %v12921_v44, %v4109_v62  ;;  %v12234_v32 = vunpack.c.h.bf16 %v11370_v29  ;;  %v4954_v43 = vadd.f32 1.4214138, %v4890_v33  ;;  %v945_v21 = vmul.f32 %v6917_v23, %v12923_v31  ;;  %v12926_v38 = vld [vmem:[#allocation18_spill] sm:$0xff] }
 0x469   : > { %v4112_v15 = vsel %vm2988_vm4, %v12922_v34, %v4111_v52  ;;  %v4245_v48 = vadd.f32 %v4110_v47, %v3758_v8  ;;  %v946_v46 = vmul.f32 %v6930_v19, %v12924_v58  ;;  %v5017_v36 = vmul.f32 %v11346_v55, %v4953_v20  ;;  %v6398_v52 = vld [vmem:[#allocation2 + $0x88] sm:$0xff] }
 0x46a   : > { %v4246_v40 = vadd.f32 %v4112_v15, %v3759_v30  ;;  %v1016_v28 = vmul.f32 %v6933_v14, %v12925_v35  ;;  %v1017_v1 = vmul.f32 %v12351_v49, %v12926_v38  ;;  %v11398_v7 = vmul.f32 0.5, %v11295_v39 }
 0x46b   : > { %v11391_v45 = vadd.f32 %v7119_v6, %v4245_v48  ;;  %v5018_v42 = vmul.f32 %v11356_v25, %v4954_v43  ;;  %6364 = vpow2.f32 %v5523_v51  ;;  %v5081_v56 = vadd.f32 -0.28449672, %v5017_v36 }
 0x46c   : > { %v11402_v57 = vadd.f32 %v7127_v16, %v4246_v40  ;;  %v1080_v41 = vadd.f32 %v1016_v28, %v945_v21  ;;  %v1151_v13 = vmul.f32 %v6941_v22, %v12235_v54  ;;  %v6363_v27 = vpop.eup %6362  ;;  %v1081_v62 = vadd.f32 %v1017_v1, %v946_v46 }
 0x46d   : > { %v11405_v61 = vmul.f32 0.70710677, %v11391_v45  ;;  %v5082_v8 = vadd.f32 -0.28449672, %v5018_v42  ;;  %v1152_v17 = vmul.f32 %v12901_v4, %v12234_v32  ;;  %v5145_v51 = vmul.f32 %v11346_v55, %v5081_v56  ;;  %v12927_v42 = vld [vmem:[#allocation62_spill] sm:$0xff]  ;;  %v12930_v32 = vld [vmem:[#allocation11_spill] sm:$0xff] }
 0x46e   : > { %v11411_v39 = vmul.f32 0.70710677, %v11402_v57  ;;  %v11418_v33 = vunpack.c.l.bf16 %v6398_v52  ;;  %v11420_v44 = vunpack.c.h.bf16 %v6398_v52  ;;  %v1215_v34 = vadd.f32 %v1151_v13, %v1080_v41  ;;  %v12928_v52 = vld [vmem:[#allocation43_spill] sm:$0xff] }
 0x46f   : > { %v4507_v30 = vand.u32 2147483647, %v11405_v61  ;;  %v5146_v47 = vmul.f32 %v11356_v25, %v5082_v8  ;;  %v1216_v15 = vadd.f32 %v1152_v17, %v1081_v62  ;;  %v5209_v48 = vadd.f32 0.2548296, %v5145_v51  ;;  %v12929_v62 = vld [vmem:[#allocation45_spill] sm:$0xff] }
 0x470   : > { %v4508_v20 = vand.u32 2147483647, %v11411_v39  ;;  %v1370_v21 = vmul.f32 %v12905_v50, %v12923_v31  ;;  %vm5721_vm5 = vcmp.lt.f32.partialorder %v11297_v59, 0.0  ;;  %v1371_v56 = vmul.f32 %v12927_v42, %v12924_v58 }
 0x471   : > { %v4571_v43 = vmul.f32 0.3275911, %v4507_v30  ;;  %v5339_v40 = vsub.f32 0.0, %v4507_v30  ;;  %v6365_v46 = vpop.eup %6364  ;;  %v5210_v36 = vadd.f32 0.2548296, %v5146_v47  ;;  %v5273_v8 = vmul.f32 %v11346_v55, %v5209_v48 }
 0x472   : > { %v4572_v28 = vmul.f32 0.3275911, %v4508_v20  ;;  %v5340_v1 = vsub.f32 0.0, %v4508_v20  ;;  %vm5722_vm6 = vcmp.lt.f32.partialorder %v12928_v52, 0.0  ;;  %v11433_v17 = vmul.f32 %v12905_v50, %v12929_v62 }
 0x473   : > { %v4635_v41 = vadd.f32 1.0, %v4571_v43  ;;  %v5403_v13 = vmul.f32 %v5339_v40, %v4507_v30  ;;  %v5274_v31 = vmul.f32 %v11356_v25, %v5210_v36  ;;  %v11438_v54 = vmul.f32 %v12927_v42, %v12930_v32 }
 0x474   : > { %v4636_v51 = vadd.f32 1.0, %v4572_v28  ;;  %v5404_v47 = vmul.f32 %v5340_v1, %v4508_v20  ;;  %v5593_v60 = vmul.f32 %v6363_v27, %v5273_v8  ;;  %v1623_v55 = vrot.slane %v1370_v21, 1  ;;  %v12931_v8 = vld [vmem:[#allocation21_spill] sm:$0xff] }
 0x475   : > { %6366 = vrcp.f32 %v4635_v41  ;;  %v5525_v58 = vmul.f32 1.442695, %v5403_v13  ;;  %v5594_v48 = vmul.f32 %v6365_v46, %v5274_v31  ;;  %v12242_v30 = vrot.slane %v11433_v17, 1  ;;  %v12932_v13 = vld [vmem:[#allocation52_spill] sm:$0xff] }
 0x476   : > { %6368 = vrcp.f32 %v4636_v51  ;;  %v5527_v43 = vmul.f32 1.442695, %v5404_v47  ;;  %v5657_v40 = vsub.f32 1.0, %v5593_v60  ;;  %v1626_v10 = vrot.slane %v1371_v56, 1 }
 0x477   : > { %6370 = vpow2.f32 %v5525_v58  ;;  %v12240_v25 = vrot.slane %v11438_v54, 1  ;;  %v5658_v36 = vsub.f32 1.0, %v5594_v48  ;;  %v1625_v20 = vsel %vm1472_vm1, %v1623_v55, %v12242_v30 }
 0x478   : > { %6372 = vpow2.f32 %v5527_v43  ;;  %v1858_v27 = vmul.f32 %v6972_v12, %v12925_v35  ;;  %v5785_v21 = vsub.f32 0.0, %v5657_v40  ;;  %v1757_v28 = vadd.f32 %v1625_v20, %v1215_v34 }
 0x479   : > { %v1628_v46 = vsel %vm1472_vm1, %v1626_v10, %v12240_v25  ;;  %v1859_v60 = vmul.f32 %v12357_v63, %v12926_v38  ;;  %v5786_v1 = vsub.f32 0.0, %v5658_v36  ;;  %v11454_v41 = vmul.f32 %v6972_v12, %v12931_v8  ;;  %v2752_v25 = vld [vmem:[#allocation2 + $0x60] sm:$0xee] }
 0x47a   : > { %v1758_v56 = vadd.f32 %v1628_v46, %v1216_v15  ;;  %v11458_v31 = vmul.f32 %v12357_v63, %v12932_v13  ;;  %v5849_v51 = vsel %vm5721_vm5, %v5785_v21, %v5657_v40  ;;  %v2110_v10 = vrot.slane %v1858_v27, 1 }
 0x47b   : > { %v11460_v35 = vpop.eup %6366  ;;  %v2113_v34 = vrot.slane %v1859_v60, 1  ;;  %v12934_v47 = vunpack.c.l.bf16 %v11370_v29  ;;  %v5850_v58 = vsel %vm5722_vm6, %v5786_v1, %v5658_v36  ;;  %v5913_v55 = vadd.f32 1.0, %v5849_v51 }
 0x47c   : > { %12933 = vst [vmem:[#allocation54_spill] sm:$0xff] %v11458_v31  ;;  %v11467_v15 = vpop.eup %6368  ;;  %v4763_v48 = vmul.f32 1.0614054, %v11460_v35  ;;  %v12241_v43 = vrot.slane %v11454_v41, 1  ;;  %v5914_v59 = vadd.f32 1.0, %v5850_v58  ;;  %v12245_v27 = vrot.slane %v11458_v31, 1 }
 0x47d   : > { %v2345_v38 = vmul.f32 %v7007_v37, %v12934_v47  ;;  %v11473_v20 = vpop.eup %6370  ;;  %v4764_v40 = vmul.f32 1.0614054, %v11467_v15  ;;  %v12935_v21 = vunpack.c.h.bf16 %v11370_v29  ;;  %v5977_v52 = vmul.f32 %v5913_v55, %v11323_v18 }
 0x47e   : > { %v11480_v60 = vpop.eup %6372  ;;  %v4827_v36 = vadd.f32 -1.4531521, %v4763_v48  ;;  %v2112_v1 = vsel %vm1472_vm1, %v2110_v10, %v12241_v43  ;;  %v11488_v51 = vmul.f32 %v7007_v37, %v11418_v33  ;;  %v5978_v47 = vmul.f32 %v5914_v59, %v11398_v7 }
 0x47f   : > { %v2346_v46 = vmul.f32 %v7009_v53, %v12935_v21  ;;  %v4828_v58 = vadd.f32 -1.4531521, %v4764_v40  ;;  %v2115_v29 = vsel %vm1472_vm1, %v2113_v34, %v12245_v27  ;;  %v2244_v21 = vadd.f32 %v2112_v1, %v1757_v28 }
 0x480   : > { %v4891_v18 = vmul.f32 %v11460_v35, %v4827_v36  ;;  %v2245_v55 = vadd.f32 %v2115_v29, %v1758_v56  ;;  %v11497_v10 = vmul.f32 %v7009_v53, %v11420_v44  ;;  %v2597_v48 = vrot.slane %v2345_v38, 1  ;;  %v12937_v36 = vld [vmem:[#allocation47_spill] sm:$0xff] }
 0x481   : > { %v6013_v43 = vpack.c.bf16 %v5978_v47, %v5977_v52  ;;  %v4892_v30 = vmul.f32 %v11467_v15, %v4828_v58  ;;  %v12244_v7 = vrot.slane %v11488_v51, 1  ;;  %v2600_v59 = vrot.slane %v2346_v46, 1  ;;  %v12938_v52 = vld [vmem:[#allocation14_spill] sm:$0xff] }
 0x482   : > { %12936 = vst [vmem:[#allocation33_spill] sm:$0xff] %v11497_v10  ;;  %v4955_v40 = vadd.f32 1.4214138, %v4891_v18  ;;  %v12246_v31 = vrot.slane %v11497_v10, 1  ;;  %v2787_v34 = vunpack.c.l.bf16 %v2752_v25  ;;  %v2788_v28 = vunpack.c.h.bf16 %v2752_v25 }
 0x483   : > { %6045 = vst [vmem:[%s7389_s16 + $0xe0] sm:$0xff] %v6013_v43  ;;  %v4956_v1 = vadd.f32 1.4214138, %v4892_v30  ;;  %v2599_v56 = vsel %vm1472_vm1, %v2597_v48, %v12244_v7  ;;  %v2886_v38 = vmul.f32 %v7046_v24, %v12937_v36  ;;  %v2887_v47 = vmul.f32 %v7057_v2, %v12938_v52  ;;  %v12940_v7 = vld [vmem:[#allocation25_spill] sm:$0xff] }
 0x484   : > { %v5019_v58 = vmul.f32 %v11460_v35, %v4955_v40  ;;  %v2602_v46 = vsel %vm1472_vm1, %v2600_v59, %v12246_v31  ;;  %v2731_v29 = vadd.f32 %v2599_v56, %v2244_v21  ;;  %v11516_v30 = vmul.f32 %v7046_v24, %v12929_v62 }
 0x485   : > { %v5020_v25 = vmul.f32 %v11467_v15, %v4956_v1  ;;  %v2732_v43 = vadd.f32 %v2602_v46, %v2245_v55  ;;  %v11521_v18 = vmul.f32 %v7057_v2, %v12930_v32  ;;  %v3139_v48 = vrot.slane %v2886_v38, 2 }
 0x486   : > { %12939 = vst [vmem:[#allocation27_spill] sm:$0xff] %v11516_v30  ;;  %v5083_v36 = vadd.f32 -0.28449672, %v5019_v58  ;;  %v12250_v40 = vrot.slane %v11516_v30, 2  ;;  %v3142_v52 = vrot.slane %v2887_v47, 2  ;;  %v12941_v27 = vunpack.c.l.bf16 %v12940_v7 }
 0x487   : > { %v5084_v59 = vadd.f32 -0.28449672, %v5020_v25  ;;  %v3143_v56 = vrot.slane %v11521_v18, 2  ;;  %v12942_v31 = vunpack.c.h.bf16 %v12940_v7  ;;  %v11533_v1 = vmul.f32 %v7072_v3, %v12931_v8 }
 0x488   : > { %v3374_v21 = vmul.f32 %v7072_v3, %v12941_v27  ;;  %v5147_v38 = vmul.f32 %v11460_v35, %v5083_v36  ;;  %v3141_v47 = vsel %vm2988_vm4, %v3139_v48, %v12250_v40  ;;  %v11541_v27 = vmul.f32 %v12880_v11, %v12932_v13 }
 0x489   : > { %v3375_v55 = vmul.f32 %v12880_v11, %v12942_v31  ;;  %v5148_v46 = vmul.f32 %v11467_v15, %v5084_v59  ;;  %v3144_v31 = vsel %vm2988_vm4, %v3142_v52, %v3143_v56  ;;  %v3273_v7 = vadd.f32 %v3141_v47, %v2731_v29 }
 0x48a   : > { %v3626_v58 = vrot.slane %v3374_v21, 2  ;;  %v3627_v25 = vrot.slane %v11533_v1, 2  ;;  %v5211_v3 = vadd.f32 0.2548296, %v5147_v38  ;;  %v3274_v36 = vadd.f32 %v3144_v31, %v2732_v43 }
 0x48b   : > { %v3629_v10 = vrot.slane %v3375_v55, 2  ;;  %v3630_v30 = vrot.slane %v11541_v27, 2  ;;  %v5212_v48 = vadd.f32 0.2548296, %v5148_v46  ;;  %v3861_v40 = vmul.f32 %v7077_v0, %v2787_v34 }
 0x48c   : > { %v3862_v11 = vmul.f32 %v7079_v5, %v2788_v28  ;;  %v5275_v21 = vmul.f32 %v11460_v35, %v5211_v3  ;;  %v3628_v59 = vsel %vm2988_vm4, %v3626_v58, %v3627_v25  ;;  %v11560_v43 = vmul.f32 %v7077_v0, %v11418_v33 }
 0x48d   : > { %v3631_v29 = vsel %vm2988_vm4, %v3629_v10, %v3630_v30  ;;  %v5276_v52 = vmul.f32 %v11467_v15, %v5212_v48  ;;  %v3760_v55 = vadd.f32 %v3628_v59, %v3273_v7  ;;  %v11565_v34 = vmul.f32 %v7079_v5, %v11420_v44 }
 0x48e   : > { %v4113_v3 = vrot.slane %v3861_v40, 2  ;;  %v5595_v35 = vmul.f32 %v11473_v20, %v5275_v21  ;;  %v3761_v28 = vadd.f32 %v3631_v29, %v3274_v36  ;;  %v4114_v38 = vrot.slane %v11560_v43, 2 }
 0x48f   : > { %v4116_v47 = vrot.slane %v3862_v11, 2  ;;  %v5596_v10 = vmul.f32 %v11480_v60, %v5276_v52  ;;  %v4117_v58 = vrot.slane %v11565_v34, 2  ;;  %v947_v46 = vmul.f32 %v6917_v23, %v12929_v62  ;;  %v11601_v52 = vld [vmem:[#allocation2 + $0x190] sm:$0x11] }
 0x490   : > { %v1018_v15 = vmul.f32 %v6933_v14, %v12931_v8  ;;  %v5659_v31 = vsub.f32 1.0, %v5595_v35  ;;  %v4115_v40 = vsel %vm2988_vm4, %v4113_v3, %v4114_v38  ;;  %v948_v20 = vmul.f32 %v6930_v19, %v12930_v32 }
 0x491   : > { %v1019_v11 = vmul.f32 %v12351_v49, %v12932_v13  ;;  %v5660_v60 = vsub.f32 1.0, %v5596_v10  ;;  %v4118_v7 = vsel %vm2988_vm4, %v4116_v47, %v4117_v58  ;;  %v4247_v23 = vadd.f32 %v4115_v40, %v3760_v55  ;;  %v12943_v40 = vld [vmem:[#allocation44_spill] sm:$0xff] }
 0x492   : > { %v4379_v62 = vmul.f32 0.5, %v11391_v45  ;;  %vm5723_vm7 = vcmp.lt.f32.partialorder %v11405_v61, 0.0  ;;  %v5787_v14 = vsub.f32 0.0, %v5659_v31  ;;  %v4248_v8 = vadd.f32 %v4118_v7, %v3761_v28 }
 0x493   : > { %v5788_v36 = vsub.f32 0.0, %v5660_v60  ;;  %v11588_v48 = vadd.f32 %v7119_v6, %v4247_v23  ;;  %v1082_v19 = vadd.f32 %v1018_v15, %v947_v46  ;;  %v1153_v49 = vmul.f32 %v6941_v22, %v11418_v33 }
 0x494   : > { %vm5724_vm8 = vcmp.lt.f32.partialorder %v11411_v39, 0.0  ;;  %v5851_v32 = vsel %vm5723_vm7, %v5787_v14, %v5659_v31  ;;  %v11594_v13 = vadd.f32 %v7127_v16, %v4248_v8  ;;  %v1083_v21 = vadd.f32 %v1019_v11, %v948_v20 }
 0x495   : > { %v5852_v45 = vsel %vm5724_vm8, %v5788_v36, %v5660_v60  ;;  %v5915_v59 = vadd.f32 1.0, %v5851_v32  ;;  %v11597_v61 = vmul.f32 0.70710677, %v11588_v48  ;;  %v1154_v29 = vmul.f32 %v12901_v4, %v11420_v44 }
 0x496   : > { %v4380_v55 = vmul.f32 0.5, %v11402_v57  ;;  %v5916_v22 = vadd.f32 1.0, %v5852_v45  ;;  %v11605_v39 = vmul.f32 0.70710677, %v11594_v13  ;;  %v1374_v33 = vmul.f32 %v12905_v50, %v12909_v9 }
 0x497   : > { %v5979_v3 = vmul.f32 %v5915_v59, %v4379_v62  ;;  %v4509_v35 = vand.u32 2147483647, %v11597_v61  ;;  %v1217_v28 = vadd.f32 %v1153_v49, %v1082_v19  ;;  %v1375_v47 = vmul.f32 %v12927_v42, %v12912_v26  ;;  %v12946_v19 = vld [vmem:[#allocation53_spill] sm:$0xff] }
 0x498   : > { %v5980_v4 = vmul.f32 %v5916_v22, %v4380_v55  ;;  %v11613_v44 = vand.u32 2147483647, %v11605_v39  ;;  %v1271_v57 = vunpack.c.l.bf16 %v11601_v52  ;;  %v1629_v10 = vrot.slane %v1374_v33, 1  ;;  %v12948_v22 = vld [vmem:[#allocation54_spill] sm:$0xff] }
 0x499   : > { %v4573_v46 = vmul.f32 0.3275911, %v4509_v35  ;;  %v1218_v15 = vadd.f32 %v1154_v29, %v1083_v21  ;;  %v1631_v31 = vrot.slane %v1375_v47, 1  ;;  %v1862_v50 = vmul.f32 %v6972_v12, %v12943_v40 }
 0x49a   : > { %v6014_v20 = vpack.c.bf16 %v5980_v4, %v5979_v3  ;;  %v4574_v11 = vmul.f32 0.3275911, %v11613_v44  ;;  %v1272_v60 = vunpack.c.h.bf16 %v11601_v52  ;;  %v12944_v42 = vrot.slane %v11433_v17, 1 }
 0x49b   : > { %v4637_v23 = vadd.f32 1.0, %v4573_v46  ;;  %v12945_v62 = vrot.slane %v11438_v54, 1  ;;  %v1863_v12 = vmul.f32 %v12357_v63, %v12946_v19  ;;  %v2116_v32 = vrot.slane %v1862_v50, 1  ;;  %v12951_v46 = vld [vmem:[#allocation33_spill] sm:$0xff] }
 0x49c   : > { %v1630_v7 = vsel %vm1472_vm1, %v12944_v42, %v1629_v10  ;;  %6046 = vst [vmem:[%s7389_s16 + $0xe8] sm:$0xff] %v6014_v20  ;;  %v4638_v8 = vadd.f32 1.0, %v4574_v11  ;;  %v2349_v21 = vmul.f32 %v7007_v37, %v1271_v57  ;;  %v2350_v45 = vmul.f32 %v7009_v53, %v1272_v60  ;;  %v12954_v20 = vld [vmem:[#allocation68_spill] sm:$0xff] }
 0x49d   : > { %v1632_v14 = vsel %vm1472_vm1, %v12945_v62, %v1631_v31  ;;  %v1759_v36 = vadd.f32 %v1630_v7, %v1217_v28  ;;  %6374 = vrcp.f32 %v4637_v23  ;;  %v2118_v17 = vrot.slane %v1863_v12, 1  ;;  %v12953_v31 = vld [vmem:[#allocation67_spill] sm:$0xff] }
 0x49e   : > { %v1760_v49 = vadd.f32 %v1632_v14, %v1218_v15  ;;  %6376 = vrcp.f32 %v4638_v8  ;;  %v5341_v59 = vsub.f32 0.0, %v4509_v35  ;;  %v12947_v54 = vrot.slane %v11454_v41, 1 }
 0x49f   : > { %v2603_v52 = vrot.slane %v2349_v21, 1  ;;  %v2890_v55 = vmul.f32 %v7046_v24, %v12909_v9  ;;  %v5342_v63 = vsub.f32 0.0, %v11613_v44  ;;  %v12949_v33 = vrot.slane %v12948_v22, 1 }
 0x4a0   : > { %v2117_v29 = vsel %vm1472_vm1, %v12947_v54, %v2116_v32  ;;  %v2605_v28 = vrot.slane %v2350_v45, 1  ;;  %v12950_v53 = vrot.slane %v11488_v51, 1  ;;  %v2891_v41 = vmul.f32 %v7057_v2, %v12912_v26  ;;  %v12955_v51 = vld [vmem:[#allocation27_spill] sm:$0xff] }
 0x4a1   : > { %v2119_v3 = vsel %vm1472_vm1, %v12949_v33, %v2118_v17  ;;  %v2246_v37 = vadd.f32 %v2117_v29, %v1759_v36  ;;  %v3145_v10 = vrot.slane %v2890_v55, 2  ;;  %v12952_v15 = vrot.slane %v12951_v46, 1 }
 0x4a2   : > { %v2247_v47 = vadd.f32 %v2119_v3, %v1760_v49  ;;  %v2604_v4 = vsel %vm1472_vm1, %v12950_v53, %v2603_v52  ;;  %v3378_v50 = vmul.f32 %v12953_v31, %v12943_v40  ;;  %v3379_v11 = vmul.f32 %v12954_v20, %v12946_v19 }
 0x4a3   : > { %v2606_v24 = vsel %vm1472_vm1, %v12952_v15, %v2605_v28  ;;  %v2733_v9 = vadd.f32 %v2604_v4, %v2246_v37  ;;  %v6375_v42 = vpop.eup %6374  ;;  %v12956_v23 = vrot.slane %v12955_v51, 2  ;;  %v3147_v14 = vrot.slane %v2891_v41, 2 }
 0x4a4   : > { %v2734_v7 = vadd.f32 %v2606_v24, %v2247_v47  ;;  %v3865_v2 = vmul.f32 %v7077_v0, %v1271_v57  ;;  %v6377_v26 = vpop.eup %6376  ;;  %v4765_v8 = vmul.f32 1.0614054, %v6375_v42  ;;  %v3632_v12 = vrot.slane %v3378_v50, 2 }
 0x4a5   : > { %v3146_v62 = vsel %vm2988_vm4, %v12956_v23, %v3145_v10  ;;  %v3634_v49 = vrot.slane %v3379_v11, 2  ;;  %v4766_v32 = vmul.f32 1.0614054, %v6377_v26  ;;  %v3148_v40 = vsel %vm2988_vm4, %v3143_v56, %v3147_v14 }
 0x4a6   : > { %v3275_v36 = vadd.f32 %v3146_v62, %v2733_v9  ;;  %v3866_v19 = vmul.f32 %v7079_v5, %v1272_v60  ;;  %v4119_v21 = vrot.slane %v3865_v2, 2  ;;  %v4829_v17 = vadd.f32 -1.4531521, %v4765_v8 }
 0x4a7   : > { %v5405_v45 = vmul.f32 %v5341_v59, %v4509_v35  ;;  %v3276_v54 = vadd.f32 %v3148_v40, %v2734_v7  ;;  %v3633_v0 = vsel %vm2988_vm4, %v3627_v25, %v3632_v12  ;;  %v4830_v57 = vadd.f32 -1.4531521, %v4766_v32 }
 0x4a8   : > { %v3635_v29 = vsel %vm2988_vm4, %v3630_v30, %v3634_v49  ;;  %v3762_v52 = vadd.f32 %v3633_v0, %v3275_v36  ;;  %v4121_v55 = vrot.slane %v3866_v19, 2  ;;  %v4893_v18 = vmul.f32 %v6375_v42, %v4829_v17 }
 0x4a9   : > { %v5406_v56 = vmul.f32 %v5342_v63, %v11613_v44  ;;  %v3763_v22 = vadd.f32 %v3635_v29, %v3276_v54  ;;  %v4120_v5 = vsel %vm2988_vm4, %v4114_v38, %v4119_v21  ;;  %v4894_v35 = vmul.f32 %v6377_v26, %v4830_v57 }
 0x4aa   : > { %v4122_v1 = vsel %vm2988_vm4, %v4117_v58, %v4121_v55  ;;  %v4249_v25 = vadd.f32 %v4120_v5, %v3762_v52  ;;  %v4957_v60 = vadd.f32 1.4214138, %v4893_v18  ;;  %v5529_v30 = vmul.f32 1.442695, %v5405_v45 }
 0x4ab   : > { %v4250_v27 = vadd.f32 %v4122_v1, %v3763_v22  ;;  %v4958_v59 = vadd.f32 1.4214138, %v4894_v35  ;;  %v5531_v44 = vmul.f32 1.442695, %v5406_v56  ;;  %vm5725_vm1 = vcmp.lt.f32.partialorder %v11597_v61, 0.0 }
 0x4ac   : > { %v11674_v33 = vadd.f32 %v7119_v6, %v4249_v25  ;;  %v5021_v3 = vmul.f32 %v6375_v42, %v4957_v60  ;;  %6378 = vpow2.f32 %v5529_v30  ;;  %vm5726_vm4 = vcmp.lt.f32.partialorder %v11605_v39, 0.0 }
 0x4ad   : > { %v11677_v63 = vadd.f32 %v7127_v16, %v4250_v27  ;;  %v5022_v43 = vmul.f32 %v6377_v26, %v4958_v59  ;;  %6380 = vpow2.f32 %v5531_v44  ;;  %v4382_v19 = vmul.f32 0.5, %v11594_v13 }
 0x4ae   : > { %v11680_v38 = vmul.f32 0.70710677, %v11674_v33  ;;  %v5085_v34 = vadd.f32 -0.28449672, %v5021_v3 }
 0x4af   : > { %v11683_v58 = vmul.f32 0.70710677, %v11677_v63  ;;  %v5086_v37 = vadd.f32 -0.28449672, %v5022_v43 }
 0x4b0   : > { %v4511_v28 = vand.u32 2147483647, %v11680_v38  ;;  %v5149_v47 = vmul.f32 %v6375_v42, %v5085_v34  ;;  %vm5727_vm9 = vcmp.lt.f32.partialorder %v11680_v38, 0.0 }
 0x4b1   : > { %v4512_v6 = vand.u32 2147483647, %v11683_v58  ;;  %v5150_v53 = vmul.f32 %v6377_v26, %v5086_v37  ;;  %vm5728_vm10 = vcmp.lt.f32.partialorder %v11683_v58, 0.0 }
 0x4b2   : > { %v4575_v4 = vmul.f32 0.3275911, %v4511_v28  ;;  %v5213_v16 = vadd.f32 0.2548296, %v5149_v47  ;;  %v6379_v9 = vpop.eup %6378  ;;  %v5343_v2 = vsub.f32 0.0, %v4511_v28 }
 0x4b3   : > { %v4576_v41 = vmul.f32 0.3275911, %v4512_v6  ;;  %v5214_v10 = vadd.f32 0.2548296, %v5150_v53  ;;  %v6381_v50 = vpop.eup %6380  ;;  %v5344_v12 = vsub.f32 0.0, %v4512_v6 }
 0x4b4   : > { %v4639_v46 = vadd.f32 1.0, %v4575_v4  ;;  %v5277_v15 = vmul.f32 %v6375_v42, %v5213_v16  ;;  %v5407_v54 = vmul.f32 %v5343_v2, %v4511_v28  ;;  %v4383_v4 = vmul.f32 0.5, %v11674_v33 }
 0x4b5   : > { %v4640_v24 = vadd.f32 1.0, %v4576_v41  ;;  %v5278_v31 = vmul.f32 %v6377_v26, %v5214_v10  ;;  %v4381_v26 = vmul.f32 0.5, %v11588_v48  ;;  %v5408_v29 = vmul.f32 %v5344_v12, %v4512_v6 }
 0x4b6   : > { %6382 = vrcp.f32 %v4639_v46  ;;  %v5597_v20 = vmul.f32 %v6379_v9, %v5277_v15  ;;  %v5533_v56 = vmul.f32 1.442695, %v5407_v54  ;;  %v4384_v10 = vmul.f32 0.5, %v11677_v63 }
 0x4b7   : > { %6384 = vrcp.f32 %v4640_v24  ;;  %v5598_v11 = vmul.f32 %v6381_v50, %v5278_v31  ;;  %v5535_v22 = vmul.f32 1.442695, %v5408_v29 }
 0x4b8   : > { %v5661_v7 = vsub.f32 1.0, %v5597_v20  ;;  %6386 = vpow2.f32 %v5533_v56 }
 0x4b9   : > { %v5662_v51 = vsub.f32 1.0, %v5598_v11  ;;  %6388 = vpow2.f32 %v5535_v22 }
 0x4ba   : > { %v5789_v23 = vsub.f32 0.0, %v5661_v7 }
 0x4bb   : > { %v5790_v14 = vsub.f32 0.0, %v5662_v51 }
 0x4bc   : > { %v6383_v62 = vpop.eup %6382  ;;  %v5853_v42 = vsel %vm5725_vm1, %v5789_v23, %v5661_v7 }
 0x4bd   : > { %v6385_v8 = vpop.eup %6384  ;;  %v4767_v36 = vmul.f32 1.0614054, %v6383_v62  ;;  %v5854_v49 = vsel %vm5726_vm4, %v5790_v14, %v5662_v51  ;;  %v5917_v32 = vadd.f32 1.0, %v5853_v42 }
 0x4be   : > { %v4768_v40 = vmul.f32 1.0614054, %v6385_v8  ;;  %v5918_v21 = vadd.f32 1.0, %v5854_v49  ;;  %v6387_v30 = vpop.eup %6386 }
 0x4bf   : > { %v4831_v17 = vadd.f32 -1.4531521, %v4767_v36  ;;  %v5981_v45 = vmul.f32 %v5917_v32, %v4381_v26  ;;  %v6389_v44 = vpop.eup %6388 }
 0x4c0   : > { %v4832_v61 = vadd.f32 -1.4531521, %v4768_v40  ;;  %v5982_v0 = vmul.f32 %v5918_v21, %v4382_v19 }
 0x4c1   : > { %v4895_v57 = vmul.f32 %v6383_v62, %v4831_v17 }
 0x4c2   : > { %v4896_v39 = vmul.f32 %v6385_v8, %v4832_v61  ;;  %v6015_v52 = vpack.c.bf16 %v5982_v0, %v5981_v45 }
 0x4c3   : > { %v4959_v55 = vadd.f32 1.4214138, %v4895_v57 }
 0x4c4   : > { %v4960_v18 = vadd.f32 1.4214138, %v4896_v39  ;;  %6047 = vst [vmem:[%s7389_s16 + $0xf0] sm:$0xff] %v6015_v52 }
 0x4c5   : > { %v5023_v48 = vmul.f32 %v6383_v62, %v4959_v55 }
 0x4c6   : > { %v5024_v5 = vmul.f32 %v6385_v8, %v4960_v18 }
 0x4c7   : > { %v5087_v35 = vadd.f32 -0.28449672, %v5023_v48 }
 0x4c8   : > { %v5088_v1 = vadd.f32 -0.28449672, %v5024_v5 }
 0x4c9   : > { %v5151_v13 = vmul.f32 %v6383_v62, %v5087_v35 }
 0x4ca   : > { %v5152_v25 = vmul.f32 %v6385_v8, %v5088_v1 }
 0x4cb   : > { %v5215_v60 = vadd.f32 0.2548296, %v5151_v13 }
 0x4cc   : > { %v5216_v27 = vadd.f32 0.2548296, %v5152_v25 }
 0x4cd   : > { %v5279_v59 = vmul.f32 %v6383_v62, %v5215_v60 }
 0x4ce   : > { %v5280_v3 = vmul.f32 %v6385_v8, %v5216_v27 }
 0x4cf   : > { %v5599_v43 = vmul.f32 %v6387_v30, %v5279_v59 }
 0x4d0   : > { %v5600_v34 = vmul.f32 %v6389_v44, %v5280_v3 }
 0x4d1   : > { %v5663_v37 = vsub.f32 1.0, %v5599_v43 }
 0x4d2   : > { %v5664_v28 = vsub.f32 1.0, %v5600_v34 }
 0x4d3   : > { %v5791_v47 = vsub.f32 0.0, %v5663_v37 }
 0x4d4   : > { %v5792_v6 = vsub.f32 0.0, %v5664_v28 }
 0x4d5   : > { %v5855_v53 = vsel %vm5727_vm9, %v5791_v47, %v5663_v37 }
 0x4d6   : > { %v5856_v16 = vsel %vm5728_vm10, %v5792_v6, %v5664_v28  ;;  %v5919_v41 = vadd.f32 1.0, %v5855_v53 }
 0x4d7   : > { %v5920_v46 = vadd.f32 1.0, %v5856_v16 }
 0x4d8   : > { %v5983_v15 = vmul.f32 %v5919_v41, %v4383_v4 }
 0x4d9   : > { %v5984_v24 = vmul.f32 %v5920_v46, %v4384_v10 }
 0x4db   : > { %v6016_v9 = vpack.c.bf16 %v5984_v24, %v5983_v15 }
 0x4dd   : > { %6048 = vst [vmem:[%s7389_s16 + $0xf8] sm:$0xff] %v6016_v9 }
 0x4de PF: > { %s13_s12 = sadd.s32 1, %s6405_s12  }
 0x4df   : > { %p10_p4 = scmp.ge.s32.totalorder %s13_s12, 4  }
 0x4e1   :  { %12 = sbr.rel (!%p10_p4) target bundleno = 1 (0x1), region = 72 }

</bundles_post_ra>
